<compile_context>
chip_gen: v6e
topology: v6e:2x2x1
jax: 0.10.0
libtpu: 0.0.40
codegen_flags: <defaults>
</compile_context>

<pallas_src>
import numpy as np
import jax
import jax.numpy as jnp
from jax import lax
from jax.experimental import pallas as pl
from jax.experimental.pallas import tpu as pltpu

EDGE_HIDDEN_DIM = 4
EDGE_INPUT_DIM = 1
NODE_INPUT_DIM = 4

# Matmul-operand dtype (accumulation is always f32 via preferred_element_type).
MXU_DTYPE = jnp.bfloat16

VMEM_SPEC = pl.BlockSpec(memory_space=pltpu.MemorySpace.VMEM)


def _round_up(x, m):
    return (x + m - 1) // m * m


def _mm(a, b):
    """MXU matmul: bf16 operands, f32 accumulation."""
    return jnp.dot(a.astype(MXU_DTYPE), b.astype(MXU_DTYPE),
                   preferred_element_type=jnp.float32)


# ------------------------------ fused kernel ------------------------------- #

def _net_kernel(x_ref, src_ref, dst_ref, ea_ref, *refs):
    """Fused 4x(NNConv + ReLU) + Linear + sigmoid; activations stay in VMEM.

    Per layer:
      out_i = relu( sum_{e: dst(e)=i} x_{src(e)} @ Theta(edge_attr_e)
                    + x_i @ W_root + b_root )
      Theta(a) = reshape( relu(a @ W1 + b1) @ W2 + b2, (Cin, Cout) )

    The per-edge contraction is re-associated into H small 2-D matmuls;
    gather (x[src]) and scatter-add (to dst) are one-hot matmuls whose 0/1
    masks are built in-kernel from the src/dst index vectors (no O(N*E) HBM
    traffic).  Edges are processed in chunks to bound mask size in VMEM.
    """
    (w1_1, b1_1, w2_1, b2_1, wr_1, br_1,
     w1_2, b1_2, w2_2, b2_2, wr_2, br_2,
     w1_3, b1_3, w2_3, b2_3, wr_3, br_3,
     w1_4, b1_4, w2_4, b2_4, wr_4, br_4,
     lw, lb, o_ref) = refs

    n_pad = x_ref.shape[0]
    e_pad = ea_ref.shape[0]
    e_tile = min(e_pad, 512)          # static; wrapper guarantees divisibility
    assert e_pad % e_tile == 0
    n_chunks = e_pad // e_tile

    def conv_relu(h, w1, b1, w2r, b2r, wroot, broot):
        cin = h.shape[1]
        cout = wroot.shape[1]

        def edge_chunk(c, agg):
            e0 = pl.multiple_of(c * e_tile, e_tile)
            ea = ea_ref[pl.ds(e0, e_tile), :]                       # (T, 1)
            src = src_ref[pl.ds(e0, e_tile), :]                     # (T, 1) i32
            dst = dst_ref[:, pl.ds(e0, e_tile)]                     # (1, T) i32

            # edge MLP hidden: relu(ea @ W1 + b1) (edge_input_dim == 1)
            he = jnp.maximum(ea * w1 + b1, 0.0)                     # (T, H)

            # gather x_src = h[src] via one-hot matmul (mask built on VPU)
            gmask = (lax.broadcasted_iota(jnp.int32, (e_tile, n_pad), 1)
                     == src).astype(jnp.float32)                    # (T, N)
            x_src = _mm(gmask, h)                                   # (T, cin)

            # per-edge x_src @ Theta(e), re-associated as H small matmuls
            msg = _mm(x_src, b2r)                                   # (T, cout)
            for k in range(EDGE_HIDDEN_DIM):
                msg = msg + he[:, k:k + 1] * _mm(
                    x_src, w2r[k * cin:(k + 1) * cin, :])           # (T, cout)

            # scatter-add to destination nodes via one-hot matmul
            smask = (lax.broadcasted_iota(jnp.int32, (n_pad, e_tile), 0)
                     == dst).astype(jnp.float32)                    # (N, T)
            return agg + _mm(smask, msg)                            # (N, cout)

        agg = lax.fori_loop(0, n_chunks, edge_chunk,
                            jnp.zeros((n_pad, cout), jnp.float32),
                            unroll=(n_chunks <= 4))
        out = agg + _mm(h, wroot) + broot
        return jnp.maximum(out, 0.0)

    h = x_ref[...]                                                  # (N, 4)
    h = conv_relu(h, w1_1[...], b1_1[...], w2_1[...], b2_1[...],
                  wr_1[...], br_1[...])
    # TODO(synk): F.dropout(x, training=self.training) — inference mode
    # (identity); training-mode randomness not reproduced.
    h = conv_relu(h, w1_2[...], b1_2[...], w2_2[...], b2_2[...],
                  wr_2[...], br_2[...])
    h = conv_relu(h, w1_3[...], b1_3[...], w2_3[...], b2_3[...],
                  wr_3[...], br_3[...])
    h = conv_relu(h, w1_4[...], b1_4[...], w2_4[...], b2_4[...],
                  wr_4[...], br_4[...])

    y = _mm(h, lw[...]) + lb[...]                                   # (N, 1)
    o_ref[...] = jax.nn.sigmoid(y)


# -------------------------------- wrapper ----------------------------------- #

def _fused_net(x_pad, src_col, dst_row, ea_pad, flat_params, n_pad):
    n_inputs = 4 + len(flat_params)
    return pl.pallas_call(
        _net_kernel,
        out_shape=jax.ShapeDtypeStruct((n_pad, 1), jnp.float32),
        in_specs=[VMEM_SPEC] * n_inputs,
        out_specs=VMEM_SPEC,
        compiler_params=pltpu.CompilerParams(
            vmem_limit_bytes=64 * 1024 * 1024),
    )(x_pad, src_col, dst_row, ea_pad, *flat_params)


# ----------------------------- parameter init ------------------------------- #

def _init_linear(key, fan_in, fan_out):
    kw, kb = jax.random.split(key)
    bound = 1.0 / np.sqrt(fan_in)
    w = jax.random.uniform(kw, (fan_in, fan_out), jnp.float32, -bound, bound)
    b = jax.random.uniform(kb, (1, fan_out), jnp.float32, -bound, bound)
    return w, b


def init_nnconv_params(key, cin, cout):
    # TODO(synk): the PyTorch reference shares ONE edge MLP across all NNConv
    # layers, which is shape-incompatible (it must emit cin*cout values per
    # layer); we instantiate a correctly-shaped edge MLP per layer instead.
    k1, k2, k3 = jax.random.split(key, 3)
    w1, b1 = _init_linear(k1, EDGE_INPUT_DIM, EDGE_HIDDEN_DIM)
    w2, b2 = _init_linear(k2, EDGE_HIDDEN_DIM, cin * cout)
    wroot, broot = _init_linear(k3, cin, cout)
    # Re-layout W2 so the per-edge contraction becomes 2-D matmuls in-kernel
    # (row index = k*cin + i); b2 reshaped to (cin, cout).
    w2r = w2.reshape(EDGE_HIDDEN_DIM, cin, cout).reshape(
        EDGE_HIDDEN_DIM * cin, cout)
    b2r = b2.reshape(cin, cout)
    return {"w1": w1, "b1": b1, "w2r": w2r, "b2r": b2r,
            "wroot": wroot, "broot": broot}


def init_net_params(key, num_node_features=NODE_INPUT_DIM):
    keys = jax.random.split(key, 5)
    return {
        "conv1": init_nnconv_params(keys[0], num_node_features, 16),
        "conv2": init_nnconv_params(keys[1], 16, 32),
        "conv3": init_nnconv_params(keys[2], 32, 256),
        "conv4": init_nnconv_params(keys[3], 256, 32),
        "lin2": _init_linear(keys[4], 32, 1),
    }


# --------------------------- forward (Net.forward) -------------------------- #

def output_indices(batch):
    """Python port of Net.output_indices (index glue, host-side)."""
    batch = np.asarray(batch)
    out, count, previous, current = [], 0, 0, -1
    for idx, item in enumerate(batch):
        if int(item) != current:
            count = 0
        current = int(item)
        count += 1
        if current == previous and count == 2:
            out.append(idx)
            previous += 1
    return out


def net_forward(params, x, edge_index, edge_attr, batch):
    out_ind = output_indices(batch)
    n = x.shape[0]
    e = edge_attr.shape[0]

    # Padding: nodes to a sublane multiple; edges to a lane multiple (and to a
    # multiple of the 512-row in-kernel edge chunk when large).
    n_pad = _round_up(max(n, 8), 8)
    if e <= 512:
        e_pad = _round_up(max(e, 128), 128)
    else:
        e_pad = _round_up(e, 512)

    x_pad = jnp.zeros((n_pad, x.shape[1]), jnp.float32).at[:n].set(x)
    ea_pad = jnp.zeros((e_pad, EDGE_INPUT_DIM), jnp.float32).at[:e].set(
        edge_attr.astype(jnp.float32))
    src = edge_index[0].astype(jnp.int32)
    dst = edge_index[1].astype(jnp.int32)
    # Padded edges: src -> node 0 (harmless gather), dst -> n_pad (matches no
    # node, so they scatter nowhere).
    src_col = jnp.zeros((e_pad, 1), jnp.int32).at[:e, 0].set(src)
    dst_row = jnp.full((1, e_pad), n_pad, jnp.int32).at[0, :e].set(dst)

    flat = []
    for name in ("conv1", "conv2", "conv3", "conv4"):
        p = params[name]
        flat += [p["w1"], p["b1"], p["w2r"], p["b2r"], p["wroot"], p["broot"]]
    flat += [params["lin2"][0], params["lin2"][1]]

    y = _fused_net(x_pad, src_col, dst_row, ea_pad, flat, n_pad)    # (n_pad, 1)
    y = y[:n]                                                       # drop node pad
    return y[jnp.asarray(out_ind, dtype=jnp.int32)]   # == sigmoid(lin2(x))[output_ind]


# ---------------------------------- main ------------------------------------ #

if __name__ == "__main__":
    key = jax.random.PRNGKey(0)
    kp, kx, ke = jax.random.split(key, 3)
    params = init_net_params(kp)

    # Two graphs of 4 nodes each (N=8); ring edges per graph + a few extras (E=12).
    batch = np.array([0, 0, 0, 0, 1, 1, 1, 1], dtype=np.int32)
    src = np.array([0, 1, 2, 3, 4, 5, 6, 7, 0, 2, 4, 6], dtype=np.int32)
    dst = np.array([1, 2, 3, 0, 5, 6, 7, 4, 2, 0, 6, 4], dtype=np.int32)
    edge_index = jnp.stack([jnp.asarray(src), jnp.asarray(dst)], axis=0)

    n_nodes = 8
    x = jax.random.normal(kx, (n_nodes, NODE_INPUT_DIM), dtype=jnp.float32)
    edge_attr = jax.random.normal(ke, (src.shape[0], EDGE_INPUT_DIM),
                                  dtype=jnp.float32)

    out = net_forward(params, x, edge_index, edge_attr, batch)
    jax.block_until_ready(out)
    assert out.shape == (len(output_indices(batch)), 1)
    assert bool(jnp.all((out >= 0.0) & (out <= 1.0)))
    print("KERNEL_OK")
</pallas_src>

<mosaic_0001>
module attributes {stable_mosaic.version = 11 : i64} {
  func.func @_net_kernel(%arg0: memref<8x4xf32, #tpu.memory_space<vmem>>, %arg1: memref<128x1xi32, #tpu.memory_space<vmem>>, %arg2: memref<1x128xi32, #tpu.memory_space<vmem>>, %arg3: memref<128x1xf32, #tpu.memory_space<vmem>>, %arg4: memref<1x4xf32, #tpu.memory_space<vmem>>, %arg5: memref<1x4xf32, #tpu.memory_space<vmem>>, %arg6: memref<16x16xf32, #tpu.memory_space<vmem>>, %arg7: memref<4x16xf32, #tpu.memory_space<vmem>>, %arg8: memref<4x16xf32, #tpu.memory_space<vmem>>, %arg9: memref<1x16xf32, #tpu.memory_space<vmem>>, %arg10: memref<1x4xf32, #tpu.memory_space<vmem>>, %arg11: memref<1x4xf32, #tpu.memory_space<vmem>>, %arg12: memref<64x32xf32, #tpu.memory_space<vmem>>, %arg13: memref<16x32xf32, #tpu.memory_space<vmem>>, %arg14: memref<16x32xf32, #tpu.memory_space<vmem>>, %arg15: memref<1x32xf32, #tpu.memory_space<vmem>>, %arg16: memref<1x4xf32, #tpu.memory_space<vmem>>, %arg17: memref<1x4xf32, #tpu.memory_space<vmem>>, %arg18: memref<128x256xf32, #tpu.memory_space<vmem>>, %arg19: memref<32x256xf32, #tpu.memory_space<vmem>>, %arg20: memref<32x256xf32, #tpu.memory_space<vmem>>, %arg21: memref<1x256xf32, #tpu.memory_space<vmem>>, %arg22: memref<1x4xf32, #tpu.memory_space<vmem>>, %arg23: memref<1x4xf32, #tpu.memory_space<vmem>>, %arg24: memref<1024x32xf32, #tpu.memory_space<vmem>>, %arg25: memref<256x32xf32, #tpu.memory_space<vmem>>, %arg26: memref<256x32xf32, #tpu.memory_space<vmem>>, %arg27: memref<1x32xf32, #tpu.memory_space<vmem>>, %arg28: memref<32x1xf32, #tpu.memory_space<vmem>>, %arg29: memref<1x1xf32, #tpu.memory_space<vmem>>, %arg30: memref<8x1xf32, #tpu.memory_space<vmem>>) attributes {dimension_semantics = [], scalar_prefetch = 0 : i64, scratch_operands = 0 : i64, tpu.core_type = #tpu.core_type<tc>} {
    %c0 = arith.constant 0 : index
    %c0_0 = arith.constant 0 : index
    %0 = vector.load %arg0[%c0, %c0_0] : memref<8x4xf32, #tpu.memory_space<vmem>>, vector<8x4xf32>
    %c0_1 = arith.constant 0 : index
    %c0_2 = arith.constant 0 : index
    %1 = vector.load %arg4[%c0_1, %c0_2] : memref<1x4xf32, #tpu.memory_space<vmem>>, vector<1x4xf32>
    %c0_3 = arith.constant 0 : index
    %c0_4 = arith.constant 0 : index
    %2 = vector.load %arg5[%c0_3, %c0_4] : memref<1x4xf32, #tpu.memory_space<vmem>>, vector<1x4xf32>
    %c0_5 = arith.constant 0 : index
    %c0_6 = arith.constant 0 : index
    %3 = vector.load %arg6[%c0_5, %c0_6] : memref<16x16xf32, #tpu.memory_space<vmem>>, vector<16x16xf32>
    %c0_7 = arith.constant 0 : index
    %c0_8 = arith.constant 0 : index
    %4 = vector.load %arg7[%c0_7, %c0_8] : memref<4x16xf32, #tpu.memory_space<vmem>>, vector<4x16xf32>
    %c0_9 = arith.constant 0 : index
    %c0_10 = arith.constant 0 : index
    %5 = vector.load %arg8[%c0_9, %c0_10] : memref<4x16xf32, #tpu.memory_space<vmem>>, vector<4x16xf32>
    %c0_11 = arith.constant 0 : index
    %c0_12 = arith.constant 0 : index
    %6 = vector.load %arg9[%c0_11, %c0_12] : memref<1x16xf32, #tpu.memory_space<vmem>>, vector<1x16xf32>
    %cst = arith.constant 0.000000e+00 : f32
    %7 = vector.broadcast %cst : f32 to vector<8x16xf32>
    %c0_i32 = arith.constant 0 : i32
    %c128_i32 = arith.constant 128 : i32
    %8 = arith.muli %c0_i32, %c128_i32 : i32
    %9 = tpu.assume_multiple %8, 128 : i32
    %10 = arith.index_cast %9 : i32 to index
    %c0_13 = arith.constant 0 : index
    %11 = vector.load %arg3[%10, %c0_13] : memref<128x1xf32, #tpu.memory_space<vmem>>, vector<128x1xf32>
    %12 = arith.index_cast %9 : i32 to index
    %c0_14 = arith.constant 0 : index
    %13 = vector.load %arg1[%12, %c0_14] : memref<128x1xi32, #tpu.memory_space<vmem>>, vector<128x1xi32>
    %c0_15 = arith.constant 0 : index
    %14 = arith.index_cast %9 : i32 to index
    %15 = vector.load %arg2[%c0_15, %14] : memref<1x128xi32, #tpu.memory_space<vmem>>, vector<1x128xi32>
    %16 = vector.broadcast %11 : vector<128x1xf32> to vector<128x4xf32>
    %17 = vector.broadcast %1 : vector<1x4xf32> to vector<128x4xf32>
    %18 = arith.mulf %16, %17 : vector<128x4xf32>
    %19 = vector.broadcast %2 : vector<1x4xf32> to vector<128x4xf32>
    %20 = arith.addf %18, %19 : vector<128x4xf32>
    %cst_16 = arith.constant 0.000000e+00 : f32
    %21 = vector.broadcast %cst_16 : f32 to vector<128x4xf32>
    %22 = arith.maximumf %20, %21 : vector<128x4xf32>
    %23 = tpu.iota {dimensions = array<i32: 1>} : vector<128x8xi32>
    %24 = vector.broadcast %13 : vector<128x1xi32> to vector<128x8xi32>
    %25 = arith.cmpi eq, %23, %24 : vector<128x8xi32>
    %26 = arith.extui %25 : vector<128x8xi1> to vector<128x8xi32>
    %27 = arith.sitofp %26 : vector<128x8xi32> to vector<128x8xf32>
    %28 = arith.truncf %27 : vector<128x8xf32> to vector<128x8xbf16>
    %29 = arith.truncf %0 : vector<8x4xf32> to vector<8x4xbf16>
    %cst_17 = arith.constant dense<0.000000e+00> : vector<128x4xf32>
    %30 = tpu.matmul %28, %29, %cst_17 {dimension_numbers = #tpu.dot_dimension_numbers<[1], [0], [0], [1], [0, 0, 1, 1], [], []>} : vector<128x8xbf16>, vector<8x4xbf16>, vector<128x4xf32> -> vector<128x4xf32>
    %31 = arith.truncf %30 : vector<128x4xf32> to vector<128x4xbf16>
    %32 = arith.truncf %4 : vector<4x16xf32> to vector<4x16xbf16>
    %cst_18 = arith.constant dense<0.000000e+00> : vector<128x16xf32>
    %33 = tpu.matmul %31, %32, %cst_18 {dimension_numbers = #tpu.dot_dimension_numbers<[1], [0], [0], [1], [0, 0, 1, 1], [], []>} : vector<128x4xbf16>, vector<4x16xbf16>, vector<128x16xf32> -> vector<128x16xf32>
    %34 = vector.extract_strided_slice %22 {offsets = [0, 0], sizes = [128, 1], strides = [1, 1]} : vector<128x4xf32> to vector<128x1xf32>
    %35 = vector.extract_strided_slice %3 {offsets = [0, 0], sizes = [4, 16], strides = [1, 1]} : vector<16x16xf32> to vector<4x16xf32>
    %36 = arith.truncf %30 : vector<128x4xf32> to vector<128x4xbf16>
    %37 = arith.truncf %35 : vector<4x16xf32> to vector<4x16xbf16>
    %cst_19 = arith.constant dense<0.000000e+00> : vector<128x16xf32>
    %38 = tpu.matmul %36, %37, %cst_19 {dimension_numbers = #tpu.dot_dimension_numbers<[1], [0], [0], [1], [0, 0, 1, 1], [], []>} : vector<128x4xbf16>, vector<4x16xbf16>, vector<128x16xf32> -> vector<128x16xf32>
    %39 = vector.broadcast %34 : vector<128x1xf32> to vector<128x16xf32>
    %40 = arith.mulf %39, %38 : vector<128x16xf32>
    %41 = arith.addf %33, %40 : vector<128x16xf32>
    %42 = vector.extract_strided_slice %22 {offsets = [0, 1], sizes = [128, 1], strides = [1, 1]} : vector<128x4xf32> to vector<128x1xf32>
    %43 = vector.extract_strided_slice %3 {offsets = [4, 0], sizes = [4, 16], strides = [1, 1]} : vector<16x16xf32> to vector<4x16xf32>
    %44 = arith.truncf %30 : vector<128x4xf32> to vector<128x4xbf16>
    %45 = arith.truncf %43 : vector<4x16xf32> to vector<4x16xbf16>
    %cst_20 = arith.constant dense<0.000000e+00> : vector<128x16xf32>
    %46 = tpu.matmul %44, %45, %cst_20 {dimension_numbers = #tpu.dot_dimension_numbers<[1], [0], [0], [1], [0, 0, 1, 1], [], []>} : vector<128x4xbf16>, vector<4x16xbf16>, vector<128x16xf32> -> vector<128x16xf32>
    %47 = vector.broadcast %42 : vector<128x1xf32> to vector<128x16xf32>
    %48 = arith.mulf %47, %46 : vector<128x16xf32>
    %49 = arith.addf %41, %48 : vector<128x16xf32>
    %50 = vector.extract_strided_slice %22 {offsets = [0, 2], sizes = [128, 1], strides = [1, 1]} : vector<128x4xf32> to vector<128x1xf32>
    %51 = vector.extract_strided_slice %3 {offsets = [8, 0], sizes = [4, 16], strides = [1, 1]} : vector<16x16xf32> to vector<4x16xf32>
    %52 = arith.truncf %30 : vector<128x4xf32> to vector<128x4xbf16>
    %53 = arith.truncf %51 : vector<4x16xf32> to vector<4x16xbf16>
    %cst_21 = arith.constant dense<0.000000e+00> : vector<128x16xf32>
    %54 = tpu.matmul %52, %53, %cst_21 {dimension_numbers = #tpu.dot_dimension_numbers<[1], [0], [0], [1], [0, 0, 1, 1], [], []>} : vector<128x4xbf16>, vector<4x16xbf16>, vector<128x16xf32> -> vector<128x16xf32>
    %55 = vector.broadcast %50 : vector<128x1xf32> to vector<128x16xf32>
    %56 = arith.mulf %55, %54 : vector<128x16xf32>
    %57 = arith.addf %49, %56 : vector<128x16xf32>
    %58 = vector.extract_strided_slice %22 {offsets = [0, 3], sizes = [128, 1], strides = [1, 1]} : vector<128x4xf32> to vector<128x1xf32>
    %59 = vector.extract_strided_slice %3 {offsets = [12, 0], sizes = [4, 16], strides = [1, 1]} : vector<16x16xf32> to vector<4x16xf32>
    %60 = arith.truncf %30 : vector<128x4xf32> to vector<128x4xbf16>
    %61 = arith.truncf %59 : vector<4x16xf32> to vector<4x16xbf16>
    %cst_22 = arith.constant dense<0.000000e+00> : vector<128x16xf32>
    %62 = tpu.matmul %60, %61, %cst_22 {dimension_numbers = #tpu.dot_dimension_numbers<[1], [0], [0], [1], [0, 0, 1, 1], [], []>} : vector<128x4xbf16>, vector<4x16xbf16>, vector<128x16xf32> -> vector<128x16xf32>
    %63 = vector.broadcast %58 : vector<128x1xf32> to vector<128x16xf32>
    %64 = arith.mulf %63, %62 : vector<128x16xf32>
    %65 = arith.addf %57, %64 : vector<128x16xf32>
    %66 = tpu.iota {dimensions = array<i32: 0>} : vector<8x128xi32>
    %67 = vector.broadcast %15 : vector<1x128xi32> to vector<8x128xi32>
    %68 = arith.cmpi eq, %66, %67 : vector<8x128xi32>
    %69 = arith.extui %68 : vector<8x128xi1> to vector<8x128xi32>
    %70 = arith.sitofp %69 : vector<8x128xi32> to vector<8x128xf32>
    %71 = arith.truncf %70 : vector<8x128xf32> to vector<8x128xbf16>
    %72 = arith.truncf %65 : vector<128x16xf32> to vector<128x16xbf16>
    %cst_23 = arith.constant dense<0.000000e+00> : vector<8x16xf32>
    %73 = tpu.matmul %71, %72, %cst_23 {dimension_numbers = #tpu.dot_dimension_numbers<[1], [0], [0], [1], [0, 0, 1, 1], [], []>} : vector<8x128xbf16>, vector<128x16xbf16>, vector<8x16xf32> -> vector<8x16xf32>
    %74 = arith.addf %7, %73 : vector<8x16xf32>
    %c1_i32 = arith.constant 1 : i32
    %75 = arith.truncf %0 : vector<8x4xf32> to vector<8x4xbf16>
    %76 = arith.truncf %5 : vector<4x16xf32> to vector<4x16xbf16>
    %cst_24 = arith.constant dense<0.000000e+00> : vector<8x16xf32>
    %77 = tpu.matmul %75, %76, %cst_24 {dimension_numbers = #tpu.dot_dimension_numbers<[1], [0], [0], [1], [0, 0, 1, 1], [], []>} : vector<8x4xbf16>, vector<4x16xbf16>, vector<8x16xf32> -> vector<8x16xf32>
    %78 = arith.addf %74, %77 : vector<8x16xf32>
    %79 = vector.broadcast %6 : vector<1x16xf32> to vector<8x16xf32>
    %80 = arith.addf %78, %79 : vector<8x16xf32>
    %cst_25 = arith.constant 0.000000e+00 : f32
    %81 = vector.broadcast %cst_25 : f32 to vector<8x16xf32>
    %82 = arith.maximumf %80, %81 : vector<8x16xf32>
    %c0_26 = arith.constant 0 : index
    %c0_27 = arith.constant 0 : index
    %83 = vector.load %arg10[%c0_26, %c0_27] : memref<1x4xf32, #tpu.memory_space<vmem>>, vector<1x4xf32>
    %c0_28 = arith.constant 0 : index
    %c0_29 = arith.constant 0 : index
    %84 = vector.load %arg11[%c0_28, %c0_29] : memref<1x4xf32, #tpu.memory_space<vmem>>, vector<1x4xf32>
    %c0_30 = arith.constant 0 : index
    %c0_31 = arith.constant 0 : index
    %85 = vector.load %arg12[%c0_30, %c0_31] : memref<64x32xf32, #tpu.memory_space<vmem>>, vector<64x32xf32>
    %c0_32 = arith.constant 0 : index
    %c0_33 = arith.constant 0 : index
    %86 = vector.load %arg13[%c0_32, %c0_33] : memref<16x32xf32, #tpu.memory_space<vmem>>, vector<16x32xf32>
    %c0_34 = arith.constant 0 : index
    %c0_35 = arith.constant 0 : index
    %87 = vector.load %arg14[%c0_34, %c0_35] : memref<16x32xf32, #tpu.memory_space<vmem>>, vector<16x32xf32>
    %c0_36 = arith.constant 0 : index
    %c0_37 = arith.constant 0 : index
    %88 = vector.load %arg15[%c0_36, %c0_37] : memref<1x32xf32, #tpu.memory_space<vmem>>, vector<1x32xf32>
    %cst_38 = arith.constant 0.000000e+00 : f32
    %89 = vector.broadcast %cst_38 : f32 to vector<8x32xf32>
    %c0_i32_39 = arith.constant 0 : i32
    %c128_i32_40 = arith.constant 128 : i32
    %90 = arith.muli %c0_i32_39, %c128_i32_40 : i32
    %91 = tpu.assume_multiple %90, 128 : i32
    %92 = arith.index_cast %91 : i32 to index
    %c0_41 = arith.constant 0 : index
    %93 = vector.load %arg3[%92, %c0_41] : memref<128x1xf32, #tpu.memory_space<vmem>>, vector<128x1xf32>
    %94 = arith.index_cast %91 : i32 to index
    %c0_42 = arith.constant 0 : index
    %95 = vector.load %arg1[%94, %c0_42] : memref<128x1xi32, #tpu.memory_space<vmem>>, vector<128x1xi32>
    %c0_43 = arith.constant 0 : index
    %96 = arith.index_cast %91 : i32 to index
    %97 = vector.load %arg2[%c0_43, %96] : memref<1x128xi32, #tpu.memory_space<vmem>>, vector<1x128xi32>
    %98 = vector.broadcast %93 : vector<128x1xf32> to vector<128x4xf32>
    %99 = vector.broadcast %83 : vector<1x4xf32> to vector<128x4xf32>
    %100 = arith.mulf %98, %99 : vector<128x4xf32>
    %101 = vector.broadcast %84 : vector<1x4xf32> to vector<128x4xf32>
    %102 = arith.addf %100, %101 : vector<128x4xf32>
    %cst_44 = arith.constant 0.000000e+00 : f32
    %103 = vector.broadcast %cst_44 : f32 to vector<128x4xf32>
    %104 = arith.maximumf %102, %103 : vector<128x4xf32>
    %105 = tpu.iota {dimensions = array<i32: 1>} : vector<128x8xi32>
    %106 = vector.broadcast %95 : vector<128x1xi32> to vector<128x8xi32>
    %107 = arith.cmpi eq, %105, %106 : vector<128x8xi32>
    %108 = arith.extui %107 : vector<128x8xi1> to vector<128x8xi32>
    %109 = arith.sitofp %108 : vector<128x8xi32> to vector<128x8xf32>
    %110 = arith.truncf %109 : vector<128x8xf32> to vector<128x8xbf16>
    %111 = arith.truncf %82 : vector<8x16xf32> to vector<8x16xbf16>
    %cst_45 = arith.constant dense<0.000000e+00> : vector<128x16xf32>
    %112 = tpu.matmul %110, %111, %cst_45 {dimension_numbers = #tpu.dot_dimension_numbers<[1], [0], [0], [1], [0, 0, 1, 1], [], []>} : vector<128x8xbf16>, vector<8x16xbf16>, vector<128x16xf32> -> vector<128x16xf32>
    %113 = arith.truncf %112 : vector<128x16xf32> to vector<128x16xbf16>
    %114 = arith.truncf %86 : vector<16x32xf32> to vector<16x32xbf16>
    %cst_46 = arith.constant dense<0.000000e+00> : vector<128x32xf32>
    %115 = tpu.matmul %113, %114, %cst_46 {dimension_numbers = #tpu.dot_dimension_numbers<[1], [0], [0], [1], [0, 0, 1, 1], [], []>} : vector<128x16xbf16>, vector<16x32xbf16>, vector<128x32xf32> -> vector<128x32xf32>
    %116 = vector.extract_strided_slice %104 {offsets = [0, 0], sizes = [128, 1], strides = [1, 1]} : vector<128x4xf32> to vector<128x1xf32>
    %117 = vector.extract_strided_slice %85 {offsets = [0, 0], sizes = [16, 32], strides = [1, 1]} : vector<64x32xf32> to vector<16x32xf32>
    %118 = arith.truncf %112 : vector<128x16xf32> to vector<128x16xbf16>
    %119 = arith.truncf %117 : vector<16x32xf32> to vector<16x32xbf16>
    %cst_47 = arith.constant dense<0.000000e+00> : vector<128x32xf32>
    %120 = tpu.matmul %118, %119, %cst_47 {dimension_numbers = #tpu.dot_dimension_numbers<[1], [0], [0], [1], [0, 0, 1, 1], [], []>} : vector<128x16xbf16>, vector<16x32xbf16>, vector<128x32xf32> -> vector<128x32xf32>
    %121 = vector.broadcast %116 : vector<128x1xf32> to vector<128x32xf32>
    %122 = arith.mulf %121, %120 : vector<128x32xf32>
    %123 = arith.addf %115, %122 : vector<128x32xf32>
    %124 = vector.extract_strided_slice %104 {offsets = [0, 1], sizes = [128, 1], strides = [1, 1]} : vector<128x4xf32> to vector<128x1xf32>
    %125 = vector.extract_strided_slice %85 {offsets = [16, 0], sizes = [16, 32], strides = [1, 1]} : vector<64x32xf32> to vector<16x32xf32>
    %126 = arith.truncf %112 : vector<128x16xf32> to vector<128x16xbf16>
    %127 = arith.truncf %125 : vector<16x32xf32> to vector<16x32xbf16>
    %cst_48 = arith.constant dense<0.000000e+00> : vector<128x32xf32>
    %128 = tpu.matmul %126, %127, %cst_48 {dimension_numbers = #tpu.dot_dimension_numbers<[1], [0], [0], [1], [0, 0, 1, 1], [], []>} : vector<128x16xbf16>, vector<16x32xbf16>, vector<128x32xf32> -> vector<128x32xf32>
    %129 = vector.broadcast %124 : vector<128x1xf32> to vector<128x32xf32>
    %130 = arith.mulf %129, %128 : vector<128x32xf32>
    %131 = arith.addf %123, %130 : vector<128x32xf32>
    %132 = vector.extract_strided_slice %104 {offsets = [0, 2], sizes = [128, 1], strides = [1, 1]} : vector<128x4xf32> to vector<128x1xf32>
    %133 = vector.extract_strided_slice %85 {offsets = [32, 0], sizes = [16, 32], strides = [1, 1]} : vector<64x32xf32> to vector<16x32xf32>
    %134 = arith.truncf %112 : vector<128x16xf32> to vector<128x16xbf16>
    %135 = arith.truncf %133 : vector<16x32xf32> to vector<16x32xbf16>
    %cst_49 = arith.constant dense<0.000000e+00> : vector<128x32xf32>
    %136 = tpu.matmul %134, %135, %cst_49 {dimension_numbers = #tpu.dot_dimension_numbers<[1], [0], [0], [1], [0, 0, 1, 1], [], []>} : vector<128x16xbf16>, vector<16x32xbf16>, vector<128x32xf32> -> vector<128x32xf32>
    %137 = vector.broadcast %132 : vector<128x1xf32> to vector<128x32xf32>
    %138 = arith.mulf %137, %136 : vector<128x32xf32>
    %139 = arith.addf %131, %138 : vector<128x32xf32>
    %140 = vector.extract_strided_slice %104 {offsets = [0, 3], sizes = [128, 1], strides = [1, 1]} : vector<128x4xf32> to vector<128x1xf32>
    %141 = vector.extract_strided_slice %85 {offsets = [48, 0], sizes = [16, 32], strides = [1, 1]} : vector<64x32xf32> to vector<16x32xf32>
    %142 = arith.truncf %112 : vector<128x16xf32> to vector<128x16xbf16>
    %143 = arith.truncf %141 : vector<16x32xf32> to vector<16x32xbf16>
    %cst_50 = arith.constant dense<0.000000e+00> : vector<128x32xf32>
    %144 = tpu.matmul %142, %143, %cst_50 {dimension_numbers = #tpu.dot_dimension_numbers<[1], [0], [0], [1], [0, 0, 1, 1], [], []>} : vector<128x16xbf16>, vector<16x32xbf16>, vector<128x32xf32> -> vector<128x32xf32>
    %145 = vector.broadcast %140 : vector<128x1xf32> to vector<128x32xf32>
    %146 = arith.mulf %145, %144 : vector<128x32xf32>
    %147 = arith.addf %139, %146 : vector<128x32xf32>
    %148 = tpu.iota {dimensions = array<i32: 0>} : vector<8x128xi32>
    %149 = vector.broadcast %97 : vector<1x128xi32> to vector<8x128xi32>
    %150 = arith.cmpi eq, %148, %149 : vector<8x128xi32>
    %151 = arith.extui %150 : vector<8x128xi1> to vector<8x128xi32>
    %152 = arith.sitofp %151 : vector<8x128xi32> to vector<8x128xf32>
    %153 = arith.truncf %152 : vector<8x128xf32> to vector<8x128xbf16>
    %154 = arith.truncf %147 : vector<128x32xf32> to vector<128x32xbf16>
    %cst_51 = arith.constant dense<0.000000e+00> : vector<8x32xf32>
    %155 = tpu.matmul %153, %154, %cst_51 {dimension_numbers = #tpu.dot_dimension_numbers<[1], [0], [0], [1], [0, 0, 1, 1], [], []>} : vector<8x128xbf16>, vector<128x32xbf16>, vector<8x32xf32> -> vector<8x32xf32>
    %156 = arith.addf %89, %155 : vector<8x32xf32>
    %c1_i32_52 = arith.constant 1 : i32
    %157 = arith.truncf %82 : vector<8x16xf32> to vector<8x16xbf16>
    %158 = arith.truncf %87 : vector<16x32xf32> to vector<16x32xbf16>
    %cst_53 = arith.constant dense<0.000000e+00> : vector<8x32xf32>
    %159 = tpu.matmul %157, %158, %cst_53 {dimension_numbers = #tpu.dot_dimension_numbers<[1], [0], [0], [1], [0, 0, 1, 1], [], []>} : vector<8x16xbf16>, vector<16x32xbf16>, vector<8x32xf32> -> vector<8x32xf32>
    %160 = arith.addf %156, %159 : vector<8x32xf32>
    %161 = vector.broadcast %88 : vector<1x32xf32> to vector<8x32xf32>
    %162 = arith.addf %160, %161 : vector<8x32xf32>
    %cst_54 = arith.constant 0.000000e+00 : f32
    %163 = vector.broadcast %cst_54 : f32 to vector<8x32xf32>
    %164 = arith.maximumf %162, %163 : vector<8x32xf32>
    %c0_55 = arith.constant 0 : index
    %c0_56 = arith.constant 0 : index
    %165 = vector.load %arg16[%c0_55, %c0_56] : memref<1x4xf32, #tpu.memory_space<vmem>>, vector<1x4xf32>
    %c0_57 = arith.constant 0 : index
    %c0_58 = arith.constant 0 : index
    %166 = vector.load %arg17[%c0_57, %c0_58] : memref<1x4xf32, #tpu.memory_space<vmem>>, vector<1x4xf32>
    %c0_59 = arith.constant 0 : index
    %c0_60 = arith.constant 0 : index
    %167 = vector.load %arg18[%c0_59, %c0_60] : memref<128x256xf32, #tpu.memory_space<vmem>>, vector<128x256xf32>
    %c0_61 = arith.constant 0 : index
    %c0_62 = arith.constant 0 : index
    %168 = vector.load %arg19[%c0_61, %c0_62] : memref<32x256xf32, #tpu.memory_space<vmem>>, vector<32x256xf32>
    %c0_63 = arith.constant 0 : index
    %c0_64 = arith.constant 0 : index
    %169 = vector.load %arg20[%c0_63, %c0_64] : memref<32x256xf32, #tpu.memory_space<vmem>>, vector<32x256xf32>
    %c0_65 = arith.constant 0 : index
    %c0_66 = arith.constant 0 : index
    %170 = vector.load %arg21[%c0_65, %c0_66] : memref<1x256xf32, #tpu.memory_space<vmem>>, vector<1x256xf32>
    %cst_67 = arith.constant 0.000000e+00 : f32
    %171 = vector.broadcast %cst_67 : f32 to vector<8x256xf32>
    %c0_i32_68 = arith.constant 0 : i32
    %c128_i32_69 = arith.constant 128 : i32
    %172 = arith.muli %c0_i32_68, %c128_i32_69 : i32
    %173 = tpu.assume_multiple %172, 128 : i32
    %174 = arith.index_cast %173 : i32 to index
    %c0_70 = arith.constant 0 : index
    %175 = vector.load %arg3[%174, %c0_70] : memref<128x1xf32, #tpu.memory_space<vmem>>, vector<128x1xf32>
    %176 = arith.index_cast %173 : i32 to index
    %c0_71 = arith.constant 0 : index
    %177 = vector.load %arg1[%176, %c0_71] : memref<128x1xi32, #tpu.memory_space<vmem>>, vector<128x1xi32>
    %c0_72 = arith.constant 0 : index
    %178 = arith.index_cast %173 : i32 to index
    %179 = vector.load %arg2[%c0_72, %178] : memref<1x128xi32, #tpu.memory_space<vmem>>, vector<1x128xi32>
    %180 = vector.broadcast %175 : vector<128x1xf32> to vector<128x4xf32>
    %181 = vector.broadcast %165 : vector<1x4xf32> to vector<128x4xf32>
    %182 = arith.mulf %180, %181 : vector<128x4xf32>
    %183 = vector.broadcast %166 : vector<1x4xf32> to vector<128x4xf32>
    %184 = arith.addf %182, %183 : vector<128x4xf32>
    %cst_73 = arith.constant 0.000000e+00 : f32
    %185 = vector.broadcast %cst_73 : f32 to vector<128x4xf32>
    %186 = arith.maximumf %184, %185 : vector<128x4xf32>
    %187 = tpu.iota {dimensions = array<i32: 1>} : vector<128x8xi32>
    %188 = vector.broadcast %177 : vector<128x1xi32> to vector<128x8xi32>
    %189 = arith.cmpi eq, %187, %188 : vector<128x8xi32>
    %190 = arith.extui %189 : vector<128x8xi1> to vector<128x8xi32>
    %191 = arith.sitofp %190 : vector<128x8xi32> to vector<128x8xf32>
    %192 = arith.truncf %191 : vector<128x8xf32> to vector<128x8xbf16>
    %193 = arith.truncf %164 : vector<8x32xf32> to vector<8x32xbf16>
    %cst_74 = arith.constant dense<0.000000e+00> : vector<128x32xf32>
    %194 = tpu.matmul %192, %193, %cst_74 {dimension_numbers = #tpu.dot_dimension_numbers<[1], [0], [0], [1], [0, 0, 1, 1], [], []>} : vector<128x8xbf16>, vector<8x32xbf16>, vector<128x32xf32> -> vector<128x32xf32>
    %195 = arith.truncf %194 : vector<128x32xf32> to vector<128x32xbf16>
    %196 = arith.truncf %168 : vector<32x256xf32> to vector<32x256xbf16>
    %cst_75 = arith.constant dense<0.000000e+00> : vector<128x256xf32>
    %197 = tpu.matmul %195, %196, %cst_75 {dimension_numbers = #tpu.dot_dimension_numbers<[1], [0], [0], [1], [0, 0, 1, 1], [], []>} : vector<128x32xbf16>, vector<32x256xbf16>, vector<128x256xf32> -> vector<128x256xf32>
    %198 = vector.extract_strided_slice %186 {offsets = [0, 0], sizes = [128, 1], strides = [1, 1]} : vector<128x4xf32> to vector<128x1xf32>
    %199 = vector.extract_strided_slice %167 {offsets = [0, 0], sizes = [32, 256], strides = [1, 1]} : vector<128x256xf32> to vector<32x256xf32>
    %200 = arith.truncf %194 : vector<128x32xf32> to vector<128x32xbf16>
    %201 = arith.truncf %199 : vector<32x256xf32> to vector<32x256xbf16>
    %cst_76 = arith.constant dense<0.000000e+00> : vector<128x256xf32>
    %202 = tpu.matmul %200, %201, %cst_76 {dimension_numbers = #tpu.dot_dimension_numbers<[1], [0], [0], [1], [0, 0, 1, 1], [], []>} : vector<128x32xbf16>, vector<32x256xbf16>, vector<128x256xf32> -> vector<128x256xf32>
    %203 = vector.broadcast %198 : vector<128x1xf32> to vector<128x256xf32>
    %204 = arith.mulf %203, %202 : vector<128x256xf32>
    %205 = arith.addf %197, %204 : vector<128x256xf32>
    %206 = vector.extract_strided_slice %186 {offsets = [0, 1], sizes = [128, 1], strides = [1, 1]} : vector<128x4xf32> to vector<128x1xf32>
    %207 = vector.extract_strided_slice %167 {offsets = [32, 0], sizes = [32, 256], strides = [1, 1]} : vector<128x256xf32> to vector<32x256xf32>
    %208 = arith.truncf %194 : vector<128x32xf32> to vector<128x32xbf16>
    %209 = arith.truncf %207 : vector<32x256xf32> to vector<32x256xbf16>
    %cst_77 = arith.constant dense<0.000000e+00> : vector<128x256xf32>
    %210 = tpu.matmul %208, %209, %cst_77 {dimension_numbers = #tpu.dot_dimension_numbers<[1], [0], [0], [1], [0, 0, 1, 1], [], []>} : vector<128x32xbf16>, vector<32x256xbf16>, vector<128x256xf32> -> vector<128x256xf32>
    %211 = vector.broadcast %206 : vector<128x1xf32> to vector<128x256xf32>
    %212 = arith.mulf %211, %210 : vector<128x256xf32>
    %213 = arith.addf %205, %212 : vector<128x256xf32>
    %214 = vector.extract_strided_slice %186 {offsets = [0, 2], sizes = [128, 1], strides = [1, 1]} : vector<128x4xf32> to vector<128x1xf32>
    %215 = vector.extract_strided_slice %167 {offsets = [64, 0], sizes = [32, 256], strides = [1, 1]} : vector<128x256xf32> to vector<32x256xf32>
    %216 = arith.truncf %194 : vector<128x32xf32> to vector<128x32xbf16>
    %217 = arith.truncf %215 : vector<32x256xf32> to vector<32x256xbf16>
    %cst_78 = arith.constant dense<0.000000e+00> : vector<128x256xf32>
    %218 = tpu.matmul %216, %217, %cst_78 {dimension_numbers = #tpu.dot_dimension_numbers<[1], [0], [0], [1], [0, 0, 1, 1], [], []>} : vector<128x32xbf16>, vector<32x256xbf16>, vector<128x256xf32> -> vector<128x256xf32>
    %219 = vector.broadcast %214 : vector<128x1xf32> to vector<128x256xf32>
    %220 = arith.mulf %219, %218 : vector<128x256xf32>
    %221 = arith.addf %213, %220 : vector<128x256xf32>
    %222 = vector.extract_strided_slice %186 {offsets = [0, 3], sizes = [128, 1], strides = [1, 1]} : vector<128x4xf32> to vector<128x1xf32>
    %223 = vector.extract_strided_slice %167 {offsets = [96, 0], sizes = [32, 256], strides = [1, 1]} : vector<128x256xf32> to vector<32x256xf32>
    %224 = arith.truncf %194 : vector<128x32xf32> to vector<128x32xbf16>
    %225 = arith.truncf %223 : vector<32x256xf32> to vector<32x256xbf16>
    %cst_79 = arith.constant dense<0.000000e+00> : vector<128x256xf32>
    %226 = tpu.matmul %224, %225, %cst_79 {dimension_numbers = #tpu.dot_dimension_numbers<[1], [0], [0], [1], [0, 0, 1, 1], [], []>} : vector<128x32xbf16>, vector<32x256xbf16>, vector<128x256xf32> -> vector<128x256xf32>
    %227 = vector.broadcast %222 : vector<128x1xf32> to vector<128x256xf32>
    %228 = arith.mulf %227, %226 : vector<128x256xf32>
    %229 = arith.addf %221, %228 : vector<128x256xf32>
    %230 = tpu.iota {dimensions = array<i32: 0>} : vector<8x128xi32>
    %231 = vector.broadcast %179 : vector<1x128xi32> to vector<8x128xi32>
    %232 = arith.cmpi eq, %230, %231 : vector<8x128xi32>
    %233 = arith.extui %232 : vector<8x128xi1> to vector<8x128xi32>
    %234 = arith.sitofp %233 : vector<8x128xi32> to vector<8x128xf32>
    %235 = arith.truncf %234 : vector<8x128xf32> to vector<8x128xbf16>
    %236 = arith.truncf %229 : vector<128x256xf32> to vector<128x256xbf16>
    %cst_80 = arith.constant dense<0.000000e+00> : vector<8x256xf32>
    %237 = tpu.matmul %235, %236, %cst_80 {dimension_numbers = #tpu.dot_dimension_numbers<[1], [0], [0], [1], [0, 0, 1, 1], [], []>} : vector<8x128xbf16>, vector<128x256xbf16>, vector<8x256xf32> -> vector<8x256xf32>
    %238 = arith.addf %171, %237 : vector<8x256xf32>
    %c1_i32_81 = arith.constant 1 : i32
    %239 = arith.truncf %164 : vector<8x32xf32> to vector<8x32xbf16>
    %240 = arith.truncf %169 : vector<32x256xf32> to vector<32x256xbf16>
    %cst_82 = arith.constant dense<0.000000e+00> : vector<8x256xf32>
    %241 = tpu.matmul %239, %240, %cst_82 {dimension_numbers = #tpu.dot_dimension_numbers<[1], [0], [0], [1], [0, 0, 1, 1], [], []>} : vector<8x32xbf16>, vector<32x256xbf16>, vector<8x256xf32> -> vector<8x256xf32>
    %242 = arith.addf %238, %241 : vector<8x256xf32>
    %243 = vector.broadcast %170 : vector<1x256xf32> to vector<8x256xf32>
    %244 = arith.addf %242, %243 : vector<8x256xf32>
    %cst_83 = arith.constant 0.000000e+00 : f32
    %245 = vector.broadcast %cst_83 : f32 to vector<8x256xf32>
    %246 = arith.maximumf %244, %245 : vector<8x256xf32>
    %c0_84 = arith.constant 0 : index
    %c0_85 = arith.constant 0 : index
    %247 = vector.load %arg22[%c0_84, %c0_85] : memref<1x4xf32, #tpu.memory_space<vmem>>, vector<1x4xf32>
    %c0_86 = arith.constant 0 : index
    %c0_87 = arith.constant 0 : index
    %248 = vector.load %arg23[%c0_86, %c0_87] : memref<1x4xf32, #tpu.memory_space<vmem>>, vector<1x4xf32>
    %c0_88 = arith.constant 0 : index
    %c0_89 = arith.constant 0 : index
    %249 = vector.load %arg24[%c0_88, %c0_89] : memref<1024x32xf32, #tpu.memory_space<vmem>>, vector<1024x32xf32>
    %c0_90 = arith.constant 0 : index
    %c0_91 = arith.constant 0 : index
    %250 = vector.load %arg25[%c0_90, %c0_91] : memref<256x32xf32, #tpu.memory_space<vmem>>, vector<256x32xf32>
    %c0_92 = arith.constant 0 : index
    %c0_93 = arith.constant 0 : index
    %251 = vector.load %arg26[%c0_92, %c0_93] : memref<256x32xf32, #tpu.memory_space<vmem>>, vector<256x32xf32>
    %c0_94 = arith.constant 0 : index
    %c0_95 = arith.constant 0 : index
    %252 = vector.load %arg27[%c0_94, %c0_95] : memref<1x32xf32, #tpu.memory_space<vmem>>, vector<1x32xf32>
    %cst_96 = arith.constant 0.000000e+00 : f32
    %253 = vector.broadcast %cst_96 : f32 to vector<8x32xf32>
    %c0_i32_97 = arith.constant 0 : i32
    %c128_i32_98 = arith.constant 128 : i32
    %254 = arith.muli %c0_i32_97, %c128_i32_98 : i32
    %255 = tpu.assume_multiple %254, 128 : i32
    %256 = arith.index_cast %255 : i32 to index
    %c0_99 = arith.constant 0 : index
    %257 = vector.load %arg3[%256, %c0_99] : memref<128x1xf32, #tpu.memory_space<vmem>>, vector<128x1xf32>
    %258 = arith.index_cast %255 : i32 to index
    %c0_100 = arith.constant 0 : index
    %259 = vector.load %arg1[%258, %c0_100] : memref<128x1xi32, #tpu.memory_space<vmem>>, vector<128x1xi32>
    %c0_101 = arith.constant 0 : index
    %260 = arith.index_cast %255 : i32 to index
    %261 = vector.load %arg2[%c0_101, %260] : memref<1x128xi32, #tpu.memory_space<vmem>>, vector<1x128xi32>
    %262 = vector.broadcast %257 : vector<128x1xf32> to vector<128x4xf32>
    %263 = vector.broadcast %247 : vector<1x4xf32> to vector<128x4xf32>
    %264 = arith.mulf %262, %263 : vector<128x4xf32>
    %265 = vector.broadcast %248 : vector<1x4xf32> to vector<128x4xf32>
    %266 = arith.addf %264, %265 : vector<128x4xf32>
    %cst_102 = arith.constant 0.000000e+00 : f32
    %267 = vector.broadcast %cst_102 : f32 to vector<128x4xf32>
    %268 = arith.maximumf %266, %267 : vector<128x4xf32>
    %269 = tpu.iota {dimensions = array<i32: 1>} : vector<128x8xi32>
    %270 = vector.broadcast %259 : vector<128x1xi32> to vector<128x8xi32>
    %271 = arith.cmpi eq, %269, %270 : vector<128x8xi32>
    %272 = arith.extui %271 : vector<128x8xi1> to vector<128x8xi32>
    %273 = arith.sitofp %272 : vector<128x8xi32> to vector<128x8xf32>
    %274 = arith.truncf %273 : vector<128x8xf32> to vector<128x8xbf16>
    %275 = arith.truncf %246 : vector<8x256xf32> to vector<8x256xbf16>
    %cst_103 = arith.constant dense<0.000000e+00> : vector<128x256xf32>
    %276 = tpu.matmul %274, %275, %cst_103 {dimension_numbers = #tpu.dot_dimension_numbers<[1], [0], [0], [1], [0, 0, 1, 1], [], []>} : vector<128x8xbf16>, vector<8x256xbf16>, vector<128x256xf32> -> vector<128x256xf32>
    %277 = arith.truncf %276 : vector<128x256xf32> to vector<128x256xbf16>
    %278 = arith.truncf %250 : vector<256x32xf32> to vector<256x32xbf16>
    %cst_104 = arith.constant dense<0.000000e+00> : vector<128x32xf32>
    %279 = tpu.matmul %277, %278, %cst_104 {dimension_numbers = #tpu.dot_dimension_numbers<[1], [0], [0], [1], [0, 0, 1, 1], [], []>} : vector<128x256xbf16>, vector<256x32xbf16>, vector<128x32xf32> -> vector<128x32xf32>
    %280 = vector.extract_strided_slice %268 {offsets = [0, 0], sizes = [128, 1], strides = [1, 1]} : vector<128x4xf32> to vector<128x1xf32>
    %281 = vector.extract_strided_slice %249 {offsets = [0, 0], sizes = [256, 32], strides = [1, 1]} : vector<1024x32xf32> to vector<256x32xf32>
    %282 = arith.truncf %276 : vector<128x256xf32> to vector<128x256xbf16>
    %283 = arith.truncf %281 : vector<256x32xf32> to vector<256x32xbf16>
    %cst_105 = arith.constant dense<0.000000e+00> : vector<128x32xf32>
    %284 = tpu.matmul %282, %283, %cst_105 {dimension_numbers = #tpu.dot_dimension_numbers<[1], [0], [0], [1], [0, 0, 1, 1], [], []>} : vector<128x256xbf16>, vector<256x32xbf16>, vector<128x32xf32> -> vector<128x32xf32>
    %285 = vector.broadcast %280 : vector<128x1xf32> to vector<128x32xf32>
    %286 = arith.mulf %285, %284 : vector<128x32xf32>
    %287 = arith.addf %279, %286 : vector<128x32xf32>
    %288 = vector.extract_strided_slice %268 {offsets = [0, 1], sizes = [128, 1], strides = [1, 1]} : vector<128x4xf32> to vector<128x1xf32>
    %289 = vector.extract_strided_slice %249 {offsets = [256, 0], sizes = [256, 32], strides = [1, 1]} : vector<1024x32xf32> to vector<256x32xf32>
    %290 = arith.truncf %276 : vector<128x256xf32> to vector<128x256xbf16>
    %291 = arith.truncf %289 : vector<256x32xf32> to vector<256x32xbf16>
    %cst_106 = arith.constant dense<0.000000e+00> : vector<128x32xf32>
    %292 = tpu.matmul %290, %291, %cst_106 {dimension_numbers = #tpu.dot_dimension_numbers<[1], [0], [0], [1], [0, 0, 1, 1], [], []>} : vector<128x256xbf16>, vector<256x32xbf16>, vector<128x32xf32> -> vector<128x32xf32>
    %293 = vector.broadcast %288 : vector<128x1xf32> to vector<128x32xf32>
    %294 = arith.mulf %293, %292 : vector<128x32xf32>
    %295 = arith.addf %287, %294 : vector<128x32xf32>
    %296 = vector.extract_strided_slice %268 {offsets = [0, 2], sizes = [128, 1], strides = [1, 1]} : vector<128x4xf32> to vector<128x1xf32>
    %297 = vector.extract_strided_slice %249 {offsets = [512, 0], sizes = [256, 32], strides = [1, 1]} : vector<1024x32xf32> to vector<256x32xf32>
    %298 = arith.truncf %276 : vector<128x256xf32> to vector<128x256xbf16>
    %299 = arith.truncf %297 : vector<256x32xf32> to vector<256x32xbf16>
    %cst_107 = arith.constant dense<0.000000e+00> : vector<128x32xf32>
    %300 = tpu.matmul %298, %299, %cst_107 {dimension_numbers = #tpu.dot_dimension_numbers<[1], [0], [0], [1], [0, 0, 1, 1], [], []>} : vector<128x256xbf16>, vector<256x32xbf16>, vector<128x32xf32> -> vector<128x32xf32>
    %301 = vector.broadcast %296 : vector<128x1xf32> to vector<128x32xf32>
    %302 = arith.mulf %301, %300 : vector<128x32xf32>
    %303 = arith.addf %295, %302 : vector<128x32xf32>
    %304 = vector.extract_strided_slice %268 {offsets = [0, 3], sizes = [128, 1], strides = [1, 1]} : vector<128x4xf32> to vector<128x1xf32>
    %305 = vector.extract_strided_slice %249 {offsets = [768, 0], sizes = [256, 32], strides = [1, 1]} : vector<1024x32xf32> to vector<256x32xf32>
    %306 = arith.truncf %276 : vector<128x256xf32> to vector<128x256xbf16>
    %307 = arith.truncf %305 : vector<256x32xf32> to vector<256x32xbf16>
    %cst_108 = arith.constant dense<0.000000e+00> : vector<128x32xf32>
    %308 = tpu.matmul %306, %307, %cst_108 {dimension_numbers = #tpu.dot_dimension_numbers<[1], [0], [0], [1], [0, 0, 1, 1], [], []>} : vector<128x256xbf16>, vector<256x32xbf16>, vector<128x32xf32> -> vector<128x32xf32>
    %309 = vector.broadcast %304 : vector<128x1xf32> to vector<128x32xf32>
    %310 = arith.mulf %309, %308 : vector<128x32xf32>
    %311 = arith.addf %303, %310 : vector<128x32xf32>
    %312 = tpu.iota {dimensions = array<i32: 0>} : vector<8x128xi32>
    %313 = vector.broadcast %261 : vector<1x128xi32> to vector<8x128xi32>
    %314 = arith.cmpi eq, %312, %313 : vector<8x128xi32>
    %315 = arith.extui %314 : vector<8x128xi1> to vector<8x128xi32>
    %316 = arith.sitofp %315 : vector<8x128xi32> to vector<8x128xf32>
    %317 = arith.truncf %316 : vector<8x128xf32> to vector<8x128xbf16>
    %318 = arith.truncf %311 : vector<128x32xf32> to vector<128x32xbf16>
    %cst_109 = arith.constant dense<0.000000e+00> : vector<8x32xf32>
    %319 = tpu.matmul %317, %318, %cst_109 {dimension_numbers = #tpu.dot_dimension_numbers<[1], [0], [0], [1], [0, 0, 1, 1], [], []>} : vector<8x128xbf16>, vector<128x32xbf16>, vector<8x32xf32> -> vector<8x32xf32>
    %320 = arith.addf %253, %319 : vector<8x32xf32>
    %c1_i32_110 = arith.constant 1 : i32
    %321 = arith.truncf %246 : vector<8x256xf32> to vector<8x256xbf16>
    %322 = arith.truncf %251 : vector<256x32xf32> to vector<256x32xbf16>
    %cst_111 = arith.constant dense<0.000000e+00> : vector<8x32xf32>
    %323 = tpu.matmul %321, %322, %cst_111 {dimension_numbers = #tpu.dot_dimension_numbers<[1], [0], [0], [1], [0, 0, 1, 1], [], []>} : vector<8x256xbf16>, vector<256x32xbf16>, vector<8x32xf32> -> vector<8x32xf32>
    %324 = arith.addf %320, %323 : vector<8x32xf32>
    %325 = vector.broadcast %252 : vector<1x32xf32> to vector<8x32xf32>
    %326 = arith.addf %324, %325 : vector<8x32xf32>
    %cst_112 = arith.constant 0.000000e+00 : f32
    %327 = vector.broadcast %cst_112 : f32 to vector<8x32xf32>
    %328 = arith.maximumf %326, %327 : vector<8x32xf32>
    %c0_113 = arith.constant 0 : index
    %c0_114 = arith.constant 0 : index
    %329 = vector.load %arg28[%c0_113, %c0_114] : memref<32x1xf32, #tpu.memory_space<vmem>>, vector<32x1xf32>
    %330 = arith.truncf %328 : vector<8x32xf32> to vector<8x32xbf16>
    %331 = arith.truncf %329 : vector<32x1xf32> to vector<32x1xbf16>
    %cst_115 = arith.constant dense<0.000000e+00> : vector<8x1xf32>
    %332 = tpu.matmul %330, %331, %cst_115 {dimension_numbers = #tpu.dot_dimension_numbers<[1], [0], [0], [1], [0, 0, 1, 1], [], []>} : vector<8x32xbf16>, vector<32x1xbf16>, vector<8x1xf32> -> vector<8x1xf32>
    %c0_116 = arith.constant 0 : index
    %c0_117 = arith.constant 0 : index
    %333 = vector.load %arg29[%c0_116, %c0_117] : memref<1x1xf32, #tpu.memory_space<vmem>>, vector<1x1xf32>
    %334 = vector.broadcast %333 : vector<1x1xf32> to vector<8x1xf32>
    %335 = arith.addf %332, %334 : vector<8x1xf32>
    %336 = arith.negf %335 : vector<8x1xf32>
    %337 = math.exp %336 : vector<8x1xf32>
    %cst_118 = arith.constant 1.000000e+00 : f32
    %338 = vector.broadcast %cst_118 : f32 to vector<8x1xf32>
    %339 = arith.addf %338, %337 : vector<8x1xf32>
    %340 = arith.divf %338, %339 : vector<8x1xf32>
    %c0_119 = arith.constant 0 : index
    %c0_120 = arith.constant 0 : index
    %341 = vector.load %arg30[%c0_119, %c0_120] : memref<8x1xf32, #tpu.memory_space<vmem>>, vector<8x1xf32>
    tpu.vector_store %arg30[%c0_119, %c0_120], %340 {strides = array<i32>} : memref<8x1xf32, #tpu.memory_space<vmem>>, vector<8x1xf32>,
    return
  }
}

</mosaic_0001>

<bundles_post_ra>
// kernel: tpu_custom_call.1
= control target key start
LH: loop header
LB: loop body
LE: loop exit
PB: predicated region body
PF: predicated region fallthrough
CT: control target
= control target key end

     0   :  { %v10403_v0 = vmov 0   ;;  %s6971_s3 = smov 1   ;;  %vm442_vm0 = vcmask 1043456   ;;  %s6972_s10 = smov 3   ;;  %v10397_v36 = vlaneseq  ;;  %vm417_vm5 = vcmask 64512   ;;  %s10396_s0 = inlined_call_operand.smem [shape: u32[31], index: -1, kind: input, shape index: {}] }
   0x1   :  { %6811 = vset.pattern.permute.xlu1 %v10403_v0  ;;  %6810 = vset.pattern.permute.xlu0 %v10403_v0  ;;  %s7017_s6 = sld [smem:[%s10396_s0 + %s6971_s3]]   ;;  %v10398_v42 = vmov 0.0   ;;  %s6974_s14 = smov 4  }
   0x2   :  { %s1_s9 = sld [smem:[%s10396_s0]]   ;;  %v7066_v37 = vand.u32 127, %v10397_v36  ;;  %s6975_s18 = smov 5  }
   0x3   :  { %s7045_s13 = sld [smem:[%s10396_s0 + %s6972_s10]]   ;;  %s6978_s22 = smov 10  }
   0x4   :  { %s5732_s17 = sld [smem:[%s10396_s0 + %s6974_s14]]   ;;  %s6980_s26 = smov 11  }
   0x5   :  { %s5733_s21 = sld [smem:[%s10396_s0 + %s6975_s18]]   ;;  %s6981_s30 = smov 16  }
   0x6   :  { %s5738_s25 = sld [smem:[%s10396_s0 + %s6978_s22]]   ;;  %s6982_s4 = smov 17  }
   0x7   :  { %v155_v1 = vld [vmem:[%s7017_s6 + $0x10] sm:$0xff]  ;;  %v153_v2 = vld [vmem:[%s7017_s6] sm:$0xff]  ;;  %v156_v3 = vld [vmem:[%s7017_s6 + $0x18] sm:$0xff]  ;;  %s5739_s29 = sld [smem:[%s10396_s0 + %s6980_s26]]   ;;  %s6983_s8 = smov 22  }
   0x8   :  { %319 = vperm.xlu1 %6811, %v155_v1   ;;  %313 = vperm.xlu0 %6810, %v153_v2   ;;  %v154_v4 = vld [vmem:[%s7017_s6 + $0x8] sm:$0xff]  ;;  %v157_v6 = vld [vmem:[%s7017_s6 + $0x20] sm:$0xff]  ;;  %v160_v7 = vld [vmem:[%s7017_s6 + $0x38] sm:$0xff]  ;;  %s7219_s3 = sld [smem:[%s10396_s0 + %s6981_s30]]   ;;  %s6984_s12 = smov 23  }
   0x9   :  { %v158_v5 = vld [vmem:[%s7017_s6 + $0x28] sm:$0xff]  ;;  %v159_v8 = vld [vmem:[%s7017_s6 + $0x30] sm:$0xff]  ;;  %v129_v9 = vld [vmem:[%s1_s9] sm:$0xff]  ;;  %s5745_s7 = sld [smem:[%s10396_s0 + %s6982_s4]]   ;;  %s6985_s16 = smov 6  }
   0xa   :  { %v7030_v10 = vpack.c.bf16 %v129_v9, %v129_v9  ;;  %v162_v12 = vld [vmem:[%s7017_s6 + $0x48] sm:$0xff]  ;;  %v161_v13 = vld [vmem:[%s7017_s6 + $0x40] sm:$0xff]  ;;  %v164_v14 = vld [vmem:[%s7017_s6 + $0x58] sm:$0xff]  ;;  %s7265_s11 = sld [smem:[%s10396_s0 + %s6983_s8]]   ;;  %s6986_s20 = smov 7  }
   0xb   :  { %v163_v15 = vld [vmem:[%s7017_s6 + $0x50] sm:$0xff]  ;;  %v166_v16 = vld [vmem:[%s7017_s6 + $0x68] sm:$0xff]  ;;  %v165_v17 = vld [vmem:[%s7017_s6 + $0x60] sm:$0xff]  ;;  %s7289_s15 = sld [smem:[%s10396_s0 + %s6984_s12]]   ;;  %s6987_s24 = smov 8  }
   0xc   :  { %322 = vperm.xlu1 %6811, %v156_v3   ;;  %316 = vperm.xlu0 %6810, %v154_v4   ;;  %v444_v11 = vsel %vm442_vm0, %v7030_v10, 0  ;;  %v168_v18 = vld [vmem:[%s7017_s6 + $0x78] sm:$0xff]  ;;  %v167_v19 = vld [vmem:[%s7017_s6 + $0x70] sm:$0xff]  ;;  %v150_v22 = vld [vmem:[%s7045_s13 + $0x68] sm:$0xff]  ;;  %s7313_s19 = sld [smem:[%s10396_s0 + %s6985_s16]]   ;;  %s6989_s28 = smov 2  }
   0xd   :  { %6764 = vmatprep.subr.msk.bf16.mxu0 %vm442_vm0, %v7030_v10  ;;  %v152_v20 = vld [vmem:[%s7045_s13 + $0x78] sm:$0xff]  ;;  %v151_v21 = vld [vmem:[%s7045_s13 + $0x70] sm:$0xff]  ;;  %v149_v23 = vld [vmem:[%s7045_s13 + $0x60] sm:$0xff]  ;;  %s5735_s23 = sld [smem:[%s10396_s0 + %s6986_s20]]   ;;  %s6991_s2 = smov 9  }
   0xe   :  { %6449 = vmatpush3.bf16.msra.mxu0 %v444_v11  ;;  %v148_v24 = vld [vmem:[%s7045_s13 + $0x58] sm:$0xff]  ;;  %v147_v25 = vld [vmem:[%s7045_s13 + $0x50] sm:$0xff]  ;;  %v146_v26 = vld [vmem:[%s7045_s13 + $0x48] sm:$0xff]  ;;  %s5736_s27 = sld [smem:[%s10396_s0 + %s6987_s24]]   ;;  %s6992_s6 = smov 12  }
   0xf   :  { %v145_v27 = vld [vmem:[%s7045_s13 + $0x40] sm:$0xff]  ;;  %v144_v28 = vld [vmem:[%s7045_s13 + $0x38] sm:$0xff]  ;;  %v143_v29 = vld [vmem:[%s7045_s13 + $0x30] sm:$0xff]  ;;  %s5730_s1 = sld [smem:[%s10396_s0 + %s6989_s28]]   ;;  %s6993_s10 = smov 13  }
  0x10   :  { %328 = vperm.xlu1 %6811, %v158_v5   ;;  %325 = vperm.xlu0 %6810, %v157_v6   ;;  %v142_v30 = vld [vmem:[%s7045_s13 + $0x28] sm:$0xff]  ;;  %v141_v31 = vld [vmem:[%s7045_s13 + $0x20] sm:$0xff]  ;;  %v140_v32 = vld [vmem:[%s7045_s13 + $0x18] sm:$0xff]  ;;  %s5737_s5 = sld [smem:[%s10396_s0 + %s6991_s2]]   ;;  %s6994_s14 = smov 14  }
  0x11   :  { %v139_v33 = vld [vmem:[%s7045_s13 + $0x10] sm:$0xff]  ;;  %v138_v34 = vld [vmem:[%s7045_s13 + $0x8] sm:$0xff]  ;;  %v137_v35 = vld [vmem:[%s7045_s13] sm:$0xff]  ;;  %s8675_s9 = sld [smem:[%s10396_s0 + %s6992_s6]]   ;;  %s6995_s18 = smov 15  }
  0x12   :  { %s5741_s13 = sld [smem:[%s10396_s0 + %s6993_s10]]   ;;  %s6996_s22 = smov 18  }
  0x13   :  { %s6997_s26 = smov 19   ;;  %s6998_s30 = smov 20  }
  0x14   :  { %334 = vperm.xlu1 %6811, %v160_v7   ;;  %331 = vperm.xlu0 %6810, %v159_v8   ;;  %s6999_s4 = smov 24   ;;  %s7000_s8 = smov 21  }
  0x15   :  { %s7001_s12 = smov 25   ;;  %s7002_s16 = smov 26  }
  0x16   :  { %s7003_s20 = smov 28   ;;  %s7004_s24 = smov 29  }
  0x17   :  { %s7005_s28 = smov 27   ;;  %s7006_s2 = smov 30  }
  0x18   :  { %340 = vperm.xlu1 %6811, %v162_v12   ;;  %337 = vperm.xlu0 %6810, %v161_v13  }
  0x1c   :  { %346 = vperm.xlu1 %6811, %v164_v14   ;;  %343 = vperm.xlu0 %6810, %v163_v15  }
  0x20   :  { %352 = vperm.xlu1 %6811, %v166_v16   ;;  %349 = vperm.xlu0 %6810, %v165_v17   ;;  %v7134_v16 = vld [vmem:[%s5732_s17] ss:$0 sm:$0xff]  ;;  %s5742_s17 = sld [smem:[%s10396_s0 + %s6994_s14]]  }
  0x24   :  { %358 = vperm.xlu1 %6811, %v168_v18   ;;  %355 = vperm.xlu0 %6810, %v167_v19  }
  0x28   :  { %247 = vperm.xlu1 %6811, %v152_v20   ;;  %242 = vperm.xlu0 %6810, %v151_v21   ;;  %v7142_v20 = vld [vmem:[%s5733_s21] ss:$0 sm:$0xff]  ;;  %s5743_s21 = sld [smem:[%s10396_s0 + %s6995_s18]]  }
  0x2c   :  { %237 = vperm.xlu1 %6811, %v150_v22   ;;  %232 = vperm.xlu0 %6810, %v149_v23  }
  0x30   :  { %227 = vperm.xlu1 %6811, %v148_v24   ;;  %222 = vperm.xlu0 %6810, %v147_v25  }
  0x34   :  { %217 = vperm.xlu1 %6811, %v146_v26   ;;  %212 = vperm.xlu0 %6810, %v145_v27  }
  0x38   :  { %207 = vperm.xlu1 %6811, %v144_v28   ;;  %202 = vperm.xlu0 %6810, %v143_v29  }
  0x3c   :  { %197 = vperm.xlu1 %6811, %v142_v30   ;;  %192 = vperm.xlu0 %6810, %v141_v31  }
  0x40   :  { %187 = vperm.xlu1 %6811, %v140_v32   ;;  %182 = vperm.xlu0 %6810, %v139_v33  }
  0x44   :  { %177 = vperm.xlu1 %6811, %v138_v34   ;;  %172 = vperm.xlu0 %6810, %v137_v35  }
  0x83   :  { %v320_v38 = vpop.permute.xlu1 %319  ;;  %v314_v39 = vpop.permute.xlu0 %313 }
  0x84   :  { %vm362_vm1 = vcmp.eq.s32.totalorder %v7066_v37, %v320_v38  ;;  %vm360_vm2 = vcmp.eq.s32.totalorder %v7066_v37, %v314_v39  ;;  %v10405_v38 = vmov 1  }
  0x85   :  { %v5763_v43 = vsel %vm362_vm1, 1.0, %v10398_v42  ;;  %v5761_v44 = vsel %vm360_vm2, 1.0, %v10398_v42 }
  0x87   :  { %v323_v40 = vpop.permute.xlu1 %322  ;;  %v317_v41 = vpop.permute.xlu0 %316 }
  0x88   :  { %vm363_vm3 = vcmp.eq.s32.totalorder %v7066_v37, %v323_v40  ;;  %vm361_vm4 = vcmp.eq.s32.totalorder %v7066_v37, %v317_v41 }
  0x89   :  { %v5764_v45 = vsel %vm363_vm3, 1.0, %v10398_v42  ;;  %v5762_v46 = vsel %vm361_vm4, 1.0, %v10398_v42  ;;  %vm578_vm3 = vcmask 1041408   ;;  %vm553_vm4 = vcmask 31744  }
  0x8a   :  { %v7076_v47 = vpack.c.bf16 %v5764_v45, %v5763_v43  ;;  %v7078_v48 = vpack.c.bf16 %v5762_v46, %v5761_v44  ;;  %v10409_v43 = vmov 3  }
  0x8b   :  { %v329_v49 = vpop.permute.xlu1 %328  ;;  %v326_v50 = vpop.permute.xlu0 %325 }
  0x8c   :  { %10564 = vst [vmem:[#allocation3_spill] sm:$0xff] %v7076_v47  ;;  %10565 = vst [vmem:[#allocation4_spill] sm:$0xff] %v7078_v48  ;;  %vm365_vm6 = vcmp.eq.s32.totalorder %v7066_v37, %v329_v49  ;;  %vm364_vm7 = vcmp.eq.s32.totalorder %v7066_v37, %v326_v50  ;;  %6450 = vmatprep.mubr.msk.bf16.mxu0 %vm417_vm5, %v7078_v48  ;;  %v10400_v50 = vmov 2  }
  0x8d   :  { %v5766_v51 = vsel %vm365_vm6, 1.0, %v10398_v42  ;;  %v5765_v52 = vsel %vm364_vm7, 1.0, %v10398_v42  ;;  %6451 = vmatmul.mubr.msk.bf16.vlgmr.msra.gmra.mxu0 %vm417_vm5, %v7076_v47  ;;  %vm6988_vm6 = vmmov 0  }
  0x8e   :  { %v7088_v53 = vpack.c.bf16 %v5766_v51, %v5765_v52 }
  0x8f   :  { %v335_v54 = vpop.permute.xlu1 %334  ;;  %v332_v55 = vpop.permute.xlu0 %331 }
  0x90   :  { %10566 = vst [vmem:[#allocation5_spill] sm:$0xff] %v7088_v53  ;;  %vm367_vm8 = vcmp.eq.s32.totalorder %v7066_v37, %v335_v54  ;;  %vm366_vm9 = vcmp.eq.s32.totalorder %v7066_v37, %v332_v55  ;;  %6454 = vmatprep.mubr.msk.bf16.mxu0 %vm417_vm5, %v7088_v53 }
  0x91   :  { %v5768_v56 = vsel %vm367_vm8, 1.0, %v10398_v42  ;;  %v5767_v57 = vsel %vm366_vm9, 1.0, %v10398_v42  ;;  %vm1766_vm9 = vcmask 130048  }
  0x92   :  { %v7096_v58 = vpack.c.bf16 %v5768_v56, %v5767_v57 }
  0x93   :  { %v341_v59 = vpop.permute.xlu1 %340  ;;  %v338_v60 = vpop.permute.xlu0 %337 }
  0x94   :  { %10567 = vst [vmem:[#allocation6_spill] sm:$0xff] %v7096_v58  ;;  %vm369_vm10 = vcmp.eq.s32.totalorder %v7066_v37, %v341_v59  ;;  %vm368_vm11 = vcmp.eq.s32.totalorder %v7066_v37, %v338_v60 }
  0x95   :  { %v5770_v61 = vsel %vm369_vm10, 1.0, %v10398_v42  ;;  %v5769_v62 = vsel %vm368_vm11, 1.0, %v10398_v42  ;;  %6455 = vmatmul.mubr.msk.bf16.gmra.mxu0 %vm417_vm5, %v7096_v58  ;;  %vm2990_vm10 = vcmask 261120  }
  0x96   :  { %v7104_v63 = vpack.c.bf16 %v5770_v61, %v5769_v62 }
  0x97   :  { %v347_v1 = vpop.permute.xlu1 %346  ;;  %v344_v2 = vpop.permute.xlu0 %343 }
  0x98   :  { %10568 = vst [vmem:[#allocation7_spill] sm:$0xff] %v7104_v63  ;;  %vm371_vm12 = vcmp.eq.s32.totalorder %v7066_v37, %v347_v1  ;;  %vm370_vm13 = vcmp.eq.s32.totalorder %v7066_v37, %v344_v2  ;;  %6458 = vmatprep.mubr.msk.bf16.mxu0 %vm417_vm5, %v7104_v63  ;;  %v7230_v2 = vld [vmem:[%s5738_s25] ss:$0 sm:$0xff]  ;;  %v10582_v63 = vmov 1   ;;  %s9007_s25 = sld [smem:[%s10396_s0 + %s6996_s22]]  }
  0x99   :  { %v5772_v3 = vsel %vm371_vm12, 1.0, %v10398_v42  ;;  %v5771_v4 = vsel %vm370_vm13, 1.0, %v10398_v42 }
  0x9a   :  { %v7115_v5 = vpack.c.bf16 %v5772_v3, %v5771_v4 }
  0x9b   :  { %v353_v6 = vpop.permute.xlu1 %352  ;;  %v350_v7 = vpop.permute.xlu0 %349 }
  0x9c   :  { %10569 = vst [vmem:[#allocation8_spill] sm:$0xff] %v7115_v5  ;;  %vm373_vm14 = vcmp.eq.s32.totalorder %v7066_v37, %v353_v6  ;;  %vm372_vm15 = vcmp.eq.s32.totalorder %v7066_v37, %v350_v7 }
  0x9d   :  { %v5774_v8 = vsel %vm373_vm14, 1.0, %v10398_v42  ;;  %v5773_v9 = vsel %vm372_vm15, 1.0, %v10398_v42  ;;  %6459 = vmatmul.mubr.msk.bf16.gmra.mxu0 %vm417_vm5, %v7115_v5 }
  0x9e   :  { %v7126_v11 = vpack.c.bf16 %v5774_v8, %v5773_v9 }
  0x9f   :  { %v359_v12 = vpop.permute.xlu1 %358  ;;  %v356_v13 = vpop.permute.xlu0 %355 }
  0xa0   :  { %10570 = vst [vmem:[#allocation9_spill] sm:$0xff] %v7126_v11  ;;  %vm375_vm1 = vcmp.eq.s32.totalorder %v7066_v37, %v359_v12  ;;  %vm374_vm2 = vcmp.eq.s32.totalorder %v7066_v37, %v356_v13  ;;  %6462 = vmatprep.mubr.msk.bf16.mxu0 %vm417_vm5, %v7126_v11  ;;  %v10579_v11 = vmov 0  }
  0xa1   :  { %v5776_v14 = vsel %vm375_vm1, 1.0, %v10398_v42  ;;  %v5775_v15 = vsel %vm374_vm2, 1.0, %v10398_v42 }
  0xa2   :  { %v7136_v17 = vpack.c.bf16 %v5776_v14, %v5775_v15  ;;  %v7247_v14 = vld [vmem:[%s5739_s29] ss:$0 sm:$0xff]  ;;  %s5747_s29 = sld [smem:[%s10396_s0 + %s6997_s26]]  }
  0xa3   :  { %v7138_v18 = vpop.permute.xlu1 %247  ;;  %v7140_v19 = vpop.permute.xlu0 %242 }
  0xa4   :  { %10571 = vst [vmem:[#allocation10_spill] sm:$0xff] %v7136_v17  ;;  %v271_v21 = vmul.f32 %v7134_v16, %v7138_v18  ;;  %v270_v22 = vmul.f32 %v7134_v16, %v7140_v19 }
  0xa5   :  { %6463 = vmatmul.mubr.msk.bf16.gmra.mxu0 %vm417_vm5, %v7136_v17 }
  0xa6   :  { %v293_v23 = vadd.f32 %v7142_v20, %v271_v21  ;;  %v292_v26 = vadd.f32 %v7142_v20, %v270_v22 }
  0xa7   :  { %v7151_v24 = vpop.permute.xlu1 %237  ;;  %v7153_v25 = vpop.permute.xlu0 %232 }
  0xa8   :  { %v269_v27 = vmul.f32 %v7134_v16, %v7151_v24  ;;  %v309_v28 = vmax.f32 %v293_v23, 0.0  ;;  %v7158_v29 = vmax.f32 %v292_v26, 0.0  ;;  %v268_v33 = vmul.f32 %v7134_v16, %v7153_v25  ;;  %v7268_v23 = vld [vmem:[%s7219_s3] ss:$0 sm:$0xff]  ;;  %s9105_s3 = sld [smem:[%s10396_s0 + %s6998_s30]]  }
  0xaa   :  { %v291_v30 = vadd.f32 %v7142_v20, %v269_v27  ;;  %756 = vperm.xlu1 %6811, %v309_v28   ;;  %751 = vperm.xlu0 %6810, %v7158_v29   ;;  %v290_v39 = vadd.f32 %v7142_v20, %v268_v33 }
  0xab   :  { %v7161_v31 = vpop.permute.xlu1 %227  ;;  %v7163_v32 = vpop.permute.xlu0 %222 }
  0xac   :  { %v7168_v34 = vmax.f32 %v291_v30, 0.0  ;;  %v7182_v44 = vmax.f32 %v290_v39, 0.0  ;;  %v267_v54 = vmul.f32 %v7134_v16, %v7161_v31  ;;  %v266_v61 = vmul.f32 %v7134_v16, %v7163_v32 }
  0xae   :  { %6812 = vset.pattern.permute.xlu1 %v10405_v38  ;;  %746 = vperm.xlu0 %6810, %v7168_v34   ;;  %v289_v62 = vadd.f32 %v7142_v20, %v267_v54  ;;  %v288_v13 = vadd.f32 %v7142_v20, %v266_v61 }
  0xaf   :  { %v7170_v35 = vpop.permute.xlu1 %217  ;;  %v7172_v37 = vpop.permute.xlu0 %212  ;;  %1038 = vperm.xlu1 %6812, %v309_v28  }
  0xb0   :  { %v264_v45 = vmul.f32 %v7134_v16, %v7172_v37  ;;  %v265_v9 = vmul.f32 %v7134_v16, %v7170_v35  ;;  %v7244_v12 = vmax.f32 %v289_v62, 0.0  ;;  %v7275_v30 = vmax.f32 %v288_v13, 0.0 }
  0xb2   :  { %6817 = vset.pattern.permute.xlu0 %v10409_v43  ;;  %v286_v52 = vadd.f32 %v7142_v20, %v264_v45  ;;  %v287_v33 = vadd.f32 %v7142_v20, %v265_v9  ;;  %v7284_v45 = vld [vmem:[%s5745_s7] ss:$0 sm:$0xff]  ;;  %s9728_s7 = sld [smem:[%s10396_s0 + %s6999_s4]]  }
  0xb3   :  { %v7177_v40 = vpop.permute.xlu1 %207  ;;  %v7179_v41 = vpop.permute.xlu0 %202  ;;  %6813 = vset.pattern.permute.xlu1 %v10403_v0  ;;  %1433 = vperm.xlu0 %6817, %v309_v28  }
  0xb4   :  { %741 = vperm.xlu1 %6813, %v7182_v44   ;;  %v7221_v60 = vmax.f32 %v286_v52, 0.0  ;;  %v262_v39 = vmul.f32 %v7134_v16, %v7179_v41  ;;  %v7294_v52 = vmax.f32 %v287_v33, 0.0  ;;  %v132_v33 = vld [vmem:[%s7313_s19] sm:$0xff] }
  0xb6   :  { %v284_v62 = vadd.f32 %v7142_v20, %v262_v39 }
  0xb7   :  { %v7191_v46 = vpop.permute.xlu1 %197  ;;  %v7193_v49 = vpop.permute.xlu0 %192  ;;  %6819 = vset.pattern.permute.xlu0 %v10400_v50 }
  0xb8   :  { %v260_v51 = vmul.f32 %v7134_v16, %v7193_v49  ;;  %1223 = vperm.xlu0 %6819, %v7182_v44   ;;  %6814 = vset.pattern.permute.xlu1 %v10400_v50  ;;  %v2823_v27 = vmul.f32 %v7268_v23, %v7193_v49  ;;  %v261_v61 = vmul.f32 %v7134_v16, %v7191_v46  ;;  %v7319_v9 = vmax.f32 %v284_v62, 0.0 }
  0xb9   :  { %1231 = vperm.xlu1 %6814, %v7158_v29  }
  0xba   :  { %v7212_v57 = vadd.f32 %v7142_v20, %v260_v51  ;;  %v7297_v54 = vadd.f32 %v7284_v45, %v2823_v27  ;;  %v283_v13 = vadd.f32 %v7142_v20, %v261_v61  ;;  %v7326_v27 = vld [vmem:[%s7289_s15] ss:$0 sm:$0xff]  ;;  %v7339_v61 = vpack.c.bf16 %v132_v33, %v132_v33 }
  0xbb   :  { %v7207_v55 = vpop.permute.xlu1 %187  ;;  %v7209_v56 = vpop.permute.xlu0 %182  ;;  %v134_v33 = vld [vmem:[%s5735_s23] sm:$0xf]  ;;  %s5756_s23 = sld [smem:[%s10396_s0 + %s7003_s20]]  }
  0xbc   :  { %v259_v59 = vmul.f32 %v7134_v16, %v7207_v55  ;;  %6823 = vset.pattern.permute.xlu0 %v10403_v0  ;;  %v7337_v39 = vmax.f32 %v283_v13, 0.0  ;;  %v258_v62 = vmul.f32 %v7134_v16, %v7209_v56  ;;  %6765 = vmatprep.subr.msk.bf16.mxu0 %vm578_vm3, %v7339_v61  ;;  %v7365_v42 = vpack.c.bf16 %v134_v33, %v134_v33 }
  0xbd   :  { %1235 = vperm.xlu1 %6814, %v309_v28   ;;  %721 = vperm.xlu0 %6823, %v7221_v60   ;;  %v2822_v28 = vmul.f32 %v7268_v23, %v7207_v55  ;;  %v1605_v33 = vmul.f32 %v7230_v2, %v7193_v49 }
  0xbe   :  { %v7228_v1 = vadd.f32 %v7142_v20, %v259_v59  ;;  %6766 = vmatprep.subr.msk.bf16.mxu1 %vm578_vm3, %v7339_v61 }
  0xbf   :  { %v7233_v3 = vpop.permute.xlu1 %177  ;;  %v173_v4 = vpop.permute.xlu0 %172  ;;  %v7300_v59 = vadd.f32 %v7284_v45, %v2822_v28 }
  0xc0   :  { %v1602_v6 = vmul.f32 %v7230_v2, %v7233_v3  ;;  %v256_v7 = vmul.f32 %v7134_v16, %v173_v4  ;;  %v1601_v8 = vmul.f32 %v7230_v2, %v173_v4  ;;  %v2819_v26 = vmul.f32 %v7268_v23, %v173_v4 }
  0xc1   :  { %6815 = vset.pattern.permute.xlu1 %v10405_v38  ;;  %6826 = vset.pattern.permute.xlu0 %v10400_v50 }
  0xc2   :  { %v7252_v15 = vadd.f32 %v7142_v20, %v256_v7  ;;  %v7255_v21 = vadd.f32 %v7247_v14, %v1602_v6  ;;  %v7258_v22 = vadd.f32 %v7247_v14, %v1601_v8  ;;  %1030 = vperm.xlu1 %6815, %v7168_v34   ;;  %1219 = vperm.xlu0 %6826, %v7244_v12   ;;  %v7306_v6 = vld [vmem:[%s7265_s11] ss:$0 sm:$0xff] }
  0xc3   :  { %v7292_v51 = vadd.f32 %v7284_v45, %v2819_v26  ;;  %v4409_v7 = vmul.f32 %v7306_v6, %v7233_v3  ;;  %v4408_v8 = vmul.f32 %v7306_v6, %v173_v4  ;;  %v263_v26 = vmul.f32 %v7134_v16, %v7177_v40 }
  0xc5   :  { %v7331_v28 = vadd.f32 %v7326_v27, %v4409_v7  ;;  %v7334_v4 = vadd.f32 %v7326_v27, %v4408_v8  ;;  %v285_v36 = vadd.f32 %v7142_v20, %v263_v26  ;;  %v580_v7 = vsel %vm578_vm3, %v7339_v61, 0 }
  0xc6   :  { %6816 = vset.pattern.permute.xlu1 %v10409_v43  ;;  %6828 = vset.pattern.permute.xlu0 %v10409_v43  ;;  %v257_v8 = vmul.f32 %v7134_v16, %v7233_v3  ;;  %v280_v26 = vadd.f32 %v7142_v20, %v258_v62 }
  0xc7   :  { %1429 = vperm.xlu1 %6816, %v7158_v29   ;;  %1413 = vperm.xlu0 %6828, %v7275_v30   ;;  %10572 = vst [vmem:[#allocation11_spill] sm:$0xff] %v7331_v28  ;;  %10573 = vst [vmem:[#allocation12_spill] sm:$0xff] %v7334_v4  ;;  %v7358_v13 = vmax.f32 %v285_v36, 0.0 }
  0xc8   :  { %6467 = vmatpush3.bf16.msra.mxu0 %v580_v7  ;;  %6763 = vmatpush3.bf16.msra.mxu1 %v580_v7  ;;  %v279_v16 = vadd.f32 %v7142_v20, %v257_v8  ;;  %v10574_v20 = vmov 2   ;;  %v1611_v8 = vmul.f32 %v7230_v2, %v7163_v32 }
  0xc9   :  { %6767 = vmatprep.subr.msk.bf16.mxu0 %vm578_vm3, %v7365_v42 }
  0xca   :  { %v7375_v36 = vmax.f32 %v279_v16, 0.0 }
  0xcb   :  { %6818 = vset.pattern.permute.xlu1 %v10403_v0  ;;  %1409 = vperm.xlu0 %6828, %v7294_v52  }
  0xcc   :  { %731 = vperm.xlu1 %6818, %v7275_v30  }
  0xcf   :  { %6835 = vset.pattern.permute.xlu0 %v10400_v50 }
  0xd0   :  { %736 = vperm.xlu1 %6818, %v7244_v12   ;;  %1199 = vperm.xlu0 %6835, %v7319_v9  }
  0xd4   :  { %6820 = vset.pattern.permute.xlu1 %v10400_v50  ;;  %1195 = vperm.xlu0 %6835, %v7337_v39   ;;  %v7367_v50 = vmax.f32 %v280_v26, 0.0  ;;  %v1633_v26 = vadd.f32 %v7247_v14, %v1611_v8 }
  0xd5   :  { %1227 = vperm.xlu1 %6820, %v7168_v34  }
  0xd6   :  { %v7444_v16 = vmax.f32 %v1633_v26, 0.0 }
  0xd8   :  { %6841 = vset.pattern.permute.xlu0 %v10403_v0 }
  0xd9   :  { %6821 = vset.pattern.permute.xlu1 %v10405_v38  ;;  %716 = vperm.xlu0 %6841, %v7358_v13  }
  0xda   :  { %1018 = vperm.xlu1 %6821, %v7275_v30  }
  0xdd   :  { %691 = vperm.xlu0 %6841, %v7367_v50  }
  0xde   :  { %6822 = vset.pattern.permute.xlu1 %v10409_v43 }
  0xdf   :  { %1421 = vperm.xlu1 %6822, %v7182_v44  }
  0xe1   :  { %686 = vperm.xlu0 %6841, %v7375_v36  }
  0xe3   :  { %1425 = vperm.xlu1 %6822, %v7168_v34   ;;  %v7397_v34 = vmax.f32 %v7252_v15, 0.0  ;;  %v7410_v15 = vmax.f32 %v7228_v1, 0.0 }
  0xe5   :  { %6845 = vset.pattern.permute.xlu0 %v10405_v38 }
  0xe6   :  { %1034 = vperm.xlu0 %6845, %v7158_v29   ;;  %v10402_v29 = vrot.slane %v7339_v61, 2 }
  0xe7   :  { %6824 = vset.pattern.permute.xlu1 %v10403_v0 }
  0xe8   :  { %726 = vperm.xlu1 %6824, %v7294_v52   ;;  %6768 = vmatprep.subr.msk.bf16.mxu1 %vm578_vm3, %v10402_v29 }
  0xea   :  { %1026 = vperm.xlu0 %6845, %v7182_v44   ;;  %v7403_v44 = vmax.f32 %v7212_v57, 0.0  ;;  %v1614_v57 = vmul.f32 %v7230_v2, %v7151_v24 }
  0xec   :  { %6825 = vset.pattern.permute.xlu1 %v10574_v20  ;;  %v1636_v62 = vadd.f32 %v7247_v14, %v1614_v57 }
  0xed   :  { %1215 = vperm.xlu1 %6825, %v7275_v30   ;;  %v1615_v30 = vmul.f32 %v7230_v2, %v7140_v19 }
  0xee   :  { %1022 = vperm.xlu0 %6845, %v7244_v12   ;;  %v7429_v7 = vmax.f32 %v1636_v62, 0.0 }
  0xf1   :  { %6827 = vset.pattern.permute.xlu1 %v10405_v38 }
  0xf2   :  { %1010 = vperm.xlu1 %6827, %v7221_v60   ;;  %1002 = vperm.xlu0 %6845, %v7319_v9  }
  0xf6   :  { %1014 = vperm.xlu1 %6827, %v7294_v52   ;;  %998 = vperm.xlu0 %6845, %v7337_v39  }
  0xfa   :  { %6829 = vset.pattern.permute.xlu1 %v10409_v43  ;;  %978 = vperm.xlu0 %6845, %v7397_v34  }
  0xfb   :  { %1417 = vperm.xlu1 %6829, %v7244_v12   ;;  %v1637_v12 = vadd.f32 %v7247_v14, %v1615_v30 }
  0xfd   :  { %v7422_v1 = vmax.f32 %v1637_v12, 0.0  ;;  %v1627_v12 = vadd.f32 %v7247_v14, %v1605_v33  ;;  %v1612_v33 = vmul.f32 %v7230_v2, %v7161_v31 }
  0xfe   :  { %6847 = vset.pattern.permute.xlu0 %v10409_v43 }
  0xff   :  { %6830 = vset.pattern.permute.xlu1 %v10403_v0  ;;  %1389 = vperm.xlu0 %6847, %v7403_v44   ;;  %v7456_v62 = vmax.f32 %v1627_v12, 0.0 }
 0x100   :  { %711 = vperm.xlu1 %6830, %v7319_v9  }
 0x103   :  { %1385 = vperm.xlu0 %6847, %v7410_v15  }
 0x104   :  { %6831 = vset.pattern.permute.xlu1 %v10574_v20 }
 0x105   :  { %1207 = vperm.xlu1 %6831, %v7221_v60  }
 0x107   :  { %1373 = vperm.xlu0 %6847, %v7397_v34  }
 0x109   :  { %1211 = vperm.xlu1 %6831, %v7294_v52   ;;  %v1610_v52 = vmul.f32 %v7230_v2, %v7170_v35 }
 0x10b   :  { %6855 = vset.pattern.permute.xlu0 %v10574_v20  ;;  %v1632_v30 = vadd.f32 %v7247_v14, %v1610_v52  ;;  %v1613_v52 = vmul.f32 %v7230_v2, %v7153_v25 }
 0x10c   :  { %2430 = vperm.xlu0 %6855, %v7422_v1  }
 0x10d   :  { %6832 = vset.pattern.permute.xlu1 %v10405_v38  ;;  %v7451_v57 = vmax.f32 %v1632_v30, 0.0  ;;  %v1635_v30 = vadd.f32 %v7247_v14, %v1613_v52  ;;  %v1606_v52 = vmul.f32 %v7230_v2, %v7191_v46 }
 0x10e   :  { %1006 = vperm.xlu1 %6832, %v7358_v13  }
 0x10f   :  { %v7476_v29 = vmax.f32 %v1635_v30, 0.0 }
 0x110   :  { %2426 = vperm.xlu0 %6855, %v7429_v7  }
 0x112   :  { %6833 = vset.pattern.permute.xlu1 %v10409_v43 }
 0x113   :  { %1405 = vperm.xlu1 %6833, %v7221_v60   ;;  %v1604_v60 = vmul.f32 %v7230_v2, %v7207_v55 }
 0x114   :  { %6861 = vset.pattern.permute.xlu0 %v10403_v0 }
 0x115   :  { %1960 = vperm.xlu0 %6861, %v7422_v1   ;;  %v1626_v8 = vadd.f32 %v7247_v14, %v1604_v60  ;;  %v1607_v60 = vmul.f32 %v7230_v2, %v7179_v41 }
 0x117   :  { %6834 = vset.pattern.permute.xlu1 %v10403_v0  ;;  %v7464_v26 = vmax.f32 %v1626_v8, 0.0  ;;  %v1634_v8 = vadd.f32 %v7247_v14, %v1612_v33  ;;  %v1629_v30 = vadd.f32 %v7247_v14, %v1607_v60 }
 0x118   :  { %701 = vperm.xlu1 %6834, %v7403_v44  }
 0x119   :  { %1940 = vperm.xlu0 %6861, %v7444_v16   ;;  %10575 = vst [vmem:[#allocation13_spill] sm:$0xff] %v7464_v26  ;;  %v7494_v17 = vmax.f32 %v1629_v30, 0.0 }
 0x11c   :  { %706 = vperm.xlu1 %6834, %v7337_v39  }
 0x11d   :  { %1935 = vperm.xlu0 %6861, %v7451_v57  }
 0x120   :  { %6836 = vset.pattern.permute.xlu1 %v10574_v20 }
 0x121   :  { %1203 = vperm.xlu1 %6836, %v7358_v13   ;;  %1910 = vperm.xlu0 %6861, %v7456_v62  }
 0x125   :  { %v7469_v12 = vpop.permute.xlu1 %756  ;;  %6837 = vset.pattern.permute.xlu1 %v10405_v38  ;;  %1905 = vperm.xlu0 %6861, %v7464_v26   ;;  %v7487_v38 = vmax.f32 %v1634_v8, 0.0 }
 0x126   :  { %10576 = vst [vmem:[#allocation14_spill] sm:$0xff] %v7469_v12  ;;  %994 = vperm.xlu1 %6837, %v7403_v44  }
 0x129   :  { %6877 = vset.pattern.permute.xlu0 %v10409_v43 }
 0x12a   :  { %v7480_v0 = vpop.permute.xlu1 %1038  ;;  %6838 = vset.pattern.permute.xlu1 %v10409_v43  ;;  %2616 = vperm.xlu0 %6877, %v7476_v29   ;;  %v1628_v43 = vadd.f32 %v7247_v14, %v1606_v52  ;;  %v1609_v52 = vmul.f32 %v7230_v2, %v7172_v37 }
 0x12b   :  { %10577 = vst [vmem:[#allocation15_spill] sm:$0xff] %v7480_v0  ;;  %1397 = vperm.xlu1 %6838, %v7319_v9   ;;  %v1616_v9 = vmul.f32 %v7230_v2, %v7138_v18 }
 0x12c   :  { %v7504_v60 = vmax.f32 %v1628_v43, 0.0  ;;  %v1608_v43 = vmul.f32 %v7230_v2, %v7177_v40  ;;  %v1631_v53 = vadd.f32 %v7247_v14, %v1609_v52 }
 0x12d   :  { %v1638_v5 = vadd.f32 %v7247_v14, %v1616_v9  ;;  %v7520_v9 = vpop.permute.xlu0 %751 }
 0x12e   :  { %2612 = vperm.xlu0 %6877, %v7487_v38   ;;  %10583 = vst [vmem:[#allocation19_spill] sm:$0xff] %v7520_v9  ;;  %v1630_v47 = vadd.f32 %v7247_v14, %v1608_v43 }
 0x12f   :  { %v7491_v33 = vpop.permute.xlu1 %741  ;;  %1401 = vperm.xlu1 %6838, %v7358_v13   ;;  %v7514_v30 = vmax.f32 %v1638_v5, 0.0  ;;  %v1603_v5 = vmul.f32 %v7230_v2, %v7209_v56 }
 0x130   :  { %10578 = vst [vmem:[#allocation16_spill] sm:$0xff] %v7491_v33  ;;  %v7539_v52 = vmax.f32 %v1630_v47, 0.0 }
 0x132   :  { %2592 = vperm.xlu0 %6877, %v7494_v17  }
 0x133   :  { %6839 = vset.pattern.permute.xlu1 %v10579_v11 }
 0x134   :  { %v7501_v8 = vpop.permute.xlu1 %1231  ;;  %696 = vperm.xlu1 %6839, %v7410_v15  }
 0x135   :  { %10580 = vst [vmem:[#allocation17_spill] sm:$0xff] %v7501_v8  ;;  %v1625_v8 = vadd.f32 %v7247_v14, %v1603_v5  ;;  %v7557_v14 = vmax.f32 %v7255_v21, 0.0 }
 0x136   :  { %2588 = vperm.xlu0 %6877, %v7504_v60  }
 0x137   :  { %v7549_v2 = vmax.f32 %v1625_v8, 0.0  ;;  %10591 = vst [vmem:[#allocation26_spill] sm:$0xff] %v7557_v14 }
 0x138   :  { %v7508_v13 = vpop.permute.xlu1 %1235  ;;  %6840 = vset.pattern.permute.xlu1 %v10574_v20 }
 0x139   :  { %10581 = vst [vmem:[#allocation18_spill] sm:$0xff] %v7508_v13  ;;  %1191 = vperm.xlu1 %6840, %v7403_v44   ;;  %v7530_v44 = vmax.f32 %v1631_v53, 0.0  ;;  %v7536_v13 = vpop.permute.xlu0 %746 }
 0x13a   :  { %6881 = vset.pattern.permute.xlu0 %v10582_v63  ;;  %10586 = vst [vmem:[#allocation22_spill] sm:$0xff] %v7536_v13 }
 0x13b   :  { %2240 = vperm.xlu0 %6881, %v7514_v30  }
 0x13d   :  { %v7522_v58 = vpop.permute.xlu1 %1030  ;;  %6842 = vset.pattern.permute.xlu1 %v10582_v63  ;;  %v7547_v53 = vpop.permute.xlu0 %1433 }
 0x13e   :  { %10584 = vst [vmem:[#allocation20_spill] sm:$0xff] %v7522_v58  ;;  %986 = vperm.xlu1 %6842, %v7367_v50   ;;  %v10587_v58 = vmov 3   ;;  %10589 = vst [vmem:[#allocation24_spill] sm:$0xff] %v7547_v53 }
 0x13f   :  { %2232 = vperm.xlu0 %6881, %v7429_v7  }
 0x141   :  { %v7559_v5 = vpop.permute.xlu0 %1223 }
 0x142   :  { %v7533_v33 = vpop.permute.xlu1 %1429  ;;  %990 = vperm.xlu1 %6842, %v7410_v15   ;;  %10592 = vst [vmem:[#allocation27_spill] sm:$0xff] %v7559_v5 }
 0x143   :  { %10585 = vst [vmem:[#allocation21_spill] sm:$0xff] %v7533_v33  ;;  %2212 = vperm.xlu0 %6881, %v7530_v44   ;;  %v133_v33 = vld [vmem:[%s7313_s19 + $0x8] sm:$0xff]  ;;  %s9924_s19 = sld [smem:[%s10396_s0 + %s7002_s16]]  }
 0x144   :  { %v7575_v9 = vpack.c.bf16 %v133_v33, %v133_v33 }
 0x146   :  { %6843 = vset.pattern.permute.xlu1 %v10587_v58 }
 0x147   :  { %v7543_v0 = vpop.permute.xlu1 %731  ;;  %1393 = vperm.xlu1 %6843, %v7337_v39   ;;  %2208 = vperm.xlu0 %6881, %v7539_v52  }
 0x148   :  { %10588 = vst [vmem:[#allocation23_spill] sm:$0xff] %v7543_v0 }
 0x14b   :  { %v7551_v43 = vpop.permute.xlu1 %736  ;;  %6844 = vset.pattern.permute.xlu1 %v10579_v11  ;;  %2188 = vperm.xlu0 %6881, %v7549_v2  }
 0x14c   :  { %10590 = vst [vmem:[#allocation25_spill] sm:$0xff] %v7551_v43  ;;  %681 = vperm.xlu1 %6844, %v7397_v34   ;;  %v7577_v43 = vpop.permute.xlu0 %721 }
 0x14d   :  { %v6452_v47 = vpop.f32.mrf.mxu0  ;;  %10594 = vst [vmem:[#allocation29_spill] sm:$0xff] %v7577_v43 }
 0x14f   :  { %v480_v39 = vpop.f32.mrf.mxu0  ;;  %2184 = vperm.xlu0 %6881, %v7557_v14  }
 0x150   :  { %v7562_v53 = vpop.permute.xlu1 %1227  ;;  %6846 = vset.pattern.permute.xlu1 %v10574_v20 }
 0x151   :  { %10593 = vst [vmem:[#allocation28_spill] sm:$0xff] %v7562_v53  ;;  %v6453_v8 = vpop.f32.mrf.mxu0  ;;  %1183 = vperm.xlu1 %6846, %v7367_v50   ;;  %v776_v53 = vsel %vm578_vm3, %v7365_v42, 0 }
 0x152   :  { %v7570_v21 = vpack.c.bf16 %v6453_v8, %v6452_v47  ;;  %v7595_v47 = vpop.permute.xlu0 %1219 }
 0x153   :  { %v483_v13 = vpop.f32.mrf.mxu0  ;;  %6885 = vset.pattern.permute.xlu0 %v10574_v20  ;;  %10597 = vst [vmem:[#allocation32_spill] sm:$0xff] %v7595_v47  ;;  %v7610_v47 = vmax.f32 %v7258_v22, 0.0 }
 0x154   :  { %v7568_v12 = vpack.c.bf16 %v483_v13, %v480_v39  ;;  %2406 = vperm.xlu0 %6885, %v7530_v44  }
 0x155   :  { %v6456_v5 = vpop.f32.mrf.mxu0  ;;  %v7579_v0 = vpop.permute.xlu1 %1018  ;;  %1187 = vperm.xlu1 %6846, %v7410_v15   ;;  %10599 = vst [vmem:[#allocation34_spill] sm:$0xff] %v7610_v47 }
 0x156   :  { %10595 = vst [vmem:[#allocation30_spill] sm:$0xff] %v7579_v0  ;;  %6468 = vmatprep.mubr.msk.bf16.mxu0 %vm553_vm4, %v7568_v12  ;;  %v10602_v0 = vmov 0.0  }
 0x157   :  { %v496_v13 = vpop.f32.mrf.mxu0  ;;  %6469 = vmatmul.mubr.msk.bf16.vlgmr.msra.gmra.mxu0 %vm553_vm4, %v7570_v21 }
 0x158   :  { %6486 = vmatprep.mubr.msk.bf16.mxu0 %vm553_vm4, %v7568_v12  ;;  %6485 = vmatpush3.bf16.msra.mxu0 %v776_v53 }
 0x159   :  { %2402 = vperm.xlu0 %6885, %v7539_v52   ;;  %v6457_v42 = vpop.f32.mrf.mxu0  ;;  %6769 = vmatprep.subr.msk.bf16.mxu0 %vm578_vm3, %v7575_v9 }
 0x15a   :  { %6848 = vset.pattern.permute.xlu1 %v10582_v63  ;;  %v7592_v15 = vpop.permute.xlu1 %1421  ;;  %v7599_v8 = vpack.c.bf16 %v6457_v42, %v6456_v5  ;;  %v10600_v5 = vrot.slane %v7339_v61, 2  ;;  %v1075_v42 = vsel %vm578_vm3, %v7575_v9, 0  ;;  %v7626_v61 = vpop.permute.xlu0 %1413 }
 0x15b   :  { %10596 = vst [vmem:[#allocation31_spill] sm:$0xff] %v7592_v15  ;;  %982 = vperm.xlu1 %6848, %v7375_v36   ;;  %v499_v33 = vpop.f32.mrf.mxu0  ;;  %10601 = vst [vmem:[#allocation35_spill] sm:$0xff] %v7626_v61 }
 0x15c   :  { %v7597_v39 = vpack.c.bf16 %v499_v33, %v496_v13  ;;  %v878_v13 = vsel %vm578_vm3, %v10600_v5, 0  ;;  %v10425_v33 = vrot.slane %v7575_v9, 2 }
 0x15d   :  { %2382 = vperm.xlu0 %6885, %v7549_v2   ;;  %v6460_v53 = vpop.f32.mrf.mxu0 }
 0x15e   :  { %6472 = vmatprep.mubr.msk.bf16.mxu1 %vm553_vm4, %v7597_v39  ;;  %v7604_v43 = vpop.permute.xlu1 %1425 }
 0x15f   :  { %10598 = vst [vmem:[#allocation33_spill] sm:$0xff] %v7604_v43  ;;  %6849 = vset.pattern.permute.xlu1 %v10587_v58  ;;  %v512_v15 = vpop.f32.mrf.mxu0  ;;  %6473 = vmatmul.mubr.msk.bf16.vlgmr.msra.gmra.mxu1 %vm553_vm4, %v7599_v8  ;;  %v2834_v43 = vmul.f32 %v7268_v23, %v7138_v18 }
 0x160   :  { %1381 = vperm.xlu1 %6849, %v7367_v50   ;;  %6487 = vmatmul.mubr.msk.bf16.vlgmr.msra.gmra.mxu0 %vm553_vm4, %v7570_v21  ;;  %v2829_v50 = vmul.f32 %v7268_v23, %v7163_v32 }
 0x161   :  { %2374 = vperm.xlu0 %6885, %v7610_v47   ;;  %6490 = vmatprep.mubr.msk.bf16.mxu0 %vm553_vm4, %v7597_v39  ;;  %v6461_v22 = vpop.f32.mrf.mxu0  ;;  %v2856_v61 = vadd.f32 %v7284_v45, %v2834_v43  ;;  %v7651_v43 = vpop.permute.xlu0 %1409 }
 0x162   :  { %6503 = vmatpush3.bf16.msra.mxu1 %v878_v13  ;;  %6521 = vmatpush3.bf16.msra.mxu0 %v1075_v42  ;;  %v7640_v13 = vpack.c.bf16 %v6461_v22, %v6460_v53  ;;  %10604 = vst [vmem:[#allocation37_spill] sm:$0xff] %v7651_v43 }
 0x163   :  { %v515_v5 = vpop.f32.mrf.mxu0  ;;  %6770 = vmatprep.subr.msk.bf16.mxu1 %vm578_vm3, %v10425_v33  ;;  %6556 = vmatprep.subr.bf16.mxu0 %v10602_v0  ;;  %v7634_v4 = vpop.permute.xlu1 %726  ;;  %v7655_v53 = vmax.f32 %v2856_v61, 0.0 }
 0x164   :  { %10603 = vst [vmem:[#allocation36_spill] sm:$0xff] %v7634_v4  ;;  %6850 = vset.pattern.permute.xlu1 %v10574_v20  ;;  %v7637_v47 = vpack.c.bf16 %v515_v5, %v512_v15  ;;  %v2828_v15 = vmul.f32 %v7268_v23, %v7170_v35 }
 0x165   :  { %6889 = vset.pattern.permute.xlu0 %v10587_v58  ;;  %1175 = vperm.xlu1 %6850, %v7397_v34   ;;  %v6464_v42 = vpop.f32.mrf.mxu0  ;;  %10605 = vst [vmem:[#allocation38_spill] sm:$0xff] %v7655_v53  ;;  %v2851_v34 = vadd.f32 %v7284_v45, %v2829_v50  ;;  %v2831_v50 = vmul.f32 %v7268_v23, %v7153_v25 }
 0x166   :  { %2572 = vperm.xlu0 %6889, %v7557_v14   ;;  %6476 = vmatprep.mubr.msk.bf16.mxu1 %vm553_vm4, %v7637_v47  ;;  %v2850_v61 = vadd.f32 %v7284_v45, %v2828_v15  ;;  %v2825_v15 = vmul.f32 %v7268_v23, %v7179_v41 }
 0x167   :  { %v528_v33 = vpop.f32.mrf.mxu0  ;;  %6477 = vmatmul.mubr.msk.bf16.gmra.mxu1 %vm553_vm4, %v7640_v13  ;;  %v7666_v43 = vmax.f32 %v2851_v34, 0.0 }
 0x168   :  { %6491 = vmatmul.mubr.msk.bf16.gmra.mxu0 %vm553_vm4, %v7599_v8  ;;  %v7658_v22 = vpop.permute.xlu1 %1215 }
 0x169   :  { %10606 = vst [vmem:[#allocation39_spill] sm:$0xff] %v7658_v22  ;;  %1179 = vperm.xlu1 %6850, %v7375_v36   ;;  %6494 = vmatprep.mubr.msk.bf16.mxu0 %vm553_vm4, %v7637_v47  ;;  %v6465_v5 = vpop.f32.mrf.mxu0  ;;  %10607 = vst [vmem:[#allocation40_spill] sm:$0xff] %v7666_v43 }
 0x16a   :  { %4021 = vperm.xlu0 %6889, %v7655_v53   ;;  %v7672_v22 = vpack.c.bf16 %v6465_v5, %v6464_v42  ;;  %v7678_v53 = vpop.permute.xlu0 %1199 }
 0x16b   :  { %v531_v4 = vpop.f32.mrf.mxu0  ;;  %10609 = vst [vmem:[#allocation42_spill] sm:$0xff] %v7678_v53 }
 0x16c   :  { %v7664_v14 = vpack.c.bf16 %v531_v4, %v528_v33  ;;  %v7686_v4 = vmax.f32 %v2850_v61, 0.0  ;;  %v2830_v33 = vmul.f32 %v7268_v23, %v7161_v31 }
 0x16d   :  { %6851 = vset.pattern.permute.xlu1 %v10587_v58  ;;  %v7674_v26 = vpop.permute.xlu1 %1010 }
 0x16e   :  { %10608 = vst [vmem:[#allocation41_spill] sm:$0xff] %v7674_v26  ;;  %4001 = vperm.xlu0 %6889, %v7666_v43   ;;  %1377 = vperm.xlu1 %6851, %v7375_v36   ;;  %10610 = vst [vmem:[#allocation43_spill] sm:$0xff] %v7686_v4  ;;  %v2853_v36 = vadd.f32 %v7284_v45, %v2831_v50  ;;  %v7705_v34 = vpop.permute.xlu0 %1195  ;;  %v2852_v61 = vadd.f32 %v7284_v45, %v2830_v33 }
 0x16f   :  { %6480 = vmatprep.mubr.msk.bf16.mxu1 %vm553_vm4, %v7664_v14  ;;  %10612 = vst [vmem:[#allocation45_spill] sm:$0xff] %v7705_v34  ;;  %v2824_v33 = vmul.f32 %v7268_v23, %v7191_v46  ;;  %v135_v34 = vld [vmem:[%s5736_s27] sm:$0xf]  ;;  %s5757_s27 = sld [smem:[%s10396_s0 + %s7004_s24]]  }
 0x170   :  { %6481 = vmatmul.mubr.msk.bf16.gmra.mxu1 %vm553_vm4, %v7672_v22  ;;  %6495 = vmatmul.mubr.msk.bf16.gmra.mxu0 %vm553_vm4, %v7640_v13  ;;  %v7707_v5 = vmax.f32 %v2853_v36, 0.0  ;;  %v7727_v36 = vmax.f32 %v2852_v61, 0.0 }
 0x171   :  { %6498 = vmatprep.mubr.msk.bf16.mxu0 %vm553_vm4, %v7664_v14  ;;  %6504 = vmatprep.mubr.msk.bf16.mxu1 %vm553_vm4, %v7568_v12  ;;  %v7698_v42 = vpop.permute.xlu1 %1014 }
 0x172   :  { %10611 = vst [vmem:[#allocation44_spill] sm:$0xff] %v7698_v42  ;;  %3997 = vperm.xlu0 %6889, %v7686_v4   ;;  %6852 = vset.pattern.permute.xlu1 %v10579_v11  ;;  %v10614_v4 = vrot.slane %v7575_v9, 2  ;;  %v2847_v9 = vadd.f32 %v7284_v45, %v2825_v15  ;;  %v2846_v15 = vadd.f32 %v7284_v45, %v2824_v33 }
 0x173   :  { %1965 = vperm.xlu1 %6852, %v7514_v30  }
 0x174   :  { %v1273_v26 = vsel %vm578_vm3, %v10614_v4, 0  ;;  %v7732_v4 = vpop.permute.xlu0 %716  ;;  %v7740_v61 = vmax.f32 %v2847_v9, 0.0  ;;  %v7756_v33 = vmax.f32 %v2846_v15, 0.0  ;;  %v2827_v9 = vmul.f32 %v7268_v23, %v7172_v37 }
 0x175   :  { %10615 = vst [vmem:[#allocation47_spill] sm:$0xff] %v7732_v4  ;;  %v2826_v15 = vmul.f32 %v7268_v23, %v7177_v40 }
 0x176   :  { %6908 = vset.pattern.permute.xlu0 %v10574_v20  ;;  %v7711_v50 = vpop.permute.xlu1 %1417  ;;  %10617 = vst [vmem:[#allocation49_spill] sm:$0xff] %v7740_v61  ;;  %10620 = vst [vmem:[#allocation52_spill] sm:$0xff] %v7756_v33 }
 0x177   :  { %10613 = vst [vmem:[#allocation46_spill] sm:$0xff] %v7711_v50  ;;  %3764 = vperm.xlu0 %6908, %v7707_v5   ;;  %6853 = vset.pattern.permute.xlu1 %v10582_v63  ;;  %v1486_v50 = vpack.c.bf16 %v135_v34, %v135_v34 }
 0x178   :  { %2236 = vperm.xlu1 %6853, %v7422_v1   ;;  %6499 = vmatmul.mubr.msk.bf16.gmra.mxu0 %vm553_vm4, %v7672_v22  ;;  %v7749_v43 = vpop.permute.xlu0 %691 }
 0x179   :  { %6505 = vmatmul.mubr.msk.bf16.vlgmr.msra.gmra.mxu1 %vm553_vm4, %v7570_v21  ;;  %6522 = vmatprep.mubr.msk.bf16.mxu0 %vm553_vm4, %v7568_v12  ;;  %v1490_v53 = vsel %vm578_vm3, %v1486_v50, 0  ;;  %10618 = vst [vmem:[#allocation50_spill] sm:$0xff] %v7749_v43 }
 0x17a   :  { %6508 = vmatprep.mubr.msk.bf16.mxu1 %vm553_vm4, %v7597_v39  ;;  %6539 = vmatpush3.bf16.msra.mxu1 %v1273_v26  ;;  %v2832_v26 = vmul.f32 %v7268_v23, %v7151_v24 }
 0x17b   :  { %3760 = vperm.xlu0 %6908, %v7727_v36   ;;  %6562 = vmatprep.subr.bf16.mxu1 %v10602_v0  ;;  %v7736_v42 = vpop.permute.xlu1 %711 }
 0x17c   :  { %10616 = vst [vmem:[#allocation48_spill] sm:$0xff] %v7736_v42  ;;  %6854 = vset.pattern.permute.xlu1 %v10579_v11  ;;  %v2854_v50 = vadd.f32 %v7284_v45, %v2832_v26  ;;  %v2849_v42 = vadd.f32 %v7284_v45, %v2827_v9  ;;  %v7775_v43 = vpop.permute.xlu0 %686 }
 0x17d   :  { %1950 = vperm.xlu1 %6854, %v7476_v29   ;;  %10623 = vst [vmem:[#allocation55_spill] sm:$0xff] %v7775_v43 }
 0x17e   :  { %v7792_v9 = vmax.f32 %v2849_v42, 0.0 }
 0x17f   :  { %3740 = vperm.xlu0 %6908, %v7740_v61  }
 0x180   :  { %6523 = vmatmul.mubr.msk.bf16.vlgmr.msra.gmra.mxu0 %vm553_vm4, %v7570_v21  ;;  %v7753_v34 = vpop.permute.xlu1 %1207  ;;  %10625 = vst [vmem:[#allocation57_spill] sm:$0xff] %v7792_v9  ;;  %v7797_v43 = vpop.permute.xlu0 %1034 }
 0x181   :  { %6509 = vmatmul.mubr.msk.bf16.gmra.mxu1 %vm553_vm4, %v7599_v8  ;;  %10619 = vst [vmem:[#allocation51_spill] sm:$0xff] %v7753_v34  ;;  %1955 = vperm.xlu1 %6854, %v7429_v7   ;;  %v7772_v34 = vmax.f32 %v2854_v50, 0.0  ;;  %v2848_v50 = vadd.f32 %v7284_v45, %v2826_v15 }
 0x182   :  { %6512 = vmatprep.mubr.msk.bf16.mxu1 %vm553_vm4, %v7637_v47  ;;  %6526 = vmatprep.mubr.msk.bf16.mxu0 %vm553_vm4, %v7597_v39 }
 0x183   :  { %3736 = vperm.xlu0 %6908, %v7756_v33   ;;  %6557 = vmatpush3.bf16.msra.mxu0 %v1490_v53  ;;  %10622 = vst [vmem:[#allocation54_spill] sm:$0xff] %v7772_v34  ;;  %v2821_v53 = vmul.f32 %v7268_v23, %v7209_v56 }
 0x184   :  { %v7766_v4 = vpop.permute.xlu1 %1211  ;;  %v7822_v15 = vpop.permute.xlu0 %1026 }
 0x185   :  { %10621 = vst [vmem:[#allocation53_spill] sm:$0xff] %v7766_v4  ;;  %6856 = vset.pattern.permute.xlu1 %v10574_v20  ;;  %v2820_v4 = vmul.f32 %v7268_v23, %v7233_v3  ;;  %v2843_v28 = vadd.f32 %v7284_v45, %v2821_v53 }
 0x186   :  { %2434 = vperm.xlu1 %6856, %v7514_v30  }
 0x187   :  { %6915 = vset.pattern.permute.xlu0 %v10579_v11  ;;  %v7817_v3 = vmax.f32 %v2843_v28, 0.0  ;;  %v2842_v42 = vadd.f32 %v7284_v45, %v2820_v4  ;;  %v7890_v4 = vmax.f32 %v7292_v51, 0.0 }
 0x188   :  { %3195 = vperm.xlu0 %6915, %v7772_v34   ;;  %6527 = vmatmul.mubr.msk.bf16.gmra.mxu0 %vm553_vm4, %v7599_v8  ;;  %v7801_v34 = vmax.f32 %v2848_v50, 0.0  ;;  %v7835_v28 = vpop.permute.xlu0 %1022 }
 0x189   :  { %6513 = vmatmul.mubr.msk.bf16.gmra.mxu1 %vm553_vm4, %v7640_v13  ;;  %6530 = vmatprep.mubr.msk.bf16.mxu0 %vm553_vm4, %v7637_v47  ;;  %v7789_v26 = vpop.permute.xlu1 %1006  ;;  %10628 = vst [vmem:[#allocation60_spill] sm:$0xff] %v7817_v3  ;;  %v7828_v50 = vmax.f32 %v2842_v42, 0.0  ;;  %10632 = vst [vmem:[#allocation64_spill] sm:$0xff] %v7890_v4 }
 0x18a   :  { %6516 = vmatprep.mubr.msk.bf16.mxu1 %vm553_vm4, %v7664_v14  ;;  %10624 = vst [vmem:[#allocation56_spill] sm:$0xff] %v7789_v26  ;;  %6857 = vset.pattern.permute.xlu1 %v10582_v63  ;;  %10626 = vst [vmem:[#allocation58_spill] sm:$0xff] %v7801_v34 }
 0x18b   :  { %2228 = vperm.xlu1 %6857, %v7476_v29   ;;  %10629 = vst [vmem:[#allocation61_spill] sm:$0xff] %v7828_v50 }
 0x18c   :  { %3170 = vperm.xlu0 %6915, %v7792_v9  }
 0x18e   :  { %v7804_v26 = vpop.permute.xlu1 %1405 }
 0x18f   :  { %10627 = vst [vmem:[#allocation59_spill] sm:$0xff] %v7804_v26  ;;  %6858 = vset.pattern.permute.xlu1 %v10587_v58 }
 0x190   :  { %2624 = vperm.xlu1 %6858, %v7422_v1   ;;  %3165 = vperm.xlu0 %6915, %v7801_v34   ;;  %v2833_v1 = vmul.f32 %v7268_v23, %v7140_v19 }
 0x191   :  { %6517 = vmatmul.mubr.msk.bf16.gmra.mxu1 %vm553_vm4, %v7672_v22  ;;  %6531 = vmatmul.mubr.msk.bf16.gmra.mxu0 %vm553_vm4, %v7640_v13 }
 0x192   :  { %6534 = vmatprep.mubr.msk.bf16.mxu0 %vm553_vm4, %v7664_v14  ;;  %6540 = vmatprep.mubr.msk.bf16.mxu1 %vm553_vm4, %v7568_v12  ;;  %v2855_v34 = vadd.f32 %v7284_v45, %v2833_v1  ;;  %v4421_v1 = vmul.f32 %v7306_v6, %v7151_v24 }
 0x193   :  { %v7824_v53 = vpop.permute.xlu1 %701 }
 0x194   :  { %2628 = vperm.xlu1 %6858, %v7514_v30   ;;  %3140 = vperm.xlu0 %6915, %v7817_v3   ;;  %v7844_v23 = vmax.f32 %v2855_v34, 0.0  ;;  %v7853_v30 = vpop.permute.xlu0 %1002  ;;  %v4422_v34 = vmul.f32 %v7306_v6, %v7140_v19 }
 0x197   :  { %v7831_v12 = vpop.permute.xlu1 %706 }
 0x198   :  { %10630 = vst [vmem:[#allocation62_spill] sm:$0xff] %v7831_v12  ;;  %6859 = vset.pattern.permute.xlu1 %v10579_v11  ;;  %3135 = vperm.xlu0 %6915, %v7828_v50  }
 0x199   :  { %6535 = vmatmul.mubr.msk.bf16.gmra.mxu0 %vm553_vm4, %v7672_v22  ;;  %6541 = vmatmul.mubr.msk.bf16.vlgmr.msra.gmra.mxu1 %vm553_vm4, %v7570_v21 }
 0x19a   :  { %1945 = vperm.xlu1 %6859, %v7487_v38   ;;  %6544 = vmatprep.mubr.msk.bf16.mxu1 %vm553_vm4, %v7597_v39 }
 0x19b   :  { %6558 = vmatprep.mubr.msk.bf16.mxu0 %vm6988_vm6, %v10602_v0 }
 0x19c   :  { %6919 = vset.pattern.permute.xlu0 %v10582_v63  ;;  %v7849_v45 = vpop.permute.xlu1 %1203 }
 0x19d   :  { %3527 = vperm.xlu0 %6919, %v7844_v23  }
 0x19e   :  { %6860 = vset.pattern.permute.xlu1 %v10574_v20 }
 0x19f   :  { %2422 = vperm.xlu1 %6860, %v7476_v29   ;;  %v7869_v29 = vpop.permute.xlu0 %998 }
 0x1a0   :  { %10631 = vst [vmem:[#allocation63_spill] sm:$0xff] %v7869_v29 }
 0x1a1   :  { %6545 = vmatmul.mubr.msk.bf16.gmra.mxu1 %vm553_vm4, %v7599_v8  ;;  %6559 = vmatmul.mubr.msk.bf16.vlgmr.msra.gmra.mxu0 %vm553_vm4, %v7030_v10  ;;  %v7863_v21 = vpop.permute.xlu1 %994 }
 0x1a2   :  { %3519 = vperm.xlu0 %6919, %v7707_v5   ;;  %6548 = vmatprep.mubr.msk.bf16.mxu1 %vm553_vm4, %v7637_v47 }
 0x1a3   :  { %6584 = vmatprep.mubr.msk.bf16.mxu0 %vm417_vm5, %v7078_v48  ;;  %6862 = vset.pattern.permute.xlu1 %v10582_v63  ;;  %v7880_v10 = vpop.permute.xlu0 %978  ;;  %v4444_v48 = vadd.f32 %v7326_v27, %v4422_v34 }
 0x1a4   :  { %2220 = vperm.xlu1 %6862, %v7444_v16  }
 0x1a5   :  { %v7931_v19 = vmax.f32 %v4444_v48, 0.0  ;;  %v4418_v48 = vmul.f32 %v7306_v6, %v7163_v32  ;;  %v4412_v32 = vmul.f32 %v7306_v6, %v7193_v49 }
 0x1a6   :  { %3515 = vperm.xlu0 %6919, %v7727_v36   ;;  %v7872_v39 = vpop.permute.xlu1 %1397 }
 0x1a7   :  { %10638 = vst [vmem:[#allocation70_spill] sm:$0xff] %v7931_v19  ;;  %v4434_v49 = vadd.f32 %v7326_v27, %v4412_v32 }
 0x1a8   :  { %2224 = vperm.xlu1 %6862, %v7487_v38  }
 0x1a9   :  { %6549 = vmatmul.mubr.msk.bf16.gmra.mxu1 %vm553_vm4, %v7640_v13  ;;  %v7892_v13 = vpop.permute.xlu0 %1389 }
 0x1aa   :  { %3495 = vperm.xlu0 %6919, %v7740_v61   ;;  %6552 = vmatprep.mubr.msk.bf16.mxu1 %vm553_vm4, %v7664_v14  ;;  %v7882_v47 = vpop.permute.xlu1 %1401  ;;  %10633 = vst [vmem:[#allocation65_spill] sm:$0xff] %v7892_v13  ;;  %v7904_v14 = vmax.f32 %v7297_v54, 0.0 }
 0x1ac   :  { %6863 = vset.pattern.permute.xlu1 %v10587_v58  ;;  %10635 = vst [vmem:[#allocation67_spill] sm:$0xff] %v7904_v14 }
 0x1ad   :  { %2620 = vperm.xlu1 %6863, %v7429_v7   ;;  %v7908_v51 = vpop.permute.xlu0 %1385 }
 0x1ae   :  { %3491 = vperm.xlu0 %6919, %v7756_v33  }
 0x1af   :  { %v7887_v8 = vpop.permute.xlu1 %696 }
 0x1b1   :  { %6864 = vset.pattern.permute.xlu1 %v10579_v11  ;;  %6553 = vmatmul.mubr.msk.bf16.gmra.mxu1 %vm553_vm4, %v7672_v22  ;;  %v7913_v22 = vmax.f32 %v7300_v59, 0.0  ;;  %v7921_v54 = vpop.permute.xlu0 %1373 }
 0x1b2   :  { %1930 = vperm.xlu1 %6864, %v7530_v44   ;;  %3471 = vperm.xlu0 %6919, %v7890_v4   ;;  %10637 = vst [vmem:[#allocation69_spill] sm:$0xff] %v7921_v54 }
 0x1b3   :  { %6578 = vmatprep.mubr.msk.bf16.mxu1 %vm6988_vm6, %v10602_v0  ;;  %10636 = vst [vmem:[#allocation68_spill] sm:$0xff] %v7913_v22 }
 0x1b4   :  { %v7901_v7 = vpop.permute.xlu1 %1191 }
 0x1b5   :  { %10634 = vst [vmem:[#allocation66_spill] sm:$0xff] %v7901_v7  ;;  %v7934_v50 = vpop.permute.xlu0 %2430 }
 0x1b6   :  { %6865 = vset.pattern.permute.xlu1 %v10574_v20  ;;  %6921 = vset.pattern.permute.xlu0 %v10587_v58  ;;  %10639 = vst [vmem:[#allocation71_spill] sm:$0xff] %v7934_v50  ;;  %v4417_v50 = vmul.f32 %v7306_v6, %v7170_v35 }
 0x1b7   :  { %2414 = vperm.xlu1 %6865, %v7444_v16   ;;  %3977 = vperm.xlu0 %6921, %v7904_v14  }
 0x1b8   :  { %v4439_v3 = vadd.f32 %v7326_v27, %v4417_v50  ;;  %v7980_v50 = vmax.f32 %v4434_v49, 0.0  ;;  %v4414_v49 = vmul.f32 %v7306_v6, %v7179_v41 }
 0x1b9   :  { %v7917_v42 = vpop.permute.xlu1 %986 }
 0x1ba   :  { %10647 = vst [vmem:[#allocation79_spill] sm:$0xff] %v7980_v50  ;;  %v4436_v41 = vadd.f32 %v7326_v27, %v4414_v49 }
 0x1bb   :  { %2418 = vperm.xlu1 %6865, %v7487_v38   ;;  %3973 = vperm.xlu0 %6921, %v7913_v22   ;;  %v4443_v38 = vadd.f32 %v7326_v27, %v4421_v1  ;;  %v7947_v1 = vpop.permute.xlu0 %2426 }
 0x1bc   :  { %10642 = vst [vmem:[#allocation74_spill] sm:$0xff] %v7947_v1 }
 0x1bd   :  { %v7928_v59 = vpop.permute.xlu1 %990  ;;  %v7942_v34 = vmax.f32 %v4443_v38, 0.0 }
 0x1bf   :  { %6866 = vset.pattern.permute.xlu1 %v10582_v63  ;;  %3961 = vperm.xlu0 %6921, %v7890_v4   ;;  %10641 = vst [vmem:[#allocation73_spill] sm:$0xff] %v7942_v34  ;;  %v7961_v38 = vpop.permute.xlu0 %1960 }
 0x1c0   :  { %2216 = vperm.xlu1 %6866, %v7451_v57   ;;  %10643 = vst [vmem:[#allocation75_spill] sm:$0xff] %v7961_v38 }
 0x1c2   :  { %v7940_v24 = vpop.permute.xlu1 %1393 }
 0x1c3   :  { %6929 = vset.pattern.permute.xlu0 %v10574_v20  ;;  %10640 = vst [vmem:[#allocation72_spill] sm:$0xff] %v7940_v24  ;;  %v7976_v38 = vpop.permute.xlu0 %1940 }
 0x1c4   :  { %6867 = vset.pattern.permute.xlu1 %v10587_v58  ;;  %5300 = vperm.xlu0 %6929, %v7931_v19   ;;  %10646 = vst [vmem:[#allocation78_spill] sm:$0xff] %v7976_v38  ;;  %v4419_v38 = vmul.f32 %v7306_v6, %v7161_v31  ;;  %v4413_v31 = vmul.f32 %v7306_v6, %v7191_v46 }
 0x1c5   :  { %2608 = vperm.xlu1 %6867, %v7444_v16   ;;  %v4440_v16 = vadd.f32 %v7326_v27, %v4418_v48  ;;  %v4411_v48 = vmul.f32 %v7306_v6, %v7207_v55  ;;  %v4423_v46 = vmul.f32 %v7306_v6, %v7138_v18  ;;  %v6968_v18 = vld [vmem:[%s7265_s11] ss:$0 sm:$0xff]  ;;  %s5749_s11 = sld [smem:[%s10396_s0 + %s7000_s8]]  }
 0x1c7   :  { %v7954_v4 = vpop.permute.xlu1 %681  ;;  %v7963_v1 = vmax.f32 %v4440_v16, 0.0  ;;  %v4433_v16 = vadd.f32 %v7326_v27, %v4411_v48 }
 0x1c8   :  { %5296 = vperm.xlu0 %6929, %v7942_v34  }
 0x1c9   :  { %6868 = vset.pattern.permute.xlu1 %v10579_v11  ;;  %10644 = vst [vmem:[#allocation76_spill] sm:$0xff] %v7963_v1  ;;  %v7991_v32 = vmax.f32 %v4433_v16, 0.0  ;;  %v4441_v16 = vadd.f32 %v7326_v27, %v4419_v38  ;;  %v8023_v38 = vmax.f32 %v4436_v41, 0.0  ;;  %v4445_v41 = vadd.f32 %v7326_v27, %v4423_v46 }
 0x1ca   :  { %1920 = vperm.xlu1 %6868, %v7494_v17  }
 0x1cb   :  { %10649 = vst [vmem:[#allocation81_spill] sm:$0xff] %v7991_v32  ;;  %10655 = vst [vmem:[#allocation87_spill] sm:$0xff] %v8023_v38 }
 0x1cc   :  { %6935 = vset.pattern.permute.xlu0 %v10579_v11  ;;  %v7967_v35 = vpop.permute.xlu1 %1183 }
 0x1cd   :  { %4800 = vperm.xlu0 %6935, %v7931_v19   ;;  %v7973_v19 = vmax.f32 %v4439_v3, 0.0  ;;  %v7989_v3 = vpop.permute.xlu0 %1935 }
 0x1ce   :  { %1925 = vperm.xlu1 %6868, %v7539_v52   ;;  %10648 = vst [vmem:[#allocation80_spill] sm:$0xff] %v7989_v3 }
 0x1cf   :  { %10645 = vst [vmem:[#allocation77_spill] sm:$0xff] %v7973_v19 }
 0x1d0   :  { %v7985_v55 = vpop.permute.xlu1 %1187 }
 0x1d1   :  { %4780 = vperm.xlu0 %6935, %v7963_v1   ;;  %v4420_v1 = vmul.f32 %v7306_v6, %v7153_v25  ;;  %v8006_v3 = vpop.permute.xlu0 %1910  ;;  %v4416_v6 = vmul.f32 %v6968_v18, %v7172_v37  ;;  %v4410_v37 = vmul.f32 %v6968_v18, %v7209_v56 }
 0x1d2   :  { %6869 = vset.pattern.permute.xlu1 %v10574_v20  ;;  %10652 = vst [vmem:[#allocation84_spill] sm:$0xff] %v8006_v3 }
 0x1d3   :  { %2410 = vperm.xlu1 %6869, %v7451_v57   ;;  %v4442_v48 = vadd.f32 %v7326_v27, %v4420_v1  ;;  %v8015_v1 = vmax.f32 %v4441_v16, 0.0  ;;  %v4438_v46 = vadd.f32 %v7326_v27, %v4416_v6 }
 0x1d5   :  { %4775 = vperm.xlu0 %6935, %v7973_v19   ;;  %10653 = vst [vmem:[#allocation85_spill] sm:$0xff] %v8015_v1 }
 0x1d6   :  { %v7999_v25 = vpop.permute.xlu1 %982 }
 0x1d7   :  { %6870 = vset.pattern.permute.xlu1 %v10582_v63  ;;  %10650 = vst [vmem:[#allocation82_spill] sm:$0xff] %v7999_v25 }
 0x1d8   :  { %2204 = vperm.xlu1 %6870, %v7494_v17  }
 0x1d9   :  { %4750 = vperm.xlu0 %6935, %v7980_v50   ;;  %v8003_v50 = vmax.f32 %v4442_v48, 0.0  ;;  %v4435_v48 = vadd.f32 %v7326_v27, %v4413_v31 }
 0x1db   :  { %10651 = vst [vmem:[#allocation83_spill] sm:$0xff] %v8003_v50  ;;  %v8033_v49 = vmax.f32 %v4435_v48, 0.0  ;;  %v4415_v48 = vmul.f32 %v6968_v18, %v7177_v40 }
 0x1dc   :  { %6871 = vset.pattern.permute.xlu1 %v10587_v58 }
 0x1dd   :  { %2600 = vperm.xlu1 %6871, %v7530_v44   ;;  %4745 = vperm.xlu0 %6935, %v7991_v32   ;;  %v8013_v44 = vpop.permute.xlu1 %1381  ;;  %10657 = vst [vmem:[#allocation89_spill] sm:$0xff] %v8033_v49  ;;  %v6969_v32 = vld [vmem:[%s7289_s15] ss:$0 sm:$0xff]  ;;  %s9762_s15 = sld [smem:[%s10396_s0 + %s7001_s12]]  }
 0x1de   :  { %v4432_v6 = vadd.f32 %v6969_v32, %v4410_v37 }
 0x1e1   :  { %2604 = vperm.xlu1 %6871, %v7451_v57   ;;  %6951 = vset.pattern.permute.xlu0 %v10587_v58  ;;  %v8021_v57 = vpop.permute.xlu0 %1905  ;;  %v8028_v16 = vpop.permute.xlu1 %1175 }
 0x1e2   :  { %5501 = vperm.xlu0 %6951, %v8003_v50   ;;  %10654 = vst [vmem:[#allocation86_spill] sm:$0xff] %v8021_v57  ;;  %10656 = vst [vmem:[#allocation88_spill] sm:$0xff] %v8028_v16  ;;  %v8045_v57 = vmax.f32 %v4445_v41, 0.0 }
 0x1e4   :  { %10660 = vst [vmem:[#allocation92_spill] sm:$0xff] %v8045_v57 }
 0x1e5   :  { %6872 = vset.pattern.permute.xlu1 %v10579_v11  ;;  %v8035_v3 = vpop.permute.xlu0 %2616  ;;  %v8040_v31 = vpop.permute.xlu1 %1179 }
 0x1e6   :  { %1915 = vperm.xlu1 %6872, %v7504_v60   ;;  %5497 = vperm.xlu0 %6951, %v8015_v1   ;;  %10658 = vst [vmem:[#allocation90_spill] sm:$0xff] %v8035_v3  ;;  %10659 = vst [vmem:[#allocation91_spill] sm:$0xff] %v8040_v31 }
 0x1e9   :  { %v8054_v3 = vpop.permute.xlu1 %1377 }
 0x1ea   :  { %6873 = vset.pattern.permute.xlu1 %v10574_v20  ;;  %5477 = vperm.xlu0 %6951, %v8023_v38   ;;  %10662 = vst [vmem:[#allocation94_spill] sm:$0xff] %v8054_v3 }
 0x1eb   :  { %2398 = vperm.xlu1 %6873, %v7494_v17   ;;  %v8048_v17 = vpop.permute.xlu0 %2612 }
 0x1ec   :  { %10661 = vst [vmem:[#allocation93_spill] sm:$0xff] %v8048_v17  ;;  %v8062_v17 = vmax.f32 %v4438_v46, 0.0 }
 0x1ee   :  { %5473 = vperm.xlu0 %6951, %v8033_v49   ;;  %10664 = vst [vmem:[#allocation96_spill] sm:$0xff] %v8062_v17  ;;  %v4437_v49 = vadd.f32 %v6969_v32, %v4415_v48  ;;  %v8066_v40 = vpop.permute.xlu1 %1965 }
 0x1ef   :  { %6874 = vset.pattern.permute.xlu1 %v10582_v63  ;;  %v8059_v41 = vpop.permute.xlu0 %2592  ;;  %10665 = vst [vmem:[#allocation97_spill] sm:$0xff] %v8066_v40 }
 0x1f0   :  { %2196 = vperm.xlu1 %6874, %v7456_v62   ;;  %10663 = vst [vmem:[#allocation95_spill] sm:$0xff] %v8059_v41  ;;  %v8069_v27 = vmax.f32 %v4437_v49, 0.0  ;;  %v10671_v49 = vld [vmem:[#allocation11_spill] sm:$0xff] }
 0x1f1   :  { %v8085_v32 = vmax.f32 %v10671_v49, 0.0 }
 0x1f2   :  { %6955 = vset.pattern.permute.xlu0 %v10582_v63  ;;  %10666 = vst [vmem:[#allocation98_spill] sm:$0xff] %v8069_v27 }
 0x1f3   :  { %5095 = vperm.xlu0 %6955, %v8045_v57   ;;  %v8072_v56 = vpop.permute.xlu0 %2588  ;;  %v8077_v18 = vpop.permute.xlu1 %2236  ;;  %10672 = vst [vmem:[#allocation11_spill] sm:$0xff] %v8085_v32 }
 0x1f4   :  { %2200 = vperm.xlu1 %6874, %v7504_v60   ;;  %10667 = vst [vmem:[#allocation99_spill] sm:$0xff] %v8072_v56  ;;  %10669 = vst [vmem:[#allocation101_spill] sm:$0xff] %v8077_v18 }
 0x1f7   :  { %5087 = vperm.xlu0 %6955, %v7942_v34   ;;  %v8082_v48 = vpop.permute.xlu0 %2240 }
 0x1f8   :  { %6875 = vset.pattern.permute.xlu1 %v10587_v58  ;;  %10670 = vst [vmem:[#allocation102_spill] sm:$0xff] %v8082_v48  ;;  %v8089_v46 = vpop.permute.xlu1 %1950  ;;  %v10680_v48 = vld [vmem:[#allocation12_spill] sm:$0xff] }
 0x1f9   :  { %2596 = vperm.xlu1 %6875, %v7539_v52   ;;  %v8075_v52 = vmax.f32 %v4432_v6, 0.0  ;;  %10673 = vst [vmem:[#allocation103_spill] sm:$0xff] %v8089_v46  ;;  %v10675_v6 = vld [vmem:[#allocation13_spill] sm:$0xff]  ;;  %v8110_v18 = vmax.f32 %v10680_v48, 0.0  ;;  %v10687_v48 = vld [vmem:[#allocation50_spill] sm:$0xff] }
 0x1fb   :  { %5067 = vperm.xlu0 %6955, %v8062_v17   ;;  %10668 = vst [vmem:[#allocation100_spill] sm:$0xff] %v8075_v52  ;;  %v8091_v37 = vpop.permute.xlu0 %2232 }
 0x1fc   :  { %10674 = vst [vmem:[#allocation104_spill] sm:$0xff] %v8091_v37  ;;  %v8097_v56 = vpop.permute.xlu1 %1955  ;;  %v10679_v37 = vld [vmem:[#allocation34_spill] sm:$0xff] }
 0x1fd   :  { %6876 = vset.pattern.permute.xlu1 %v10579_v11  ;;  %10676 = vst [vmem:[#allocation13_spill] sm:$0xff] %v8097_v56  ;;  %10681 = vst [vmem:[#allocation34_spill] sm:$0xff] %v8110_v18 }
 0x1fe   :  { %1900 = vperm.xlu1 %6876, %v7549_v2  }
 0x1ff   :  { %5063 = vperm.xlu0 %6955, %v8069_v27  }
 0x201   :  { %v8104_v49 = vpop.permute.xlu1 %2434 }
 0x202   :  { %6878 = vset.pattern.permute.xlu1 %v10574_v20  ;;  %10678 = vst [vmem:[#allocation106_spill] sm:$0xff] %v8104_v49 }
 0x203   :  { %2390 = vperm.xlu1 %6878, %v7456_v62   ;;  %5043 = vperm.xlu0 %6955, %v8075_v52  }
 0x207   :  { %2394 = vperm.xlu1 %6878, %v7504_v60   ;;  %5039 = vperm.xlu0 %6955, %v8085_v32   ;;  %v8101_v60 = vpop.permute.xlu0 %2212 }
 0x208   :  { %10677 = vst [vmem:[#allocation105_spill] sm:$0xff] %v8101_v60  ;;  %v8115_v60 = vpop.permute.xlu1 %2228 }
 0x209   :  { %10683 = vst [vmem:[#allocation107_spill] sm:$0xff] %v8115_v60 }
 0x20b   :  { %6879 = vset.pattern.permute.xlu1 %v10582_v63  ;;  %6959 = vset.pattern.permute.xlu0 %v10574_v20  ;;  %v8112_v56 = vpop.permute.xlu0 %2208 }
 0x20c   :  { %2192 = vperm.xlu1 %6879, %v10675_v6   ;;  %5276 = vperm.xlu0 %6959, %v8062_v17   ;;  %10682 = vst [vmem:[#allocation12_spill] sm:$0xff] %v8112_v56 }
 0x20f   :  { %v8119_v46 = vpop.permute.xlu0 %2188 }
 0x210   :  { %6880 = vset.pattern.permute.xlu1 %v10587_v58  ;;  %5272 = vperm.xlu0 %6959, %v8069_v27   ;;  %v8127_v27 = vpop.permute.xlu1 %2624 }
 0x211   :  { %2584 = vperm.xlu1 %6880, %v7456_v62   ;;  %v10684_v62 = vld [vmem:[#allocation26_spill] sm:$0xff]  ;;  %10688 = vst [vmem:[#allocation50_spill] sm:$0xff] %v8127_v27 }
 0x212   :  { %10685 = vst [vmem:[#allocation26_spill] sm:$0xff] %v8119_v46 }
 0x214   :  { %5252 = vperm.xlu0 %6959, %v8075_v52   ;;  %v8137_v27 = vpop.permute.xlu1 %2628 }
 0x215   :  { %6882 = vset.pattern.permute.xlu1 %v10579_v11  ;;  %10690 = vst [vmem:[#allocation110_spill] sm:$0xff] %v8137_v27 }
 0x216   :  { %1890 = vperm.xlu1 %6882, %v10679_v37  }
 0x217   :  { %v6470_v40 = vpop.f32.mrf.mxu0 }
 0x218   :  { %5244 = vperm.xlu0 %6959, %v8110_v18   ;;  %v761_v56 = vmul.f32 %v6470_v40, %v10687_v48  ;;  %v8151_v27 = vpop.permute.xlu1 %1945 }
 0x219   :  { %v616_v41 = vpop.f32.mrf.mxu0 }
 0x21a   :  { %1895 = vperm.xlu1 %6882, %v10684_v62   ;;  %v759_v38 = vmul.f32 %v7954_v4, %v616_v41  ;;  %v10692_v4 = vld [vmem:[#allocation48_spill] sm:$0xff] }
 0x21b   :  { %v6471_v49 = vpop.f32.mrf.mxu0  ;;  %10693 = vst [vmem:[#allocation48_spill] sm:$0xff] %v8151_v27 }
 0x21c   :  { %6963 = vset.pattern.permute.xlu0 %v10587_v58  ;;  %v762_v46 = vmul.f32 %v6471_v49, %v7887_v8 }
 0x21d   :  { %5457 = vperm.xlu0 %6963, %v8085_v32   ;;  %v8122_v52 = vpop.f32.mrf.mxu0 }
 0x21e   :  { %10686 = vst [vmem:[#allocation108_spill] sm:$0xff] %v8122_v52  ;;  %6883 = vset.pattern.permute.xlu1 %v10574_v20  ;;  %v10701_v52 = vld [vmem:[#allocation38_spill] sm:$0xff] }
 0x21f   :  { %2386 = vperm.xlu1 %6883, %v10675_v6   ;;  %v6474_v18 = vpop.f32.mrf.mxu1 }
 0x220   :  { %v6488_v60 = vpop.f32.mrf.mxu0  ;;  %v765_v41 = vmul.f32 %v6474_v18, %v10692_v4 }
 0x221   :  { %v821_v19 = vadd.f32 %v6488_v60, %v761_v56  ;;  %v632_v17 = vpop.f32.mrf.mxu1 }
 0x222   :  { %v812_v1 = vpop.f32.mrf.mxu0 }
 0x223   :  { %6884 = vset.pattern.permute.xlu1 %v10582_v63  ;;  %v813_v32 = vadd.f32 %v812_v1, %v759_v38  ;;  %v8132_v34 = vpop.f32.mrf.mxu1  ;;  %v763_v1 = vmul.f32 %v7824_v53, %v632_v17  ;;  %v8165_v17 = vpop.permute.xlu1 %2422 }
 0x224   :  { %2180 = vperm.xlu1 %6884, %v10679_v37   ;;  %v6489_v40 = vpop.f32.mrf.mxu0  ;;  %10695 = vst [vmem:[#allocation113_spill] sm:$0xff] %v8165_v17 }
 0x225   :  { %v824_v48 = vadd.f32 %v6489_v40, %v762_v46  ;;  %v8135_v50 = vpop.f32.mrf.mxu1 }
 0x226   :  { %10689 = vst [vmem:[#allocation109_spill] sm:$0xff] %v8135_v50  ;;  %v8139_v57 = vpop.f32.mrf.mxu0 }
 0x227   :  { %10691 = vst [vmem:[#allocation111_spill] sm:$0xff] %v8139_v57  ;;  %v8142_v56 = vpop.f32.mrf.mxu1  ;;  %v8182_v33 = vpop.permute.xlu1 %2220 }
 0x228   :  { %6886 = vset.pattern.permute.xlu1 %v10587_v58  ;;  %v6492_v8 = vpop.f32.mrf.mxu0  ;;  %10697 = vst [vmem:[#allocation115_spill] sm:$0xff] %v8182_v33 }
 0x229   :  { %2576 = vperm.xlu1 %6886, %v7549_v2   ;;  %v837_v38 = vadd.f32 %v6492_v8, %v765_v41  ;;  %v8147_v60 = vpop.f32.mrf.mxu1 }
 0x22a   :  { %v828_v46 = vpop.f32.mrf.mxu0 }
 0x22b   :  { %v829_v49 = vadd.f32 %v828_v46, %v763_v1  ;;  %v8149_v40 = vpop.f32.mrf.mxu1  ;;  %v8194_v57 = vpop.permute.xlu1 %2224 }
 0x22c   :  { %v8153_v22 = vpop.f32.mrf.mxu0  ;;  %10698 = vst [vmem:[#allocation116_spill] sm:$0xff] %v8194_v57 }
 0x22d   :  { %2580 = vperm.xlu1 %6886, %v10675_v6   ;;  %v8156_v18 = vpop.f32.mrf.mxu1 }
 0x22e   :  { %v8158_v4 = vpop.f32.mrf.mxu0 }
 0x22f   :  { %10694 = vst [vmem:[#allocation112_spill] sm:$0xff] %v8158_v4 }
 0x230   :  { %v8160_v53 = vpop.f32.mrf.mxu1  ;;  %v8162_v2 = vpop.f32.mrf.mxu0 }
 0x231   :  { %6887 = vset.pattern.permute.xlu1 %v10574_v20 }
 0x232   :  { %2378 = vperm.xlu1 %6887, %v10684_v62   ;;  %v8168_v41 = vpop.f32.mrf.mxu1  ;;  %v8170_v8 = vpop.f32.mrf.mxu0 }
 0x233   :  { %10696 = vst [vmem:[#allocation114_spill] sm:$0xff] %v8170_v8 }
 0x234   :  { %v8172_v1 = vpop.f32.mrf.mxu1  ;;  %v8174_v6 = vpop.f32.mrf.mxu0 }
 0x236   :  { %6888 = vset.pattern.permute.xlu1 %v10587_v58  ;;  %v8178_v46 = vpop.f32.mrf.mxu1  ;;  %v8180_v27 = vpop.f32.mrf.mxu0 }
 0x237   :  { %2568 = vperm.xlu1 %6888, %v10679_v37  }
 0x238   :  { %v8184_v17 = vpop.f32.mrf.mxu0 }
 0x239   :  { %v6506_v62 = vpop.f32.mrf.mxu1 }
 0x23a   :  { %v1043_v14 = vmul.f32 %v6506_v62, %v7917_v42  ;;  %v8188_v61 = vpop.f32.mrf.mxu0 }
 0x23b   :  { %6890 = vset.pattern.permute.xlu1 %v10579_v11  ;;  %v914_v3 = vpop.f32.mrf.mxu1 }
 0x23c   :  { %v1059_v54 = vadd.f32 %v1043_v14, %v821_v19  ;;  %3200 = vperm.xlu1 %6890, %v7844_v23   ;;  %v1041_v37 = vmul.f32 %v7880_v10, %v914_v3  ;;  %v8192_v16 = vpop.f32.mrf.mxu0 }
 0x23d   :  { %v6507_v31 = vpop.f32.mrf.mxu1 }
 0x23e   :  { %v8196_v33 = vadd.f32 %v1041_v37, %v813_v32  ;;  %v1044_v25 = vmul.f32 %v6507_v31, %v7928_v59  ;;  %v8199_v42 = vpop.f32.mrf.mxu0  ;;  %v8208_v32 = vpop.permute.xlu1 %2620 }
 0x23f   :  { %v8201_v62 = vpop.f32.mrf.mxu1  ;;  %10703 = vst [vmem:[#allocation119_spill] sm:$0xff] %v8208_v32 }
 0x240   :  { %10699 = vst [vmem:[#allocation117_spill] sm:$0xff] %v8196_v33  ;;  %10700 = vst [vmem:[#allocation118_spill] sm:$0xff] %v8201_v62  ;;  %3205 = vperm.xlu1 %6890, %v10701_v52   ;;  %v1060_v14 = vadd.f32 %v1044_v25, %v824_v48  ;;  %v6524_v19 = vpop.f32.mrf.mxu0 }
 0x241   :  { %v6510_v13 = vpop.f32.mrf.mxu1  ;;  %v1240_v4 = vmul.f32 %v6524_v19, %v7967_v35  ;;  %v10717_v35 = vld [vmem:[#allocation47_spill] sm:$0xff]  ;;  %v10718_v19 = vld [vmem:[#allocation56_spill] sm:$0xff] }
 0x242   :  { %v1047_v10 = vmul.f32 %v6510_v13, %v7853_v30  ;;  %v8205_v3 = vpop.f32.mrf.mxu0 }
 0x243   :  { %10702 = vst [vmem:[#allocation38_spill] sm:$0xff] %v8205_v3  ;;  %v930_v9 = vpop.f32.mrf.mxu1  ;;  %v1256_v26 = vadd.f32 %v1240_v4, %v1059_v54  ;;  %v10719_v54 = vld [vmem:[#allocation40_spill] sm:$0xff] }
 0x244   :  { %6891 = vset.pattern.permute.xlu1 %v10582_v63  ;;  %v8210_v37 = vadd.f32 %v1047_v10, %v837_v38  ;;  %v1045_v59 = vmul.f32 %v7863_v21, %v930_v9  ;;  %v6525_v31 = vpop.f32.mrf.mxu0  ;;  %v8222_v38 = vpop.permute.xlu1 %1930 }
 0x245   :  { %3531 = vperm.xlu1 %6891, %v10701_v52   ;;  %v6511_v57 = vpop.f32.mrf.mxu1  ;;  %10707 = vst [vmem:[#allocation123_spill] sm:$0xff] %v8222_v38 }
 0x246   :  { %v8214_v25 = vadd.f32 %v1045_v59, %v829_v49  ;;  %v8216_v48 = vpop.f32.mrf.mxu0 }
 0x247   :  { %10705 = vst [vmem:[#allocation121_spill] sm:$0xff] %v8216_v48  ;;  %v8218_v30 = vpop.f32.mrf.mxu1 }
 0x248   :  { %10704 = vst [vmem:[#allocation120_spill] sm:$0xff] %v8214_v25  ;;  %10706 = vst [vmem:[#allocation122_spill] sm:$0xff] %v8218_v30  ;;  %v6528_v13 = vpop.f32.mrf.mxu0  ;;  %v8232_v59 = vpop.permute.xlu1 %2414 }
 0x249   :  { %6892 = vset.pattern.permute.xlu1 %v10579_v11  ;;  %v6514_v33 = vpop.f32.mrf.mxu1  ;;  %10710 = vst [vmem:[#allocation126_spill] sm:$0xff] %v8232_v59 }
 0x24a   :  { %3190 = vperm.xlu1 %6892, %v7707_v5   ;;  %v8224_v10 = vpop.f32.mrf.mxu0 }
 0x24b   :  { %10708 = vst [vmem:[#allocation124_spill] sm:$0xff] %v8224_v10  ;;  %v8226_v9 = vpop.f32.mrf.mxu1  ;;  %v10713_v10 = vld [vmem:[#allocation54_spill] sm:$0xff] }
 0x24c   :  { %10709 = vst [vmem:[#allocation125_spill] sm:$0xff] %v8226_v9  ;;  %v6529_v21 = vpop.f32.mrf.mxu0  ;;  %v8243_v24 = vpop.permute.xlu1 %2418 }
 0x24d   :  { %v6515_v32 = vpop.f32.mrf.mxu1  ;;  %10712 = vst [vmem:[#allocation128_spill] sm:$0xff] %v8243_v24 }
 0x24e   :  { %6893 = vset.pattern.permute.xlu1 %v10574_v20  ;;  %v8234_v3 = vpop.f32.mrf.mxu0 }
 0x24f   :  { %3772 = vperm.xlu1 %6893, %v7844_v23   ;;  %v8230_v49 = vpop.f32.mrf.mxu1  ;;  %10711 = vst [vmem:[#allocation127_spill] sm:$0xff] %v8234_v3 }
 0x250   :  { %v8256_v30 = vpop.permute.xlu1 %2216 }
 0x251   :  { %v8236_v48 = vpop.f32.mrf.mxu1  ;;  %v6532_v25 = vpop.f32.mrf.mxu0  ;;  %10716 = vst [vmem:[#allocation130_spill] sm:$0xff] %v8256_v30 }
 0x253   :  { %3776 = vperm.xlu1 %6893, %v10701_v52   ;;  %v8239_v38 = vpop.f32.mrf.mxu1  ;;  %v8249_v59 = vpop.f32.mrf.mxu0  ;;  %v1241_v52 = vmul.f32 %v6525_v31, %v7985_v55  ;;  %v766_v55 = vmul.f32 %v8132_v34, %v10717_v35  ;;  %v1048_v31 = vmul.f32 %v6511_v57, %v10718_v19  ;;  %v1245_v34 = vmul.f32 %v6529_v21, %v7849_v45  ;;  %v10722_v21 = vld [vmem:[#allocation25_spill] sm:$0xff] }
 0x254   :  { %10714 = vst [vmem:[#allocation54_spill] sm:$0xff] %v8249_v59  ;;  %v770_v35 = vmul.f32 %v8149_v40, %v10722_v21  ;;  %v10724_v40 = vld [vmem:[#allocation39_spill] sm:$0xff] }
 0x255   :  { %v8241_v62 = vpop.f32.mrf.mxu1  ;;  %v6533_v24 = vpop.f32.mrf.mxu0  ;;  %v1257_v0 = vadd.f32 %v1241_v52, %v1060_v14 }
 0x257   :  { %6894 = vset.pattern.permute.xlu1 %v10582_v63  ;;  %v8246_v7 = vpop.f32.mrf.mxu1 }
 0x258   :  { %3523 = vperm.xlu1 %6894, %v10713_v10  }
 0x259   :  { %v6542_v3 = vpop.f32.mrf.mxu1 }
 0x25a   :  { %v1438_v12 = vmul.f32 %v6542_v3, %v8013_v44  ;;  %v10720_v44 = vld [vmem:[#allocation42_spill] sm:$0xff] }
 0x25b   :  { %v8253_v29 = vpop.f32.mrf.mxu1  ;;  %v1244_v4 = vmul.f32 %v6528_v13, %v10720_v44  ;;  %v10721_v13 = vld [vmem:[#allocation23_spill] sm:$0xff] }
 0x25c   :  { %10715 = vst [vmem:[#allocation129_spill] sm:$0xff] %v8253_v29  ;;  %6895 = vset.pattern.permute.xlu1 %v10587_v58  ;;  %v8266_v29 = vpop.f32.mrf.mxu0  ;;  %v8268_v30 = vadd.f32 %v1438_v12, %v1256_v26  ;;  %v769_v45 = vmul.f32 %v8142_v56, %v10721_v13  ;;  %v856_v56 = vadd.f32 %v8174_v6, %v770_v35 }
 0x25d   :  { %4017 = vperm.xlu1 %6895, %v7844_v23   ;;  %v6543_v50 = vpop.f32.mrf.mxu1 }
 0x25e   :  { %v1439_v59 = vmul.f32 %v6543_v50, %v7908_v51  ;;  %v840_v51 = vadd.f32 %v8153_v22, %v766_v55  ;;  %v8275_v50 = vpop.permute.xlu1 %2608  ;;  %v6536_v12 = vpop.f32.mrf.mxu0  ;;  %v1260_v22 = vadd.f32 %v1244_v4, %v8210_v37 }
 0x25f   :  { %v8261_v8 = vpop.f32.mrf.mxu1 }
 0x260   :  { %v8270_v9 = vadd.f32 %v1439_v59, %v1257_v0  ;;  %v1064_v0 = vadd.f32 %v1048_v31, %v840_v51  ;;  %v10723_v31 = vld [vmem:[#allocation30_spill] sm:$0xff]  ;;  %v1159_v51 = vpop.f32.mrf.mxu0 }
 0x261   :  { %6896 = vset.pattern.permute.xlu1 %v10579_v11  ;;  %v6546_v23 = vpop.f32.mrf.mxu1 }
 0x262   :  { %3180 = vperm.xlu1 %6896, %v10719_v54   ;;  %v1479_v57 = vpack.c.bf16 %v8270_v9, %v8268_v30  ;;  %v1442_v14 = vmul.f32 %v6546_v23, %v7872_v39  ;;  %v1261_v59 = vadd.f32 %v1245_v34, %v1064_v0  ;;  %v8293_v19 = vpop.permute.xlu1 %1920  ;;  %v1051_v39 = vmul.f32 %v6514_v33, %v10723_v31  ;;  %v10725_v0 = vld [vmem:[#allocation32_spill] sm:$0xff]  ;;  %v10729_v31 = vld [vmem:[#allocation14_spill] sm:$0xff] }
 0x263   :  { %v8281_v26 = vpop.f32.mrf.mxu1  ;;  %v1052_v23 = vmul.f32 %v6515_v32, %v7835_v28  ;;  %v1248_v34 = vmul.f32 %v6532_v25, %v10724_v40  ;;  %v10727_v25 = vld [vmem:[#allocation46_spill] sm:$0xff]  ;;  %v774_v40 = vmul.f32 %v8172_v1, %v10729_v31  ;;  %v10732_v1 = vld [vmem:[#allocation20_spill] sm:$0xff]  ;;  %v10491_v30 = vmov 1.0|1.0  }
 0x264   :  { %v8297_v44 = vadd.f32 %v1442_v14, %v1260_v22  ;;  %v6537_v22 = vpop.f32.mrf.mxu0 }
 0x265   :  { %v6547_v3 = vpop.f32.mrf.mxu1  ;;  %v1068_v14 = vadd.f32 %v1052_v23, %v856_v56  ;;  %v1055_v23 = vmul.f32 %v8236_v48, %v7797_v43  ;;  %v10733_v43 = vld [vmem:[#allocation17_spill] sm:$0xff] }
 0x266   :  { %3185 = vperm.xlu1 %6896, %v7727_v36   ;;  %v1443_v52 = vmul.f32 %v6547_v3, %v7882_v47  ;;  %v853_v47 = vadd.f32 %v8162_v2, %v769_v45  ;;  %v1249_v3 = vmul.f32 %v6533_v24, %v10725_v0  ;;  %v10726_v2 = vld [vmem:[#allocation35_spill] sm:$0xff]  ;;  %v8312_v13 = vpop.permute.xlu1 %1925  ;;  %v1162_v56 = vpop.f32.mrf.mxu0  ;;  %v1252_v48 = vmul.f32 %v6536_v12, %v10733_v43 }
 0x267   :  { %v8291_v55 = vpop.f32.mrf.mxu1  ;;  %v10728_v24 = vld [vmem:[#allocation19_spill] sm:$0xff] }
 0x268   :  { %v8299_v37 = vadd.f32 %v1443_v52, %v1261_v59  ;;  %v1067_v32 = vadd.f32 %v1051_v39, %v853_v47  ;;  %v1265_v45 = vadd.f32 %v1249_v3, %v1068_v14  ;;  %v773_v35 = vmul.f32 %v8160_v53, %v10728_v24  ;;  %v10730_v47 = vld [vmem:[#allocation15_spill] sm:$0xff]  ;;  %v10731_v3 = vld [vmem:[#allocation22_spill] sm:$0xff] }
 0x269   :  { %v6550_v4 = vpop.f32.mrf.mxu1  ;;  %v772_v53 = vmul.f32 %v10731_v3, %v8178_v46  ;;  %v1054_v14 = vmul.f32 %v10732_v1, %v8246_v7 }
 0x26a   :  { %6897 = vset.pattern.permute.xlu1 %v10574_v20  ;;  %v1481_v33 = vpack.c.bf16 %v8299_v37, %v8297_v44  ;;  %v1446_v59 = vmul.f32 %v6550_v4, %v10726_v2  ;;  %v1264_v6 = vadd.f32 %v1248_v34, %v1067_v32  ;;  %v1056_v4 = vmul.f32 %v8241_v62, %v10730_v47 }
 0x26b   :  { %3768 = vperm.xlu1 %6897, %v10713_v10   ;;  %v8309_v28 = vpop.f32.mrf.mxu1  ;;  %v869_v32 = vadd.f32 %v8184_v17, %v773_v35  ;;  %v864_v46 = vadd.f32 %v8199_v42, %v772_v53  ;;  %v1053_v17 = vmul.f32 %v7822_v15, %v8239_v38  ;;  %v10737_v35 = vld [vmem:[#allocation21_spill] sm:$0xff]  ;;  %v10780_v44 = vlaneseq }
 0x26c   :  { %v8325_v34 = vadd.f32 %v1446_v59, %v1264_v6  ;;  %v10735_v6 = vld [vmem:[#allocation16_spill] sm:$0xff] }
 0x26d   :  { %v6551_v52 = vpop.f32.mrf.mxu1  ;;  %v1071_v12 = vadd.f32 %v1055_v23, %v869_v32  ;;  %v10740_v23 = vld [vmem:[#allocation31_spill] sm:$0xff]  ;;  %v8430_v37 = vshrl.u32 %v10780_v44, 7 }
 0x26e   :  { %v1447_v21 = vmul.f32 %v6551_v52, %v10727_v25  ;;  %v872_v52 = vadd.f32 %v8192_v16, %v774_v40  ;;  %v10734_v25 = vld [vmem:[#allocation18_spill] sm:$0xff]  ;;  %v8346_v16 = vpop.permute.xlu1 %2410  ;;  %v1070_v40 = vadd.f32 %v1054_v14, %v864_v46  ;;  %v10743_v14 = vld [vmem:[#allocation44_spill] sm:$0xff] }
 0x26f   :  { %6898 = vset.pattern.permute.xlu1 %v10582_v63  ;;  %v1344_v39 = vpop.f32.mrf.mxu1  ;;  %v1253_v62 = vmul.f32 %v6537_v22, %v10734_v25  ;;  %v1268_v47 = vadd.f32 %v1252_v48, %v1071_v12  ;;  %10781 = vst [vmem:[#allocation47_spill] sm:$0xff] %v8430_v37 }
 0x270   :  { %3511 = vperm.xlu1 %6898, %v10719_v54   ;;  %v8327_v0 = vadd.f32 %v1447_v21, %v1265_v45  ;;  %v771_v45 = vmul.f32 %v10735_v6, %v8168_v41  ;;  %v10736_v21 = vld [vmem:[#allocation28_spill] sm:$0xff]  ;;  %v1072_v22 = vadd.f32 %v1056_v4, %v872_v52 }
 0x271   :  { %v6554_v2 = vpop.f32.mrf.mxu1  ;;  %v1251_v7 = vmul.f32 %v10736_v21, %v1162_v56  ;;  %v10739_v56 = vld [vmem:[#allocation24_spill] sm:$0xff]  ;;  %v10745_v21 = vld [vmem:[#allocation125_spill] sm:$0xff] }
 0x272   :  { %v1483_v59 = vpack.c.bf16 %v8327_v0, %v8325_v34  ;;  %v1450_v31 = vmul.f32 %v6554_v2, %v10737_v35  ;;  %v861_v41 = vadd.f32 %v8188_v61, %v771_v45  ;;  %v10738_v34 = vld [vmem:[#allocation27_spill] sm:$0xff]  ;;  %v1269_v38 = vadd.f32 %v1253_v62, %v1072_v22  ;;  %v10741_v2 = vld [vmem:[#allocation33_spill] sm:$0xff]  ;;  %v8360_v48 = vpop.permute.xlu1 %2204 }
 0x273   :  { %v1357_v24 = vpop.f32.mrf.mxu1  ;;  %v1250_v15 = vmul.f32 %v10738_v34, %v1159_v51  ;;  %v1267_v53 = vadd.f32 %v1251_v7, %v1070_v40  ;;  %v1050_v51 = vmul.f32 %v10743_v14, %v8230_v49  ;;  %v10744_v45 = vld [vmem:[#allocation29_spill] sm:$0xff]  ;;  %v10748_v49 = vld [vmem:[#allocation114_spill] sm:$0xff]  ;;  %v10749_v35 = vld [vmem:[#allocation43_spill] sm:$0xff] }
 0x274   :  { %6899 = vset.pattern.permute.xlu1 %v10587_v58  ;;  %v1069_v3 = vadd.f32 %v1053_v17, %v861_v41  ;;  %v1466_v43 = vadd.f32 %v1450_v31, %v1268_v47  ;;  %v1448_v4 = vmul.f32 %v10740_v23, %v1357_v24  ;;  %v767_v46 = vmul.f32 %v10744_v45, %v8147_v60  ;;  %v10746_v7 = vld [vmem:[#allocation41_spill] sm:$0xff]  ;;  %v10751_v60 = vld [vmem:[#allocation54_spill] sm:$0xff]  ;;  %v10752_v40 = vld [vmem:[#allocation51_spill] sm:$0xff] }
 0x275   :  { %4009 = vperm.xlu1 %6899, %v7707_v5   ;;  %v6555_v42 = vpop.f32.mrf.mxu1  ;;  %v10742_v5 = vld [vmem:[#allocation36_spill] sm:$0xff]  ;;  %v1049_v24 = vmul.f32 %v10746_v7, %v10745_v21  ;;  %v10750_v31 = vmov 0.0   ;;  %v10758_v23 = vld [vmem:[#allocation63_spill] sm:$0xff] }
 0x276   :  { %v1451_v0 = vmul.f32 %v6555_v42, %v10739_v56  ;;  %v768_v61 = vmul.f32 %v10742_v5, %v8156_v18  ;;  %v1266_v25 = vadd.f32 %v1250_v15, %v1069_v3  ;;  %v845_v22 = vadd.f32 %v10748_v49, %v767_v46  ;;  %v10753_v42 = vld [vmem:[#allocation37_spill] sm:$0xff]  ;;  %v10754_v56 = vld [vmem:[#allocation59_spill] sm:$0xff]  ;;  %v10764_v46 = vld [vmem:[#allocation72_spill] sm:$0xff] }
 0x277   :  { %v1360_v1 = vpop.f32.mrf.mxu1  ;;  %v1445_v47 = vmul.f32 %v10753_v42, %v1344_v39  ;;  %v10755_v3 = vld [vmem:[#allocation109_spill] sm:$0xff]  ;;  %v10760_v5 = vld [vmem:[#allocation127_spill] sm:$0xff]  ;;  %v10769_v49 = vld [vmem:[#allocation118_spill] sm:$0xff] }
 0x278   :  { %v1467_v32 = vadd.f32 %v1451_v0, %v1269_v38  ;;  %v1449_v52 = vmul.f32 %v10741_v2, %v1360_v1  ;;  %v848_v17 = vadd.f32 %v8180_v27, %v768_v61  ;;  %v1464_v18 = vadd.f32 %v1448_v4, %v1266_v25  ;;  %v10759_v2 = vld [vmem:[#allocation112_spill] sm:$0xff]  ;;  %v10761_v61 = vld [vmem:[#allocation45_spill] sm:$0xff] }
 0x279   :  { %4013 = vperm.xlu1 %6899, %v10713_v10   ;;  %v10747_v10 = vld [vmem:[#allocation53_spill] sm:$0xff]  ;;  %v1246_v27 = vmul.f32 %v10752_v40, %v10751_v60  ;;  %v1065_v15 = vadd.f32 %v1049_v24, %v845_v22  ;;  %v1444_v0 = vmul.f32 %v10754_v56, %v8309_v28  ;;  %v1243_v28 = vmul.f32 %v10761_v61, %v10760_v5  ;;  %v10762_v25 = vld [vmem:[#allocation124_spill] sm:$0xff]  ;;  %v10770_v22 = vld [vmem:[#allocation82_spill] sm:$0xff] }
 0x27a   :  { %v1485_v62 = vpack.c.bf16 %v1467_v32, %v1466_v43  ;;  %v1465_v6 = vadd.f32 %v1449_v52, %v1267_v53  ;;  %v1247_v12 = vmul.f32 %v10747_v10, %v8266_v29  ;;  %v1066_v41 = vadd.f32 %v1050_v51, %v848_v17  ;;  %v8376_v29 = vpop.permute.xlu1 %2600  ;;  %v10756_v53 = vld [vmem:[#allocation62_spill] sm:$0xff]  ;;  %v10766_v24 = vld [vmem:[#allocation65_spill] sm:$0xff]  ;;  %v10767_v10 = vld [vmem:[#allocation108_spill] sm:$0xff] }
 0x27b   :  { %v764_v1 = vmul.f32 %v10756_v53, %v10755_v3  ;;  %v10757_v43 = vld [vmem:[#allocation122_spill] sm:$0xff]  ;;  %v1262_v39 = vadd.f32 %v1246_v27, %v1065_v15  ;;  %v1441_v17 = vmul.f32 %v10764_v46, %v8291_v55  ;;  %v10771_v60 = vld [vmem:[#allocation120_spill] sm:$0xff]  ;;  %v10773_v42 = vld [vmem:[#allocation121_spill] sm:$0xff] }
 0x27c   :  { %6563 = vmatpush3.bf16.msra.mxu1 %v1485_v62  ;;  %v1484_v34 = vpack.c.bf16 %v1465_v6, %v1464_v18  ;;  %v1263_v38 = vadd.f32 %v1247_v12, %v1066_v41  ;;  %v1046_v4 = vmul.f32 %v10758_v23, %v10757_v43  ;;  %v10763_v62 = vld [vmem:[#allocation66_spill] sm:$0xff]  ;;  %v10768_v12 = vld [vmem:[#allocation55_spill] sm:$0xff]  ;;  %v1042_v41 = vmul.f32 %v10770_v22, %v10769_v49  ;;  %v10776_v3 = vld [vmem:[#allocation88_spill] sm:$0xff] }
 0x27d   :  { %6900 = vset.pattern.permute.xlu1 %v10579_v11  ;;  %6564 = vmatprep.subr.bf16.mxu1 %v10750_v31  ;;  %v832_v52 = vadd.f32 %v10759_v2, %v764_v1  ;;  %v1460_v14 = vadd.f32 %v1444_v0, %v1262_v39  ;;  %v1242_v6 = vmul.f32 %v10763_v62, %v10762_v25  ;;  %v10775_v0 = vld [vmem:[#allocation38_spill] sm:$0xff]  ;;  %v10778_v39 = vld [vmem:[#allocation129_spill] sm:$0xff]  ;;  %v10784_v25 = vmov 0  ;;  %v10788_v46 = vld [vmem:[#allocation67_spill] sm:$0xff] }
 0x27e   :  { %3175 = vperm.xlu1 %6900, %v10749_v35   ;;  %v1461_v32 = vadd.f32 %v1445_v47, %v1263_v38  ;;  %v8393_v45 = vpop.permute.xlu1 %2604  ;;  %v760_v18 = vmul.f32 %v10768_v12, %v10767_v10  ;;  %v10774_v47 = vld [vmem:[#allocation91_spill] sm:$0xff]  ;;  %v1238_v53 = vmul.f32 %v10776_v3, %v10775_v0  ;;  %v10777_v1 = vld [vmem:[#allocation94_spill] sm:$0xff]  ;;  %v10794_v12 = vld [vmem:[#allocation60_spill] sm:$0xff] }
 0x27f   :  { %v1062_v51 = vadd.f32 %v1046_v4, %v832_v52  ;;  %v1258_v55 = vadd.f32 %v1242_v6, %v10771_v60  ;;  %v1437_v43 = vmul.f32 %v10777_v1, %v8261_v8  ;;  %v5825_v8 = vld [vmem:[%s5730_s1] ss:$0 sm:$0xff]  ;;  %v10802_v3 = vld [vmem:[#allocation92_spill] sm:$0xff]  ;;  %s5755_s1 = sld [smem:[%s10396_s0 + %s7005_s28]]  }
 0x280   :  { %6565 = vmatpush3.bf16.msra.mxu1 %v1484_v34  ;;  %v1482_v21 = vpack.c.bf16 %v1461_v32, %v1460_v14  ;;  %v1239_v34 = vmul.f32 %v10774_v47, %v10773_v42  ;;  %v10779_v32 = vld [vmem:[#allocation69_spill] sm:$0xff]  ;;  %vm1474_vm7 = vcmp.eq.s32.totalorder %v8430_v37, %v5825_v8  ;;  %v10804_v1 = vld [vmem:[#allocation70_spill] sm:$0xff]  ;;  %v10815_v8 = vld [vmem:[#allocation76_spill] sm:$0xff] }
 0x281   :  { %6566 = vmatprep.subr.bf16.mxu1 %v10750_v31  ;;  %v1259_v7 = vadd.f32 %v1243_v28, %v1062_v51  ;;  %v1436_v2 = vmul.f32 %v10779_v32, %v10778_v39  ;;  %v10783_v14 = vld [vmem:[#allocation49_spill] sm:$0xff]  ;;  %vm8444_vm8 = vmpackc.low %vm1474_vm7, %vm1474_vm7 }
 0x282   :  { %6901 = vset.pattern.permute.xlu1 %v10574_v20  ;;  %v8414_v15 = vpop.permute.xlu1 %1915  ;;  %v10785_v25 = vsel %vm8444_vm8, 4294967295, %v10784_v25  ;;  %v10797_v47 = vld [vmem:[#allocation61_spill] sm:$0xff] }
 0x283   :  { %3756 = vperm.xlu1 %6901, %v10719_v54   ;;  %v10765_v54 = vld [vmem:[#allocation57_spill] sm:$0xff]  ;;  %v1457_v40 = vadd.f32 %v1441_v17, %v1259_v7  ;;  %10786 = vst [vmem:[#allocation56_spill] sm:$0xff] %v10785_v25 }
 0x284   :  { %6567 = vmatpush3.bf16.msra.mxu1 %v1483_v59  ;;  %v1440_v59 = vmul.f32 %v10766_v24, %v8281_v26  ;;  %v10772_v26 = vld [vmem:[#allocation111_spill] sm:$0xff] }
 0x285   :  { %6568 = vmatprep.subr.bf16.mxu1 %v10750_v31  ;;  %v816_v27 = vadd.f32 %v10772_v26, %v760_v18  ;;  %v8492_v18 = vpop.f32.mrf.mxu0  ;;  %v10795_v26 = vld [vmem:[#allocation64_spill] sm:$0xff] }
 0x286   :  { %v1456_v38 = vadd.f32 %v1440_v59, %v1258_v55  ;;  %v8433_v61 = vpop.permute.xlu1 %2398  ;;  %v10792_v59 = vld [vmem:[#allocation68_spill] sm:$0xff] }
 0x287   :  { %6902 = vset.pattern.permute.xlu1 %v10582_v63  ;;  %v1058_v56 = vadd.f32 %v1042_v41, %v816_v27  ;;  %v6560_v22 = vpop.f32.mrf.mxu0 }
 0x288   :  { %3503 = vperm.xlu1 %6902, %v10765_v54   ;;  %6569 = vmatpush3.bf16.msra.mxu1 %v1482_v21  ;;  %v1480_v23 = vpack.c.bf16 %v1457_v40, %v1456_v38  ;;  %v10789_v21 = vld [vmem:[#allocation52_spill] sm:$0xff]  ;;  %v5830_v22 = vld [vmem:[%s5737_s5] ss:$0 sm:$0xff]  ;;  %s5758_s5 = sld [smem:[%s10396_s0 + %s7006_s2]]  }
 0x289   :  { %6570 = vmatprep.subr.bf16.mxu1 %v10750_v31  ;;  %v1255_v4 = vadd.f32 %v1239_v34, %v1058_v56  ;;  %v1529_v41 = vpop.f32.mrf.mxu0 }
 0x28a   :  { %v8442_v51 = vpop.permute.xlu1 %2196 }
 0x28b   :  { %v1453_v5 = vadd.f32 %v1437_v43, %v1255_v4  ;;  %v6561_v60 = vpop.f32.mrf.mxu0  ;;  %v10807_v4 = vld [vmem:[#allocation73_spill] sm:$0xff] }
 0x28c   :  { %3507 = vperm.xlu1 %6902, %v10749_v35   ;;  %6571 = vmatpush3.bf16.msra.mxu1 %v1481_v33  ;;  %v10782_v33 = vld [vmem:[#allocation117_spill] sm:$0xff] }
 0x28d   :  { %6572 = vmatprep.subr.bf16.mxu1 %v10750_v31  ;;  %v1254_v52 = vadd.f32 %v1238_v53, %v10782_v33  ;;  %v10812_v33 = vld [vmem:[#allocation85_spill] sm:$0xff] }
 0x28e   :  { %v8453_v9 = vpop.permute.xlu1 %2200 }
 0x28f   :  { %v1452_v28 = vadd.f32 %v1436_v2, %v1254_v52 }
 0x290   :  { %6903 = vset.pattern.permute.xlu1 %v10587_v58  ;;  %6573 = vmatpush3.bf16.msra.mxu1 %v1480_v23  ;;  %v10806_v23 = vld [vmem:[#allocation83_spill] sm:$0xff] }
 0x291   :  { %4005 = vperm.xlu1 %6903, %v7727_v36   ;;  %6574 = vmatprep.subr.bf16.mxu1 %v10750_v31  ;;  %v1478_v36 = vpack.c.bf16 %v1453_v5, %v1452_v28 }
 0x292   :  { %v8458_v62 = vpop.permute.xlu1 %2596 }
 0x294   :  { %6575 = vmatpush3.bf16.msra.mxu1 %v1479_v57  ;;  %v10787_v57 = vld [vmem:[#allocation58_spill] sm:$0xff] }
 0x295   :  { %6904 = vset.pattern.permute.xlu1 %v10579_v11  ;;  %6576 = vmatprep.subr.bf16.mxu1 %v10750_v31 }
 0x296   :  { %3160 = vperm.xlu1 %6904, %v10783_v14   ;;  %v8462_v6 = vpop.permute.xlu1 %1900 }
 0x298   :  { %6577 = vmatpush3.bf16.msra.mxu1 %v1478_v36  ;;  %v10818_v36 = vld [vmem:[#allocation96_spill] sm:$0xff] }
 0x29a   :  { %6905 = vset.pattern.permute.xlu1 %v10574_v20  ;;  %v8466_v17 = vpop.permute.xlu1 %2390 }
 0x29b   :  { %3748 = vperm.xlu1 %6905, %v10765_v54   ;;  %6579 = vmatmul.mubr.msk.bf16.vlgmr.msra.gmra.mxu1 %vm8444_vm8, %v10491_v30  ;;  %v10826_v30 = vld [vmem:[#allocation98_spill] sm:$0xff] }
 0x29f   :  { %3752 = vperm.xlu1 %6905, %v10749_v35   ;;  %v8470_v35 = vpop.permute.xlu1 %2394 }
 0x2a0   :  { %10790 = vst [vmem:[#allocation40_spill] sm:$0xff] %v8470_v35 }
 0x2a3   :  { %6906 = vset.pattern.permute.xlu1 %v10582_v63 }
 0x2a4   :  { %3499 = vperm.xlu1 %6906, %v10787_v57  }
 0x2a8   :  { %6907 = vset.pattern.permute.xlu1 %v10587_v58 }
 0x2a9   :  { %3993 = vperm.xlu1 %6907, %v10765_v54   ;;  %v8475_v54 = vpop.permute.xlu1 %2192 }
 0x2ad   :  { %6909 = vset.pattern.permute.xlu1 %v10579_v11  ;;  %v8479_v7 = vpop.permute.xlu1 %2584 }
 0x2ae   :  { %3150 = vperm.xlu1 %6909, %v10788_v46   ;;  %10791 = vst [vmem:[#allocation42_spill] sm:$0xff] %v8479_v7 }
 0x2b1   :  { %v8482_v24 = vpop.permute.xlu1 %1890 }
 0x2b2   :  { %3155 = vperm.xlu1 %6909, %v10789_v21  }
 0x2b5   :  { %v8487_v10 = vpop.permute.xlu1 %1895 }
 0x2b6   :  { %6910 = vset.pattern.permute.xlu1 %v10574_v20  ;;  %10793 = vst [vmem:[#allocation23_spill] sm:$0xff] %v8487_v10 }
 0x2b7   :  { %3744 = vperm.xlu1 %6910, %v10787_v57  }
 0x2b9   :  { %v8494_v49 = vpop.permute.xlu1 %2386 }
 0x2bb   :  { %6911 = vset.pattern.permute.xlu1 %v10582_v63 }
 0x2bc   :  { %3487 = vperm.xlu1 %6911, %v10788_v46  }
 0x2bd   :  { %v8497_v55 = vpop.permute.xlu1 %2180 }
 0x2c0   :  { %6912 = vset.pattern.permute.xlu1 %v10587_v58 }
 0x2c1   :  { %3985 = vperm.xlu1 %6912, %v10783_v14   ;;  %v8501_v40 = vpop.permute.xlu1 %2576 }
 0x2c5   :  { %3989 = vperm.xlu1 %6912, %v10787_v57   ;;  %v8506_v27 = vpop.permute.xlu1 %2580 }
 0x2c9   :  { %6913 = vset.pattern.permute.xlu1 %v10579_v11  ;;  %v8510_v42 = vpop.permute.xlu1 %2378 }
 0x2ca   :  { %3145 = vperm.xlu1 %6913, %v10792_v59   ;;  %10796 = vst [vmem:[#allocation25_spill] sm:$0xff] %v8510_v42 }
 0x2cd   :  { %v8514_v34 = vpop.permute.xlu1 %2568 }
 0x2ce   :  { %6914 = vset.pattern.permute.xlu1 %v10574_v20  ;;  %10798 = vst [vmem:[#allocation30_spill] sm:$0xff] %v8514_v34 }
 0x2cf   :  { %3732 = vperm.xlu1 %6914, %v10788_v46  }
 0x2d1   :  { %v8518_v38 = vpop.permute.xlu1 %3200 }
 0x2d2   :  { %10799 = vst [vmem:[#allocation39_spill] sm:$0xff] %v8518_v38 }
 0x2d3   :  { %6916 = vset.pattern.permute.xlu1 %v10582_v63 }
 0x2d4   :  { %3479 = vperm.xlu1 %6916, %v10794_v12  }
 0x2d5   :  { %v8523_v56 = vpop.permute.xlu1 %3205 }
 0x2d6   :  { %10800 = vst [vmem:[#allocation32_spill] sm:$0xff] %v8523_v56  ;;  %v8784_v56 = vpop.permute.xlu0 %2184 }
 0x2d7   :  { %10862 = vst [vmem:[#allocation66_spill] sm:$0xff] %v8784_v56 }
 0x2d8   :  { %3483 = vperm.xlu1 %6916, %v10792_v59  }
 0x2d9   :  { %v8527_v0 = vpop.permute.xlu1 %3531 }
 0x2da   :  { %10801 = vst [vmem:[#allocation35_spill] sm:$0xff] %v8527_v0  ;;  %v8796_v38 = vpop.permute.xlu0 %2406 }
 0x2dc   :  { %6917 = vset.pattern.permute.xlu1 %v10587_v58 }
 0x2dd   :  { %3981 = vperm.xlu1 %6917, %v10789_v21   ;;  %v8531_v53 = vpop.permute.xlu1 %3190 }
 0x2de   :  { %10803 = vst [vmem:[#allocation46_spill] sm:$0xff] %v8531_v53  ;;  %v10864_v53 = vld [vmem:[#allocation78_spill] sm:$0xff] }
 0x2e1   :  { %6918 = vset.pattern.permute.xlu1 %v10579_v11  ;;  %v8535_v43 = vpop.permute.xlu1 %3772 }
 0x2e2   :  { %3130 = vperm.xlu1 %6918, %v10795_v26   ;;  %10805 = vst [vmem:[#allocation19_spill] sm:$0xff] %v8535_v43  ;;  %v10841_v43 = vld [vmem:[#allocation79_spill] sm:$0xff] }
 0x2e5   :  { %v8540_v39 = vpop.permute.xlu1 %3776 }
 0x2e6   :  { %6920 = vset.pattern.permute.xlu1 %v10574_v20  ;;  %10808 = vst [vmem:[#allocation14_spill] sm:$0xff] %v8540_v39 }
 0x2e7   :  { %3724 = vperm.xlu1 %6920, %v10794_v12  }
 0x2e9   :  { %v8544_v32 = vpop.permute.xlu1 %3523 }
 0x2ea   :  { %10809 = vst [vmem:[#allocation15_spill] sm:$0xff] %v8544_v32  ;;  %v1591_v32 = vld [vmem:[%s5741_s13 + $0x8] sm:$0xff] }
 0x2eb   :  { %3728 = vperm.xlu1 %6920, %v10792_v59   ;;  %v10822_v59 = vld [vmem:[#allocation77_spill] sm:$0xff] }
 0x2ed   :  { %v8548_v2 = vpop.permute.xlu1 %4017 }
 0x2ee   :  { %10810 = vst [vmem:[#allocation22_spill] sm:$0xff] %v8548_v2  ;;  %v10837_v2 = vld [vmem:[#allocation89_spill] sm:$0xff] }
 0x2ef   :  { %6922 = vset.pattern.permute.xlu1 %v10582_v63 }
 0x2f0   :  { %3475 = vperm.xlu1 %6922, %v10797_v47  }
 0x2f1   :  { %v8552_v44 = vpop.permute.xlu1 %3180 }
 0x2f2   :  { %10811 = vst [vmem:[#allocation20_spill] sm:$0xff] %v8552_v44  ;;  %v10866_v44 = vld [vmem:[#allocation48_spill] sm:$0xff] }
 0x2f4   :  { %6923 = vset.pattern.permute.xlu1 %v10587_v58 }
 0x2f5   :  { %3969 = vperm.xlu1 %6923, %v10794_v12   ;;  %v8557_v52 = vpop.permute.xlu1 %3185 }
 0x2f6   :  { %10813 = vst [vmem:[#allocation17_spill] sm:$0xff] %v8557_v52 }
 0x2f9   :  { %6924 = vset.pattern.permute.xlu1 %v10574_v20  ;;  %v8561_v5 = vpop.permute.xlu1 %3768 }
 0x2fa   :  { %3716 = vperm.xlu1 %6924, %v10795_v26   ;;  %10814 = vst [vmem:[#allocation18_spill] sm:$0xff] %v8561_v5 }
 0x2fd   :  { %v8565_v28 = vpop.permute.xlu1 %3511 }
 0x2fe   :  { %3720 = vperm.xlu1 %6924, %v10797_v47   ;;  %10816 = vst [vmem:[#allocation16_spill] sm:$0xff] %v8565_v28 }
 0x301   :  { %v8569_v14 = vpop.permute.xlu1 %4009 }
 0x302   :  { %6925 = vset.pattern.permute.xlu1 %v10587_v58  ;;  %10817 = vst [vmem:[#allocation28_spill] sm:$0xff] %v8569_v14 }
 0x303   :  { %3965 = vperm.xlu1 %6925, %v10797_v47   ;;  %v10824_v47 = vld [vmem:[#allocation87_spill] sm:$0xff] }
 0x305   :  { %v8574_v57 = vpop.permute.xlu1 %4013 }
 0x306   :  { %10819 = vst [vmem:[#allocation21_spill] sm:$0xff] %v8574_v57 }
 0x307   :  { %6926 = vset.pattern.permute.xlu1 %v10579_v11 }
 0x308   :  { %4805 = vperm.xlu1 %6926, %v10802_v3  }
 0x309   :  { %v8578_v46 = vpop.permute.xlu1 %3175 }
 0x30a   :  { %10820 = vst [vmem:[#allocation27_spill] sm:$0xff] %v8578_v46 }
 0x30c   :  { %6927 = vset.pattern.permute.xlu1 %v10582_v63 }
 0x30d   :  { %5091 = vperm.xlu1 %6927, %v10804_v1   ;;  %v8581_v21 = vpop.permute.xlu1 %3756 }
 0x30e   :  { %10821 = vst [vmem:[#allocation24_spill] sm:$0xff] %v8581_v21 }
 0x311   :  { %6928 = vset.pattern.permute.xlu1 %v10579_v11  ;;  %v8589_v12 = vpop.permute.xlu1 %3503 }
 0x312   :  { %4790 = vperm.xlu1 %6928, %v10806_v23   ;;  %10823 = vst [vmem:[#allocation31_spill] sm:$0xff] %v8589_v12 }
 0x316   :  { %4795 = vperm.xlu1 %6928, %v10807_v4  }
 0x31a   :  { %6930 = vset.pattern.permute.xlu1 %v10574_v20 }
 0x31b   :  { %5304 = vperm.xlu1 %6930, %v10802_v3  }
 0x31f   :  { %6931 = vset.pattern.permute.xlu1 %v10582_v63 }
 0x320   :  { %5083 = vperm.xlu1 %6931, %v10806_v23  }
 0x324   :  { %6932 = vset.pattern.permute.xlu1 %v10587_v58 }
 0x325   :  { %5509 = vperm.xlu1 %6932, %v10804_v1  }
 0x329   :  { %5513 = vperm.xlu1 %6932, %v10802_v3   ;;  %v8595_v3 = vpop.permute.xlu1 %3507 }
 0x32a   :  { %10825 = vst [vmem:[#allocation33_spill] sm:$0xff] %v8595_v3 }
 0x32d   :  { %6933 = vset.pattern.permute.xlu1 %v10579_v11 }
 0x32e   :  { %4785 = vperm.xlu1 %6933, %v10812_v33  }
 0x332   :  { %6934 = vset.pattern.permute.xlu1 %v10574_v20 }
 0x333   :  { %5292 = vperm.xlu1 %6934, %v10806_v23  }
 0x337   :  { %6936 = vset.pattern.permute.xlu1 %v10582_v63 }
 0x338   :  { %5075 = vperm.xlu1 %6936, %v10815_v8  }
 0x33c   :  { %5079 = vperm.xlu1 %6936, %v10812_v33  }
 0x340   :  { %6937 = vset.pattern.permute.xlu1 %v10587_v58 }
 0x341   :  { %5505 = vperm.xlu1 %6937, %v10807_v4  }
 0x345   :  { %6938 = vset.pattern.permute.xlu1 %v10579_v11 }
 0x346   :  { %4770 = vperm.xlu1 %6938, %v10818_v36  }
 0x34a   :  { %6939 = vset.pattern.permute.xlu1 %v10574_v20 }
 0x34b   :  { %5284 = vperm.xlu1 %6939, %v10815_v8  }
 0x34f   :  { %5288 = vperm.xlu1 %6939, %v10812_v33  }
 0x353   :  { %6940 = vset.pattern.permute.xlu1 %v10582_v63 }
 0x354   :  { %5071 = vperm.xlu1 %6940, %v10822_v59  }
 0x358   :  { %6941 = vset.pattern.permute.xlu1 %v10587_v58 }
 0x359   :  { %5493 = vperm.xlu1 %6941, %v10815_v8   ;;  %v8600_v8 = vpop.permute.xlu1 %4005 }
 0x35a   :  { %10827 = vst [vmem:[#allocation36_spill] sm:$0xff] %v8600_v8  ;;  %v10847_v8 = vld [vmem:[#allocation81_spill] sm:$0xff] }
 0x35b   :  { %v1566_v41 = vpop.f32.mrf.mxu1 }
 0x35c   :  { %v1567_v60 = vadd.f32 %v1566_v41, %v8492_v18  ;;  %v10829_v41 = vld [vmem:[#allocation5_spill] sm:$0xff] }
 0x35d   :  { %6942 = vset.pattern.permute.xlu1 %v10579_v11  ;;  %v6580_v26 = vpop.f32.mrf.mxu1 }
 0x35e   :  { %4760 = vperm.xlu1 %6942, %v10824_v47   ;;  %v1578_v1 = vadd.f32 %v5830_v22, %v1567_v60  ;;  %v10828_v22 = vld [vmem:[#allocation3_spill] sm:$0xff]  ;;  %v8612_v60 = vpop.permute.xlu1 %3160 }
 0x35f   :  { %v1569_v23 = vpop.f32.mrf.mxu1  ;;  %10830 = vst [vmem:[#allocation44_spill] sm:$0xff] %v8612_v60  ;;  %v8809_v60 = vpop.permute.xlu0 %2402 }
 0x360   :  { %v1579_v4 = vmax.f32 %v1578_v1, 0.0  ;;  %v10832_v1 = vld [vmem:[#allocation6_spill] sm:$0xff]  ;;  %v10833_v23 = vld [vmem:[#allocation7_spill] sm:$0xff] }
 0x361   :  { %v6581_v33 = vpop.f32.mrf.mxu1 }
 0x362   :  { %4765 = vperm.xlu1 %6942, %v10826_v30   ;;  %v8598_v37 = vpack.c.bf16 %v1579_v4, %v1579_v4  ;;  %v8617_v26 = vpop.permute.xlu1 %3748  ;;  %v10835_v33 = vld [vmem:[#allocation8_spill] sm:$0xff] }
 0x363   :  { %10831 = vst [vmem:[#allocation29_spill] sm:$0xff] %v8617_v26  ;;  %v10852_v26 = vld [vmem:[#allocation11_spill] sm:$0xff] }
 0x364   :  { %6771 = vmatprep.subr.msk.bf16.mxu0 %vm442_vm0, %v8598_v37  ;;  %v1657_v18 = vsel %vm442_vm0, %v8598_v37, 0 }
 0x365   :  { %6583 = vmatpush3.bf16.msra.mxu0 %v1657_v18  ;;  %v10836_v18 = vld [vmem:[#allocation9_spill] sm:$0xff] }
 0x366   :  { %6943 = vset.pattern.permute.xlu1 %v10574_v20  ;;  %v8625_v4 = vpop.permute.xlu1 %3752 }
 0x367   :  { %5280 = vperm.xlu1 %6943, %v10822_v59   ;;  %10834 = vst [vmem:[#allocation125_spill] sm:$0xff] %v8625_v4 }
 0x368   :  { %6585 = vmatmul.mubr.msk.bf16.vlgmr.msra.gmra.mxu0 %vm417_vm5, %v10828_v22 }
 0x369   :  { %6588 = vmatprep.mubr.msk.bf16.mxu0 %vm417_vm5, %v10829_v41 }
 0x36a   :  { %v8633_v39 = vpop.permute.xlu1 %3499 }
 0x36b   :  { %6944 = vset.pattern.permute.xlu1 %v10582_v63  ;;  %10838 = vst [vmem:[#allocation41_spill] sm:$0xff] %v8633_v39  ;;  %v1588_v39 = vld [vmem:[%s8675_s9 + $0x30] sm:$0xff] }
 0x36c   :  { %5059 = vperm.xlu1 %6944, %v10824_v47  }
 0x370   :  { %6945 = vset.pattern.permute.xlu1 %v10587_v58  ;;  %6589 = vmatmul.mubr.msk.bf16.gmra.mxu0 %vm417_vm5, %v10832_v1 }
 0x371   :  { %5485 = vperm.xlu1 %6945, %v10818_v36   ;;  %6592 = vmatprep.mubr.msk.bf16.mxu0 %vm417_vm5, %v10833_v23  ;;  %v10839_v36 = vld [vmem:[#allocation10_spill] sm:$0xff] }
 0x375   :  { %5489 = vperm.xlu1 %6945, %v10822_v59   ;;  %v8639_v59 = vpop.permute.xlu1 %3993 }
 0x376   :  { %10840 = vst [vmem:[#allocation53_spill] sm:$0xff] %v8639_v59  ;;  %v10850_v59 = vld [vmem:[#allocation34_spill] sm:$0xff] }
 0x378   :  { %6593 = vmatmul.mubr.msk.bf16.gmra.mxu0 %vm417_vm5, %v10835_v33 }
 0x379   :  { %6946 = vset.pattern.permute.xlu1 %v10579_v11  ;;  %6596 = vmatprep.mubr.msk.bf16.mxu0 %vm417_vm5, %v10836_v18  ;;  %v8644_v57 = vpop.permute.xlu1 %3150 }
 0x37a   :  { %4755 = vperm.xlu1 %6946, %v10837_v2   ;;  %10842 = vst [vmem:[#allocation114_spill] sm:$0xff] %v8644_v57 }
 0x37d   :  { %v8648_v0 = vpop.permute.xlu1 %3155 }
 0x37e   :  { %6947 = vset.pattern.permute.xlu1 %v10574_v20  ;;  %10843 = vst [vmem:[#allocation43_spill] sm:$0xff] %v8648_v0 }
 0x37f   :  { %5268 = vperm.xlu1 %6947, %v10824_v47   ;;  %v10844_v47 = vld [vmem:[#allocation100_spill] sm:$0xff] }
 0x380   :  { %6597 = vmatmul.mubr.msk.bf16.gmra.mxu0 %vm417_vm5, %v10839_v36 }
 0x381   :  { %v8652_v14 = vpop.permute.xlu1 %3744 }
 0x382   :  { %10845 = vst [vmem:[#allocation54_spill] sm:$0xff] %v8652_v14  ;;  %v1590_v14 = vld [vmem:[%s5741_s13] sm:$0xff] }
 0x383   :  { %6948 = vset.pattern.permute.xlu1 %v10582_v63  ;;  %v1764_v3 = vpack.c.bf16 %v1591_v32, %v1590_v14  ;;  %v1584_v14 = vld [vmem:[%s8675_s9 + $0x10] sm:$0xff] }
 0x384   :  { %5051 = vperm.xlu1 %6948, %v10841_v43  }
 0x385   :  { %v8656_v5 = vpop.permute.xlu1 %3487  ;;  %6618 = vmatprep.subr.bf16.mxu0 %v1764_v3 }
 0x386   :  { %10846 = vst [vmem:[#allocation51_spill] sm:$0xff] %v8656_v5  ;;  %6619 = vmatpush3.bf16.msra.mxu0 %v1764_v3  ;;  %v1585_v3 = vld [vmem:[%s8675_s9 + $0x18] sm:$0xff] }
 0x388   :  { %5055 = vperm.xlu1 %6948, %v10837_v2  }
 0x38c   :  { %6949 = vset.pattern.permute.xlu1 %v10587_v58 }
 0x38d   :  { %5481 = vperm.xlu1 %6949, %v10826_v30   ;;  %v8661_v30 = vpop.permute.xlu1 %3985 }
 0x38e   :  { %10848 = vst [vmem:[#allocation37_spill] sm:$0xff] %v8661_v30 }
 0x391   :  { %6950 = vset.pattern.permute.xlu1 %v10579_v11  ;;  %v8665_v21 = vpop.permute.xlu1 %3989 }
 0x392   :  { %4740 = vperm.xlu1 %6950, %v10844_v47   ;;  %10849 = vst [vmem:[#allocation59_spill] sm:$0xff] %v8665_v21  ;;  %v1583_v21 = vld [vmem:[%s8675_s9 + $0x8] sm:$0xff] }
 0x395   :  { %v8669_v4 = vpop.permute.xlu1 %3145 }
 0x396   :  { %6952 = vset.pattern.permute.xlu1 %v10574_v20  ;;  %10851 = vst [vmem:[#allocation109_spill] sm:$0xff] %v8669_v4 }
 0x397   :  { %5260 = vperm.xlu1 %6952, %v10841_v43  }
 0x39b   :  { %5264 = vperm.xlu1 %6952, %v10837_v2   ;;  %v1582_v2 = vld [vmem:[%s8675_s9] sm:$0xff] }
 0x39c   :  { %v1765_v30 = vpack.c.bf16 %v1583_v21, %v1582_v2  ;;  %v1587_v2 = vld [vmem:[%s8675_s9 + $0x28] sm:$0xff] }
 0x39e   :  { %6600 = vmatprep.subr.bf16.mxu1 %v1765_v30 }
 0x39f   :  { %6953 = vset.pattern.permute.xlu1 %v10582_v63  ;;  %6601 = vmatpush3.bf16.msra.mxu1 %v1765_v30  ;;  %v2081_v30 = vpack.c.bf16 %v1585_v3, %v1584_v14 }
 0x3a0   :  { %5047 = vperm.xlu1 %6953, %v10847_v8  }
 0x3a1   :  { %6636 = vmatprep.subr.bf16.mxu1 %v2081_v30 }
 0x3a4   :  { %6954 = vset.pattern.permute.xlu1 %v10587_v58 }
 0x3a5   :  { %5469 = vperm.xlu1 %6954, %v10841_v43   ;;  %v8681_v43 = vpop.permute.xlu1 %3732 }
 0x3a6   :  { %10853 = vst [vmem:[#allocation62_spill] sm:$0xff] %v8681_v43 }
 0x3a9   :  { %6956 = vset.pattern.permute.xlu1 %v10579_v11  ;;  %v8688_v28 = vpop.permute.xlu1 %3479 }
 0x3aa   :  { %4730 = vperm.xlu1 %6956, %v10850_v59   ;;  %10854 = vst [vmem:[#allocation122_spill] sm:$0xff] %v8688_v28 }
 0x3ae   :  { %4735 = vperm.xlu1 %6956, %v10852_v26  }
 0x3b2   :  { %6957 = vset.pattern.permute.xlu1 %v10574_v20 }
 0x3b3   :  { %5256 = vperm.xlu1 %6957, %v10847_v8  }
 0x3b7   :  { %6958 = vset.pattern.permute.xlu1 %v10582_v63  ;;  %v8692_v63 = vpop.permute.xlu1 %3483 }
 0x3b8   :  { %5035 = vperm.xlu1 %6958, %v10850_v59   ;;  %10855 = vst [vmem:[#allocation63_spill] sm:$0xff] %v8692_v63 }
 0x3bb   :  { %v8695_v21 = vpop.permute.xlu1 %3981 }
 0x3bc   :  { %6960 = vset.pattern.permute.xlu1 %v10587_v58  ;;  %10856 = vst [vmem:[#allocation112_spill] sm:$0xff] %v8695_v21 }
 0x3bd   :  { %5461 = vperm.xlu1 %6960, %v10844_v47   ;;  %v1586_v47 = vld [vmem:[%s8675_s9 + $0x20] sm:$0xff] }
 0x3bf   :  { %v8700_v32 = vpop.permute.xlu1 %3130 }
 0x3c0   :  { %10857 = vst [vmem:[#allocation127_spill] sm:$0xff] %v8700_v32  ;;  %v10868_v32 = vld [vmem:[#allocation26_spill] sm:$0xff] }
 0x3c1   :  { %5465 = vperm.xlu1 %6960, %v10847_v8   ;;  %v2275_v8 = vpack.c.bf16 %v1587_v2, %v1586_v47 }
 0x3c3   :  { %6654 = vmatprep.subr.bf16.mxu0 %v2275_v8 }
 0x3c5   :  { %6961 = vset.pattern.permute.xlu1 %v10574_v20 }
 0x3c6   :  { %5248 = vperm.xlu1 %6961, %v10852_v26   ;;  %v1589_v26 = vld [vmem:[%s8675_s9 + $0x38] sm:$0xff] }
 0x3c7   :  { %v2469_v63 = vpack.c.bf16 %v1589_v26, %v1588_v39 }
 0x3ca   :  { %6962 = vset.pattern.permute.xlu1 %v10587_v58 }
 0x3cb   :  { %5453 = vperm.xlu1 %6962, %v10850_v59  }
 0x428   :  { %v6586_v21 = vpop.f32.mrf.mxu0 }
 0x42a   :  { %v1693_v20 = vpop.f32.mrf.mxu0 }
 0x42c   :  { %v6587_v12 = vpop.f32.mrf.mxu0 }
 0x42d   :  { %v8711_v5 = vpack.c.bf16 %v6587_v12, %v6586_v21 }
 0x42e   :  { %v1696_v43 = vpop.f32.mrf.mxu0 }
 0x42f   :  { %v8709_v58 = vpack.c.bf16 %v1696_v43, %v1693_v20 }
 0x430   :  { %v6590_v59 = vpop.f32.mrf.mxu0 }
 0x431   :  { %6602 = vmatprep.mubr.msk.bf16.mxu1 %vm1766_vm9, %v8709_v58  ;;  %6620 = vmatprep.mubr.msk.bf16.mxu0 %vm1766_vm9, %v8709_v58 }
 0x432   :  { %v1709_v14 = vpop.f32.mrf.mxu0  ;;  %6603 = vmatmul.mubr.msk.bf16.vlgmr.msra.gmra.mxu1 %vm1766_vm9, %v8711_v5  ;;  %6621 = vmatmul.mubr.msk.bf16.vlgmr.msra.gmra.mxu0 %vm1766_vm9, %v8711_v5 }
 0x433   :  { %6637 = vmatpush3.bf16.msra.mxu1 %v2081_v30  ;;  %6655 = vmatpush3.bf16.msra.mxu0 %v2275_v8 }
 0x434   :  { %v6591_v43 = vpop.f32.mrf.mxu0  ;;  %6672 = vmatprep.subr.bf16.mxu1 %v2469_v63  ;;  %6690 = vmatprep.subr.bf16.mxu0 %v10750_v31 }
 0x435   :  { %v1759_v21 = vpack.c.bf16 %v6591_v43, %v6590_v59 }
 0x436   :  { %v1712_v39 = vpop.f32.mrf.mxu0 }
 0x437   :  { %v1758_v12 = vpack.c.bf16 %v1712_v39, %v1709_v14 }
 0x438   :  { %v6594_v3 = vpop.f32.mrf.mxu0 }
 0x439   :  { %6606 = vmatprep.mubr.msk.bf16.mxu1 %vm1766_vm9, %v1758_v12  ;;  %6624 = vmatprep.mubr.msk.bf16.mxu0 %vm1766_vm9, %v1758_v12 }
 0x43a   :  { %v1725_v47 = vpop.f32.mrf.mxu0  ;;  %6607 = vmatmul.mubr.msk.bf16.gmra.mxu1 %vm1766_vm9, %v1759_v21  ;;  %6625 = vmatmul.mubr.msk.bf16.gmra.mxu0 %vm1766_vm9, %v1759_v21 }
 0x43c   :  { %v6595_v2 = vpop.f32.mrf.mxu0 }
 0x43d   :  { %v1761_v20 = vpack.c.bf16 %v6595_v2, %v6594_v3  ;;  %v1592_v3 = vld [vmem:[%s5742_s17] sm:$0xff]  ;;  %v1593_v2 = vld [vmem:[%s5742_s17 + $0x8] sm:$0xff] }
 0x43e   :  { %v1728_v30 = vpop.f32.mrf.mxu0 }
 0x43f   :  { %v1760_v8 = vpack.c.bf16 %v1728_v30, %v1725_v47  ;;  %v2671_v30 = vpack.c.bf16 %v1593_v2, %v1592_v3 }
 0x440   :  { %v6598_v26 = vpop.f32.mrf.mxu0 }
 0x441   :  { %6610 = vmatprep.mubr.msk.bf16.mxu1 %vm1766_vm9, %v1760_v8  ;;  %6628 = vmatprep.mubr.msk.bf16.mxu0 %vm1766_vm9, %v1760_v8 }
 0x442   :  { %v1741_v59 = vpop.f32.mrf.mxu0  ;;  %6611 = vmatmul.mubr.msk.bf16.gmra.mxu1 %vm1766_vm9, %v1761_v20  ;;  %6629 = vmatmul.mubr.msk.bf16.gmra.mxu0 %vm1766_vm9, %v1761_v20 }
 0x444   :  { %v6599_v14 = vpop.f32.mrf.mxu0 }
 0x445   :  { %v1763_v47 = vpack.c.bf16 %v6599_v14, %v6598_v26 }
 0x446   :  { %v1744_v43 = vpop.f32.mrf.mxu0 }
 0x447   :  { %v1762_v39 = vpack.c.bf16 %v1744_v43, %v1741_v59 }
 0x449   :  { %6614 = vmatprep.mubr.msk.bf16.mxu1 %vm1766_vm9, %v1762_v39  ;;  %6632 = vmatprep.mubr.msk.bf16.mxu0 %vm1766_vm9, %v1762_v39 }
 0x44a   :  { %6615 = vmatmul.mubr.msk.bf16.gmra.mxu1 %vm1766_vm9, %v1763_v47  ;;  %6633 = vmatmul.mubr.msk.bf16.gmra.mxu0 %vm1766_vm9, %v1763_v47 }
 0x44b   :  { %6638 = vmatprep.mubr.msk.bf16.mxu1 %vm1766_vm9, %v8709_v58  ;;  %6656 = vmatprep.mubr.msk.bf16.mxu0 %vm1766_vm9, %v8709_v58 }
 0x452   :  { %6639 = vmatmul.mubr.msk.bf16.vlgmr.msra.gmra.mxu1 %vm1766_vm9, %v8711_v5  ;;  %6657 = vmatmul.mubr.msk.bf16.vlgmr.msra.gmra.mxu0 %vm1766_vm9, %v8711_v5 }
 0x453   :  { %6642 = vmatprep.mubr.msk.bf16.mxu1 %vm1766_vm9, %v1758_v12  ;;  %6660 = vmatprep.mubr.msk.bf16.mxu0 %vm1766_vm9, %v1758_v12 }
 0x454   :  { %6673 = vmatpush3.bf16.msra.mxu1 %v2469_v63  ;;  %6691 = vmatpush3.bf16.msra.mxu0 %v2671_v30  ;;  %v10858_v63 = vld [vmem:[#allocation4_spill] sm:$0xff] }
 0x455   :  { %6696 = vmatprep.subr.bf16.mxu1 %v10750_v31 }
 0x45a   :  { %6643 = vmatmul.mubr.msk.bf16.gmra.mxu1 %vm1766_vm9, %v1759_v21  ;;  %6661 = vmatmul.mubr.msk.bf16.gmra.mxu0 %vm1766_vm9, %v1759_v21 }
 0x45b   :  { %6646 = vmatprep.mubr.msk.bf16.mxu1 %vm1766_vm9, %v1760_v8  ;;  %6664 = vmatprep.mubr.msk.bf16.mxu0 %vm1766_vm9, %v1760_v8 }
 0x462   :  { %6647 = vmatmul.mubr.msk.bf16.gmra.mxu1 %vm1766_vm9, %v1761_v20  ;;  %6665 = vmatmul.mubr.msk.bf16.gmra.mxu0 %vm1766_vm9, %v1761_v20 }
 0x463   :  { %6650 = vmatprep.mubr.msk.bf16.mxu1 %vm1766_vm9, %v1762_v39  ;;  %6668 = vmatprep.mubr.msk.bf16.mxu0 %vm1766_vm9, %v1762_v39 }
 0x46a   :  { %6651 = vmatmul.mubr.msk.bf16.gmra.mxu1 %vm1766_vm9, %v1763_v47  ;;  %6669 = vmatmul.mubr.msk.bf16.gmra.mxu0 %vm1766_vm9, %v1763_v47 }
 0x46b   :  { %6674 = vmatprep.mubr.msk.bf16.mxu1 %vm1766_vm9, %v8709_v58  ;;  %6692 = vmatprep.mubr.msk.bf16.mxu0 %vm6988_vm6, %v10750_v31 }
 0x472   :  { %6675 = vmatmul.mubr.msk.bf16.vlgmr.msra.gmra.mxu1 %vm1766_vm9, %v8711_v5  ;;  %6693 = vmatmul.mubr.msk.bf16.vlgmr.msra.gmra.mxu0 %vm1766_vm9, %v8598_v37 }
 0x473   :  { %6678 = vmatprep.mubr.msk.bf16.mxu1 %vm1766_vm9, %v1758_v12  ;;  %6718 = vmatprep.mubr.msk.bf16.mxu0 %vm417_vm5, %v10858_v63 }
 0x47a   :  { %6679 = vmatmul.mubr.msk.bf16.gmra.mxu1 %vm1766_vm9, %v1759_v21 }
 0x47b   :  { %6682 = vmatprep.mubr.msk.bf16.mxu1 %vm1766_vm9, %v1760_v8 }
 0x482   :  { %6683 = vmatmul.mubr.msk.bf16.gmra.mxu1 %vm1766_vm9, %v1761_v20  ;;  %v10859_v20 = vld [vmem:[#allocation86_spill] sm:$0xff] }
 0x483   :  { %6686 = vmatprep.mubr.msk.bf16.mxu1 %vm1766_vm9, %v1762_v39 }
 0x48a   :  { %6687 = vmatmul.mubr.msk.bf16.gmra.mxu1 %vm1766_vm9, %v1763_v47 }
 0x48b   :  { %6712 = vmatprep.mubr.msk.bf16.mxu1 %vm6988_vm6, %v10750_v31 }
 0x4f2   :  { %v6604_v5 = vpop.f32.mrf.mxu1  ;;  %v6622_v37 = vpop.f32.mrf.mxu0 }
 0x4f3   :  { %v1970_v58 = vmul.f32 %v6604_v5, %v8462_v6 }
 0x4f4   :  { %v1825_v12 = vpop.f32.mrf.mxu1  ;;  %v2018_v26 = vpop.f32.mrf.mxu0 }
 0x4f5   :  { %v2027_v59 = vadd.f32 %v6622_v37, %v1970_v58  ;;  %v1968_v21 = vmul.f32 %v8482_v24, %v1825_v12  ;;  %v10863_v24 = vld [vmem:[#allocation84_spill] sm:$0xff] }
 0x4f6   :  { %v6605_v14 = vpop.f32.mrf.mxu1  ;;  %v6623_v8 = vpop.f32.mrf.mxu0 }
 0x4f7   :  { %v2019_v43 = vadd.f32 %v2018_v26, %v1968_v21  ;;  %v1971_v3 = vmul.f32 %v6605_v14, %v10859_v20 }
 0x4f8   :  { %v8779_v39 = vpop.f32.mrf.mxu1  ;;  %v8781_v47 = vpop.f32.mrf.mxu0 }
 0x4f9   :  { %10860 = vst [vmem:[#allocation45_spill] sm:$0xff] %v8779_v39  ;;  %10861 = vst [vmem:[#allocation124_spill] sm:$0xff] %v8781_v47  ;;  %v2030_v2 = vadd.f32 %v6623_v8, %v1971_v3 }
 0x4fa   :  { %v6608_v30 = vpop.f32.mrf.mxu1  ;;  %v6626_v63 = vpop.f32.mrf.mxu0 }
 0x4fb   :  { %v1974_v28 = vmul.f32 %v6608_v30, %v8293_v19 }
 0x4fc   :  { %v1841_v6 = vpop.f32.mrf.mxu1  ;;  %v2034_v5 = vpop.f32.mrf.mxu0 }
 0x4fd   :  { %v2043_v37 = vadd.f32 %v6626_v63, %v1974_v28  ;;  %v1972_v58 = vmul.f32 %v10863_v24, %v1841_v6 }
 0x4fe   :  { %v6609_v12 = vpop.f32.mrf.mxu1  ;;  %v6627_v26 = vpop.f32.mrf.mxu0 }
 0x4ff   :  { %v8787_v21 = vadd.f32 %v2034_v5, %v1972_v58  ;;  %v1975_v14 = vmul.f32 %v6609_v12, %v8312_v13  ;;  %v10865_v5 = vld [vmem:[#allocation123_spill] sm:$0xff] }
 0x500   :  { %v8790_v20 = vpop.f32.mrf.mxu1  ;;  %v8792_v8 = vpop.f32.mrf.mxu0 }
 0x501   :  { %v8794_v3 = vadd.f32 %v6627_v26, %v1975_v14 }
 0x502   :  { %v6612_v19 = vpop.f32.mrf.mxu1  ;;  %v6630_v30 = vpop.f32.mrf.mxu0 }
 0x503   :  { %v1978_v28 = vmul.f32 %v6612_v19, %v10864_v53 }
 0x504   :  { %v1857_v63 = vpop.f32.mrf.mxu1  ;;  %v2050_v6 = vpop.f32.mrf.mxu0 }
 0x505   :  { %v8799_v24 = vadd.f32 %v6630_v30, %v1978_v28  ;;  %v1976_v58 = vmul.f32 %v10865_v5, %v1857_v63  ;;  %v10867_v63 = vld [vmem:[#allocation103_spill] sm:$0xff] }
 0x506   :  { %v6613_v52 = vpop.f32.mrf.mxu1  ;;  %v6631_v13 = vpop.f32.mrf.mxu0 }
 0x507   :  { %v8802_v12 = vadd.f32 %v2050_v6, %v1976_v58  ;;  %v1979_v46 = vmul.f32 %v6613_v52, %v10866_v44  ;;  %v2383_v44 = vpop.permute.xlu0 %2382 }
 0x508   :  { %v8805_v26 = vpop.f32.mrf.mxu1  ;;  %v8807_v14 = vpop.f32.mrf.mxu0 }
 0x509   :  { %v8811_v0 = vadd.f32 %v6631_v13, %v1979_v46 }
 0x50a   :  { %v8813_v53 = vpop.f32.mrf.mxu1  ;;  %v8815_v19 = vpop.f32.mrf.mxu0 }
 0x50b   :  { %v2375_v23 = vpop.permute.xlu0 %2374 }
 0x50c   :  { %v1873_v30 = vpop.f32.mrf.mxu1  ;;  %v2066_v28 = vpop.f32.mrf.mxu0 }
 0x50d   :  { %v1980_v5 = vmul.f32 %v10867_v63, %v1873_v30 }
 0x50e   :  { %v8818_v6 = vpop.f32.mrf.mxu1  ;;  %v8820_v58 = vpop.f32.mrf.mxu0 }
 0x50f   :  { %v8822_v52 = vadd.f32 %v2066_v28, %v1980_v5 }
 0x510   :  { %v8824_v57 = vpop.f32.mrf.mxu1  ;;  %v8826_v4 = vpop.f32.mrf.mxu0 }
 0x512   :  { %v6640_v46 = vpop.f32.mrf.mxu1  ;;  %v6658_v13 = vpop.f32.mrf.mxu0 }
 0x513   :  { %v2245_v36 = vmul.f32 %v6640_v46, %v10868_v32  ;;  %v2439_v30 = vmul.f32 %v6658_v13, %v2383_v44 }
 0x514   :  { %v2116_v18 = vpop.f32.mrf.mxu1  ;;  %v2310_v33 = vpop.f32.mrf.mxu0 }
 0x515   :  { %v2261_v1 = vadd.f32 %v2245_v36, %v2027_v59  ;;  %v2243_v63 = vmul.f32 %v8497_v55, %v2116_v18  ;;  %v2437_v5 = vmul.f32 %v2375_v23, %v2310_v33 }
 0x516   :  { %v6641_v41 = vpop.f32.mrf.mxu1  ;;  %v6659_v22 = vpop.f32.mrf.mxu0 }
 0x517   :  { %v2455_v11 = vadd.f32 %v2439_v30, %v2261_v1  ;;  %v2259_v28 = vadd.f32 %v2243_v63, %v2019_v43  ;;  %v2246_v25 = vmul.f32 %v6641_v41, %v8475_v54  ;;  %v2440_v46 = vmul.f32 %v6659_v22, %v8494_v49 }
 0x518   :  { %v8831_v34 = vpop.f32.mrf.mxu1  ;;  %v8833_v42 = vpop.f32.mrf.mxu0 }
 0x519   :  { %10869 = vst [vmem:[#allocation72_spill] sm:$0xff] %v8831_v34  ;;  %10870 = vst [vmem:[#allocation57_spill] sm:$0xff] %v8833_v42  ;;  %v8835_v47 = vadd.f32 %v2437_v5, %v2259_v28  ;;  %v2262_v32 = vadd.f32 %v2246_v25, %v2030_v2 }
 0x51a   :  { %v6644_v36 = vpop.f32.mrf.mxu1  ;;  %v6662_v59 = vpop.f32.mrf.mxu0 }
 0x51b   :  { %10871 = vst [vmem:[#allocation65_spill] sm:$0xff] %v8835_v47  ;;  %v2456_v44 = vadd.f32 %v2440_v46, %v2262_v32  ;;  %v2249_v55 = vmul.f32 %v6644_v36, %v8360_v48  ;;  %v2443_v23 = vmul.f32 %v6662_v59, %v8433_v61 }
 0x51c   :  { %v2132_v18 = vpop.f32.mrf.mxu1  ;;  %v2326_v1 = vpop.f32.mrf.mxu0 }
 0x51d   :  { %v2265_v43 = vadd.f32 %v2249_v55, %v2043_v37  ;;  %v2247_v54 = vmul.f32 %v8442_v51, %v2132_v18  ;;  %v2441_v25 = vmul.f32 %v8466_v17, %v2326_v1 }
 0x51e   :  { %v6645_v41 = vpop.f32.mrf.mxu1  ;;  %v6663_v33 = vpop.f32.mrf.mxu0 }
 0x51f   :  { %v2459_v13 = vadd.f32 %v2443_v23, %v2265_v43  ;;  %v2263_v30 = vadd.f32 %v2247_v54, %v8787_v21 }
 0x520   :  { %v8843_v49 = vpop.f32.mrf.mxu1  ;;  %v8845_v22 = vpop.f32.mrf.mxu0 }
 0x521   :  { %10872 = vst [vmem:[#allocation108_spill] sm:$0xff] %v8845_v22  ;;  %v8847_v2 = vadd.f32 %v2441_v25, %v2263_v30 }
 0x522   :  { %v6648_v48 = vpop.f32.mrf.mxu1  ;;  %v6666_v63 = vpop.f32.mrf.mxu0 }
 0x523   :  { %10873 = vst [vmem:[#allocation55_spill] sm:$0xff] %v8847_v2  ;;  %v10875_v2 = vld [vmem:[#allocation12_spill] sm:$0xff] }
 0x524   :  { %v8849_v37 = vpop.f32.mrf.mxu1  ;;  %v8851_v61 = vpop.f32.mrf.mxu0  ;;  %v2250_v7 = vmul.f32 %v6645_v41, %v10875_v2  ;;  %v10878_v41 = vld [vmem:[#allocation95_spill] sm:$0xff] }
 0x526   :  { %v6649_v51 = vpop.f32.mrf.mxu1  ;;  %v6667_v28 = vpop.f32.mrf.mxu0 }
 0x528   :  { %v8853_v5 = vpop.f32.mrf.mxu1  ;;  %v8855_v32 = vpop.f32.mrf.mxu0 }
 0x52a   :  { %v6652_v21 = vpop.f32.mrf.mxu1  ;;  %v8857_v17 = vpop.f32.mrf.mxu0 }
 0x52c   :  { %v2164_v46 = vpop.f32.mrf.mxu1  ;;  %v8859_v36 = vpop.f32.mrf.mxu0 }
 0x52e   :  { %v6653_v59 = vpop.f32.mrf.mxu1  ;;  %v6671_v55 = vpop.f32.mrf.mxu0 }
 0x530   :  { %v2167_v18 = vpop.f32.mrf.mxu1  ;;  %v8861_v1 = vpop.f32.mrf.mxu0 }
 0x532   :  { %v6676_v43 = vpop.f32.mrf.mxu1  ;;  %v8863_v23 = vpop.f32.mrf.mxu0 }
 0x533   :  { %10874 = vst [vmem:[#allocation118_spill] sm:$0xff] %v8863_v23  ;;  %v2633_v25 = vmul.f32 %v6676_v43, %v8501_v40  ;;  %v2266_v23 = vadd.f32 %v2250_v7, %v8794_v3 }
 0x534   :  { %v8865_v54 = vpop.f32.mrf.mxu1  ;;  %v6694_v30 = vpop.f32.mrf.mxu0 }
 0x535   :  { %v8872_v22 = vadd.f32 %v2633_v25, %v2455_v11  ;;  %v10880_v11 = vld [vmem:[#allocation116_spill] sm:$0xff] }
 0x536   :  { %v6677_v47 = vpop.f32.mrf.mxu1  ;;  %v2711_v42 = vpop.f32.mrf.mxu0  ;;  %v2254_v25 = vmul.f32 %v6649_v51, %v10880_v11  ;;  %v10882_v51 = vld [vmem:[#allocation75_spill] sm:$0xff]  ;;  %v10886_v11 = vld [vmem:[#allocation101_spill] sm:$0xff] }
 0x537   :  { %v2634_v56 = vmul.f32 %v6677_v47, %v8506_v27  ;;  %10876 = vst [vmem:[#allocation82_spill] sm:$0xff] %v8872_v22  ;;  %v2444_v42 = vmul.f32 %v6663_v33, %v8809_v60  ;;  %v10879_v27 = vld [vmem:[#allocation115_spill] sm:$0xff]  ;;  %v10881_v33 = vld [vmem:[#allocation126_spill] sm:$0xff] }
 0x538   :  { %v8870_v34 = vpop.f32.mrf.mxu1  ;;  %v6695_v35 = vpop.f32.mrf.mxu0  ;;  %v2253_v47 = vmul.f32 %v6648_v48, %v10879_v27  ;;  %v2270_v60 = vadd.f32 %v2254_v25, %v8811_v0  ;;  %v2447_v48 = vmul.f32 %v6666_v63, %v10881_v33  ;;  %v2257_v25 = vmul.f32 %v6652_v21, %v10886_v11  ;;  %v10887_v63 = vld [vmem:[#allocation102_spill] sm:$0xff]  ;;  %v10888_v33 = vld [vmem:[#allocation93_spill] sm:$0xff] }
 0x539   :  { %v8874_v10 = vadd.f32 %v2634_v56, %v2456_v44  ;;  %v2460_v35 = vadd.f32 %v2444_v42, %v2266_v23  ;;  %v10883_v42 = vld [vmem:[#allocation97_spill] sm:$0xff] }
 0x53a   :  { %v6680_v39 = vpop.f32.mrf.mxu1  ;;  %v2269_v30 = vadd.f32 %v2253_v47, %v8799_v24  ;;  %v10885_v24 = vld [vmem:[#allocation13_spill] sm:$0xff] }
 0x53b   :  { %10877 = vst [vmem:[#allocation120_spill] sm:$0xff] %v8874_v10  ;;  %v2637_v2 = vmul.f32 %v6680_v39, %v10878_v41  ;;  %v10884_v41 = vld [vmem:[#allocation128_spill] sm:$0xff]  ;;  %v1981_v47 = vmul.f32 %v10885_v24, %v8824_v57  ;;  %v10891_v24 = vld [vmem:[#allocation71_spill] sm:$0xff] }
 0x53c   :  { %v8879_v40 = vpop.f32.mrf.mxu1  ;;  %v2463_v0 = vadd.f32 %v2447_v48, %v2269_v30 }
 0x53d   :  { %v8888_v7 = vadd.f32 %v2637_v2, %v2459_v13  ;;  %v1983_v13 = vmul.f32 %v8818_v6, %v10883_v42  ;;  %v2448_v2 = vmul.f32 %v6667_v28, %v10884_v41  ;;  %v2070_v57 = vadd.f32 %v8826_v4, %v1981_v47  ;;  %v10895_v4 = vld [vmem:[#allocation74_spill] sm:$0xff] }
 0x53e   :  { %v6681_v43 = vpop.f32.mrf.mxu1 }
 0x53f   :  { %v2638_v56 = vmul.f32 %v6681_v43, %v8458_v62  ;;  %v1982_v62 = vmul.f32 %v8813_v53, %v10882_v51  ;;  %v10889_v53 = vld [vmem:[#allocation104_spill] sm:$0xff]  ;;  %v2078_v28 = vadd.f32 %v8820_v58, %v1983_v13  ;;  %v2450_v13 = vmul.f32 %v10895_v4, %v8861_v1  ;;  %v10900_v1 = vld [vmem:[#allocation119_spill] sm:$0xff] }
 0x540   :  { %v8886_v44 = vpop.f32.mrf.mxu1  ;;  %v2256_v51 = vmul.f32 %v10889_v53, %v2167_v18  ;;  %v2451_v18 = vmul.f32 %v8857_v17, %v10891_v24  ;;  %v10894_v58 = vld [vmem:[#allocation80_spill] sm:$0xff]  ;;  %v2445_v24 = vmul.f32 %v8796_v38, %v8851_v61 }
 0x541   :  { %v8890_v3 = vadd.f32 %v2638_v56, %v2460_v35  ;;  %v2464_v35 = vadd.f32 %v2448_v2, %v2270_v60  ;;  %v2258_v56 = vmul.f32 %v6653_v59, %v10887_v63  ;;  %v2075_v6 = vadd.f32 %v8815_v19, %v1982_v62  ;;  %v10890_v60 = vld [vmem:[#allocation107_spill] sm:$0xff]  ;;  %v10893_v19 = vld [vmem:[#allocation50_spill] sm:$0xff]  ;;  %v10905_v38 = vld [vmem:[#allocation40_spill] sm:$0xff] }
 0x542   :  { %v6684_v22 = vpop.f32.mrf.mxu1  ;;  %v2255_v42 = vmul.f32 %v10890_v60, %v2164_v46  ;;  %v2272_v59 = vadd.f32 %v2256_v51, %v2070_v57  ;;  %v10897_v63 = vld [vmem:[#allocation130_spill] sm:$0xff] }
 0x543   :  { %v2641_v27 = vmul.f32 %v6684_v22, %v8275_v50  ;;  %v2273_v48 = vadd.f32 %v2257_v25, %v2075_v6  ;;  %v2274_v21 = vadd.f32 %v2258_v56, %v2078_v28  ;;  %v2252_v17 = vmul.f32 %v10897_v63, %v8853_v5  ;;  %v10914_v63 = vld [vmem:[#allocation25_spill] sm:$0xff] }
 0x544   :  { %v2536_v23 = vpop.f32.mrf.mxu1  ;;  %v2271_v46 = vadd.f32 %v2255_v42, %v8822_v52  ;;  %v10901_v52 = vld [vmem:[#allocation105_spill] sm:$0xff] }
 0x545   :  { %v2657_v50 = vadd.f32 %v2641_v27, %v2463_v0  ;;  %v2467_v47 = vadd.f32 %v2451_v18, %v2273_v48  ;;  %v2251_v57 = vmul.f32 %v10901_v52, %v8849_v37  ;;  %v2248_v37 = vmul.f32 %v8453_v9, %v8843_v49  ;;  %v10903_v9 = vld [vmem:[#allocation23_spill] sm:$0xff]  ;;  %v10904_v49 = vld [vmem:[#allocation108_spill] sm:$0xff] }
 0x546   :  { %v6685_v43 = vpop.f32.mrf.mxu1  ;;  %v2442_v61 = vmul.f32 %v10905_v38, %v10904_v49 }
 0x547   :  { %v2642_v39 = vmul.f32 %v6685_v43, %v10888_v33  ;;  %v10892_v43 = vld [vmem:[#allocation106_spill] sm:$0xff]  ;;  %v2466_v33 = vadd.f32 %v2450_v13, %v2272_v59  ;;  %v2446_v59 = vmul.f32 %v8346_v16, %v8855_v32 }
 0x548   :  { %v2539_v10 = vpop.f32.mrf.mxu1  ;;  %v2452_v11 = vmul.f32 %v6671_v55, %v10892_v43  ;;  %v10898_v55 = vld [vmem:[#allocation113_spill] sm:$0xff]  ;;  %v2639_v43 = vmul.f32 %v8376_v29, %v2536_v23  ;;  %v10906_v29 = vld [vmem:[#allocation99_spill] sm:$0xff] }
 0x549   :  { %v2658_v22 = vadd.f32 %v2642_v39, %v2464_v35  ;;  %v1977_v39 = vmul.f32 %v10894_v58, %v8805_v26  ;;  %v10896_v35 = vld [vmem:[#allocation110_spill] sm:$0xff]  ;;  %v2449_v56 = vmul.f32 %v10898_v55, %v8859_v36  ;;  %v1973_v36 = vmul.f32 %v8414_v15, %v8790_v20 }
 0x54a   :  { %v6688_v30 = vpop.f32.mrf.mxu1  ;;  %v2468_v0 = vadd.f32 %v2452_v11, %v2274_v21  ;;  %v10899_v26 = vld [vmem:[#allocation90_spill] sm:$0xff]  ;;  %v2267_v21 = vadd.f32 %v2251_v57, %v8802_v12  ;;  %v2636_v23 = vmul.f32 %v10906_v29, %v8886_v44  ;;  %v10912_v44 = vpack.c.bf16 %v8890_v3, %v8888_v7  ;;  %v10917_v3 = vld [vmem:[#allocation120_spill] sm:$0xff] }
 0x54b   :  { %v2668_v41 = vpack.c.bf16 %v2658_v22, %v2657_v50  ;;  %v2645_v62 = vmul.f32 %v6688_v30, %v10893_v19  ;;  %v2054_v22 = vadd.f32 %v8807_v14, %v1977_v39  ;;  %v2465_v30 = vadd.f32 %v2449_v56, %v2271_v46  ;;  %v10907_v19 = vld [vmem:[#allocation72_spill] sm:$0xff]  ;;  %v10909_v39 = vld [vmem:[#allocation42_spill] sm:$0xff]  ;;  %v10911_v46 = vld [vmem:[#allocation55_spill] sm:$0xff] }
 0x54c   :  { %v2552_v2 = vpop.f32.mrf.mxu1  ;;  %v2640_v14 = vmul.f32 %v8393_v45, %v2539_v10  ;;  %v2038_v15 = vadd.f32 %v8792_v8, %v1973_v36  ;;  %v2461_v20 = vadd.f32 %v2445_v24, %v2267_v21  ;;  %v10902_v45 = vld [vmem:[#allocation45_spill] sm:$0xff]  ;;  %v2635_v4 = vmul.f32 %v10909_v39, %v8879_v40  ;;  %v10923_v57 = vld [vmem:[#allocation118_spill] sm:$0xff]  ;;  %v10927_v24 = vld [vmem:[#allocation7_spill] sm:$0xff] }
 0x54d   :  { %v2661_v51 = vadd.f32 %v2645_v62, %v2467_v47  ;;  %v2643_v6 = vmul.f32 %v10899_v26, %v2552_v2  ;;  %v2268_v5 = vadd.f32 %v2252_v17, %v2054_v22  ;;  %v1969_v10 = vmul.f32 %v10903_v9, %v10902_v45  ;;  %v10908_v62 = vld [vmem:[#allocation66_spill] sm:$0xff]  ;;  %v10916_v26 = vld [vmem:[#allocation65_spill] sm:$0xff]  ;;  %v2801_v45 = vld [vmem:[%s5747_s29 + $0x28] sm:$0xff] }
 0x54e   :  { %v6689_v27 = vpop.f32.mrf.mxu1  ;;  %v2264_v16 = vadd.f32 %v2248_v37, %v2038_v15  ;;  %v2655_v32 = vadd.f32 %v2639_v43, %v2461_v20  ;;  %v2244_v8 = vmul.f32 %v10908_v62, %v10907_v19  ;;  %v10922_v22 = vmov 0   ;;  %v10926_v37 = vld [vmem:[#allocation6_spill] sm:$0xff]  ;;  %v10929_v43 = vld [vmem:[#allocation9_spill] sm:$0xff]  ;;  %v2769_v20 = vld [vmem:[%s9007_s25 + $0x28] sm:$0xff] }
 0x54f   :  { %v2646_v25 = vmul.f32 %v6689_v27, %v10896_v35  ;;  %v2659_v42 = vadd.f32 %v2643_v6, %v2465_v30  ;;  %v2462_v18 = vadd.f32 %v2446_v59, %v2268_v5  ;;  %v2573_v35 = vpop.permute.xlu0 %2572  ;;  %v10918_v6 = vld [vmem:[#allocation82_spill] sm:$0xff]  ;;  %v2802_v29 = vld [vmem:[%s5747_s29 + $0x30] sm:$0xff]  ;;  %v2797_v62 = vld [vmem:[%s5747_s29 + $0x8] sm:$0xff] }
 0x550   :  { %v2555_v53 = vpop.f32.mrf.mxu1  ;;  %v2458_v58 = vadd.f32 %v2442_v61, %v2264_v16  ;;  %v2632_v40 = vmul.f32 %v2573_v35, %v8870_v34  ;;  %v10920_v34 = vmov 1.0|1.0   ;;  %v10930_v15 = vld [vmem:[#allocation10_spill] sm:$0xff] }
 0x551   :  { %v2662_v28 = vadd.f32 %v2646_v25, %v2468_v0  ;;  %v2644_v50 = vmul.f32 %v10900_v1, %v2555_v53  ;;  %v2656_v12 = vadd.f32 %v2640_v14, %v2462_v18  ;;  %v2651_v0 = vadd.f32 %v2635_v4, %v10911_v46  ;;  %v10913_v25 = vld [vmem:[#allocation57_spill] sm:$0xff]  ;;  %v10924_v14 = vld [vmem:[#allocation3_spill] sm:$0xff]  ;;  %v10928_v18 = vld [vmem:[#allocation8_spill] sm:$0xff] }
 0x552   :  { %v2652_v27 = vadd.f32 %v2636_v23, %v2458_v58  ;;  %v2438_v17 = vmul.f32 %v10914_v63, %v10913_v25  ;;  %v2768_v16 = vld [vmem:[%s9007_s25 + $0x20] sm:$0xff]  ;;  %v2803_v9 = vld [vmem:[%s5747_s29 + $0x38] sm:$0xff]  ;;  %v2765_v23 = vld [vmem:[%s9007_s25 + $0x8] sm:$0xff] }
 0x553   :  { %v2670_v48 = vpack.c.bf16 %v2662_v28, %v2661_v51  ;;  %v2660_v60 = vadd.f32 %v2644_v50, %v2466_v33  ;;  %v2667_v11 = vpack.c.bf16 %v2656_v12, %v2655_v32  ;;  %v10915_v33 = vld [vmem:[#allocation30_spill] sm:$0xff]  ;;  %v10919_v28 = vpack.c.bf16 %v10917_v3, %v10918_v6  ;;  %v2785_v25 = vld [vmem:[%s9007_s25 + $0xa8] sm:$0xff] }
 0x554   :  { %v2665_v55 = vpack.c.bf16 %v2652_v27, %v2651_v0  ;;  %v2631_v53 = vmul.f32 %v10915_v33, %v8865_v54  ;;  %v5884_v54 = vld [vmem:[%s5743_s21] ss:$0 sm:$0xff]  ;;  %v2771_v12 = vld [vmem:[%s9007_s25 + $0x38] sm:$0xff]  ;;  %v2985_v49 = vpack.c.bf16 %v2803_v9, %v2801_v45  ;;  %v2777_v0 = vld [vmem:[%s9007_s25 + $0x68] sm:$0xff] }
 0x555   :  { %6697 = vmatpush3.bf16.msra.mxu1 %v2670_v48  ;;  %v2669_v2 = vpack.c.bf16 %v2660_v60, %v2659_v42  ;;  %v2989_v32 = vpack.c.bf16 %v2771_v12, %v2769_v20  ;;  %v2800_v61 = vld [vmem:[%s5747_s29 + $0x20] sm:$0xff]  ;;  %v2767_v19 = vld [vmem:[%s9007_s25 + $0x18] sm:$0xff]  ;;  %v2778_v33 = vld [vmem:[%s9007_s25 + $0x70] sm:$0xff] }
 0x556   :  { %6698 = vmatprep.subr.bf16.mxu1 %v10750_v31  ;;  %v2647_v7 = vadd.f32 %v2631_v53, %v10916_v26  ;;  %v2987_v58 = vpack.c.bf16 %v2767_v19, %v2765_v23  ;;  %v2764_v4 = vld [vmem:[%s9007_s25] sm:$0xff]  ;;  %v2787_v63 = vld [vmem:[%s9007_s25 + $0xb8] sm:$0xff]  ;;  %v2786_v26 = vld [vmem:[%s9007_s25 + $0xb0] sm:$0xff] }
 0x557   :  { %v2775_v3 = vld [vmem:[%s9007_s25 + $0x58] sm:$0xff]  ;;  %v2781_v6 = vld [vmem:[%s9007_s25 + $0x88] sm:$0xff] }
 0x558   :  { %v2793_v20 = vld [vmem:[%s9007_s25 + $0xe8] sm:$0xff]  ;;  %v2795_v12 = vld [vmem:[%s9007_s25 + $0xf8] sm:$0xff] }
 0x559   :  { %6699 = vmatpush3.bf16.msra.mxu1 %v2669_v2  ;;  %v10925_v2 = vld [vmem:[#allocation5_spill] sm:$0xff]  ;;  %v3846_v9 = vpack.c.bf16 %v2795_v12, %v2793_v20 }
 0x55a   :  { %6700 = vmatprep.subr.bf16.mxu1 %v10750_v31 }
 0x55d   :  { %6701 = vmatpush3.bf16.msra.mxu1 %v2668_v41  ;;  %v10910_v41 = vld [vmem:[#allocation124_spill] sm:$0xff] }
 0x55e   :  { %6702 = vmatprep.subr.bf16.mxu1 %v10750_v31  ;;  %v2022_v13 = vadd.f32 %v10910_v41, %v1969_v10  ;;  %v2770_v10 = vld [vmem:[%s9007_s25 + $0x30] sm:$0xff] }
 0x55f   :  { %v2988_v38 = vpack.c.bf16 %v2770_v10, %v2768_v16  ;;  %v2766_v41 = vld [vmem:[%s9007_s25 + $0x10] sm:$0xff] }
 0x560   :  { %v2260_v47 = vadd.f32 %v2244_v8, %v2022_v13  ;;  %v2799_v8 = vld [vmem:[%s5747_s29 + $0x18] sm:$0xff]  ;;  %v2796_v13 = vld [vmem:[%s5747_s29] sm:$0xff]  ;;  %v2986_v27 = vpack.c.bf16 %v2766_v41, %v2764_v4 }
 0x561   :  { %6703 = vmatpush3.bf16.msra.mxu1 %v2667_v11  ;;  %v2984_v11 = vpack.c.bf16 %v2802_v29, %v2800_v61  ;;  %v2983_v39 = vpack.c.bf16 %v2799_v8, %v2797_v62 }
 0x562   :  { %6704 = vmatprep.subr.bf16.mxu1 %v10750_v31  ;;  %v2454_v56 = vadd.f32 %v2438_v17, %v2260_v47  ;;  %v2798_v47 = vld [vmem:[%s5747_s29 + $0x10] sm:$0xff]  ;;  %v3601_v17 = vpack.c.bf16 %v2787_v63, %v2785_v25 }
 0x563   :  { %v2982_v46 = vpack.c.bf16 %v2798_v47, %v2796_v13 }
 0x564   :  { %v2648_v51 = vadd.f32 %v2632_v40, %v2454_v56  ;;  %v2776_v56 = vld [vmem:[%s9007_s25 + $0x60] sm:$0xff] }
 0x565   :  { %6705 = vmatpush3.bf16.msra.mxu1 %v10912_v44  ;;  %v2779_v44 = vld [vmem:[%s9007_s25 + $0x78] sm:$0xff] }
 0x566   :  { %6706 = vmatprep.subr.bf16.mxu1 %v10750_v31  ;;  %v2663_v1 = vpack.c.bf16 %v2648_v51, %v2647_v7  ;;  %v3356_v35 = vpack.c.bf16 %v2779_v44, %v2777_v0  ;;  %v2784_v51 = vld [vmem:[%s9007_s25 + $0xa0] sm:$0xff]  ;;  %v2773_v7 = vld [vmem:[%s9007_s25 + $0x48] sm:$0xff]  ;;  %v2794_v0 = vld [vmem:[%s9007_s25 + $0xf0] sm:$0xff] }
 0x567   :  { %v2789_v44 = vld [vmem:[%s9007_s25 + $0xc8] sm:$0xff] }
 0x569   :  { %6707 = vmatpush3.bf16.msra.mxu1 %v2665_v55 }
 0x56a   :  { %6708 = vmatprep.subr.bf16.mxu1 %v10750_v31 }
 0x56d   :  { %6709 = vmatpush3.bf16.msra.mxu1 %v10919_v28  ;;  %v2783_v28 = vld [vmem:[%s9007_s25 + $0x98] sm:$0xff] }
 0x56e   :  { %6710 = vmatprep.subr.bf16.mxu1 %v10750_v31 }
 0x571   :  { %6711 = vmatpush3.bf16.msra.mxu1 %v2663_v1 }
 0x572   :  { %3027 = vmatprep.subr.bf16.mxu1 %v2989_v32 }
 0x574   :  { %6713 = vmatmul.mubr.msk.bf16.vlgmr.msra.gmra.mxu1 %vm8444_vm8, %v10920_v34 }
 0x575   :  { %3047 = vmatprep.mubr.bf16.mxu1 %v10922_v22  ;;  %3028 = vmatpush1.bf16.msra.mxu1 %v2988_v38 }
 0x576   :  { %3029 = vmatprep.subr.bf16.mxu1 %v2987_v58 }
 0x579   :  { %3030 = vmatpush1.bf16.msra.mxu1 %v2986_v27 }
 0x57a   :  { %3369 = vmatprep.subr.bf16.mxu1 %v3356_v35  ;;  %v2791_v35 = vld [vmem:[%s9007_s25 + $0xd8] sm:$0xff] }
 0x57b   :  { %v3844_v63 = vpack.c.bf16 %v2791_v35, %v2789_v44 }
 0x634   :  { %v2748_v52 = vpop.f32.mrf.mxu1 }
 0x635   :  { %v2749_v30 = vadd.f32 %v2748_v52, %v10923_v57  ;;  %v3355_v52 = vpack.c.bf16 %v2778_v33, %v2776_v56  ;;  %v3600_v57 = vpack.c.bf16 %v2786_v26, %v2784_v51  ;;  %v2811_v56 = vld [vmem:[%s9105_s3 + $0x38] sm:$0xff]  ;;  %v2808_v51 = vld [vmem:[%s9105_s3 + $0x20] sm:$0xff]  ;;  %v2810_v26 = vld [vmem:[%s9105_s3 + $0x30] sm:$0xff] }
 0x636   :  { %v6714_v48 = vpop.f32.mrf.mxu1 }
 0x637   :  { %v2760_v60 = vadd.f32 %v5884_v54, %v2749_v30  ;;  %v2772_v30 = vld [vmem:[%s9007_s25 + $0x40] sm:$0xff] }
 0x638   :  { %v2751_v5 = vpop.f32.mrf.mxu1 }
 0x639   :  { %v2761_v42 = vmax.f32 %v2760_v60, 0.0  ;;  %v3354_v60 = vpack.c.bf16 %v2775_v3, %v2773_v7  ;;  %v3599_v5 = vpack.c.bf16 %v2783_v28, %v2781_v6  ;;  %v2805_v7 = vld [vmem:[%s9105_s3 + $0x8] sm:$0xff]  ;;  %v2807_v3 = vld [vmem:[%s9105_s3 + $0x18] sm:$0xff]  ;;  %v4106_v6 = vpack.c.bf16 %v2810_v26, %v2808_v51 }
 0x63a   :  { %v6715_v36 = vpop.f32.mrf.mxu1  ;;  %v4105_v28 = vpack.c.bf16 %v2807_v3, %v2805_v7  ;;  %v10942_v51 = vld [vmem:[#allocation114_spill] sm:$0xff] }
 0x63b   :  { %v8983_v21 = vpack.c.bf16 %v2761_v42, %v2761_v42  ;;  %v2774_v42 = vld [vmem:[%s9007_s25 + $0x50] sm:$0xff]  ;;  %v2780_v36 = vld [vmem:[%s9007_s25 + $0x80] sm:$0xff] }
 0x63c   :  { %v3353_v16 = vpack.c.bf16 %v2774_v42, %v2772_v30 }
 0x63d   :  { %6772 = vmatprep.subr.msk.bf16.mxu0 %vm442_vm0, %v8983_v21  ;;  %v2875_v59 = vsel %vm442_vm0, %v8983_v21, 0 }
 0x63e   :  { %6717 = vmatpush3.bf16.msra.mxu0 %v2875_v59  ;;  %v2782_v59 = vld [vmem:[%s9007_s25 + $0x90] sm:$0xff] }
 0x63f   :  { %3252 = vmatprep.subr.bf16.mxu0 %v2985_v49  ;;  %v3598_v32 = vpack.c.bf16 %v2782_v59, %v2780_v36 }
 0x641   :  { %6719 = vmatmul.mubr.msk.bf16.vlgmr.msra.gmra.mxu0 %vm417_vm5, %v10924_v14 }
 0x642   :  { %6722 = vmatprep.mubr.msk.bf16.mxu0 %vm417_vm5, %v10925_v2  ;;  %3253 = vmatpush1.bf16.msra.mxu0 %v2984_v11 }
 0x643   :  { %3254 = vmatprep.subr.bf16.mxu0 %v2983_v39 }
 0x646   :  { %3255 = vmatpush1.bf16.msra.mxu0 %v2982_v46  ;;  %v2792_v46 = vld [vmem:[%s9007_s25 + $0xe0] sm:$0xff] }
 0x647   :  { %3614 = vmatprep.subr.bf16.mxu0 %v3601_v17  ;;  %v3845_v25 = vpack.c.bf16 %v2794_v0, %v2792_v46  ;;  %v2788_v17 = vld [vmem:[%s9007_s25 + $0xc0] sm:$0xff] }
 0x649   :  { %6723 = vmatmul.mubr.msk.bf16.gmra.mxu0 %vm417_vm5, %v10926_v37  ;;  %v10956_v37 = vld [vmem:[#allocation46_spill] sm:$0xff] }
 0x64a   :  { %6726 = vmatprep.mubr.msk.bf16.mxu0 %vm417_vm5, %v10927_v24 }
 0x651   :  { %6727 = vmatmul.mubr.msk.bf16.gmra.mxu0 %vm417_vm5, %v10928_v18 }
 0x652   :  { %6730 = vmatprep.mubr.msk.bf16.mxu0 %vm417_vm5, %v10929_v43 }
 0x659   :  { %6731 = vmatmul.mubr.msk.bf16.gmra.mxu0 %vm417_vm5, %v10930_v15 }
 0x65a   :  { %3272 = vmatprep.mubr.bf16.mxu0 %v10922_v22 }
 0x701   :  { %v6720_v40 = vpop.f32.mrf.mxu0 }
 0x703   :  { %v2911_v55 = vpop.f32.mrf.mxu0 }
 0x705   :  { %v6721_v53 = vpop.f32.mrf.mxu0 }
 0x706   :  { %v9046_v10 = vpack.c.bf16 %v6721_v53, %v6720_v40  ;;  %v2790_v40 = vld [vmem:[%s9007_s25 + $0xd0] sm:$0xff] }
 0x707   :  { %v2914_v1 = vpop.f32.mrf.mxu0  ;;  %v3843_v33 = vpack.c.bf16 %v2790_v40, %v2788_v17 }
 0x708   :  { %v9032_v54 = vpack.c.bf16 %v2914_v1, %v2911_v55  ;;  %v2809_v55 = vld [vmem:[%s9105_s3 + $0x28] sm:$0xff]  ;;  %v2804_v1 = vld [vmem:[%s9105_s3] sm:$0xff] }
 0x709   :  { %v6724_v48 = vpop.f32.mrf.mxu0  ;;  %v4107_v53 = vpack.c.bf16 %v2811_v56, %v2809_v55 }
 0x70a   :  { %5895 = vmatmul.mubr.msk.bf16.vlgmr.msra.gmra.mxu1 %vm2990_vm10, %v9032_v54  ;;  %5903 = vmatmul.mubr.msk.bf16.vlgmr.msra.gmra.mxu0 %vm2990_vm10, %v9032_v54 }
 0x70b   :  { %3057 = vmatprep.mubr.bf16.mxu1 %v10922_v22  ;;  %3282 = vmatprep.mubr.bf16.mxu0 %v10922_v22  ;;  %v2927_v45 = vpop.f32.mrf.mxu0 }
 0x70c   :  { %3370 = vmatpush1.bf16.msra.mxu1 %v3355_v52  ;;  %3615 = vmatpush1.bf16.msra.mxu0 %v3600_v57  ;;  %v2806_v52 = vld [vmem:[%s9105_s3 + $0x10] sm:$0xff]  ;;  %v9171_v57 = vpop.permute.xlu0 %4021 }
 0x70d   :  { %3371 = vmatprep.subr.bf16.mxu1 %v3354_v60  ;;  %3616 = vmatprep.subr.bf16.mxu0 %v3599_v5  ;;  %v6725_v49 = vpop.f32.mrf.mxu0  ;;  %10931 = vst [vmem:[#allocation111_spill] sm:$0xff] %v9171_v57  ;;  %v4104_v30 = vpack.c.bf16 %v2806_v52, %v2804_v1 }
 0x70e   :  { %v9062_v11 = vpack.c.bf16 %v6725_v49, %v6724_v48 }
 0x70f   :  { %v2930_v38 = vpop.f32.mrf.mxu0 }
 0x710   :  { %3372 = vmatpush1.bf16.msra.mxu1 %v3353_v16  ;;  %3617 = vmatpush1.bf16.msra.mxu0 %v3598_v32  ;;  %v9054_v61 = vpack.c.bf16 %v2930_v38, %v2927_v45  ;;  %v9174_v48 = vpop.permute.xlu0 %4001 }
 0x711   :  { %3859 = vmatprep.subr.bf16.mxu1 %v3846_v9  ;;  %v6728_v29 = vpop.f32.mrf.mxu0  ;;  %v10935_v9 = vld [vmem:[#allocation127_spill] sm:$0xff] }
 0x712   :  { %5896 = vmatmul.mubr.msk.bf16.gmra.mxu1 %vm2990_vm10, %v9046_v10  ;;  %5904 = vmatmul.mubr.msk.bf16.gmra.mxu0 %vm2990_vm10, %v9046_v10 }
 0x713   :  { %3067 = vmatprep.mubr.bf16.mxu1 %v10922_v22  ;;  %3292 = vmatprep.mubr.bf16.mxu0 %v10922_v22  ;;  %v2943_v23 = vpop.f32.mrf.mxu0 }
 0x714   :  { %v9179_v60 = vpop.permute.xlu0 %3997 }
 0x715   :  { %v6729_v19 = vpop.f32.mrf.mxu0 }
 0x716   :  { %v9078_v4 = vpack.c.bf16 %v6729_v19, %v6728_v29 }
 0x717   :  { %v2946_v62 = vpop.f32.mrf.mxu0 }
 0x718   :  { %v9070_v8 = vpack.c.bf16 %v2946_v62, %v2943_v23 }
 0x719   :  { %v6732_v58 = vpop.f32.mrf.mxu0 }
 0x71a   :  { %5897 = vmatmul.mubr.msk.bf16.gmra.mxu1 %vm2990_vm10, %v9054_v61  ;;  %5905 = vmatmul.mubr.msk.bf16.gmra.mxu0 %vm2990_vm10, %v9054_v61 }
 0x71b   :  { %3077 = vmatprep.mubr.bf16.mxu1 %v10922_v22  ;;  %3302 = vmatprep.mubr.bf16.mxu0 %v10922_v22  ;;  %v2959_v39 = vpop.f32.mrf.mxu0 }
 0x71d   :  { %v6733_v41 = vpop.f32.mrf.mxu0 }
 0x71e   :  { %v9094_v47 = vpack.c.bf16 %v6733_v41, %v6732_v58 }
 0x71f   :  { %v2962_v13 = vpop.f32.mrf.mxu0 }
 0x720   :  { %v9086_v27 = vpack.c.bf16 %v2962_v13, %v2959_v39 }
 0x722   :  { %5898 = vmatmul.mubr.msk.bf16.gmra.mxu1 %vm2990_vm10, %v9062_v11  ;;  %5906 = vmatmul.mubr.msk.bf16.gmra.mxu0 %vm2990_vm10, %v9062_v11 }
 0x723   :  { %3087 = vmatprep.mubr.bf16.mxu1 %v10922_v22  ;;  %3312 = vmatprep.mubr.bf16.mxu0 %v10922_v22 }
 0x72a   :  { %5899 = vmatmul.mubr.msk.bf16.gmra.mxu1 %vm2990_vm10, %v9070_v8  ;;  %5907 = vmatmul.mubr.msk.bf16.gmra.mxu0 %vm2990_vm10, %v9070_v8 }
 0x72b   :  { %3097 = vmatprep.mubr.bf16.mxu1 %v10922_v22  ;;  %3322 = vmatprep.mubr.bf16.mxu0 %v10922_v22 }
 0x732   :  { %5900 = vmatmul.mubr.msk.bf16.gmra.mxu1 %vm2990_vm10, %v9078_v4  ;;  %5908 = vmatmul.mubr.msk.bf16.gmra.mxu0 %vm2990_vm10, %v9078_v4 }
 0x733   :  { %3107 = vmatprep.mubr.bf16.mxu1 %v10922_v22  ;;  %3332 = vmatprep.mubr.bf16.mxu0 %v10922_v22 }
 0x73a   :  { %5901 = vmatmul.mubr.msk.bf16.gmra.mxu1 %vm2990_vm10, %v9086_v27  ;;  %5909 = vmatmul.mubr.msk.bf16.gmra.mxu0 %vm2990_vm10, %v9086_v27 }
 0x73b   :  { %3117 = vmatprep.mubr.bf16.mxu1 %v10922_v22  ;;  %3342 = vmatprep.mubr.bf16.mxu0 %v10922_v22 }
 0x742   :  { %5902 = vmatmul.mubr.msk.bf16.gmra.mxu1 %vm2990_vm10, %v9094_v47  ;;  %5910 = vmatmul.mubr.msk.bf16.gmra.mxu0 %vm2990_vm10, %v9094_v47 }
 0x743   :  { %3389 = vmatprep.mubr.bf16.mxu1 %v10922_v22  ;;  %3634 = vmatprep.mubr.bf16.mxu0 %v10922_v22 }
 0x74a   :  { %5911 = vmatmul.mubr.msk.bf16.vlgmr.msra.gmra.mxu1 %vm2990_vm10, %v9032_v54  ;;  %5919 = vmatmul.mubr.msk.bf16.vlgmr.msra.gmra.mxu0 %vm2990_vm10, %v9032_v54 }
 0x74b   :  { %3399 = vmatprep.mubr.bf16.mxu1 %v10922_v22  ;;  %3644 = vmatprep.mubr.bf16.mxu0 %v10922_v22 }
 0x74c   :  { %3860 = vmatpush1.bf16.msra.mxu1 %v3845_v25 }
 0x74d   :  { %3861 = vmatprep.subr.bf16.mxu1 %v3844_v63  ;;  %v10939_v63 = vld [vmem:[#allocation109_spill] sm:$0xff] }
 0x750   :  { %3862 = vmatpush1.bf16.msra.mxu1 %v3843_v33 }
 0x751   :  { %4122 = vmatprep.subr.bf16.mxu1 %v4107_v53 }
 0x752   :  { %5912 = vmatmul.mubr.msk.bf16.gmra.mxu1 %vm2990_vm10, %v9046_v10  ;;  %5920 = vmatmul.mubr.msk.bf16.gmra.mxu0 %vm2990_vm10, %v9046_v10 }
 0x753   :  { %3409 = vmatprep.mubr.bf16.mxu1 %v10922_v22  ;;  %3654 = vmatprep.mubr.bf16.mxu0 %v10922_v22 }
 0x75a   :  { %5913 = vmatmul.mubr.msk.bf16.gmra.mxu1 %vm2990_vm10, %v9054_v61  ;;  %5921 = vmatmul.mubr.msk.bf16.gmra.mxu0 %vm2990_vm10, %v9054_v61 }
 0x75b   :  { %3419 = vmatprep.mubr.bf16.mxu1 %v10922_v22  ;;  %3664 = vmatprep.mubr.bf16.mxu0 %v10922_v22 }
 0x762   :  { %5914 = vmatmul.mubr.msk.bf16.gmra.mxu1 %vm2990_vm10, %v9062_v11  ;;  %5922 = vmatmul.mubr.msk.bf16.gmra.mxu0 %vm2990_vm10, %v9062_v11 }
 0x763   :  { %3429 = vmatprep.mubr.bf16.mxu1 %v10922_v22  ;;  %3674 = vmatprep.mubr.bf16.mxu0 %v10922_v22 }
 0x76a   :  { %5915 = vmatmul.mubr.msk.bf16.gmra.mxu1 %vm2990_vm10, %v9070_v8  ;;  %5923 = vmatmul.mubr.msk.bf16.gmra.mxu0 %vm2990_vm10, %v9070_v8 }
 0x76b   :  { %3439 = vmatprep.mubr.bf16.mxu1 %v10922_v22  ;;  %3684 = vmatprep.mubr.bf16.mxu0 %v10922_v22 }
 0x772   :  { %5916 = vmatmul.mubr.msk.bf16.gmra.mxu1 %vm2990_vm10, %v9078_v4  ;;  %5924 = vmatmul.mubr.msk.bf16.gmra.mxu0 %vm2990_vm10, %v9078_v4 }
 0x773   :  { %3449 = vmatprep.mubr.bf16.mxu1 %v10922_v22  ;;  %3694 = vmatprep.mubr.bf16.mxu0 %v10922_v22 }
 0x77a   :  { %5917 = vmatmul.mubr.msk.bf16.gmra.mxu1 %vm2990_vm10, %v9086_v27  ;;  %5925 = vmatmul.mubr.msk.bf16.gmra.mxu0 %vm2990_vm10, %v9086_v27 }
 0x77b   :  { %3459 = vmatprep.mubr.bf16.mxu1 %v10922_v22  ;;  %3704 = vmatprep.mubr.bf16.mxu0 %v10922_v22 }
 0x782   :  { %5918 = vmatmul.mubr.msk.bf16.gmra.mxu1 %vm2990_vm10, %v9094_v47  ;;  %5926 = vmatmul.mubr.msk.bf16.gmra.mxu0 %vm2990_vm10, %v9094_v47 }
 0x783   :  { %3879 = vmatprep.mubr.bf16.mxu1 %v10922_v22  ;;  %4183 = vmatprep.mubr.bf16.mxu0 %v10922_v22 }
 0x78a   :  { %5927 = vmatmul.mubr.msk.bf16.vlgmr.msra.gmra.mxu1 %vm2990_vm10, %v9032_v54  ;;  %v9184_v54 = vpop.permute.xlu0 %3764 }
 0x78b   :  { %3889 = vmatprep.mubr.bf16.mxu1 %v10922_v22  ;;  %4123 = vmatpush1.bf16.msra.mxu1 %v4106_v6 }
 0x78c   :  { %4124 = vmatprep.subr.bf16.mxu1 %v4105_v28 }
 0x78e   :  { %v9188_v5 = vpop.permute.xlu0 %3760 }
 0x78f   :  { %4125 = vmatpush1.bf16.msra.mxu1 %v4104_v30 }
 0x792   :  { %5928 = vmatmul.mubr.msk.bf16.gmra.mxu1 %vm2990_vm10, %v9046_v10  ;;  %v9191_v42 = vpop.permute.xlu0 %3740 }
 0x793   :  { %3899 = vmatprep.mubr.bf16.mxu1 %v10922_v22  ;;  %10932 = vst [vmem:[#allocation121_spill] sm:$0xff] %v9191_v42 }
 0x796   :  { %v9196_v36 = vpop.permute.xlu0 %3736 }
 0x797   :  { %10933 = vst [vmem:[#allocation91_spill] sm:$0xff] %v9196_v36 }
 0x79a   :  { %5929 = vmatmul.mubr.msk.bf16.gmra.mxu1 %vm2990_vm10, %v9054_v61  ;;  %v9201_v59 = vpop.permute.xlu0 %3195 }
 0x79b   :  { %3909 = vmatprep.mubr.bf16.mxu1 %v10922_v22 }
 0x79e   :  { %v9205_v20 = vpop.permute.xlu0 %3170 }
 0x7a2   :  { %5930 = vmatmul.mubr.msk.bf16.gmra.mxu1 %vm2990_vm10, %v9062_v11  ;;  %v9208_v12 = vpop.permute.xlu0 %3165 }
 0x7a3   :  { %3919 = vmatprep.mubr.bf16.mxu1 %v10922_v22  ;;  %10934 = vst [vmem:[#allocation38_spill] sm:$0xff] %v9208_v12 }
 0x7a6   :  { %v3141_v16 = vpop.permute.xlu0 %3140 }
 0x7aa   :  { %5931 = vmatmul.mubr.msk.bf16.gmra.mxu1 %vm2990_vm10, %v9070_v8  ;;  %v9217_v61 = vpop.permute.xlu0 %3135 }
 0x7ab   :  { %3929 = vmatprep.mubr.bf16.mxu1 %v10922_v22  ;;  %10936 = vst [vmem:[#allocation88_spill] sm:$0xff] %v9217_v61 }
 0x7b2   :  { %5932 = vmatmul.mubr.msk.bf16.gmra.mxu1 %vm2990_vm10, %v9078_v4 }
 0x7b3   :  { %3939 = vmatprep.mubr.bf16.mxu1 %v10922_v22 }
 0x7ba   :  { %5933 = vmatmul.mubr.msk.bf16.gmra.mxu1 %vm2990_vm10, %v9086_v27 }
 0x7bb   :  { %3949 = vmatprep.mubr.bf16.mxu1 %v10922_v22 }
 0x7c2   :  { %5934 = vmatmul.mubr.msk.bf16.gmra.mxu1 %vm2990_vm10, %v9094_v47 }
 0x7c3   :  { %4142 = vmatprep.mubr.bf16.mxu1 %v10922_v22 }
 0x7ca   :  { %v3049_v32 = vpop.f32.mrf.mxu1  ;;  %v3274_v45 = vpop.f32.mrf.mxu0  ;;  %5935 = vmatmul.mubr.msk.bf16.vlgmr.msra.gmra.mxu1 %vm2990_vm10, %v8983_v21 }
 0x7cb   :  { %v3208_v10 = vmul.f32 %v10935_v9, %v3049_v32  ;;  %4502 = vmatprep.mubr.bf16.mxu1 %v10922_v22 }
 0x7cc   :  { %v3051_v49 = vpop.f32.mrf.mxu1  ;;  %v3276_v38 = vpop.f32.mrf.mxu0 }
 0x7cd   :  { %v9219_v29 = vadd.f32 %v3274_v45, %v3208_v10  ;;  %v3209_v23 = vmul.f32 %v10935_v9, %v3051_v49 }
 0x7ce   :  { %v3053_v11 = vpop.f32.mrf.mxu1  ;;  %v3278_v19 = vpop.f32.mrf.mxu0 }
 0x7cf   :  { %v9222_v62 = vadd.f32 %v3276_v38, %v3209_v23  ;;  %v3210_v8 = vmul.f32 %v9217_v61, %v3053_v11  ;;  %v10946_v23 = vld [vmem:[#allocation44_spill] sm:$0xff] }
 0x7d0   :  { %v9225_v58 = vpop.f32.mrf.mxu1  ;;  %v9227_v21 = vpop.f32.mrf.mxu0 }
 0x7d1   :  { %10937 = vst [vmem:[#allocation94_spill] sm:$0xff] %v9225_v58  ;;  %10938 = vst [vmem:[#allocation129_spill] sm:$0xff] %v9227_v21  ;;  %v9229_v39 = vadd.f32 %v3278_v19, %v3210_v8 }
 0x7d2   :  { %v3059_v4 = vpop.f32.mrf.mxu1  ;;  %v3284_v41 = vpop.f32.mrf.mxu0 }
 0x7d3   :  { %v3212_v13 = vmul.f32 %v3141_v16, %v3059_v4 }
 0x7d4   :  { %v3061_v27 = vpop.f32.mrf.mxu1  ;;  %v3286_v47 = vpop.f32.mrf.mxu0 }
 0x7d5   :  { %v9231_v46 = vadd.f32 %v3284_v41, %v3212_v13  ;;  %v3213_v0 = vmul.f32 %v3141_v16, %v3061_v27  ;;  %v10943_v16 = vld [vmem:[#allocation43_spill] sm:$0xff] }
 0x7d6   :  { %v3063_v44 = vpop.f32.mrf.mxu1  ;;  %v3288_v35 = vpop.f32.mrf.mxu0 }
 0x7d7   :  { %v9233_v25 = vadd.f32 %v3286_v47, %v3213_v0  ;;  %v3214_v17 = vmul.f32 %v10939_v63, %v3063_v44 }
 0x7d8   :  { %v9236_v40 = vpop.f32.mrf.mxu1  ;;  %v9238_v55 = vpop.f32.mrf.mxu0 }
 0x7d9   :  { %10940 = vst [vmem:[#allocation69_spill] sm:$0xff] %v9236_v40  ;;  %10941 = vst [vmem:[#allocation117_spill] sm:$0xff] %v9238_v55  ;;  %v9240_v56 = vadd.f32 %v3288_v35, %v3214_v17 }
 0x7da   :  { %v3069_v33 = vpop.f32.mrf.mxu1  ;;  %v3294_v53 = vpop.f32.mrf.mxu0 }
 0x7db   :  { %v3216_v26 = vmul.f32 %v10942_v51, %v3069_v33 }
 0x7dc   :  { %v3071_v7 = vpop.f32.mrf.mxu1  ;;  %v3296_v3 = vpop.f32.mrf.mxu0 }
 0x7dd   :  { %v9243_v6 = vadd.f32 %v3294_v53, %v3216_v26  ;;  %v3217_v28 = vmul.f32 %v10942_v51, %v3071_v7  ;;  %v9268_v51 = vpop.permute.xlu0 %3527 }
 0x7de   :  { %v3073_v1 = vpop.f32.mrf.mxu1  ;;  %v3298_v52 = vpop.f32.mrf.mxu0 }
 0x7df   :  { %v9246_v30 = vadd.f32 %v3296_v3, %v3217_v28  ;;  %v3218_v32 = vmul.f32 %v10943_v16, %v3073_v1 }
 0x7e0   :  { %v9249_v45 = vpop.f32.mrf.mxu1  ;;  %v9251_v9 = vpop.f32.mrf.mxu0 }
 0x7e1   :  { %10944 = vst [vmem:[#allocation49_spill] sm:$0xff] %v9249_v45  ;;  %10945 = vst [vmem:[#allocation58_spill] sm:$0xff] %v9251_v9  ;;  %v9253_v10 = vadd.f32 %v3298_v52, %v3218_v32 }
 0x7e2   :  { %v3079_v49 = vpop.f32.mrf.mxu1  ;;  %v3304_v38 = vpop.f32.mrf.mxu0 }
 0x7e3   :  { %v3220_v11 = vmul.f32 %v10946_v23, %v3079_v49 }
 0x7e4   :  { %v3081_v19 = vpop.f32.mrf.mxu1  ;;  %v3306_v8 = vpop.f32.mrf.mxu0 }
 0x7e5   :  { %v9256_v4 = vadd.f32 %v3304_v38, %v3220_v11  ;;  %v3221_v41 = vmul.f32 %v10946_v23, %v3081_v19  ;;  %v10949_v38 = vld [vmem:[#allocation27_spill] sm:$0xff] }
 0x7e6   :  { %v3083_v13 = vpop.f32.mrf.mxu1  ;;  %v3308_v27 = vpop.f32.mrf.mxu0 }
 0x7e7   :  { %v9259_v47 = vadd.f32 %v3306_v8, %v3221_v41  ;;  %v3222_v0 = vmul.f32 %v9208_v12, %v3083_v13  ;;  %v9281_v8 = vpop.permute.xlu0 %3519  ;;  %v9283_v41 = vpop.permute.xlu1 %3724 }
 0x7e8   :  { %v9262_v44 = vpop.f32.mrf.mxu1  ;;  %v9264_v35 = vpop.f32.mrf.mxu0 }
 0x7e9   :  { %10947 = vst [vmem:[#allocation67_spill] sm:$0xff] %v9262_v44  ;;  %10948 = vst [vmem:[#allocation52_spill] sm:$0xff] %v9264_v35  ;;  %v9266_v17 = vadd.f32 %v3308_v27, %v3222_v0 }
 0x7ea   :  { %v3089_v33 = vpop.f32.mrf.mxu1  ;;  %v3314_v53 = vpop.f32.mrf.mxu0 }
 0x7eb   :  { %v3224_v26 = vmul.f32 %v9205_v20, %v3089_v33  ;;  %v10952_v33 = vld [vmem:[#allocation20_spill] sm:$0xff]  ;;  %v9291_v31 = vpop.permute.xlu0 %3515  ;;  %v9293_v15 = vpop.permute.xlu1 %3728 }
 0x7ec   :  { %v3091_v7 = vpop.f32.mrf.mxu1  ;;  %v3316_v3 = vpop.f32.mrf.mxu0  ;;  %10953 = vst [vmem:[#allocation64_spill] sm:$0xff] %v9293_v15 }
 0x7ed   :  { %v9271_v28 = vadd.f32 %v3314_v53, %v3224_v26  ;;  %v3225_v1 = vmul.f32 %v9205_v20, %v3091_v7 }
 0x7ee   :  { %v3093_v52 = vpop.f32.mrf.mxu1  ;;  %v3318_v32 = vpop.f32.mrf.mxu0 }
 0x7ef   :  { %v9274_v49 = vadd.f32 %v3316_v3, %v3225_v1  ;;  %v3226_v23 = vmul.f32 %v10949_v38, %v3093_v52  ;;  %v9305_v14 = vpop.permute.xlu0 %3495  ;;  %v9307_v22 = vpop.permute.xlu1 %3475 }
 0x7f0   :  { %v9277_v11 = vpop.f32.mrf.mxu1  ;;  %v9279_v19 = vpop.f32.mrf.mxu0  ;;  %10957 = vst [vmem:[#allocation92_spill] sm:$0xff] %v9307_v22 }
 0x7f1   :  { %10950 = vst [vmem:[#allocation68_spill] sm:$0xff] %v9277_v11  ;;  %10951 = vst [vmem:[#allocation60_spill] sm:$0xff] %v9279_v19  ;;  %v9285_v13 = vadd.f32 %v3318_v32, %v3226_v23  ;;  %v10954_v32 = vld [vmem:[#allocation17_spill] sm:$0xff] }
 0x7f2   :  { %v3099_v27 = vpop.f32.mrf.mxu1  ;;  %v3324_v0 = vpop.f32.mrf.mxu0 }
 0x7f3   :  { %v3228_v20 = vmul.f32 %v10952_v33, %v3099_v27  ;;  %v9321_v58 = vpop.permute.xlu0 %3491 }
 0x7f4   :  { %v3101_v53 = vpop.f32.mrf.mxu1  ;;  %v3326_v26 = vpop.f32.mrf.mxu0  ;;  %10958 = vst [vmem:[#allocation70_spill] sm:$0xff] %v9321_v58 }
 0x7f5   :  { %v9288_v7 = vadd.f32 %v3324_v0, %v3228_v20  ;;  %v3229_v3 = vmul.f32 %v10952_v33, %v3101_v53 }
 0x7f6   :  { %v3103_v1 = vpop.f32.mrf.mxu1  ;;  %v3328_v52 = vpop.f32.mrf.mxu0 }
 0x7f7   :  { %v9295_v43 = vadd.f32 %v3326_v26, %v3229_v3  ;;  %v3230_v23 = vmul.f32 %v10954_v32, %v3103_v1  ;;  %v3472_v45 = vpop.permute.xlu0 %3471 }
 0x7f8   :  { %v9298_v18 = vpop.f32.mrf.mxu1  ;;  %v9300_v24 = vpop.f32.mrf.mxu0 }
 0x7f9   :  { %10955 = vst [vmem:[#allocation61_spill] sm:$0xff] %v9300_v24  ;;  %v9302_v27 = vadd.f32 %v3328_v52, %v3230_v23 }
 0x7fa   :  { %v3109_v0 = vpop.f32.mrf.mxu1  ;;  %v3334_v20 = vpop.f32.mrf.mxu0 }
 0x7fb   :  { %v3232_v33 = vmul.f32 %v10956_v37, %v3109_v0 }
 0x7fc   :  { %v3111_v53 = vpop.f32.mrf.mxu1  ;;  %v3336_v2 = vpop.f32.mrf.mxu0 }
 0x7fd   :  { %v9309_v26 = vadd.f32 %v3334_v20, %v3232_v33  ;;  %v3233_v3 = vmul.f32 %v10956_v37, %v3111_v53  ;;  %v9323_v20 = vpop.permute.xlu1 %3969  ;;  %v10959_v33 = vld [vmem:[#allocation39_spill] sm:$0xff] }
 0x7fe   :  { %v3113_v1 = vpop.f32.mrf.mxu1  ;;  %v3338_v50 = vpop.f32.mrf.mxu0 }
 0x7ff   :  { %v9312_v34 = vadd.f32 %v3336_v2, %v3233_v3  ;;  %v3234_v52 = vmul.f32 %v9201_v59, %v3113_v1 }
 0x800   :  { %v9315_v23 = vpop.f32.mrf.mxu1  ;;  %v9317_v21 = vpop.f32.mrf.mxu0 }
 0x801   :  { %v9319_v0 = vadd.f32 %v3338_v50, %v3234_v52  ;;  %v10960_v50 = vld [vmem:[#allocation32_spill] sm:$0xff]  ;;  %v3717_v19 = vpop.permute.xlu1 %3716 }
 0x802   :  { %v3119_v55 = vpop.f32.mrf.mxu1  ;;  %v3344_v61 = vpop.f32.mrf.mxu0 }
 0x803   :  { %v3236_v37 = vmul.f32 %v10959_v33, %v3119_v55 }
 0x804   :  { %v3121_v53 = vpop.f32.mrf.mxu1  ;;  %v3346_v9 = vpop.f32.mrf.mxu0 }
 0x805   :  { %v9326_v2 = vadd.f32 %v3344_v61, %v3236_v37  ;;  %v3237_v3 = vmul.f32 %v10959_v33, %v3121_v53 }
 0x806   :  { %v3123_v1 = vpop.f32.mrf.mxu1  ;;  %v3348_v63 = vpop.f32.mrf.mxu0 }
 0x807   :  { %v9329_v40 = vadd.f32 %v3346_v9, %v3237_v3  ;;  %v3238_v52 = vmul.f32 %v10960_v50, %v3123_v1  ;;  %v9339_v1 = vpop.permute.xlu1 %3720 }
 0x808   :  { %v9332_v35 = vpop.f32.mrf.mxu1  ;;  %v9334_v16 = vpop.f32.mrf.mxu0  ;;  %10963 = vst [vmem:[#allocation85_spill] sm:$0xff] %v9339_v1 }
 0x809   :  { %10961 = vst [vmem:[#allocation83_spill] sm:$0xff] %v9334_v16  ;;  %v9336_v57 = vadd.f32 %v3348_v63, %v3238_v52 }
 0x80a   :  { %v3391_v55 = vpop.f32.mrf.mxu1  ;;  %v3636_v38 = vpop.f32.mrf.mxu0 }
 0x80b   :  { %10962 = vst [vmem:[#allocation73_spill] sm:$0xff] %v9336_v57  ;;  %v3534_v61 = vmul.f32 %v3472_v45, %v3391_v55  ;;  %v3779_v53 = vmul.f32 %v3717_v19, %v3636_v38 }
 0x80c   :  { %v3393_v37 = vpop.f32.mrf.mxu1  ;;  %v3638_v11 = vpop.f32.mrf.mxu0 }
 0x80d   :  { %v3566_v33 = vadd.f32 %v3534_v61, %v9219_v29  ;;  %v3535_v9 = vmul.f32 %v3472_v45, %v3393_v37  ;;  %v3780_v16 = vmul.f32 %v3717_v19, %v3638_v11 }
 0x80e   :  { %v3395_v3 = vpop.f32.mrf.mxu1  ;;  %v3640_v24 = vpop.f32.mrf.mxu0 }
 0x80f   :  { %v9341_v12 = vadd.f32 %v3779_v53, %v3566_v33  ;;  %v3567_v44 = vadd.f32 %v3535_v9, %v9222_v62  ;;  %v3536_v63 = vmul.f32 %v9307_v22, %v3395_v3  ;;  %v3781_v45 = vmul.f32 %v9339_v1, %v3640_v24  ;;  %v10966_v33 = vld [vmem:[#allocation122_spill] sm:$0xff] }
 0x810   :  { %v9345_v52 = vpop.f32.mrf.mxu1  ;;  %v9347_v55 = vpop.f32.mrf.mxu0 }
 0x811   :  { %10964 = vst [vmem:[#allocation76_spill] sm:$0xff] %v9345_v52  ;;  %10965 = vst [vmem:[#allocation96_spill] sm:$0xff] %v9347_v55  ;;  %v9349_v57 = vadd.f32 %v3780_v16, %v3567_v44  ;;  %v3568_v29 = vadd.f32 %v3536_v63, %v9229_v39  ;;  %v10967_v63 = vld [vmem:[#allocation63_spill] sm:$0xff] }
 0x812   :  { %v3401_v38 = vpop.f32.mrf.mxu1  ;;  %v3646_v61 = vpop.f32.mrf.mxu0 }
 0x813   :  { %v9353_v37 = vadd.f32 %v3781_v45, %v3568_v29  ;;  %v3538_v53 = vmul.f32 %v10966_v33, %v3401_v38  ;;  %v3783_v9 = vmul.f32 %v9283_v41, %v3646_v61 }
 0x814   :  { %v3403_v62 = vpop.f32.mrf.mxu1  ;;  %v3648_v11 = vpop.f32.mrf.mxu0 }
 0x815   :  { %v3570_v19 = vadd.f32 %v3538_v53, %v9231_v46  ;;  %v3539_v3 = vmul.f32 %v10966_v33, %v3403_v62  ;;  %v3784_v39 = vmul.f32 %v9283_v41, %v3648_v11  ;;  %v10971_v11 = vld [vmem:[#allocation62_spill] sm:$0xff] }
 0x816   :  { %v3405_v16 = vpop.f32.mrf.mxu1  ;;  %v3650_v44 = vpop.f32.mrf.mxu0 }
 0x817   :  { %v9359_v55 = vadd.f32 %v3783_v9, %v3570_v19  ;;  %v3571_v24 = vadd.f32 %v3539_v3, %v9233_v25  ;;  %v3540_v29 = vmul.f32 %v10967_v63, %v3405_v16  ;;  %v3785_v61 = vmul.f32 %v9293_v15, %v3650_v44  ;;  %v10970_v19 = vld [vmem:[#allocation51_spill] sm:$0xff] }
 0x818   :  { %v9364_v45 = vpop.f32.mrf.mxu1  ;;  %v9366_v38 = vpop.f32.mrf.mxu0 }
 0x819   :  { %10968 = vst [vmem:[#allocation77_spill] sm:$0xff] %v9364_v45  ;;  %10969 = vst [vmem:[#allocation87_spill] sm:$0xff] %v9366_v38  ;;  %v9368_v1 = vadd.f32 %v3784_v39, %v3571_v24  ;;  %v3572_v46 = vadd.f32 %v3540_v29, %v9240_v56 }
 0x81a   :  { %v3411_v33 = vpop.f32.mrf.mxu1  ;;  %v3656_v53 = vpop.f32.mrf.mxu0 }
 0x81b   :  { %v9372_v62 = vadd.f32 %v3785_v61, %v3572_v46  ;;  %v3542_v25 = vmul.f32 %v10970_v19, %v3411_v33  ;;  %v3787_v3 = vmul.f32 %v10971_v11, %v3656_v53 }
 0x81c   :  { %v3413_v9 = vpop.f32.mrf.mxu1 }
 0x81d   :  { %v3574_v41 = vadd.f32 %v3542_v25, %v9243_v6  ;;  %v3543_v16 = vmul.f32 %v10970_v19, %v3413_v9  ;;  %v10975_v25 = vld [vmem:[#allocation41_spill] sm:$0xff] }
 0x81e   :  { %v3415_v38 = vpop.f32.mrf.mxu1 }
 0x81f   :  { %v9378_v24 = vadd.f32 %v3787_v3, %v3574_v41  ;;  %v9381_v56 = vadd.f32 %v3543_v16, %v9246_v30  ;;  %v3544_v44 = vmul.f32 %v9321_v58, %v3415_v38  ;;  %v9403_v3 = vpop.f32.mrf.mxu0  ;;  %v10977_v16 = vld [vmem:[#allocation31_spill] sm:$0xff] }
 0x820   :  { %v9384_v39 = vpop.f32.mrf.mxu1  ;;  %10976 = vst [vmem:[#allocation100_spill] sm:$0xff] %v9403_v3 }
 0x821   :  { %10972 = vst [vmem:[#allocation98_spill] sm:$0xff] %v9381_v56  ;;  %10973 = vst [vmem:[#allocation89_spill] sm:$0xff] %v9384_v39  ;;  %v9387_v29 = vadd.f32 %v3544_v44, %v9253_v10 }
 0x822   :  { %v3421_v46 = vpop.f32.mrf.mxu1 }
 0x823   :  { %v3546_v6 = vmul.f32 %v9305_v14, %v3421_v46 }
 0x824   :  { %v3423_v61 = vpop.f32.mrf.mxu1 }
 0x825   :  { %v9391_v33 = vadd.f32 %v3546_v6, %v9256_v4  ;;  %v3547_v53 = vmul.f32 %v9305_v14, %v3423_v61  ;;  %v9410_v6 = vpop.f32.mrf.mxu0 }
 0x826   :  { %v3425_v19 = vpop.f32.mrf.mxu1 }
 0x827   :  { %v9395_v30 = vadd.f32 %v3547_v53, %v9259_v47  ;;  %v3548_v38 = vmul.f32 %v10975_v25, %v3425_v19  ;;  %v10979_v53 = vld [vmem:[#allocation33_spill] sm:$0xff]  ;;  %v9421_v56 = vpop.f32.mrf.mxu0 }
 0x828   :  { %v9398_v9 = vpop.f32.mrf.mxu1  ;;  %10980 = vst [vmem:[#allocation34_spill] sm:$0xff] %v9421_v56 }
 0x829   :  { %10974 = vst [vmem:[#allocation79_spill] sm:$0xff] %v9395_v30  ;;  %v9401_v10 = vadd.f32 %v3548_v38, %v9266_v17 }
 0x82a   :  { %v3431_v41 = vpop.f32.mrf.mxu1 }
 0x82b   :  { %v3550_v44 = vmul.f32 %v10977_v16, %v3431_v41 }
 0x82c   :  { %v3433_v4 = vpop.f32.mrf.mxu1 }
 0x82d   :  { %v9407_v46 = vadd.f32 %v3550_v44, %v9271_v28  ;;  %v3551_v14 = vmul.f32 %v10977_v16, %v3433_v4  ;;  %v10981_v28 = vld [vmem:[#allocation16_spill] sm:$0xff] }
 0x82e   :  { %v3435_v47 = vpop.f32.mrf.mxu1 }
 0x82f   :  { %v9413_v61 = vadd.f32 %v3551_v14, %v9274_v49  ;;  %v3552_v17 = vmul.f32 %v10979_v53, %v3435_v47  ;;  %v9428_v14 = vpop.f32.mrf.mxu0 }
 0x830   :  { %v9416_v19 = vpop.f32.mrf.mxu1 }
 0x831   :  { %10978 = vst [vmem:[#allocation81_spill] sm:$0xff] %v9413_v61  ;;  %v9419_v38 = vadd.f32 %v3552_v17, %v9285_v13  ;;  %v9439_v3 = vpop.f32.mrf.mxu0 }
 0x832   :  { %v3441_v41 = vpop.f32.mrf.mxu1  ;;  %10982 = vst [vmem:[#allocation11_spill] sm:$0xff] %v9439_v3 }
 0x833   :  { %v3554_v44 = vmul.f32 %v10981_v28, %v3441_v41 }
 0x834   :  { %v3443_v15 = vpop.f32.mrf.mxu1 }
 0x835   :  { %v9425_v16 = vadd.f32 %v3554_v44, %v9288_v7  ;;  %v3555_v4 = vmul.f32 %v10981_v28, %v3443_v15 }
 0x836   :  { %v3445_v49 = vpop.f32.mrf.mxu1 }
 0x837   :  { %v9431_v47 = vadd.f32 %v3555_v4, %v9295_v43  ;;  %v3556_v13 = vmul.f32 %v9291_v31, %v3445_v49  ;;  %v9446_v43 = vpop.permute.xlu0 %3977  ;;  %v3670_v49 = vpop.f32.mrf.mxu0 }
 0x838   :  { %v9434_v17 = vpop.f32.mrf.mxu1  ;;  %10983 = vst [vmem:[#allocation86_spill] sm:$0xff] %v9446_v43 }
 0x839   :  { %v9437_v11 = vadd.f32 %v3556_v13, %v9302_v27  ;;  %v10984_v27 = vld [vmem:[#allocation15_spill] sm:$0xff]  ;;  %v9457_v56 = vpop.f32.mrf.mxu0 }
 0x83a   :  { %v3451_v41 = vpop.f32.mrf.mxu1  ;;  %10985 = vst [vmem:[#allocation84_spill] sm:$0xff] %v9457_v56 }
 0x83b   :  { %v3558_v7 = vmul.f32 %v9281_v8, %v3451_v41 }
 0x83c   :  { %v3453_v44 = vpop.f32.mrf.mxu1 }
 0x83d   :  { %v9443_v15 = vadd.f32 %v3558_v7, %v9309_v26  ;;  %v3559_v28 = vmul.f32 %v9281_v8, %v3453_v44  ;;  %v9460_v8 = vpop.permute.xlu0 %3973 }
 0x83e   :  { %v3455_v4 = vpop.f32.mrf.mxu1  ;;  %10986 = vst [vmem:[#allocation78_spill] sm:$0xff] %v9460_v8 }
 0x83f   :  { %v9449_v22 = vadd.f32 %v3559_v28, %v9312_v34  ;;  %v3560_v13 = vmul.f32 %v10984_v27, %v3455_v4  ;;  %v3676_v4 = vpop.f32.mrf.mxu0 }
 0x840   :  { %v9452_v52 = vpop.f32.mrf.mxu1 }
 0x841   :  { %v9455_v30 = vadd.f32 %v3560_v13, %v9319_v0  ;;  %v3962_v13 = vpop.permute.xlu0 %3961  ;;  %v9473_v45 = vpop.f32.mrf.mxu0 }
 0x842   :  { %v3461_v41 = vpop.f32.mrf.mxu1  ;;  %10987 = vst [vmem:[#allocation123_spill] sm:$0xff] %v9473_v45 }
 0x843   :  { %v3562_v26 = vmul.f32 %v9268_v51, %v3461_v41 }
 0x844   :  { %v3463_v7 = vpop.f32.mrf.mxu1 }
 0x845   :  { %v9463_v44 = vadd.f32 %v3562_v26, %v9326_v2  ;;  %v3563_v34 = vmul.f32 %v9268_v51, %v3463_v7  ;;  %v9478_v26 = vpop.permute.xlu1 %3965  ;;  %v3680_v7 = vpop.f32.mrf.mxu0 }
 0x846   :  { %v9466_v28 = vpop.f32.mrf.mxu1  ;;  %10989 = vst [vmem:[#allocation103_spill] sm:$0xff] %v9478_v26 }
 0x847   :  { %v9469_v3 = vadd.f32 %v3563_v34, %v9329_v40  ;;  %v9489_v45 = vpop.f32.mrf.mxu0 }
 0x848   :  { %v9471_v0 = vpop.f32.mrf.mxu1 }
 0x84a   :  { %v3881_v63 = vpop.f32.mrf.mxu1 }
 0x84b   :  { %v4024_v41 = vmul.f32 %v3962_v13, %v3881_v63 }
 0x84c   :  { %v3883_v61 = vpop.f32.mrf.mxu1 }
 0x84d   :  { %v9476_v56 = vadd.f32 %v4024_v41, %v9341_v12  ;;  %v4025_v2 = vmul.f32 %v3962_v13, %v3883_v61 }
 0x84e   :  { %v3885_v51 = vpop.f32.mrf.mxu1 }
 0x84f   :  { %10988 = vst [vmem:[#allocation48_spill] sm:$0xff] %v9476_v56  ;;  %v9481_v58 = vadd.f32 %v4025_v2, %v9349_v57  ;;  %v4026_v40 = vmul.f32 %v9478_v26, %v3885_v51  ;;  %v3686_v51 = vpop.f32.mrf.mxu0 }
 0x850   :  { %v9484_v34 = vpop.f32.mrf.mxu1 }
 0x851   :  { %10990 = vst [vmem:[#allocation26_spill] sm:$0xff] %v9481_v58  ;;  %10991 = vst [vmem:[#allocation12_spill] sm:$0xff] %v9484_v34  ;;  %v9487_v39 = vadd.f32 %v4026_v40, %v9353_v37 }
 0x852   :  { %v3891_v63 = vpop.f32.mrf.mxu1 }
 0x853   :  { %10992 = vst [vmem:[#allocation95_spill] sm:$0xff] %v9487_v39  ;;  %v4028_v61 = vmul.f32 %v9323_v20, %v3891_v63  ;;  %v9507_v63 = vpop.f32.mrf.mxu0 }
 0x854   :  { %v3893_v13 = vpop.f32.mrf.mxu1 }
 0x855   :  { %v9495_v41 = vadd.f32 %v4028_v61, %v9359_v55  ;;  %v4029_v57 = vmul.f32 %v9323_v20, %v3893_v13 }
 0x856   :  { %v3895_v2 = vpop.f32.mrf.mxu1 }
 0x857   :  { %10993 = vst [vmem:[#allocation115_spill] sm:$0xff] %v9495_v41  ;;  %v9499_v58 = vadd.f32 %v4029_v57, %v9368_v1  ;;  %v4030_v37 = vmul.f32 %v9460_v8, %v3895_v2  ;;  %v3789_v1 = vmul.f32 %v9196_v36, %v9410_v6  ;;  %v3690_v2 = vpop.f32.mrf.mxu0  ;;  %v11005_v8 = vld [vmem:[#allocation59_spill] sm:$0xff] }
 0x858   :  { %v9502_v40 = vpop.f32.mrf.mxu1 }
 0x859   :  { %10994 = vst [vmem:[#allocation116_spill] sm:$0xff] %v9499_v58  ;;  %10995 = vst [vmem:[#allocation126_spill] sm:$0xff] %v9502_v40  ;;  %v9505_v26 = vadd.f32 %v4030_v37, %v9372_v62  ;;  %v3821_v62 = vadd.f32 %v3789_v1, %v9387_v29  ;;  %v10999_v37 = vld [vmem:[#allocation112_spill] sm:$0xff]  ;;  %v11004_v1 = vld [vmem:[#allocation37_spill] sm:$0xff] }
 0x85a   :  { %v3901_v12 = vpop.f32.mrf.mxu1 }
 0x85b   :  { %10996 = vst [vmem:[#allocation75_spill] sm:$0xff] %v9505_v26  ;;  %v4032_v20 = vmul.f32 %v9446_v43, %v3901_v12  ;;  %v9525_v12 = vpop.f32.mrf.mxu0 }
 0x85c   :  { %v9512_v61 = vpop.f32.mrf.mxu1 }
 0x85d   :  { %10997 = vst [vmem:[#allocation97_spill] sm:$0xff] %v9512_v61  ;;  %v9517_v13 = vadd.f32 %v4032_v20, %v9378_v24  ;;  %v3791_v24 = vmul.f32 %v9191_v42, %v9428_v14  ;;  %v11003_v20 = vld [vmem:[#allocation54_spill] sm:$0xff]  ;;  %v11010_v61 = vld [vmem:[#allocation53_spill] sm:$0xff] }
 0x85e   :  { %v3905_v57 = vpop.f32.mrf.mxu1  ;;  %v3793_v29 = vmul.f32 %v11003_v20, %v3670_v49 }
 0x85f   :  { %10998 = vst [vmem:[#allocation128_spill] sm:$0xff] %v9517_v13  ;;  %v4034_v56 = vmul.f32 %v10999_v37, %v3905_v57  ;;  %v3823_v34 = vadd.f32 %v3791_v24, %v9391_v33  ;;  %v11008_v33 = vld [vmem:[#allocation29_spill] sm:$0xff] }
 0x860   :  { %v9521_v39 = vpop.f32.mrf.mxu1  ;;  %v3795_v24 = vmul.f32 %v11008_v33, %v3676_v4 }
 0x861   :  { %11000 = vst [vmem:[#allocation13_spill] sm:$0xff] %v9521_v39  ;;  %v9523_v58 = vadd.f32 %v4034_v56, %v3821_v62  ;;  %v3825_v56 = vadd.f32 %v3793_v29, %v9401_v10  ;;  %v3696_v62 = vpop.f32.mrf.mxu0  ;;  %v11009_v10 = vld [vmem:[#allocation125_spill] sm:$0xff] }
 0x862   :  { %v3911_v55 = vpop.f32.mrf.mxu1  ;;  %v3797_v29 = vmul.f32 %v11009_v10, %v3680_v7 }
 0x863   :  { %11001 = vst [vmem:[#allocation101_spill] sm:$0xff] %v9523_v58  ;;  %v4036_v26 = vmul.f32 %v11004_v1, %v3911_v55  ;;  %v9544_v14 = vpop.f32.mrf.mxu0 }
 0x864   :  { %v9529_v6 = vpop.f32.mrf.mxu1 }
 0x865   :  { %11002 = vst [vmem:[#allocation102_spill] sm:$0xff] %v9529_v6  ;;  %v9540_v41 = vadd.f32 %v4036_v26, %v3823_v34  ;;  %v3827_v26 = vadd.f32 %v3795_v24, %v9407_v46  ;;  %v3829_v34 = vadd.f32 %v3797_v29, %v9419_v38  ;;  %v3801_v38 = vmul.f32 %v9188_v5, %v3690_v2 }
 0x866   :  { %v3915_v57 = vpop.f32.mrf.mxu1 }
 0x867   :  { %v4038_v40 = vmul.f32 %v11005_v8, %v3915_v57  ;;  %11006 = vst [vmem:[#allocation93_spill] sm:$0xff] %v9540_v41  ;;  %v11026_v8 = vld [vmem:[#allocation73_spill] sm:$0xff] }
 0x868   :  { %v9538_v43 = vpop.f32.mrf.mxu1 }
 0x869   :  { %v9542_v13 = vadd.f32 %v4038_v40, %v3825_v56  ;;  %v3700_v40 = vpop.f32.mrf.mxu0 }
 0x86a   :  { %v3921_v58 = vpop.f32.mrf.mxu1 }
 0x86b   :  { %11007 = vst [vmem:[#allocation104_spill] sm:$0xff] %v9542_v13  ;;  %v4040_v57 = vmul.f32 %v11010_v61, %v3921_v58  ;;  %v3702_v4 = vpop.f32.mrf.mxu0  ;;  %v11013_v13 = vld [vmem:[#allocation24_spill] sm:$0xff] }
 0x86c   :  { %v9548_v55 = vpop.f32.mrf.mxu1  ;;  %v3799_v46 = vmul.f32 %v11013_v13, %v3686_v51 }
 0x86d   :  { %v9558_v36 = vadd.f32 %v4040_v57, %v3827_v26  ;;  %v3833_v57 = vadd.f32 %v3801_v38, %v9437_v11  ;;  %v3706_v26 = vpop.f32.mrf.mxu0  ;;  %v11018_v11 = vld [vmem:[#allocation28_spill] sm:$0xff] }
 0x86e   :  { %v3925_v37 = vpop.f32.mrf.mxu1  ;;  %v3831_v29 = vadd.f32 %v3799_v46, %v9425_v16  ;;  %v11017_v16 = vld [vmem:[#allocation18_spill] sm:$0xff] }
 0x86f   :  { %v4042_v56 = vmul.f32 %v9179_v60, %v3925_v37  ;;  %11011 = vst [vmem:[#allocation107_spill] sm:$0xff] %v9558_v36  ;;  %v3708_v51 = vpop.f32.mrf.mxu0  ;;  %v3805_v46 = vmul.f32 %v11017_v16, %v3700_v40 }
 0x870   :  { %v9556_v39 = vpop.f32.mrf.mxu1 }
 0x871   :  { %v9560_v49 = vadd.f32 %v4042_v56, %v3829_v34  ;;  %v11014_v34 = vld [vmem:[#allocation36_spill] sm:$0xff]  ;;  %v3837_v2 = vadd.f32 %v3805_v46, %v9455_v30  ;;  %v3710_v40 = vpop.f32.mrf.mxu0  ;;  %v11023_v46 = vld [vmem:[#allocation67_spill] sm:$0xff] }
 0x872   :  { %v3931_v41 = vpop.f32.mrf.mxu1 }
 0x873   :  { %11012 = vst [vmem:[#allocation71_spill] sm:$0xff] %v9560_v49  ;;  %v4044_v24 = vmul.f32 %v9174_v48, %v3931_v41  ;;  %v3803_v49 = vmul.f32 %v9184_v54, %v3696_v62  ;;  %v11019_v62 = vld [vmem:[#allocation35_spill] sm:$0xff] }
 0x874   :  { %v9564_v58 = vpop.f32.mrf.mxu1 }
 0x875   :  { %v9574_v6 = vadd.f32 %v4044_v24, %v3831_v29  ;;  %v3235_v24 = vmul.f32 %v9201_v59, %v9315_v23  ;;  %v3239_v29 = vmul.f32 %v10960_v50, %v9332_v35  ;;  %v3565_v59 = vmul.f32 %v11019_v62, %v9471_v0 }
 0x876   :  { %v3935_v37 = vpop.f32.mrf.mxu1  ;;  %v3557_v35 = vmul.f32 %v9291_v31, %v9434_v17  ;;  %v11027_v17 = vld [vmem:[#allocation68_spill] sm:$0xff] }
 0x877   :  { %v4046_v56 = vmul.f32 %v11014_v34, %v3935_v37  ;;  %11015 = vst [vmem:[#allocation106_spill] sm:$0xff] %v9574_v6  ;;  %v3231_v37 = vmul.f32 %v10954_v32, %v9298_v18  ;;  %v3564_v6 = vmul.f32 %v11019_v62, %v9466_v28  ;;  %v3561_v18 = vmul.f32 %v10984_v27, %v9452_v52  ;;  %v11025_v52 = vld [vmem:[#allocation61_spill] sm:$0xff]  ;;  %v3712_v62 = vpop.f32.mrf.mxu0 }
 0x878   :  { %v9572_v1 = vpop.f32.mrf.mxu1  ;;  %v3341_v30 = vadd.f32 %v9317_v21, %v3235_v24 }
 0x879   :  { %v9576_v7 = vadd.f32 %v4046_v56, %v3833_v57  ;;  %v3835_v56 = vadd.f32 %v3803_v49, %v9443_v15  ;;  %v11022_v15 = vld [vmem:[#allocation83_spill] sm:$0xff]  ;;  %v3331_v27 = vadd.f32 %v11025_v52, %v3231_v37  ;;  %v3596_v0 = vadd.f32 %v3564_v6, %v11026_v8  ;;  %v11031_v52 = vld [vmem:[#allocation22_spill] sm:$0xff] }
 0x87a   :  { %v3941_v36 = vpop.f32.mrf.mxu1  ;;  %v3351_v28 = vadd.f32 %v11022_v15, %v3239_v29  ;;  %v3553_v15 = vmul.f32 %v10979_v53, %v9416_v19  ;;  %v3806_v6 = vmul.f32 %v11017_v16, %v3702_v4  ;;  %v11032_v53 = vld [vmem:[#allocation111_spill] sm:$0xff] }
 0x87b   :  { %11016 = vst [vmem:[#allocation50_spill] sm:$0xff] %v9576_v7  ;;  %v4048_v38 = vmul.f32 %v11018_v11, %v3941_v36  ;;  %v11020_v7 = vld [vmem:[#allocation21_spill] sm:$0xff] }
 0x87c   :  { %v3943_v41 = vpop.f32.mrf.mxu1  ;;  %v3597_v24 = vadd.f32 %v3565_v59, %v3351_v28 }
 0x87d   :  { %v9600_v23 = vadd.f32 %v4048_v38, %v3835_v56  ;;  %v11028_v38 = vld [vmem:[#allocation27_spill] sm:$0xff]  ;;  %v3593_v56 = vadd.f32 %v3561_v18, %v3341_v30 }
 0x87e   :  { %v3945_v57 = vpop.f32.mrf.mxu1 }
 0x87f   :  { %v4050_v36 = vmul.f32 %v11020_v7, %v3945_v57  ;;  %11021 = vst [vmem:[#allocation80_spill] sm:$0xff] %v9600_v23  ;;  %v11024_v57 = vld [vmem:[#allocation38_spill] sm:$0xff] }
 0x880   :  { %v3947_v32 = vpop.f32.mrf.mxu1  ;;  %v3223_v42 = vmul.f32 %v11024_v57, %v11023_v46  ;;  %v3589_v46 = vadd.f32 %v3557_v35, %v3331_v27  ;;  %v11030_v57 = vld [vmem:[#allocation14_spill] sm:$0xff]  ;;  %v3838_v35 = vadd.f32 %v3806_v6, %v3593_v56 }
 0x881   :  { %v9602_v50 = vadd.f32 %v4050_v36, %v3837_v2  ;;  %v3227_v2 = vmul.f32 %v11028_v38, %v11027_v17  ;;  %v11029_v36 = vld [vmem:[#allocation19_spill] sm:$0xff]  ;;  %v3809_v37 = vmul.f32 %v11030_v57, %v3710_v40  ;;  %v3810_v18 = vmul.f32 %v11030_v57, %v3712_v62  ;;  %v11033_v62 = vld [vmem:[#allocation60_spill] sm:$0xff] }
 0x882   :  { %v3951_v49 = vpop.f32.mrf.mxu1  ;;  %v3807_v21 = vmul.f32 %v11029_v36, %v3706_v26  ;;  %v3808_v23 = vmul.f32 %v11029_v36, %v3708_v51  ;;  %v4051_v59 = vmul.f32 %v11020_v7, %v3947_v32  ;;  %v3804_v40 = vmul.f32 %v9184_v54, %v9544_v14  ;;  %v11035_v36 = vld [vmem:[#allocation43_spill] sm:$0xff] }
 0x883   :  { %v4052_v8 = vmul.f32 %v11031_v52, %v3951_v49  ;;  %v3841_v26 = vadd.f32 %v3809_v37, %v3596_v0  ;;  %v3842_v16 = vadd.f32 %v3810_v18, %v3597_v24  ;;  %v4049_v51 = vmul.f32 %v11018_v11, %v3943_v41  ;;  %v11036_v24 = vld [vmem:[#allocation52_spill] sm:$0xff]  ;;  %v11042_v18 = vld [vmem:[#allocation58_spill] sm:$0xff] }
 0x884   :  { %v3953_v29 = vpop.f32.mrf.mxu1  ;;  %v3839_v31 = vadd.f32 %v3807_v21, %v9463_v44  ;;  %v3840_v4 = vadd.f32 %v3808_v23, %v9469_v3  ;;  %v3321_v7 = vadd.f32 %v11033_v62, %v3227_v2  ;;  %v3802_v32 = vmul.f32 %v9188_v5, %v9525_v12 }
 0x885   :  { %v4053_v28 = vmul.f32 %v11031_v52, %v3953_v29  ;;  %v3836_v17 = vadd.f32 %v3804_v40, %v9449_v22  ;;  %v4047_v54 = vmul.f32 %v11014_v34, %v9572_v1  ;;  %v4083_v3 = vadd.f32 %v4051_v59, %v3838_v35  ;;  %v11034_v34 = vld [vmem:[#allocation49_spill] sm:$0xff] }
 0x886   :  { %v3955_v30 = vpop.f32.mrf.mxu1  ;;  %v4084_v49 = vadd.f32 %v4052_v8, %v3839_v31  ;;  %v3549_v11 = vmul.f32 %v10975_v25, %v9398_v9  ;;  %v3585_v31 = vadd.f32 %v3553_v15, %v3321_v7  ;;  %v3800_v2 = vmul.f32 %v11013_v13, %v9507_v63  ;;  %v11039_v8 = vld [vmem:[#allocation123_spill] sm:$0xff]  ;;  %v11053_v7 = vld [vmem:[#allocation37_spill] sm:$0xff] }
 0x887   :  { %v4054_v19 = vmul.f32 %v11032_v53, %v3955_v30  ;;  %v4085_v23 = vadd.f32 %v4053_v28, %v3840_v4  ;;  %v3834_v5 = vadd.f32 %v3802_v32, %v3589_v46  ;;  %v4045_v22 = vmul.f32 %v9174_v48, %v9564_v58  ;;  %v11037_v48 = vld [vmem:[#allocation89_spill] sm:$0xff]  ;;  %v11038_v58 = vld [vmem:[#allocation70_spill] sm:$0xff] }
 0x888   :  { %v3957_v44 = vpop.f32.mrf.mxu1  ;;  %v4081_v12 = vadd.f32 %v4049_v51, %v3836_v17  ;;  %v3219_v21 = vmul.f32 %v11035_v36, %v11034_v34  ;;  %v3311_v29 = vadd.f32 %v11036_v24, %v3223_v42  ;;  %v3798_v25 = vmul.f32 %v11009_v10, %v9489_v45  ;;  %v11040_v10 = vld [vmem:[#allocation69_spill] sm:$0xff]  ;;  %v11062_v36 = vld [vmem:[#allocation76_spill] sm:$0xff] }
 0x889   :  { %v4086_v27 = vadd.f32 %v4054_v19, %v3841_v26  ;;  %v4055_v0 = vmul.f32 %v11032_v53, %v3957_v44  ;;  %v3832_v15 = vadd.f32 %v3800_v2, %v9431_v47  ;;  %v4043_v63 = vmul.f32 %v9179_v60, %v9556_v39  ;;  %v11041_v60 = vld [vmem:[#allocation109_spill] sm:$0xff]  ;;  %v11043_v26 = vld [vmem:[#allocation84_spill] sm:$0xff]  ;;  %v11045_v19 = vld [vmem:[#allocation59_spill] sm:$0xff] }
 0x88a   :  { %v9637_v14 = vpop.f32.mrf.mxu1  ;;  %v4079_v13 = vadd.f32 %v4047_v54, %v3834_v5  ;;  %v4101_v46 = vpack.c.bf16 %v4083_v3, %v4081_v12  ;;  %v3545_v57 = vmul.f32 %v11038_v58, %v11037_v48  ;;  %v3581_v37 = vadd.f32 %v3549_v11, %v3311_v29  ;;  %v11044_v28 = vld [vmem:[#allocation81_spill] sm:$0xff]  ;;  %v11048_v44 = vld [vmem:[#allocation80_spill] sm:$0xff]  ;;  %v11058_v11 = vld [vmem:[#allocation91_spill] sm:$0xff] }
 0x88b   :  { %v4102_v38 = vpack.c.bf16 %v4086_v27, %v4084_v49  ;;  %v4087_v41 = vadd.f32 %v4055_v0, %v3842_v16  ;;  %v3796_v42 = vmul.f32 %v11008_v33, %v11039_v8  ;;  %v3830_v6 = vadd.f32 %v3798_v25, %v3585_v31  ;;  %v11046_v4 = vld [vmem:[#allocation77_spill] sm:$0xff]  ;;  %v11047_v16 = vld [vmem:[#allocation63_spill] sm:$0xff]  ;;  %v11055_v54 = vld [vmem:[#allocation88_spill] sm:$0xff] }
 0x88c   :  { %v9643_v56 = vpop.f32.mrf.mxu1  ;;  %v4041_v45 = vmul.f32 %v11010_v61, %v9548_v55  ;;  %v4077_v47 = vadd.f32 %v4045_v22, %v3832_v15  ;;  %v3215_v39 = vmul.f32 %v11041_v60, %v11040_v10  ;;  %v3301_v30 = vadd.f32 %v11042_v18, %v3219_v21  ;;  %v11050_v49 = vld [vmem:[#allocation11_spill] sm:$0xff]  ;;  %v11051_v27 = vld [vmem:[#allocation121_spill] sm:$0xff]  ;;  %v11061_v22 = vld [vmem:[#allocation112_spill] sm:$0xff] }
 0x88d   :  { %v4103_v1 = vpack.c.bf16 %v4087_v41, %v4085_v23  ;;  %v3794_v59 = vmul.f32 %v11003_v20, %v11043_v26  ;;  %v3828_v53 = vadd.f32 %v3796_v42, %v11044_v28  ;;  %v4039_v40 = vmul.f32 %v11045_v19, %v9538_v43  ;;  %v11052_v20 = vld [vmem:[#allocation102_spill] sm:$0xff]  ;;  %v11056_v23 = vld [vmem:[#allocation117_spill] sm:$0xff]  ;;  %v11059_v2 = vld [vmem:[#allocation79_spill] sm:$0xff] }
 0x88e   :  { %v4148_v9 = vpop.f32.mrf.mxu1  ;;  %v4075_v33 = vadd.f32 %v4043_v63, %v3830_v6  ;;  %v4099_v35 = vpack.c.bf16 %v4079_v13, %v4077_v47  ;;  %v3541_v61 = vmul.f32 %v11047_v16, %v11046_v4  ;;  %v3577_v55 = vadd.f32 %v3545_v57, %v3301_v30  ;;  %v11054_v43 = vld [vmem:[#allocation94_spill] sm:$0xff]  ;;  %v11060_v5 = vld [vmem:[#allocation13_spill] sm:$0xff]  ;;  %v11063_v21 = vld [vmem:[#allocation92_spill] sm:$0xff] }
 0x88f   :  { %4151 = vmatprep.subr.bf16.mxu0 %v4103_v1  ;;  %v11049_v51 = vpack.c.bf16 %v9602_v50, %v11048_v44  ;;  %v3792_v0 = vmul.f32 %v11051_v27, %v11050_v49  ;;  %v3826_v62 = vadd.f32 %v3794_v59, %v3581_v37  ;;  %v4037_v32 = vmul.f32 %v11053_v7, %v11052_v20  ;;  %v11057_v41 = vld [vmem:[#allocation34_spill] sm:$0xff]  ;;  %v11067_v63 = vld [vmem:[#allocation100_spill] sm:$0xff]  ;;  %v11069_v58 = vld [vmem:[#allocation97_spill] sm:$0xff] }
 0x890   :  { %v4149_v52 = vpop.f32.mrf.mxu1  ;;  %4152 = vmatpush1.bf16.msra.mxu0 %v4102_v38  ;;  %v4073_v17 = vadd.f32 %v4041_v45, %v3828_v53  ;;  %v3211_v3 = vmul.f32 %v11055_v54, %v11054_v43  ;;  %v3291_v38 = vadd.f32 %v11056_v23, %v3215_v39  ;;  %v3790_v31 = vmul.f32 %v11058_v11, %v11057_v41  ;;  %v11064_v25 = vld [vmem:[#allocation50_spill] sm:$0xff]  ;;  %v11071_v8 = vld [vmem:[#allocation129_spill] sm:$0xff]  ;;  %v11072_v6 = vld [vmem:[#allocation87_spill] sm:$0xff] }
 0x891   :  { %4153 = vmatprep.subr.bf16.mxu0 %v4101_v46  ;;  %v3824_v50 = vadd.f32 %v3792_v0, %v11059_v2  ;;  %v4035_v12 = vmul.f32 %v11061_v22, %v11060_v5  ;;  %v4071_v1 = vadd.f32 %v4039_v40, %v3826_v62  ;;  %v3537_v24 = vmul.f32 %v11063_v21, %v11062_v36  ;;  %v11065_v9 = vld [vmem:[#allocation106_spill] sm:$0xff]  ;;  %v11073_v45 = vld [vmem:[#allocation64_spill] sm:$0xff]  ;;  %v11077_v28 = vld [vmem:[#allocation71_spill] sm:$0xff] }
 0x892   :  { %v4097_v34 = vpack.c.bf16 %v4075_v33, %v4073_v17  ;;  %v3573_v29 = vadd.f32 %v3541_v61, %v3291_v38  ;;  %v11066_v15 = vpack.c.bf16 %v11064_v25, %v11065_v9  ;;  %v11068_v13 = vld [vmem:[#allocation62_spill] sm:$0xff]  ;;  %v3822_v48 = vadd.f32 %v3790_v31, %v3577_v55  ;;  %v11078_v53 = vld [vmem:[#allocation107_spill] sm:$0xff]  ;;  %v11080_v4 = vld [vmem:[#allocation96_spill] sm:$0xff] }
 0x893   :  { %v3788_v46 = vmul.f32 %v11068_v13, %v11067_v63  ;;  %v11070_v57 = vld [vmem:[#allocation86_spill] sm:$0xff]  ;;  %v4069_v52 = vadd.f32 %v4037_v32, %v3824_v50  ;;  %v3281_v42 = vadd.f32 %v11071_v8, %v3211_v3  ;;  %v3786_v47 = vmul.f32 %v11073_v45, %v11072_v6  ;;  %v11081_v16 = vld [vmem:[#allocation85_spill] sm:$0xff]  ;;  %v11082_v55 = vld [vmem:[#allocation12_spill] sm:$0xff] }
 0x894   :  { %4154 = vmatpush1.bf16.msra.mxu0 %v11049_v51  ;;  %v4033_v37 = vmul.f32 %v11070_v57, %v11069_v58  ;;  %v11074_v10 = vld [vmem:[#allocation98_spill] sm:$0xff]  ;;  %v4067_v26 = vadd.f32 %v4035_v12, %v3822_v48  ;;  %v11079_v19 = vpack.c.bf16 %v11077_v28, %v11078_v53  ;;  %v3782_v61 = vmul.f32 %v11081_v16, %v11080_v4  ;;  %v11083_v44 = vld [vmem:[#allocation103_spill] sm:$0xff]  ;;  %v11084_v0 = vld [vmem:[#allocation104_spill] sm:$0xff] }
 0x895   :  { %4155 = vmatprep.subr.bf16.mxu0 %v4099_v35  ;;  %v3820_v60 = vadd.f32 %v3788_v46, %v11074_v10  ;;  %v11075_v39 = vld [vmem:[#allocation126_spill] sm:$0xff]  ;;  %v4095_v59 = vpack.c.bf16 %v4071_v1, %v4069_v52  ;;  %v3569_v40 = vadd.f32 %v3537_v24, %v3281_v42  ;;  %v3818_v33 = vadd.f32 %v3786_v47, %v3573_v29  ;;  %v11085_v62 = vld [vmem:[#allocation93_spill] sm:$0xff]  ;;  %v11087_v17 = vld [vmem:[#allocation116_spill] sm:$0xff] }
 0x896   :  { %v11076_v18 = vld [vmem:[#allocation78_spill] sm:$0xff]  ;;  %v4027_v51 = vmul.f32 %v11083_v44, %v11082_v55  ;;  %v11086_v20 = vpack.c.bf16 %v11084_v0, %v11085_v62  ;;  %v11088_v54 = vld [vmem:[#allocation101_spill] sm:$0xff]  ;;  %v11089_v3 = vld [vmem:[#allocation128_spill] sm:$0xff]  ;;  %v11098_v12 = vmov 1.0|1.0  }
 0x897   :  { %v4031_v30 = vmul.f32 %v11076_v18, %v11075_v39  ;;  %v4065_v35 = vadd.f32 %v4033_v37, %v3820_v60  ;;  %v3814_v7 = vadd.f32 %v3782_v61, %v3569_v40  ;;  %v11090_v23 = vpack.c.bf16 %v11088_v54, %v11089_v3  ;;  %v11091_v38 = vld [vmem:[#allocation26_spill] sm:$0xff]  ;;  %v11092_v11 = vld [vmem:[#allocation75_spill] sm:$0xff]  ;;  %v11096_v5 = vld [vmem:[#allocation48_spill] sm:$0xff] }
 0x898   :  { %4156 = vmatpush1.bf16.msra.mxu0 %v11066_v15  ;;  %v11093_v31 = vld [vmem:[#allocation115_spill] sm:$0xff]  ;;  %v4240_v36 = vld [vmem:[%s9728_s7 + $0xf8] sm:$0xff]  ;;  %v4223_v21 = vld [vmem:[%s9728_s7 + $0x70] sm:$0xff] }
 0x899   :  { %4157 = vmatprep.subr.bf16.mxu0 %v4097_v34  ;;  %v4063_v49 = vadd.f32 %v4031_v30, %v3818_v33  ;;  %v4093_v27 = vpack.c.bf16 %v4067_v26, %v4065_v35  ;;  %v4059_v32 = vadd.f32 %v4027_v51, %v3814_v7  ;;  %v11094_v2 = vpack.c.bf16 %v11092_v11, %v11093_v31  ;;  %v11095_v50 = vld [vmem:[#allocation95_spill] sm:$0xff]  ;;  %v4239_v34 = vld [vmem:[%s9728_s7 + $0xf0] sm:$0xff]  ;;  %v4224_v29 = vld [vmem:[%s9728_s7 + $0x78] sm:$0xff] }
 0x89a   :  { %v11097_v22 = vpack.c.bf16 %v11095_v50, %v11096_v5  ;;  %v4630_v24 = vpack.c.bf16 %v4240_v36, %v4239_v34  ;;  %v4622_v25 = vpack.c.bf16 %v4224_v29, %v4223_v21  ;;  %v4237_v9 = vld [vmem:[%s9728_s7 + $0xe0] sm:$0xff]  ;;  %v4238_v15 = vld [vmem:[%s9728_s7 + $0xe8] sm:$0xff]  ;;  %v4235_v58 = vld [vmem:[%s9728_s7 + $0xd0] sm:$0xff] }
 0x89b   :  { %v4091_v43 = vpack.c.bf16 %v4063_v49, %v11087_v17  ;;  %v4089_v41 = vpack.c.bf16 %v4059_v32, %v11091_v38  ;;  %v4629_v63 = vpack.c.bf16 %v4238_v15, %v4237_v9  ;;  %v4221_v13 = vld [vmem:[%s9728_s7 + $0x60] sm:$0xff]  ;;  %v4222_v46 = vld [vmem:[%s9728_s7 + $0x68] sm:$0xff]  ;;  %v4236_v57 = vld [vmem:[%s9728_s7 + $0xd8] sm:$0xff]  ;;  %v11102_v15 = vmov 0  }
 0x89c   :  { %4158 = vmatpush1.bf16.msra.mxu0 %v11079_v19  ;;  %v4621_v48 = vpack.c.bf16 %v4222_v46, %v4221_v13  ;;  %v4628_v37 = vpack.c.bf16 %v4236_v57, %v4235_v58  ;;  %v4219_v52 = vld [vmem:[%s9728_s7 + $0x50] sm:$0xff]  ;;  %v4220_v8 = vld [vmem:[%s9728_s7 + $0x58] sm:$0xff]  ;;  %v4233_v6 = vld [vmem:[%s9728_s7 + $0xc0] sm:$0xff] }
 0x89d   :  { %4159 = vmatprep.subr.bf16.mxu0 %v4095_v59  ;;  %v4620_v42 = vpack.c.bf16 %v4220_v8, %v4219_v52  ;;  %v4234_v45 = vld [vmem:[%s9728_s7 + $0xc8] sm:$0xff]  ;;  %v4217_v10 = vld [vmem:[%s9728_s7 + $0x40] sm:$0xff]  ;;  %v4231_v39 = vld [vmem:[%s9728_s7 + $0xb0] sm:$0xff] }
 0x89e   :  { %v4627_v47 = vpack.c.bf16 %v4234_v45, %v4233_v6  ;;  %v4218_v60 = vld [vmem:[%s9728_s7 + $0x48] sm:$0xff]  ;;  %v4232_v18 = vld [vmem:[%s9728_s7 + $0xb8] sm:$0xff]  ;;  %v4215_v59 = vld [vmem:[%s9728_s7 + $0x30] sm:$0xff] }
 0x89f   :  { %v4619_v30 = vpack.c.bf16 %v4218_v60, %v4217_v10  ;;  %v4626_v26 = vpack.c.bf16 %v4232_v18, %v4231_v39  ;;  %v4216_v28 = vld [vmem:[%s9728_s7 + $0x38] sm:$0xff]  ;;  %v4229_v53 = vld [vmem:[%s9728_s7 + $0xa0] sm:$0xff]  ;;  %v4230_v19 = vld [vmem:[%s9728_s7 + $0xa8] sm:$0xff] }
 0x8a0   :  { %4160 = vmatpush1.bf16.msra.mxu0 %v11086_v20  ;;  %v4618_v40 = vpack.c.bf16 %v4216_v28, %v4215_v59  ;;  %v4625_v33 = vpack.c.bf16 %v4230_v19, %v4229_v53  ;;  %v4213_v35 = vld [vmem:[%s9728_s7 + $0x20] sm:$0xff]  ;;  %v4214_v4 = vld [vmem:[%s9728_s7 + $0x28] sm:$0xff]  ;;  %v4368_v38 = vld [vmem:[%s9762_s15 + $0xf8] sm:$0xff] }
 0x8a1   :  { %4161 = vmatprep.subr.bf16.mxu0 %v4093_v27  ;;  %v4617_v16 = vpack.c.bf16 %v4214_v4, %v4213_v35  ;;  %v11100_v61 = vld [vmem:[#allocation47_spill] sm:$0xff]  ;;  %v4352_v50 = vld [vmem:[%s9762_s15 + $0x78] sm:$0xff]  ;;  %v4363_v29 = vld [vmem:[%s9762_s15 + $0xd0] sm:$0xff] }
 0x8a2   :  { %v4195_v55 = vsub.s32 0, %v11100_v61  ;;  %v2812_v44 = vld [vmem:[%s5749_s11] sm:$0x3]  ;;  %v4199_v51 = vsub.s32 1, %v11100_v61  ;;  %v11101_v9 = vld [vmem:[#allocation4_spill] sm:$0xff]  ;;  %v4360_v45 = vld [vmem:[%s9762_s15 + $0xb8] sm:$0xff] }
 0x8a3   :  { %v4365_v5 = vld [vmem:[%s9762_s15 + $0xe0] sm:$0xff]  ;;  %v4347_v46 = vld [vmem:[%s9762_s15 + $0x50] sm:$0xff]  ;;  %v4362_v57 = vld [vmem:[%s9762_s15 + $0xc8] sm:$0xff] }
 0x8a4   :  { %4162 = vmatpush1.bf16.msra.mxu0 %v11090_v23  ;;  %v4196_v49 = vrot.slane %v2812_v44, %v4195_v55  ;;  %v4200_v62 = vrot.slane %v2812_v44, %v4199_v51  ;;  %v4367_v23 = vld [vmem:[%s9762_s15 + $0xf0] sm:$0xff]  ;;  %v4349_v21 = vld [vmem:[%s9762_s15 + $0x60] sm:$0xff]  ;;  %v4344_v18 = vld [vmem:[%s9762_s15 + $0x38] sm:$0xff] }
 0x8a5   :  { %4163 = vmatprep.subr.bf16.mxu0 %v4091_v43  ;;  %v4614_v31 = vpack.c.bf16 %v4368_v38, %v4367_v23  ;;  %v4361_v58 = vld [vmem:[%s9762_s15 + $0xc0] sm:$0xff]  ;;  %v4359_v6 = vld [vmem:[%s9762_s15 + $0xb0] sm:$0xff]  ;;  %v4342_v19 = vld [vmem:[%s9762_s15 + $0x28] sm:$0xff] }
 0x8a6   :  { %v4611_v52 = vpack.c.bf16 %v4362_v57, %v4361_v58  ;;  %v4345_v8 = vld [vmem:[%s9762_s15 + $0x40] sm:$0xff]  ;;  %v4610_v60 = vpack.c.bf16 %v4360_v45, %v4359_v6  ;;  %v4343_v39 = vld [vmem:[%s9762_s15 + $0x30] sm:$0xff]  ;;  %v4228_v51 = vld [vmem:[%s9728_s7 + $0x98] sm:$0xff] }
 0x8a7   :  { %v4602_v59 = vpack.c.bf16 %v4344_v18, %v4343_v39  ;;  %v4341_v53 = vld [vmem:[%s9762_s15 + $0x20] sm:$0xff]  ;;  %v11108_v61 = vld [vmem:[#allocation9_spill] sm:$0xff]  ;;  %v4226_v23 = vld [vmem:[%s9728_s7 + $0x88] sm:$0xff] }
 0x8a8   :  { %4164 = vmatpush1.bf16.msra.mxu0 %v11094_v2  ;;  %v4351_v2 = vld [vmem:[%s9762_s15 + $0x70] sm:$0xff]  ;;  %v11105_v35 = vld [vmem:[#allocation6_spill] sm:$0xff]  ;;  %v11106_v4 = vld [vmem:[#allocation7_spill] sm:$0xff] }
 0x8a9   :  { %4165 = vmatprep.subr.bf16.mxu0 %v4089_v41  ;;  %v4606_v34 = vpack.c.bf16 %v4352_v50, %v4351_v2  ;;  %v11109_v55 = vld [vmem:[#allocation10_spill] sm:$0xff]  ;;  %v4227_v44 = vld [vmem:[%s9728_s7 + $0x90] sm:$0xff]  ;;  %v4210_v50 = vld [vmem:[%s9728_s7 + $0x8] sm:$0xff] }
 0x8aa   :  { %v4353_v38 = vld [vmem:[%s9762_s15 + $0x80] sm:$0xff]  ;;  %v4256_v58 = vld [vmem:[%s9728_s7 + $0x178] sm:$0xff]  ;;  %v4270_v6 = vld [vmem:[%s9728_s7 + $0x1e8] sm:$0xff] }
 0x8ab   :  { %v4209_v2 = vld [vmem:[%s9728_s7] sm:$0xff] }
 0x8ac   :  { %4166 = vmatpush1.bf16.msra.mxu0 %v11097_v22  ;;  %v4301_v45 = vld [vmem:[%s9728_s7 + $0x2e0] sm:$0xff] }
 0x8ad   :  { %6094 = vmatprep.subr.bf16.mxu0 %v4630_v24  ;;  %v4350_v24 = vld [vmem:[%s9762_s15 + $0x68] sm:$0xff] }
 0x8af   :  { %5937 = vmatmul.mubr.msk.bf16.vlgmr.msra.gmra.mxu0 %vm8444_vm8, %v11098_v12 }
 0x8b0   :  { %6095 = vmatpush3.bf16.msra.mxu0 %v4622_v25  ;;  %v4364_v25 = vld [vmem:[%s9762_s15 + $0xd8] sm:$0xff] }
 0x8b1   :  { %6096 = vmatprep.subr.bf16.mxu0 %v4629_v63  ;;  %v4605_v63 = vpack.c.bf16 %v4350_v24, %v4349_v21  ;;  %v4612_v13 = vpack.c.bf16 %v4364_v25, %v4363_v29  ;;  %v4271_v21 = vld [vmem:[%s9728_s7 + $0x1f0] sm:$0xff]  ;;  %v4272_v24 = vld [vmem:[%s9728_s7 + $0x1f8] sm:$0xff] }
 0x8b2   :  { %v4303_v29 = vld [vmem:[%s9728_s7 + $0x2f0] sm:$0xff]  ;;  %v4936_v25 = vpack.c.bf16 %v4272_v24, %v4271_v21  ;;  %v4281_v21 = vld [vmem:[%s9728_s7 + $0x240] sm:$0xff]  ;;  %v4282_v24 = vld [vmem:[%s9728_s7 + $0x248] sm:$0xff] }
 0x8b4   :  { %6097 = vmatpush3.bf16.msra.mxu0 %v4621_v48  ;;  %v4348_v48 = vld [vmem:[%s9762_s15 + $0x58] sm:$0xff] }
 0x8b5   :  { %6098 = vmatprep.subr.bf16.mxu0 %v4628_v37  ;;  %v4604_v37 = vpack.c.bf16 %v4348_v48, %v4347_v46  ;;  %v4255_v48 = vld [vmem:[%s9728_s7 + $0x170] sm:$0xff] }
 0x8b6   :  { %v4928_v39 = vpack.c.bf16 %v4256_v58, %v4255_v48  ;;  %v5134_v58 = vpack.c.bf16 %v4282_v24, %v4281_v21 }
 0x8b8   :  { %6099 = vmatpush3.bf16.msra.mxu0 %v4620_v42  ;;  %v4346_v42 = vld [vmem:[%s9762_s15 + $0x48] sm:$0xff] }
 0x8b9   :  { %6100 = vmatprep.subr.bf16.mxu0 %v4627_v47  ;;  %v11103_v47 = vld [vmem:[#allocation3_spill] sm:$0xff]  ;;  %v4603_v10 = vpack.c.bf16 %v4346_v42, %v4345_v8 }
 0x8ba   :  { %v4269_v8 = vld [vmem:[%s9728_s7 + $0x1e0] sm:$0xff] }
 0x8bc   :  { %6101 = vmatpush3.bf16.msra.mxu0 %v4619_v30  ;;  %v4357_v30 = vld [vmem:[%s9762_s15 + $0xa0] sm:$0xff] }
 0x8bd   :  { %6102 = vmatprep.subr.bf16.mxu0 %v4626_v26  ;;  %v4358_v26 = vld [vmem:[%s9762_s15 + $0xa8] sm:$0xff] }
 0x8be   :  { %v4609_v28 = vpack.c.bf16 %v4358_v26, %v4357_v30  ;;  %v4253_v30 = vld [vmem:[%s9728_s7 + $0x160] sm:$0xff]  ;;  %v4254_v26 = vld [vmem:[%s9728_s7 + $0x168] sm:$0xff] }
 0x8c0   :  { %6103 = vmatpush3.bf16.msra.mxu0 %v4618_v40  ;;  %v11104_v40 = vld [vmem:[#allocation5_spill] sm:$0xff] }
 0x8c1   :  { %6104 = vmatprep.subr.bf16.mxu0 %v4625_v33  ;;  %v4601_v33 = vpack.c.bf16 %v4342_v19, %v4341_v53  ;;  %v4935_v53 = vpack.c.bf16 %v4270_v6, %v4269_v8 }
 0x8c4   :  { %6105 = vmatpush3.bf16.msra.mxu0 %v4617_v16  ;;  %v11107_v16 = vld [vmem:[#allocation8_spill] sm:$0xff] }
 0x96f   :  { %v4185_v27 = vpop.f32.mrf.mxu0 }
 0x970   :  { %v4186_v0 = vadd.f32 %v4185_v27, %v9637_v14  ;;  %v4624_v27 = vpack.c.bf16 %v4228_v51, %v4227_v44  ;;  %v4927_v51 = vpack.c.bf16 %v4254_v26, %v4253_v30  ;;  %v4294_v30 = vld [vmem:[%s9728_s7 + $0x2a8] sm:$0xff] }
 0x971   :  { %v4187_v20 = vpop.f32.mrf.mxu0 }
 0x972   :  { %v4203_v7 = vadd.f32 %v4196_v49, %v4186_v0  ;;  %v4188_v32 = vadd.f32 %v4187_v20, %v9643_v56  ;;  %v4366_v56 = vld [vmem:[%s9762_s15 + $0xe8] sm:$0xff]  ;;  %v4355_v49 = vld [vmem:[%s9762_s15 + $0x90] sm:$0xff]  ;;  %v4356_v0 = vld [vmem:[%s9762_s15 + $0x98] sm:$0xff]  ;;  %6106 = vmatprep.subr.bf16.mxu0 %v4624_v27 }
 0x973   :  { %v4189_v17 = vpop.f32.mrf.mxu0  ;;  %v4613_v36 = vpack.c.bf16 %v4366_v56, %v4365_v5  ;;  %v4212_v20 = vld [vmem:[%s9728_s7 + $0x18] sm:$0xff]  ;;  %v4615_v56 = vpack.c.bf16 %v4210_v50, %v4209_v2  ;;  %v4251_v27 = vld [vmem:[%s9728_s7 + $0x150] sm:$0xff]  ;;  %v4249_v50 = vld [vmem:[%s9728_s7 + $0x140] sm:$0xff] }
 0x974   :  { %v4205_v43 = vmax.f32 %v4203_v7, 0.0  ;;  %v4204_v54 = vadd.f32 %v4200_v62, %v4188_v32  ;;  %v4211_v62 = vld [vmem:[%s9728_s7 + $0x10] sm:$0xff]  ;;  %v4608_v7 = vpack.c.bf16 %v4356_v0, %v4355_v49  ;;  %v4252_v0 = vld [vmem:[%s9728_s7 + $0x158] sm:$0xff] }
 0x975   :  { %v4190_v3 = vpop.f32.mrf.mxu0  ;;  %v4616_v32 = vpack.c.bf16 %v4212_v20, %v4211_v62  ;;  %v4339_v17 = vld [vmem:[%s9762_s15 + $0x10] sm:$0xff] }
 0x976   :  { %v9768_v41 = vpack.c.bf16 %v4205_v43, %v4205_v43  ;;  %v4206_v14 = vmax.f32 %v4204_v54, 0.0  ;;  %v4340_v43 = vld [vmem:[%s9762_s15 + $0x18] sm:$0xff]  ;;  %v4225_v3 = vld [vmem:[%s9728_s7 + $0x80] sm:$0xff] }
 0x977   :  { %v4600_v54 = vpack.c.bf16 %v4340_v43, %v4339_v17  ;;  %6107 = vmatpush3.bf16.msra.mxu0 %v4616_v32  ;;  %v4283_v32 = vld [vmem:[%s9728_s7 + $0x250] sm:$0xff]  ;;  %v4284_v17 = vld [vmem:[%s9728_s7 + $0x258] sm:$0xff]  ;;  %v4265_v43 = vld [vmem:[%s9728_s7 + $0x1c0] sm:$0xff] }
 0x978   :  { %v9770_v11 = vpack.c.bf16 %v4206_v14, %v4206_v14  ;;  %v4465_v22 = vsel %vm442_vm0, %v9768_v41, 0  ;;  %v4623_v14 = vpack.c.bf16 %v4226_v23, %v4225_v3  ;;  %v4297_v3 = vld [vmem:[%s9728_s7 + $0x2c0] sm:$0xff]  ;;  %v4298_v23 = vld [vmem:[%s9728_s7 + $0x2c8] sm:$0xff]  ;;  %v5135_v2 = vpack.c.bf16 %v4284_v17, %v4283_v32 }
 0x97a   :  { %5940 = vmatprep.subr.msk.bf16.mxu1 %vm442_vm0, %v9770_v11  ;;  %6108 = vmatprep.subr.bf16.mxu0 %v4623_v14  ;;  %vm5723_vm0 = vcmask 7168  }
 0x97b   :  { %4485 = vmatpush1.bf16.msra.mxu1 %v4465_v22  ;;  %v4337_v22 = vld [vmem:[%s9762_s15] sm:$0xff]  ;;  %6109 = vmatpush3.bf16.msra.mxu0 %v4615_v56 }
 0x97c   :  { %6158 = vmatprep.subr.bf16.mxu1 %v4614_v31  ;;  %v4354_v31 = vld [vmem:[%s9762_s15 + $0x88] sm:$0xff]  ;;  %6222 = vmatprep.subr.bf16.mxu0 %v4936_v25 }
 0x97d   :  { %v4607_v5 = vpack.c.bf16 %v4354_v31, %v4353_v38  ;;  %v4926_v31 = vpack.c.bf16 %v4252_v0, %v4251_v27  ;;  %v4259_v27 = vld [vmem:[%s9728_s7 + $0x190] sm:$0xff]  ;;  %v4260_v0 = vld [vmem:[%s9728_s7 + $0x198] sm:$0xff] }
 0x97e   :  { %5941 = vmatmul.mubr.msk.bf16.vlgmr.msra.gmra.mxu1 %vm417_vm5, %v11101_v9  ;;  %v4304_v9 = vld [vmem:[%s9728_s7 + $0x2f8] sm:$0xff] }
 0x97f   :  { %4512 = vmatprep.mubr.bf16.mxu1 %v11102_v15  ;;  %6159 = vmatpush3.bf16.msra.mxu1 %v4606_v34  ;;  %v4338_v34 = vld [vmem:[%s9762_s15 + $0x8] sm:$0xff] }
 0x980   :  { %6160 = vmatprep.subr.bf16.mxu1 %v4613_v36  ;;  %v4599_v36 = vpack.c.bf16 %v4338_v34, %v4337_v22 }
 0x983   :  { %6161 = vmatpush3.bf16.msra.mxu1 %v4605_v63  ;;  %v9841_v63 = vpop.permute.xlu1 %4805 }
 0x984   :  { %6162 = vmatprep.subr.bf16.mxu1 %v4612_v13 }
 0x986   :  { %5942 = vmatmul.mubr.msk.bf16.gmra.mxu1 %vm417_vm5, %v11103_v47  ;;  %v4302_v47 = vld [vmem:[%s9728_s7 + $0x2e8] sm:$0xff] }
 0x987   :  { %4522 = vmatprep.mubr.bf16.mxu1 %v11102_v15  ;;  %6163 = vmatpush3.bf16.msra.mxu1 %v4604_v37  ;;  %v4287_v37 = vld [vmem:[%s9728_s7 + $0x270] sm:$0xff]  ;;  %v9848_v42 = vpop.permute.xlu1 %5091  ;;  %v5144_v19 = vpack.c.bf16 %v4302_v47, %v4301_v45  ;;  %v4280_v47 = vld [vmem:[%s9728_s7 + $0x238] sm:$0xff] }
 0x988   :  { %6164 = vmatprep.subr.bf16.mxu1 %v4611_v52  ;;  %v4288_v52 = vld [vmem:[%s9728_s7 + $0x278] sm:$0xff]  ;;  %11110 = vst [vmem:[#allocation74_spill] sm:$0xff] %v9848_v42  ;;  %v4279_v45 = vld [vmem:[%s9728_s7 + $0x230] sm:$0xff] }
 0x989   :  { %v5137_v18 = vpack.c.bf16 %v4288_v52, %v4287_v37  ;;  %v4248_v37 = vld [vmem:[%s9728_s7 + $0x138] sm:$0xff] }
 0x98b   :  { %6165 = vmatpush3.bf16.msra.mxu1 %v4603_v10  ;;  %v9869_v44 = vpop.permute.xlu1 %4790 }
 0x98c   :  { %6166 = vmatprep.subr.bf16.mxu1 %v4610_v60 }
 0x98e   :  { %5943 = vmatmul.mubr.msk.bf16.gmra.mxu1 %vm417_vm5, %v11104_v40  ;;  %v4285_v40 = vld [vmem:[%s9728_s7 + $0x260] sm:$0xff] }
 0x98f   :  { %4532 = vmatprep.mubr.bf16.mxu1 %v11102_v15  ;;  %6167 = vmatpush3.bf16.msra.mxu1 %v4602_v59  ;;  %v9888_v25 = vpop.permute.xlu1 %4795 }
 0x990   :  { %6168 = vmatprep.subr.bf16.mxu1 %v4609_v28 }
 0x993   :  { %6169 = vmatpush3.bf16.msra.mxu1 %v4601_v33  ;;  %v4286_v33 = vld [vmem:[%s9728_s7 + $0x268] sm:$0xff] }
 0x994   :  { %6170 = vmatprep.subr.bf16.mxu1 %v4608_v7  ;;  %v5136_v49 = vpack.c.bf16 %v4286_v33, %v4285_v40  ;;  %v5133_v40 = vpack.c.bf16 %v4280_v47, %v4279_v45  ;;  %v4245_v33 = vld [vmem:[%s9728_s7 + $0x120] sm:$0xff]  ;;  %v4399_v45 = vld [vmem:[%s9924_s19 + $0xf0] sm:$0xff]  ;;  %v4400_v47 = vld [vmem:[%s9924_s19 + $0xf8] sm:$0xff] }
 0x996   :  { %5944 = vmatmul.mubr.msk.bf16.gmra.mxu1 %vm417_vm5, %v11105_v35  ;;  %v4267_v35 = vld [vmem:[%s9728_s7 + $0x1d0] sm:$0xff] }
 0x997   :  { %4542 = vmatprep.mubr.bf16.mxu1 %v11102_v15  ;;  %6171 = vmatpush3.bf16.msra.mxu1 %v4600_v54  ;;  %v4266_v54 = vld [vmem:[%s9728_s7 + $0x1c8] sm:$0xff] }
 0x998   :  { %6172 = vmatprep.subr.bf16.mxu1 %v4607_v5  ;;  %v4250_v5 = vld [vmem:[%s9728_s7 + $0x148] sm:$0xff]  ;;  %v4933_v34 = vpack.c.bf16 %v4266_v54, %v4265_v43  ;;  %v4243_v43 = vld [vmem:[%s9728_s7 + $0x110] sm:$0xff]  ;;  %v4244_v54 = vld [vmem:[%s9728_s7 + $0x118] sm:$0xff] }
 0x999   :  { %v4925_v48 = vpack.c.bf16 %v4250_v5, %v4249_v50  ;;  %v4257_v50 = vld [vmem:[%s9728_s7 + $0x180] sm:$0xff] }
 0x99b   :  { %6173 = vmatpush3.bf16.msra.mxu1 %v4599_v36  ;;  %v5142_v36 = vpack.c.bf16 %v4298_v23, %v4297_v3  ;;  %v4930_v23 = vpack.c.bf16 %v4260_v0, %v4259_v27 }
 0x99e   :  { %5945 = vmatmul.mubr.msk.bf16.gmra.mxu1 %vm417_vm5, %v11106_v4  ;;  %v4268_v4 = vld [vmem:[%s9728_s7 + $0x1d8] sm:$0xff] }
 0x99f   :  { %4552 = vmatprep.mubr.bf16.mxu1 %v11102_v15  ;;  %v4934_v20 = vpack.c.bf16 %v4268_v4, %v4267_v35  ;;  %v4246_v35 = vld [vmem:[%s9728_s7 + $0x128] sm:$0xff] }
 0x9a0   :  { %v4923_v32 = vpack.c.bf16 %v4246_v35, %v4245_v33 }
 0x9a6   :  { %5946 = vmatmul.mubr.msk.bf16.gmra.mxu1 %vm417_vm5, %v11107_v16  ;;  %v4299_v16 = vld [vmem:[%s9728_s7 + $0x2d0] sm:$0xff] }
 0x9a7   :  { %4562 = vmatprep.mubr.bf16.mxu1 %v11102_v15 }
 0x9ae   :  { %5947 = vmatmul.mubr.msk.bf16.gmra.mxu1 %vm417_vm5, %v11108_v61  ;;  %v4300_v61 = vld [vmem:[%s9728_s7 + $0x2d8] sm:$0xff] }
 0x9af   :  { %4572 = vmatprep.mubr.bf16.mxu1 %v11102_v15  ;;  %v5145_v15 = vpack.c.bf16 %v4304_v9, %v4303_v29  ;;  %v5143_v7 = vpack.c.bf16 %v4300_v61, %v4299_v16  ;;  %v4263_v29 = vld [vmem:[%s9728_s7 + $0x1b0] sm:$0xff]  ;;  %v4264_v9 = vld [vmem:[%s9728_s7 + $0x1b8] sm:$0xff] }
 0x9b0   :  { %v4932_v8 = vpack.c.bf16 %v4264_v9, %v4263_v29  ;;  %v4922_v29 = vpack.c.bf16 %v4244_v54, %v4243_v43 }
 0x9b1   :  { %6286 = vmatprep.subr.bf16.mxu1 %v5145_v15  ;;  %v4295_v15 = vld [vmem:[%s9728_s7 + $0x2b0] sm:$0xff] }
 0x9b6   :  { %5948 = vmatmul.mubr.msk.bf16.gmra.mxu1 %vm417_vm5, %v11109_v55 }
 0xa3e   :  { %v4504_v13 = vpop.f32.mrf.mxu1 }
 0xa40   :  { %v4506_v46 = vpop.f32.mrf.mxu1 }
 0xa42   :  { %v4508_v57 = vpop.f32.mrf.mxu1 }
 0xa43   :  { %v9857_v59 = vpack.c.bf16 %v4508_v57, %v4504_v13  ;;  %v4296_v13 = vld [vmem:[%s9728_s7 + $0x2b8] sm:$0xff]  ;;  %v4247_v57 = vld [vmem:[%s9728_s7 + $0x130] sm:$0xff] }
 0xa44   :  { %v4510_v10 = vpop.f32.mrf.mxu1  ;;  %v5141_v6 = vpack.c.bf16 %v4296_v13, %v4295_v15  ;;  %v4241_v15 = vld [vmem:[%s9728_s7 + $0x100] sm:$0xff]  ;;  %v4242_v13 = vld [vmem:[%s9728_s7 + $0x108] sm:$0xff] }
 0xa45   :  { %v9853_v60 = vpack.c.bf16 %v4510_v10, %v4506_v46  ;;  %v4261_v10 = vld [vmem:[%s9728_s7 + $0x1a0] sm:$0xff] }
 0xa46   :  { %v4514_v28 = vpop.f32.mrf.mxu1 }
 0xa47   :  { %4663 = vmatprep.mubr.bf16.mxu0 %v9853_v60  ;;  %4856 = vmatprep.mubr.bf16.mxu1 %v9853_v60 }
 0xa48   :  { %v4516_v55 = vpop.f32.mrf.mxu1  ;;  %4664 = vmatmul.mubr.bf16.vlgmr.msra.gmra.mxu0 %v9857_v59  ;;  %4857 = vmatmul.mubr.bf16.vlgmr.msra.gmra.mxu1 %v9857_v59 }
 0xa49   :  { %6223 = vmatpush3.bf16.msra.mxu0 %v4928_v39  ;;  %6287 = vmatpush3.bf16.msra.mxu1 %v5137_v18  ;;  %v4262_v39 = vld [vmem:[%s9728_s7 + $0x1a8] sm:$0xff]  ;;  %v4293_v18 = vld [vmem:[%s9728_s7 + $0x2a0] sm:$0xff] }
 0xa4a   :  { %v4518_v62 = vpop.f32.mrf.mxu1  ;;  %6224 = vmatprep.subr.bf16.mxu0 %v4935_v53  ;;  %6288 = vmatprep.subr.bf16.mxu1 %v5144_v19  ;;  %v4924_v19 = vpack.c.bf16 %v4248_v37, %v4247_v57  ;;  %v4931_v61 = vpack.c.bf16 %v4262_v39, %v4261_v10  ;;  %v4273_v37 = vld [vmem:[%s9728_s7 + $0x200] sm:$0xff] }
 0xa4b   :  { %v9883_v56 = vpack.c.bf16 %v4518_v62, %v4514_v28  ;;  %v9905_v28 = vpop.permute.xlu1 %5304  ;;  %v4291_v62 = vld [vmem:[%s9728_s7 + $0x290] sm:$0xff] }
 0xa4c   :  { %v4520_v38 = vpop.f32.mrf.mxu1  ;;  %11111 = vst [vmem:[#allocation110_spill] sm:$0xff] %v9905_v28 }
 0xa4d   :  { %v9879_v14 = vpack.c.bf16 %v4520_v38, %v4516_v55  ;;  %6225 = vmatpush3.bf16.msra.mxu0 %v4927_v51  ;;  %6289 = vmatpush3.bf16.msra.mxu1 %v5136_v49  ;;  %v5140_v55 = vpack.c.bf16 %v4294_v30, %v4293_v18  ;;  %v4277_v51 = vld [vmem:[%s9728_s7 + $0x220] sm:$0xff]  ;;  %v4278_v49 = vld [vmem:[%s9728_s7 + $0x228] sm:$0xff]  ;;  %v4921_v18 = vpack.c.bf16 %v4242_v13, %v4241_v15  ;;  %v4383_v15 = vld [vmem:[%s9924_s19 + $0x70] sm:$0xff] }
 0xa4e   :  { %v4524_v22 = vpop.f32.mrf.mxu1  ;;  %6226 = vmatprep.subr.bf16.mxu0 %v4934_v20  ;;  %6290 = vmatprep.subr.bf16.mxu1 %v5143_v7  ;;  %v4292_v20 = vld [vmem:[%s9728_s7 + $0x298] sm:$0xff]  ;;  %v5132_v17 = vpack.c.bf16 %v4278_v49, %v4277_v51 }
 0xa4f   :  { %4671 = vmatprep.mubr.bf16.mxu0 %v9879_v14  ;;  %4864 = vmatprep.mubr.bf16.mxu1 %v9879_v14  ;;  %v5139_v38 = vpack.c.bf16 %v4292_v20, %v4291_v62  ;;  %v9933_v5 = vpop.permute.xlu1 %5083  ;;  %v4384_v13 = vld [vmem:[%s9924_s19 + $0x78] sm:$0xff] }
 0xa50   :  { %v4526_v46 = vpop.f32.mrf.mxu1  ;;  %4672 = vmatmul.mubr.bf16.gmra.mxu0 %v9883_v56  ;;  %4865 = vmatmul.mubr.bf16.gmra.mxu1 %v9883_v56 }
 0xa51   :  { %6227 = vmatpush3.bf16.msra.mxu0 %v4926_v31  ;;  %6291 = vmatpush3.bf16.msra.mxu1 %v5135_v2  ;;  %v4275_v31 = vld [vmem:[%s9728_s7 + $0x210] sm:$0xff]  ;;  %v4276_v2 = vld [vmem:[%s9728_s7 + $0x218] sm:$0xff] }
 0xa52   :  { %v4528_v52 = vpop.f32.mrf.mxu1  ;;  %6228 = vmatprep.subr.bf16.mxu0 %v4933_v34  ;;  %6292 = vmatprep.subr.bf16.mxu1 %v5142_v36  ;;  %v4289_v34 = vld [vmem:[%s9728_s7 + $0x280] sm:$0xff]  ;;  %v4290_v36 = vld [vmem:[%s9728_s7 + $0x288] sm:$0xff]  ;;  %v5131_v9 = vpack.c.bf16 %v4276_v2, %v4275_v31 }
 0xa53   :  { %v9911_v4 = vpack.c.bf16 %v4528_v52, %v4524_v22  ;;  %v4258_v22 = vld [vmem:[%s9728_s7 + $0x188] sm:$0xff]  ;;  %v5138_v57 = vpack.c.bf16 %v4290_v36, %v4289_v34  ;;  %v9954_v39 = vpop.permute.xlu1 %5509 }
 0xa54   :  { %v4530_v26 = vpop.f32.mrf.mxu1  ;;  %v4274_v52 = vld [vmem:[%s9728_s7 + $0x208] sm:$0xff]  ;;  %11112 = vst [vmem:[#allocation130_spill] sm:$0xff] %v9954_v39 }
 0xa55   :  { %v9907_v53 = vpack.c.bf16 %v4530_v26, %v4526_v46  ;;  %6229 = vmatpush3.bf16.msra.mxu0 %v4925_v48  ;;  %6293 = vmatpush3.bf16.msra.mxu1 %v5134_v58  ;;  %v4929_v58 = vpack.c.bf16 %v4258_v22, %v4257_v50  ;;  %v5130_v30 = vpack.c.bf16 %v4274_v52, %v4273_v37  ;;  %v4398_v37 = vld [vmem:[%s9924_s19 + $0xe8] sm:$0xff] }
 0xa56   :  { %v4534_v16 = vpop.f32.mrf.mxu1  ;;  %6230 = vmatprep.subr.bf16.mxu0 %v4932_v8  ;;  %6294 = vmatprep.subr.bf16.mxu1 %v5141_v6  ;;  %v4335_v8 = vld [vmem:[%s9728_s7 + $0x3f0] sm:$0xff]  ;;  %v4336_v6 = vld [vmem:[%s9728_s7 + $0x3f8] sm:$0xff] }
 0xa57   :  { %4679 = vmatprep.mubr.bf16.mxu0 %v9907_v53  ;;  %4872 = vmatprep.mubr.bf16.mxu1 %v9907_v53 }
 0xa58   :  { %v4536_v7 = vpop.f32.mrf.mxu1  ;;  %4680 = vmatmul.mubr.bf16.gmra.mxu0 %v9911_v4  ;;  %4873 = vmatmul.mubr.bf16.gmra.mxu1 %v9911_v4 }
 0xa59   :  { %6231 = vmatpush3.bf16.msra.mxu0 %v4924_v19  ;;  %6295 = vmatpush3.bf16.msra.mxu1 %v5133_v40  ;;  %v5354_v19 = vpack.c.bf16 %v4336_v6, %v4335_v8  ;;  %v5571_v40 = vpack.c.bf16 %v4400_v47, %v4399_v45  ;;  %v5563_v6 = vpack.c.bf16 %v4384_v13, %v4383_v15  ;;  %v4317_v45 = vld [vmem:[%s9728_s7 + $0x360] sm:$0xff]  ;;  %v4318_v47 = vld [vmem:[%s9728_s7 + $0x368] sm:$0xff] }
 0xa5a   :  { %v4538_v3 = vpop.f32.mrf.mxu1  ;;  %6232 = vmatprep.subr.bf16.mxu0 %v4931_v61  ;;  %6296 = vmatprep.subr.bf16.mxu1 %v5140_v55  ;;  %v9960_v55 = vpop.permute.xlu1 %5513 }
 0xa5b   :  { %v9942_v46 = vpack.c.bf16 %v4538_v3, %v4534_v16  ;;  %11113 = vst [vmem:[#allocation113_spill] sm:$0xff] %v9960_v55 }
 0xa5c   :  { %v4540_v21 = vpop.f32.mrf.mxu1 }
 0xa5d   :  { %v9938_v24 = vpack.c.bf16 %v4540_v21, %v4536_v7  ;;  %6233 = vmatpush3.bf16.msra.mxu0 %v4923_v32  ;;  %6297 = vmatpush3.bf16.msra.mxu1 %v5132_v17 }
 0xa5e   :  { %v4544_v48 = vpop.f32.mrf.mxu1  ;;  %6234 = vmatprep.subr.bf16.mxu0 %v4930_v23  ;;  %6298 = vmatprep.subr.bf16.mxu1 %v5139_v38  ;;  %v9966_v0 = vpop.permute.xlu1 %4785 }
 0xa5f   :  { %4687 = vmatprep.mubr.bf16.mxu0 %v9938_v24  ;;  %4880 = vmatprep.mubr.bf16.mxu1 %v9938_v24 }
 0xa60   :  { %v4546_v10 = vpop.f32.mrf.mxu1  ;;  %4688 = vmatmul.mubr.bf16.gmra.mxu0 %v9942_v46  ;;  %4881 = vmatmul.mubr.bf16.gmra.mxu1 %v9942_v46 }
 0xa61   :  { %6235 = vmatpush3.bf16.msra.mxu0 %v4922_v29  ;;  %6299 = vmatpush3.bf16.msra.mxu1 %v5131_v9  ;;  %v4319_v29 = vld [vmem:[%s9728_s7 + $0x370] sm:$0xff]  ;;  %v4320_v9 = vld [vmem:[%s9728_s7 + $0x378] sm:$0xff] }
 0xa62   :  { %v4548_v26 = vpop.f32.mrf.mxu1  ;;  %6236 = vmatprep.subr.bf16.mxu0 %v4929_v58  ;;  %6300 = vmatprep.subr.bf16.mxu1 %v5138_v57  ;;  %v9976_v43 = vpop.permute.xlu1 %5292  ;;  %v4334_v58 = vld [vmem:[%s9728_s7 + $0x3e8] sm:$0xff]  ;;  %v4397_v57 = vld [vmem:[%s9924_s19 + $0xe0] sm:$0xff]  ;;  %v5346_v8 = vpack.c.bf16 %v4320_v9, %v4319_v29 }
 0xa63   :  { %v9958_v16 = vpack.c.bf16 %v4548_v26, %v4544_v48  ;;  %v4333_v48 = vld [vmem:[%s9728_s7 + $0x3e0] sm:$0xff]  ;;  %v4382_v26 = vld [vmem:[%s9924_s19 + $0x68] sm:$0xff] }
 0xa64   :  { %v4550_v33 = vpop.f32.mrf.mxu1  ;;  %v4393_v29 = vld [vmem:[%s9924_s19 + $0xc0] sm:$0xff]  ;;  %v4394_v9 = vld [vmem:[%s9924_s19 + $0xc8] sm:$0xff] }
 0xa65   :  { %v9956_v35 = vpack.c.bf16 %v4550_v33, %v4546_v10  ;;  %6237 = vmatpush3.bf16.msra.mxu0 %v4921_v18  ;;  %6301 = vmatpush3.bf16.msra.mxu1 %v5130_v30  ;;  %v5353_v10 = vpack.c.bf16 %v4334_v58, %v4333_v48  ;;  %v5570_v18 = vpack.c.bf16 %v4398_v37, %v4397_v57  ;;  %v4381_v30 = vld [vmem:[%s9924_s19 + $0x60] sm:$0xff]  ;;  %v4395_v33 = vld [vmem:[%s9924_s19 + $0xd0] sm:$0xff]  ;;  %v4314_v58 = vld [vmem:[%s9728_s7 + $0x348] sm:$0xff] }
 0xa66   :  { %v4554_v61 = vpop.f32.mrf.mxu1  ;;  %6350 = vmatprep.subr.bf16.mxu0 %v5354_v19  ;;  %6414 = vmatprep.subr.bf16.mxu1 %v5571_v40  ;;  %v9986_v2 = vpop.permute.xlu1 %5075  ;;  %v4331_v19 = vld [vmem:[%s9728_s7 + $0x3d0] sm:$0xff]  ;;  %v4332_v40 = vld [vmem:[%s9728_s7 + $0x3d8] sm:$0xff]  ;;  %v4313_v48 = vld [vmem:[%s9728_s7 + $0x340] sm:$0xff]  ;;  %v5568_v37 = vpack.c.bf16 %v4394_v9, %v4393_v29 }
 0xa67   :  { %4695 = vmatprep.mubr.bf16.mxu0 %v9956_v35  ;;  %4888 = vmatprep.mubr.bf16.mxu1 %v9956_v35  ;;  %v4310_v29 = vld [vmem:[%s9728_s7 + $0x328] sm:$0xff] }
 0xa68   :  { %v4556_v51 = vpop.f32.mrf.mxu1  ;;  %4696 = vmatmul.mubr.bf16.gmra.mxu0 %v9958_v16  ;;  %4889 = vmatmul.mubr.bf16.gmra.mxu1 %v9958_v16 }
 0xa6a   :  { %v4558_v49 = vpop.f32.mrf.mxu1  ;;  %v9992_v21 = vpop.permute.xlu1 %5079 }
 0xa6b   :  { %v9970_v20 = vpack.c.bf16 %v4558_v49, %v4554_v61  ;;  %v4396_v61 = vld [vmem:[%s9924_s19 + $0xd8] sm:$0xff]  ;;  %v5562_v49 = vpack.c.bf16 %v4382_v26, %v4381_v30  ;;  %v5343_v26 = vpack.c.bf16 %v4314_v58, %v4313_v48  ;;  %v4373_v48 = vld [vmem:[%s9924_s19 + $0x20] sm:$0xff]  ;;  %v4374_v58 = vld [vmem:[%s9924_s19 + $0x28] sm:$0xff] }
 0xa6c   :  { %v4560_v27 = vpop.f32.mrf.mxu1 }
 0xa6d   :  { %v9968_v62 = vpack.c.bf16 %v4560_v27, %v4556_v51  ;;  %v5345_v51 = vpack.c.bf16 %v4318_v47, %v4317_v45  ;;  %v4315_v27 = vld [vmem:[%s9728_s7 + $0x350] sm:$0xff]  ;;  %v4328_v47 = vld [vmem:[%s9728_s7 + $0x3b8] sm:$0xff] }
 0xa6e   :  { %v4564_v7 = vpop.f32.mrf.mxu1  ;;  %v10008_v52 = vpop.permute.xlu1 %5505  ;;  %v4327_v45 = vld [vmem:[%s9728_s7 + $0x3b0] sm:$0xff] }
 0xa6f   :  { %4703 = vmatprep.mubr.bf16.mxu0 %v9968_v62  ;;  %4896 = vmatprep.mubr.bf16.mxu1 %v9968_v62  ;;  %11114 = vst [vmem:[#allocation90_spill] sm:$0xff] %v10008_v52 }
 0xa70   :  { %v4566_v32 = vpop.f32.mrf.mxu1  ;;  %4704 = vmatmul.mubr.bf16.gmra.mxu0 %v9970_v20  ;;  %4897 = vmatmul.mubr.bf16.gmra.mxu1 %v9970_v20 }
 0xa72   :  { %v4568_v17 = vpop.f32.mrf.mxu1 }
 0xa73   :  { %v9980_v23 = vpack.c.bf16 %v4568_v17, %v4564_v7  ;;  %v4316_v7 = vld [vmem:[%s9728_s7 + $0x358] sm:$0xff]  ;;  %v5352_v17 = vpack.c.bf16 %v4332_v40, %v4331_v19  ;;  %v4311_v40 = vld [vmem:[%s9728_s7 + $0x330] sm:$0xff] }
 0xa74   :  { %v4570_v54 = vpop.f32.mrf.mxu1  ;;  %v5344_v15 = vpack.c.bf16 %v4316_v7, %v4315_v27  ;;  %v4376_v27 = vld [vmem:[%s9924_s19 + $0x38] sm:$0xff]  ;;  %v4325_v7 = vld [vmem:[%s9728_s7 + $0x3a0] sm:$0xff] }
 0xa75   :  { %v9978_v3 = vpack.c.bf16 %v4570_v54, %v4566_v32  ;;  %v10024_v32 = vpop.permute.xlu1 %4770  ;;  %v5569_v54 = vpack.c.bf16 %v4396_v61, %v4395_v33  ;;  %v4312_v33 = vld [vmem:[%s9728_s7 + $0x338] sm:$0xff]  ;;  %v5350_v61 = vpack.c.bf16 %v4328_v47, %v4327_v45  ;;  %v5558_v47 = vpack.c.bf16 %v4374_v58, %v4373_v48 }
 0xa76   :  { %v4574_v38 = vpop.f32.mrf.mxu1 }
 0xa77   :  { %4711 = vmatprep.mubr.bf16.mxu0 %v9978_v3  ;;  %4904 = vmatprep.mubr.bf16.mxu1 %v9978_v3 }
 0xa78   :  { %v4576_v31 = vpop.f32.mrf.mxu1  ;;  %4712 = vmatmul.mubr.bf16.gmra.mxu0 %v9980_v23  ;;  %4905 = vmatmul.mubr.bf16.gmra.mxu1 %v9980_v23 }
 0xa79   :  { %v10042_v30 = vpop.permute.xlu1 %5284 }
 0xa7a   :  { %v4578_v50 = vpop.f32.mrf.mxu1 }
 0xa7b   :  { %v9990_v36 = vpack.c.bf16 %v4578_v50, %v4574_v38  ;;  %v4379_v38 = vld [vmem:[%s9924_s19 + $0x50] sm:$0xff]  ;;  %v4329_v50 = vld [vmem:[%s9728_s7 + $0x3c0] sm:$0xff] }
 0xa7c   :  { %v4580_v22 = vpop.f32.mrf.mxu1 }
 0xa7d   :  { %v9988_v34 = vpack.c.bf16 %v4580_v22, %v4576_v31  ;;  %v4380_v31 = vld [vmem:[%s9924_s19 + $0x58] sm:$0xff]  ;;  %v4330_v22 = vld [vmem:[%s9728_s7 + $0x3c8] sm:$0xff]  ;;  %v10056_v9 = vpop.permute.xlu1 %5288 }
 0xa7e   :  { %v5561_v13 = vpack.c.bf16 %v4380_v31, %v4379_v38  ;;  %v5351_v57 = vpack.c.bf16 %v4330_v22, %v4329_v50  ;;  %v4390_v38 = vld [vmem:[%s9924_s19 + $0xa8] sm:$0xff]  ;;  %v5342_v31 = vpack.c.bf16 %v4312_v33, %v4311_v40  ;;  %v4309_v22 = vld [vmem:[%s9728_s7 + $0x320] sm:$0xff]  ;;  %v4371_v40 = vld [vmem:[%s9924_s19 + $0x10] sm:$0xff] }
 0xa7f   :  { %4719 = vmatprep.mubr.bf16.mxu0 %v9988_v34  ;;  %4912 = vmatprep.mubr.bf16.mxu1 %v9988_v34  ;;  %v5341_v45 = vpack.c.bf16 %v4310_v29, %v4309_v22  ;;  %v4372_v33 = vld [vmem:[%s9924_s19 + $0x18] sm:$0xff]  ;;  %v4306_v22 = vld [vmem:[%s9728_s7 + $0x308] sm:$0xff]  ;;  %v4369_v29 = vld [vmem:[%s9924_s19] sm:$0xff] }
 0xa80   :  { %4720 = vmatmul.mubr.bf16.gmra.mxu0 %v9990_v36  ;;  %4913 = vmatmul.mubr.bf16.gmra.mxu1 %v9990_v36 }
 0xa81   :  { %4969 = vmatprep.mubr.bf16.mxu0 %v9853_v60  ;;  %5178 = vmatprep.mubr.bf16.mxu1 %v9853_v60 }
 0xa88   :  { %4970 = vmatmul.mubr.bf16.vlgmr.msra.gmra.mxu0 %v9857_v59  ;;  %5179 = vmatmul.mubr.bf16.vlgmr.msra.gmra.mxu1 %v9857_v59 }
 0xa89   :  { %4977 = vmatprep.mubr.bf16.mxu0 %v9879_v14  ;;  %5186 = vmatprep.mubr.bf16.mxu1 %v9879_v14 }
 0xa8a   :  { %6351 = vmatpush3.bf16.msra.mxu0 %v5346_v8  ;;  %6415 = vmatpush3.bf16.msra.mxu1 %v5563_v6  ;;  %v4377_v8 = vld [vmem:[%s9924_s19 + $0x40] sm:$0xff]  ;;  %v4378_v6 = vld [vmem:[%s9924_s19 + $0x48] sm:$0xff] }
 0xa8b   :  { %6352 = vmatprep.subr.bf16.mxu0 %v5353_v10  ;;  %6416 = vmatprep.subr.bf16.mxu1 %v5570_v18  ;;  %v4391_v10 = vld [vmem:[%s9924_s19 + $0xb0] sm:$0xff]  ;;  %v4392_v18 = vld [vmem:[%s9924_s19 + $0xb8] sm:$0xff]  ;;  %v5560_v19 = vpack.c.bf16 %v4378_v6, %v4377_v8 }
 0xa8c   :  { %v4387_v8 = vld [vmem:[%s9924_s19 + $0x90] sm:$0xff]  ;;  %v4388_v6 = vld [vmem:[%s9924_s19 + $0x98] sm:$0xff] }
 0xa8e   :  { %6353 = vmatpush3.bf16.msra.mxu0 %v5345_v51  ;;  %6417 = vmatpush3.bf16.msra.mxu1 %v5562_v49  ;;  %v5567_v51 = vpack.c.bf16 %v4392_v18, %v4391_v10  ;;  %v4375_v49 = vld [vmem:[%s9924_s19 + $0x30] sm:$0xff]  ;;  %v4308_v18 = vld [vmem:[%s9728_s7 + $0x318] sm:$0xff] }
 0xa8f   :  { %6354 = vmatprep.subr.bf16.mxu0 %v5352_v17  ;;  %6418 = vmatprep.subr.bf16.mxu1 %v5569_v54  ;;  %v4326_v17 = vld [vmem:[%s9728_s7 + $0x3a8] sm:$0xff]  ;;  %v4389_v54 = vld [vmem:[%s9924_s19 + $0xa0] sm:$0xff]  ;;  %v5559_v50 = vpack.c.bf16 %v4376_v27, %v4375_v49  ;;  %v4307_v10 = vld [vmem:[%s9728_s7 + $0x310] sm:$0xff] }
 0xa90   :  { %4978 = vmatmul.mubr.bf16.gmra.mxu0 %v9883_v56  ;;  %5187 = vmatmul.mubr.bf16.gmra.mxu1 %v9883_v56  ;;  %v4385_v49 = vld [vmem:[%s9924_s19 + $0x80] sm:$0xff]  ;;  %v4386_v27 = vld [vmem:[%s9924_s19 + $0x88] sm:$0xff] }
 0xa91   :  { %4985 = vmatprep.mubr.bf16.mxu0 %v9907_v53  ;;  %5194 = vmatprep.mubr.bf16.mxu1 %v9907_v53 }
 0xa92   :  { %6355 = vmatpush3.bf16.msra.mxu0 %v5344_v15  ;;  %6419 = vmatpush3.bf16.msra.mxu1 %v5561_v13  ;;  %v5349_v15 = vpack.c.bf16 %v4326_v17, %v4325_v7  ;;  %v5566_v13 = vpack.c.bf16 %v4390_v38, %v4389_v54  ;;  %v10076_v7 = vpop.permute.xlu1 %5071  ;;  %v5340_v17 = vpack.c.bf16 %v4308_v18, %v4307_v10  ;;  %v4305_v38 = vld [vmem:[%s9728_s7 + $0x300] sm:$0xff] }
 0xa93   :  { %6356 = vmatprep.subr.bf16.mxu0 %v5351_v57  ;;  %6420 = vmatprep.subr.bf16.mxu1 %v5568_v37  ;;  %v4323_v57 = vld [vmem:[%s9728_s7 + $0x390] sm:$0xff]  ;;  %v4324_v37 = vld [vmem:[%s9728_s7 + $0x398] sm:$0xff]  ;;  %v5557_v54 = vpack.c.bf16 %v4372_v33, %v4371_v40 }
 0xa96   :  { %6357 = vmatpush3.bf16.msra.mxu0 %v5343_v26  ;;  %6421 = vmatpush3.bf16.msra.mxu1 %v5560_v19  ;;  %v5348_v26 = vpack.c.bf16 %v4324_v37, %v4323_v57  ;;  %v5565_v19 = vpack.c.bf16 %v4388_v6, %v4387_v8  ;;  %v10086_v58 = vpop.permute.xlu1 %5493  ;;  %v11116_v57 = vmov 0.0  }
 0xa97   :  { %6358 = vmatprep.subr.bf16.mxu0 %v5350_v61  ;;  %6422 = vmatprep.subr.bf16.mxu1 %v5567_v51  ;;  %v4321_v61 = vld [vmem:[%s9728_s7 + $0x380] sm:$0xff]  ;;  %v4322_v51 = vld [vmem:[%s9728_s7 + $0x388] sm:$0xff]  ;;  %11115 = vst [vmem:[#allocation119_spill] sm:$0xff] %v10086_v58 }
 0xa98   :  { %4986 = vmatmul.mubr.bf16.gmra.mxu0 %v9911_v4  ;;  %5195 = vmatmul.mubr.bf16.gmra.mxu1 %v9911_v4 }
 0xa99   :  { %4993 = vmatprep.mubr.bf16.mxu0 %v9938_v24  ;;  %5202 = vmatprep.mubr.bf16.mxu1 %v9938_v24 }
 0xa9a   :  { %6359 = vmatpush3.bf16.msra.mxu0 %v5342_v31  ;;  %6423 = vmatpush3.bf16.msra.mxu1 %v5559_v50  ;;  %v5347_v31 = vpack.c.bf16 %v4322_v51, %v4321_v61  ;;  %v5564_v50 = vpack.c.bf16 %v4386_v27, %v4385_v49  ;;  %v10092_v37 = vpop.permute.xlu1 %4760 }
 0xa9b   :  { %6360 = vmatprep.subr.bf16.mxu0 %v5349_v15  ;;  %6424 = vmatprep.subr.bf16.mxu1 %v5566_v13  ;;  %v4370_v15 = vld [vmem:[%s9924_s19 + $0x8] sm:$0xff]  ;;  %v5339_v13 = vpack.c.bf16 %v4306_v22, %v4305_v38 }
 0xa9c   :  { %v5556_v48 = vpack.c.bf16 %v4370_v15, %v4369_v29 }
 0xa9e   :  { %6361 = vmatpush3.bf16.msra.mxu0 %v5341_v45  ;;  %6425 = vmatpush3.bf16.msra.mxu1 %v5558_v47  ;;  %v10096_v8 = vpop.permute.xlu1 %4765 }
 0xa9f   :  { %6362 = vmatprep.subr.bf16.mxu0 %v5348_v26  ;;  %6426 = vmatprep.subr.bf16.mxu1 %v5565_v19 }
 0xaa0   :  { %4994 = vmatmul.mubr.bf16.gmra.mxu0 %v9942_v46  ;;  %5203 = vmatmul.mubr.bf16.gmra.mxu1 %v9942_v46 }
 0xaa1   :  { %5001 = vmatprep.mubr.bf16.mxu0 %v9956_v35  ;;  %5210 = vmatprep.mubr.bf16.mxu1 %v9956_v35 }
 0xaa2   :  { %6363 = vmatpush3.bf16.msra.mxu0 %v5340_v17  ;;  %6427 = vmatpush3.bf16.msra.mxu1 %v5557_v54  ;;  %v10102_v6 = vpop.permute.xlu1 %5280 }
 0xaa3   :  { %6364 = vmatprep.subr.bf16.mxu0 %v5347_v31  ;;  %6428 = vmatprep.subr.bf16.mxu1 %v5564_v50 }
 0xaa6   :  { %6365 = vmatpush3.bf16.msra.mxu0 %v5339_v13  ;;  %6429 = vmatpush3.bf16.msra.mxu1 %v5556_v48  ;;  %v10108_v45 = vpop.permute.xlu1 %5059 }
 0xaa7   :  { %6734 = vmatprep.subr.bf16.mxu0 %v11116_v57  ;;  %6754 = vmatprep.subr.bf16.mxu1 %v11116_v57 }
 0xaa8   :  { %5002 = vmatmul.mubr.bf16.gmra.mxu0 %v9958_v16  ;;  %5211 = vmatmul.mubr.bf16.gmra.mxu1 %v9958_v16 }
 0xaa9   :  { %5009 = vmatprep.mubr.bf16.mxu0 %v9968_v62  ;;  %5218 = vmatprep.mubr.bf16.mxu1 %v9968_v62 }
 0xaaa   :  { %v10112_v47 = vpop.permute.xlu1 %5485 }
 0xaab   :  { %11117 = vst [vmem:[#allocation105_spill] sm:$0xff] %v10112_v47 }
 0xaae   :  { %v10116_v10 = vpop.permute.xlu1 %5489 }
 0xaaf   :  { %11118 = vst [vmem:[#allocation45_spill] sm:$0xff] %v10116_v10 }
 0xab0   :  { %5010 = vmatmul.mubr.bf16.gmra.mxu0 %v9970_v20  ;;  %5219 = vmatmul.mubr.bf16.gmra.mxu1 %v9970_v20 }
 0xab1   :  { %5017 = vmatprep.mubr.bf16.mxu0 %v9978_v3  ;;  %5226 = vmatprep.mubr.bf16.mxu1 %v9978_v3 }
 0xab2   :  { %v10123_v18 = vpop.permute.xlu1 %4755 }
 0xab8   :  { %5018 = vmatmul.mubr.bf16.gmra.mxu0 %v9980_v23  ;;  %5227 = vmatmul.mubr.bf16.gmra.mxu1 %v9980_v23 }
 0xab9   :  { %5025 = vmatprep.mubr.bf16.mxu0 %v9988_v34  ;;  %5234 = vmatprep.mubr.bf16.mxu1 %v9988_v34 }
 0xac0   :  { %5026 = vmatmul.mubr.bf16.gmra.mxu0 %v9990_v36  ;;  %5235 = vmatmul.mubr.bf16.gmra.mxu1 %v9990_v36 }
 0xac1   :  { %5387 = vmatprep.mubr.bf16.mxu0 %v9853_v60  ;;  %5604 = vmatprep.mubr.bf16.mxu1 %v9770_v11  ;;  %v10127_v60 = vpop.permute.xlu1 %5268  ;;  %v10129_v11 = vpop.permute.xlu0 %5300 }
 0xac2   :  { %11119 = vst [vmem:[#allocation23_spill] sm:$0xff] %v10129_v11 }
 0xac8   :  { %5388 = vmatmul.mubr.bf16.vlgmr.msra.gmra.mxu0 %v9857_v59  ;;  %5605 = vmatmul.mubr.bf16.vlgmr.msra.gmra.mxu1 %v9768_v41  ;;  %v10132_v59 = vpop.permute.xlu1 %5051  ;;  %v10135_v41 = vpop.permute.xlu0 %5296 }
 0xac9   :  { %5395 = vmatprep.mubr.bf16.mxu0 %v9879_v14  ;;  %6758 = vmatprep.mubr.msk.bf16.mxu1 %vm6988_vm6, %v11116_v57 }
 0xacc   :  { %v10137_v14 = vpop.permute.xlu1 %5055  ;;  %v10140_v26 = vpop.permute.xlu0 %4800 }
 0xad0   :  { %5396 = vmatmul.mubr.bf16.gmra.mxu0 %v9883_v56  ;;  %v10143_v56 = vpop.permute.xlu1 %5481 }
 0xad1   :  { %5403 = vmatprep.mubr.bf16.mxu0 %v9907_v53  ;;  %11120 = vst [vmem:[#allocation108_spill] sm:$0xff] %v10143_v56  ;;  %v10145_v53 = vpop.permute.xlu0 %4780 }
 0xad8   :  { %5404 = vmatmul.mubr.bf16.gmra.mxu0 %v9911_v4  ;;  %v4741_v4 = vpop.permute.xlu1 %4740 }
 0xad9   :  { %5411 = vmatprep.mubr.bf16.mxu0 %v9938_v24  ;;  %v10149_v24 = vpop.permute.xlu0 %4775 }
 0xadc   :  { %v10152_v19 = vpop.permute.xlu1 %5260 }
 0xae0   :  { %5412 = vmatmul.mubr.bf16.gmra.mxu0 %v9942_v46  ;;  %v4751_v46 = vpop.permute.xlu0 %4750  ;;  %v10155_v40 = vpop.permute.xlu1 %5264 }
 0xae1   :  { %5419 = vmatprep.mubr.bf16.mxu0 %v9956_v35 }
 0xae4   :  { %v4746_v35 = vpop.permute.xlu0 %4745 }
 0xae8   :  { %5420 = vmatmul.mubr.bf16.gmra.mxu0 %v9958_v16  ;;  %v10159_v16 = vpop.permute.xlu1 %5047 }
 0xae9   :  { %5427 = vmatprep.mubr.bf16.mxu0 %v9968_v62  ;;  %v10161_v62 = vpop.permute.xlu0 %5501 }
 0xaea   :  { %11121 = vst [vmem:[#allocation40_spill] sm:$0xff] %v10161_v62 }
 0xaf0   :  { %5428 = vmatmul.mubr.bf16.gmra.mxu0 %v9970_v20  ;;  %v10166_v20 = vpop.permute.xlu1 %5469 }
 0xaf1   :  { %5435 = vmatprep.mubr.bf16.mxu0 %v9978_v3  ;;  %11122 = vst [vmem:[#allocation99_spill] sm:$0xff] %v10166_v20  ;;  %v10168_v3 = vpop.permute.xlu0 %5497 }
 0xaf2   :  { %11123 = vst [vmem:[#allocation72_spill] sm:$0xff] %v10168_v3 }
 0xaf4   :  { %v4731_v51 = vpop.permute.xlu1 %4730 }
 0xaf5   :  { %v10170_v27 = vpop.permute.xlu0 %5477 }
 0xaf6   :  { %11124 = vst [vmem:[#allocation66_spill] sm:$0xff] %v10170_v27 }
 0xaf8   :  { %5436 = vmatmul.mubr.bf16.gmra.mxu0 %v9980_v23  ;;  %v4736_v22 = vpop.permute.xlu1 %4735 }
 0xaf9   :  { %5443 = vmatprep.mubr.bf16.mxu0 %v9988_v34  ;;  %v10174_v12 = vpop.permute.xlu0 %5473 }
 0xafa   :  { %11125 = vst [vmem:[#allocation42_spill] sm:$0xff] %v10174_v12 }
 0xb00   :  { %5444 = vmatmul.mubr.bf16.gmra.mxu0 %v9990_v36 }
 0xb01   :  { %6750 = vmatprep.mubr.msk.bf16.mxu0 %vm6988_vm6, %v11116_v57 }
 0xb08   :  { %v6110_v33 = vpop.f32.mrf.mxu0  ;;  %v6174_v61 = vpop.f32.mrf.mxu1 }
 0xb0a   :  { %v6111_v23 = vpop.f32.mrf.mxu0  ;;  %v6175_v49 = vpop.f32.mrf.mxu1 }
 0xb0b   :  { %v6112_v34 = vadd.f32 %v6111_v23, %v6110_v33  ;;  %v6176_v17 = vadd.f32 %v6175_v49, %v6174_v61 }
 0xb0c   :  { %v6113_v54 = vpop.f32.mrf.mxu0  ;;  %v6177_v38 = vpop.f32.mrf.mxu1 }
 0xb0d   :  { %v4808_v31 = vmul.f32 %v6112_v34, %v4731_v51 }
 0xb0e   :  { %v6114_v36 = vpop.f32.mrf.mxu0  ;;  %v6178_v50 = vpop.f32.mrf.mxu1 }
 0xb0f   :  { %v10172_v29 = vadd.f32 %v6176_v17, %v4808_v31  ;;  %v6115_v15 = vadd.f32 %v6114_v36, %v6113_v54  ;;  %v6179_v13 = vadd.f32 %v6178_v50, %v6177_v38  ;;  %v10178_v17 = vpop.permute.xlu0 %5095 }
 0xb10   :  { %v6116_v48 = vpop.f32.mrf.mxu0  ;;  %v6180_v1 = vpop.f32.mrf.mxu1  ;;  %11126 = vst [vmem:[#allocation124_spill] sm:$0xff] %v10178_v17 }
 0xb11   :  { %v4809_v57 = vmul.f32 %v6115_v15, %v4736_v22 }
 0xb12   :  { %v6117_v55 = vpop.f32.mrf.mxu0  ;;  %v6181_v39 = vpop.f32.mrf.mxu1 }
 0xb13   :  { %v10176_v52 = vadd.f32 %v6179_v13, %v4809_v57  ;;  %v6118_v33 = vadd.f32 %v6117_v55, %v6116_v48  ;;  %v6182_v61 = vadd.f32 %v6181_v39, %v6180_v1 }
 0xb14   :  { %v6119_v23 = vpop.f32.mrf.mxu0  ;;  %v6183_v51 = vpop.f32.mrf.mxu1 }
 0xb15   :  { %v4810_v49 = vmul.f32 %v6118_v33, %v4741_v4  ;;  %v10184_v4 = vpop.permute.xlu0 %5087 }
 0xb16   :  { %v6120_v34 = vpop.f32.mrf.mxu0  ;;  %v6184_v62 = vpop.f32.mrf.mxu1 }
 0xb17   :  { %v10180_v54 = vadd.f32 %v6182_v61, %v4810_v49  ;;  %v6121_v38 = vadd.f32 %v6120_v34, %v6119_v23  ;;  %v6185_v31 = vadd.f32 %v6184_v62, %v6183_v51 }
 0xb18   :  { %v6122_v36 = vpop.f32.mrf.mxu0  ;;  %v6186_v50 = vpop.f32.mrf.mxu1 }
 0xb19   :  { %v4811_v22 = vmul.f32 %v6121_v38, %v4746_v35 }
 0xb1a   :  { %v6123_v15 = vpop.f32.mrf.mxu0  ;;  %v6187_v3 = vpop.f32.mrf.mxu1 }
 0xb1b   :  { %v10182_v57 = vadd.f32 %v6185_v31, %v4811_v22  ;;  %v6124_v55 = vadd.f32 %v6123_v15, %v6122_v36  ;;  %v6188_v1 = vadd.f32 %v6187_v3, %v6186_v50  ;;  %v10189_v31 = vpop.permute.xlu0 %5067 }
 0xb1c   :  { %v6125_v39 = vpop.f32.mrf.mxu0  ;;  %v6189_v13 = vpop.f32.mrf.mxu1 }
 0xb1d   :  { %v4812_v48 = vmul.f32 %v6124_v55, %v4751_v46 }
 0xb1e   :  { %v6126_v33 = vpop.f32.mrf.mxu0  ;;  %v6190_v58 = vpop.f32.mrf.mxu1 }
 0xb1f   :  { %v10186_v61 = vadd.f32 %v6188_v1, %v4812_v48  ;;  %v6127_v23 = vadd.f32 %v6126_v33, %v6125_v39  ;;  %v6191_v62 = vadd.f32 %v6190_v58, %v6189_v13  ;;  %v10196_v33 = vpop.permute.xlu0 %5063 }
 0xb20   :  { %v6128_v51 = vpop.f32.mrf.mxu0  ;;  %v6192_v49 = vpop.f32.mrf.mxu1 }
 0xb21   :  { %v4813_v35 = vmul.f32 %v6127_v23, %v10123_v18 }
 0xb22   :  { %v6129_v34 = vpop.f32.mrf.mxu0  ;;  %v6193_v38 = vpop.f32.mrf.mxu1 }
 0xb23   :  { %v10191_v3 = vadd.f32 %v6191_v62, %v4813_v35  ;;  %v6130_v36 = vadd.f32 %v6129_v34, %v6128_v51  ;;  %v6194_v50 = vadd.f32 %v6193_v38, %v6192_v49 }
 0xb24   :  { %v6131_v22 = vpop.f32.mrf.mxu0  ;;  %v6195_v46 = vpop.f32.mrf.mxu1 }
 0xb25   :  { %v4814_v15 = vmul.f32 %v6130_v36, %v10092_v37 }
 0xb26   :  { %v6132_v55 = vpop.f32.mrf.mxu0  ;;  %v6196_v1 = vpop.f32.mrf.mxu1 }
 0xb27   :  { %v10194_v39 = vadd.f32 %v6194_v50, %v4814_v15  ;;  %v6133_v58 = vadd.f32 %v6132_v55, %v6131_v22  ;;  %v6197_v13 = vadd.f32 %v6196_v1, %v6195_v46  ;;  %v10202_v22 = vpop.permute.xlu0 %5043 }
 0xb28   :  { %v6134_v48 = vpop.f32.mrf.mxu0  ;;  %v6198_v18 = vpop.f32.mrf.mxu1 }
 0xb29   :  { %v4815_v23 = vmul.f32 %v6133_v58, %v10096_v8 }
 0xb2a   :  { %v6135_v62 = vpop.f32.mrf.mxu0  ;;  %v6199_v35 = vpop.f32.mrf.mxu1 }
 0xb2b   :  { %v10199_v51 = vadd.f32 %v6197_v13, %v4815_v23  ;;  %v6136_v49 = vadd.f32 %v6135_v62, %v6134_v48  ;;  %v6200_v34 = vadd.f32 %v6199_v35, %v6198_v18 }
 0xb2c   :  { %v6137_v38 = vpop.f32.mrf.mxu0  ;;  %v6201_v37 = vpop.f32.mrf.mxu1 }
 0xb2d   :  { %v4816_v36 = vmul.f32 %v6136_v49, %v10024_v32  ;;  %v10209_v49 = vpop.permute.xlu0 %5039 }
 0xb2e   :  { %v6138_v50 = vpop.f32.mrf.mxu0  ;;  %v6202_v15 = vpop.f32.mrf.mxu1 }
 0xb2f   :  { %v10204_v46 = vadd.f32 %v6200_v34, %v4816_v36  ;;  %v6139_v55 = vadd.f32 %v6138_v50, %v6137_v38  ;;  %v6203_v1 = vadd.f32 %v6202_v15, %v6201_v37 }
 0xb30   :  { %v6140_v10 = vpop.f32.mrf.mxu0  ;;  %v6204_v8 = vpop.f32.mrf.mxu1 }
 0xb31   :  { %v4817_v58 = vmul.f32 %v6139_v55, %v10149_v24  ;;  %v10214_v55 = vpop.permute.xlu1 %5256 }
 0xb32   :  { %v6141_v13 = vpop.f32.mrf.mxu0  ;;  %v6205_v23 = vpop.f32.mrf.mxu1 }
 0xb33   :  { %v10207_v48 = vadd.f32 %v6203_v1, %v4817_v58  ;;  %v6142_v18 = vadd.f32 %v6141_v13, %v6140_v10  ;;  %v6206_v62 = vadd.f32 %v6205_v23, %v6204_v8  ;;  %v10217_v58 = vpop.permute.xlu0 %5276 }
 0xb34   :  { %v6143_v35 = vpop.f32.mrf.mxu0  ;;  %v6207_v32 = vpop.f32.mrf.mxu1 }
 0xb35   :  { %v4818_v47 = vmul.f32 %v6142_v18, %v10145_v53 }
 0xb36   :  { %v6144_v34 = vpop.f32.mrf.mxu0  ;;  %v6208_v36 = vpop.f32.mrf.mxu1 }
 0xb37   :  { %v10212_v38 = vadd.f32 %v6206_v62, %v4818_v47  ;;  %v6145_v37 = vadd.f32 %v6144_v34, %v6143_v35  ;;  %v6209_v50 = vadd.f32 %v6208_v36, %v6207_v32  ;;  %v5036_v32 = vpop.permute.xlu1 %5035  ;;  %v10224_v12 = vpop.permute.xlu0 %5272 }
 0xb38   :  { %v6146_v15 = vpop.f32.mrf.mxu0  ;;  %v6210_v24 = vpop.f32.mrf.mxu1 }
 0xb39   :  { %v4819_v1 = vmul.f32 %v6145_v37, %v9966_v0 }
 0xb3a   :  { %v6147_v10 = vpop.f32.mrf.mxu0  ;;  %v6211_v8 = vpop.f32.mrf.mxu1 }
 0xb3b   :  { %v10219_v13 = vadd.f32 %v6209_v50, %v4819_v1  ;;  %v6148_v23 = vadd.f32 %v6147_v10, %v6146_v15  ;;  %v6212_v53 = vadd.f32 %v6211_v8, %v6210_v24  ;;  %v10229_v20 = vpop.permute.xlu1 %5461 }
 0xb3c   :  { %v6149_v18 = vpop.f32.mrf.mxu0  ;;  %v6213_v56 = vpop.f32.mrf.mxu1  ;;  %11127 = vst [vmem:[#allocation55_spill] sm:$0xff] %v10229_v20 }
 0xb3d   :  { %v4820_v47 = vmul.f32 %v6148_v23, %v9869_v44 }
 0xb3e   :  { %v6150_v62 = vpop.f32.mrf.mxu0  ;;  %v6214_v35 = vpop.f32.mrf.mxu1 }
 0xb3f   :  { %v10222_v34 = vadd.f32 %v6212_v53, %v4820_v47  ;;  %v6151_v36 = vadd.f32 %v6150_v62, %v6149_v18  ;;  %v6215_v27 = vadd.f32 %v6214_v35, %v6213_v56  ;;  %v5253_v47 = vpop.permute.xlu0 %5252 }
 0xb40   :  { %v6152_v0 = vpop.f32.mrf.mxu0  ;;  %v6216_v37 = vpop.f32.mrf.mxu1 }
 0xb41   :  { %v4821_v50 = vmul.f32 %v6151_v36, %v9888_v25 }
 0xb42   :  { %v6153_v1 = vpop.f32.mrf.mxu0  ;;  %v6217_v15 = vpop.f32.mrf.mxu1 }
 0xb43   :  { %v10227_v24 = vadd.f32 %v6215_v27, %v4821_v50  ;;  %v6154_v10 = vadd.f32 %v6153_v1, %v6152_v0  ;;  %v6218_v8 = vadd.f32 %v6217_v15, %v6216_v37  ;;  %v10235_v37 = vpop.permute.xlu1 %5465  ;;  %v5245_v17 = vpop.permute.xlu0 %5244 }
 0xb44   :  { %v6155_v44 = vpop.f32.mrf.mxu0  ;;  %v6219_v23 = vpop.f32.mrf.mxu1  ;;  %11129 = vst [vmem:[#allocation25_spill] sm:$0xff] %v10235_v37 }
 0xb45   :  { %v4822_v53 = vmul.f32 %v6154_v10, %v10140_v26 }
 0xb46   :  { %v6156_v18 = vpop.f32.mrf.mxu0  ;;  %v6220_v56 = vpop.f32.mrf.mxu1 }
 0xb47   :  { %v10232_v62 = vadd.f32 %v6218_v8, %v4822_v53  ;;  %v6157_v35 = vadd.f32 %v6156_v18, %v6155_v44  ;;  %v6221_v28 = vadd.f32 %v6220_v56, %v6219_v23 }
 0xb48   :  { %v6238_v25 = vpop.f32.mrf.mxu0  ;;  %v6302_v36 = vpop.f32.mrf.mxu1 }
 0xb49   :  { %11128 = vst [vmem:[#allocation57_spill] sm:$0xff] %v10232_v62  ;;  %v4823_v27 = vmul.f32 %v6157_v35, %v9841_v63  ;;  %v5249_v62 = vpop.permute.xlu1 %5248 }
 0xb4a   :  { %v6239_v50 = vpop.f32.mrf.mxu0  ;;  %v6303_v0 = vpop.f32.mrf.mxu1 }
 0xb4b   :  { %v10237_v1 = vadd.f32 %v6221_v28, %v4823_v27  ;;  %v6240_v15 = vadd.f32 %v6239_v50, %v6238_v25  ;;  %v6304_v20 = vadd.f32 %v6303_v0, %v6302_v36 }
 0xb4c   :  { %v6241_v26 = vpop.f32.mrf.mxu0  ;;  %v6305_v10 = vpop.f32.mrf.mxu1 }
 0xb4d   :  { %v5098_v11 = vmul.f32 %v6240_v15, %v5036_v32  ;;  %v5307_v23 = vmul.f32 %v6304_v20, %v5245_v17 }
 0xb4e   :  { %v6242_v8 = vpop.f32.mrf.mxu0  ;;  %v6306_v53 = vpop.f32.mrf.mxu1 }
 0xb4f   :  { %v5114_v44 = vadd.f32 %v5098_v11, %v10172_v29  ;;  %v6243_v18 = vadd.f32 %v6242_v8, %v6241_v26  ;;  %v6307_v56 = vadd.f32 %v6306_v53, %v6305_v10 }
 0xb50   :  { %v6244_v63 = vpop.f32.mrf.mxu0  ;;  %v6308_v35 = vpop.f32.mrf.mxu1 }
 0xb51   :  { %v10240_v42 = vadd.f32 %v5307_v23, %v5114_v44  ;;  %v5099_v28 = vmul.f32 %v6243_v18, %v10209_v49  ;;  %v5308_v50 = vmul.f32 %v6307_v56, %v5249_v62 }
 0xb52   :  { %v6245_v25 = vpop.f32.mrf.mxu0  ;;  %v6309_v36 = vpop.f32.mrf.mxu1 }
 0xb53   :  { %v5115_v27 = vadd.f32 %v5099_v28, %v10176_v52  ;;  %v6246_v32 = vadd.f32 %v6245_v25, %v6244_v63  ;;  %v6310_v0 = vadd.f32 %v6309_v36, %v6308_v35 }
 0xb54   :  { %v6247_v15 = vpop.f32.mrf.mxu0  ;;  %v6311_v37 = vpop.f32.mrf.mxu1 }
 0xb55   :  { %v10244_v11 = vadd.f32 %v5308_v50, %v5115_v27  ;;  %v5100_v20 = vmul.f32 %v6246_v32, %v10202_v22  ;;  %v5309_v10 = vmul.f32 %v6310_v0, %v5253_v47 }
 0xb56   :  { %v6248_v29 = vpop.f32.mrf.mxu0  ;;  %v6312_v17 = vpop.f32.mrf.mxu1 }
 0xb57   :  { %v5116_v26 = vadd.f32 %v5100_v20, %v10180_v54  ;;  %v6249_v8 = vadd.f32 %v6248_v29, %v6247_v15  ;;  %v6313_v49 = vadd.f32 %v6312_v17, %v6311_v37 }
 0xb58   :  { %v6250_v53 = vpop.f32.mrf.mxu0  ;;  %v6314_v44 = vpop.f32.mrf.mxu1 }
 0xb59   :  { %v10248_v23 = vadd.f32 %v5309_v10, %v5116_v26  ;;  %v5101_v52 = vmul.f32 %v6249_v8, %v10159_v16  ;;  %v5310_v63 = vmul.f32 %v6313_v49, %v10214_v55 }
 0xb5a   :  { %v6251_v62 = vpop.f32.mrf.mxu0  ;;  %v6315_v18 = vpop.f32.mrf.mxu1 }
 0xb5b   :  { %v5117_v56 = vadd.f32 %v5101_v52, %v10182_v57  ;;  %v6252_v22 = vadd.f32 %v6251_v62, %v6250_v53  ;;  %v6316_v35 = vadd.f32 %v6315_v18, %v6314_v44 }
 0xb5c   :  { %v6253_v28 = vpop.f32.mrf.mxu0  ;;  %v6317_v25 = vpop.f32.mrf.mxu1 }
 0xb5d   :  { %v10253_v54 = vadd.f32 %v5310_v63, %v5117_v56  ;;  %v5102_v47 = vmul.f32 %v6252_v22, %v10132_v59  ;;  %v5311_v16 = vmul.f32 %v6316_v35, %v10152_v19 }
 0xb5e   :  { %v6254_v37 = vpop.f32.mrf.mxu0  ;;  %v6318_v36 = vpop.f32.mrf.mxu1 }
 0xb5f   :  { %v5118_v27 = vadd.f32 %v5102_v47, %v10186_v61  ;;  %v6255_v50 = vadd.f32 %v6254_v37, %v6253_v28  ;;  %v6319_v32 = vadd.f32 %v6318_v36, %v6317_v25 }
 0xb60   :  { %v6256_v0 = vpop.f32.mrf.mxu0  ;;  %v6320_v57 = vpop.f32.mrf.mxu1 }
 0xb61   :  { %v10258_v15 = vadd.f32 %v5311_v16, %v5118_v27  ;;  %v5103_v55 = vmul.f32 %v6255_v50, %v10137_v14  ;;  %v5312_v59 = vmul.f32 %v6319_v32, %v10155_v40 }
 0xb62   :  { %v6257_v20 = vpop.f32.mrf.mxu0  ;;  %v6321_v29 = vpop.f32.mrf.mxu1 }
 0xb63   :  { %v5119_v17 = vadd.f32 %v5103_v55, %v10191_v3  ;;  %v6258_v26 = vadd.f32 %v6257_v20, %v6256_v0  ;;  %v6322_v10 = vadd.f32 %v6321_v29, %v6320_v57 }
 0xb64   :  { %v6259_v8 = vpop.f32.mrf.mxu0  ;;  %v6323_v61 = vpop.f32.mrf.mxu1 }
 0xb65   :  { %v10263_v49 = vadd.f32 %v5312_v59, %v5119_v17  ;;  %v5104_v19 = vmul.f32 %v6258_v26, %v10108_v45  ;;  %v5313_v14 = vmul.f32 %v6322_v10, %v10127_v60 }
 0xb66   :  { %v6260_v53 = vpop.f32.mrf.mxu0  ;;  %v6324_v44 = vpop.f32.mrf.mxu1 }
 0xb67   :  { %v5120_v52 = vadd.f32 %v5104_v19, %v10194_v39  ;;  %v6261_v62 = vadd.f32 %v6260_v53, %v6259_v8  ;;  %v6325_v18 = vadd.f32 %v6324_v44, %v6323_v61 }
 0xb68   :  { %v6262_v56 = vpop.f32.mrf.mxu0  ;;  %v6326_v3 = vpop.f32.mrf.mxu1 }
 0xb69   :  { %v10268_v63 = vadd.f32 %v5313_v14, %v5120_v52  ;;  %v5105_v40 = vmul.f32 %v6261_v62, %v10196_v33  ;;  %v5314_v45 = vmul.f32 %v6325_v18, %v10224_v12 }
 0xb6a   :  { %v6263_v22 = vpop.f32.mrf.mxu0  ;;  %v6327_v35 = vpop.f32.mrf.mxu1 }
 0xb6b   :  { %v5121_v28 = vadd.f32 %v5105_v40, %v10199_v51  ;;  %v6264_v25 = vadd.f32 %v6263_v22, %v6262_v56  ;;  %v6328_v47 = vadd.f32 %v6327_v35, %v6326_v3 }
 0xb6c   :  { %v6265_v37 = vpop.f32.mrf.mxu0  ;;  %v6329_v39 = vpop.f32.mrf.mxu1 }
 0xb6d   :  { %v10273_v36 = vadd.f32 %v5314_v45, %v5121_v28  ;;  %v5106_v60 = vmul.f32 %v6264_v25, %v10189_v31  ;;  %v5315_v33 = vmul.f32 %v6328_v47, %v10217_v58 }
 0xb6e   :  { %v6266_v27 = vpop.f32.mrf.mxu0  ;;  %v6330_v16 = vpop.f32.mrf.mxu1 }
 0xb6f   :  { %v5122_v50 = vadd.f32 %v5106_v60, %v10204_v46  ;;  %v6267_v32 = vadd.f32 %v6266_v27, %v6265_v37  ;;  %v6331_v0 = vadd.f32 %v6330_v16, %v6329_v39 }
 0xb70   :  { %v6268_v57 = vpop.f32.mrf.mxu0  ;;  %v6332_v51 = vpop.f32.mrf.mxu1 }
 0xb71   :  { %v10278_v55 = vadd.f32 %v5315_v33, %v5122_v50  ;;  %v5107_v12 = vmul.f32 %v6267_v32, %v10076_v7  ;;  %v5316_v20 = vmul.f32 %v6331_v0, %v10102_v6 }
 0xb72   :  { %v6269_v29 = vpop.f32.mrf.mxu0  ;;  %v6333_v17 = vpop.f32.mrf.mxu1 }
 0xb73   :  { %v5123_v31 = vadd.f32 %v5107_v12, %v10207_v48  ;;  %v6270_v59 = vadd.f32 %v6269_v29, %v6268_v57  ;;  %v6334_v26 = vadd.f32 %v6333_v17, %v6332_v51  ;;  %v11131_v17 = vld [vmem:[#allocation57_spill] sm:$0xff] }
 0xb74   :  { %v6271_v10 = vpop.f32.mrf.mxu0  ;;  %v6335_v46 = vpop.f32.mrf.mxu1 }
 0xb75   :  { %v10283_v8 = vadd.f32 %v5316_v20, %v5123_v31  ;;  %v5108_v58 = vmul.f32 %v6270_v59, %v9986_v2  ;;  %v5317_v7 = vmul.f32 %v6334_v26, %v10042_v30  ;;  %v11132_v59 = vld [vmem:[#allocation23_spill] sm:$0xff] }
 0xb76   :  { %v6272_v61 = vpop.f32.mrf.mxu0  ;;  %v6336_v19 = vpop.f32.mrf.mxu1 }
 0xb77   :  { %v5124_v53 = vadd.f32 %v5108_v58, %v10212_v38  ;;  %v6273_v44 = vadd.f32 %v6272_v61, %v6271_v10  ;;  %v6337_v6 = vadd.f32 %v6336_v19, %v6335_v46 }
 0xb78   :  { %v6274_v52 = vpop.f32.mrf.mxu0  ;;  %v6338_v14 = vpop.f32.mrf.mxu1 }
 0xb79   :  { %v10288_v62 = vadd.f32 %v5317_v7, %v5124_v53  ;;  %v5109_v48 = vmul.f32 %v6273_v44, %v9992_v21  ;;  %v5318_v2 = vmul.f32 %v6337_v6, %v10056_v9  ;;  %v5454_v7 = vpop.permute.xlu1 %5453  ;;  %v11134_v6 = vld [vmem:[#allocation110_spill] sm:$0xff] }
 0xb7a   :  { %v6275_v18 = vpop.f32.mrf.mxu0  ;;  %v6339_v56 = vpop.f32.mrf.mxu1 }
 0xb7b   :  { %v5125_v3 = vadd.f32 %v5109_v48, %v10219_v13  ;;  %v6276_v40 = vadd.f32 %v6275_v18, %v6274_v52  ;;  %v6340_v22 = vadd.f32 %v6339_v56, %v6338_v14 }
 0xb7c   :  { %v6277_v35 = vpop.f32.mrf.mxu0  ;;  %v6341_v38 = vpop.f32.mrf.mxu1 }
 0xb7d   :  { %v10293_v28 = vadd.f32 %v5318_v2, %v5125_v3  ;;  %v5110_v30 = vmul.f32 %v6276_v40, %v9933_v5  ;;  %v5319_v21 = vmul.f32 %v6340_v22, %v9976_v43  ;;  %v11130_v43 = vld [vmem:[#allocation74_spill] sm:$0xff] }
 0xb7e   :  { %v6278_v45 = vpop.f32.mrf.mxu0  ;;  %v6342_v25 = vpop.f32.mrf.mxu1 }
 0xb7f   :  { %v5126_v47 = vadd.f32 %v5110_v30, %v10222_v34  ;;  %v6279_v37 = vadd.f32 %v6278_v45, %v6277_v35  ;;  %v6343_v39 = vadd.f32 %v6342_v25, %v6341_v38  ;;  %v5458_v30 = vpop.permute.xlu0 %5457 }
 0xb80   :  { %v6280_v60 = vpop.f32.mrf.mxu0  ;;  %v6344_v13 = vpop.f32.mrf.mxu1 }
 0xb81   :  { %v10298_v27 = vadd.f32 %v5319_v21, %v5126_v47  ;;  %v5111_v9 = vmul.f32 %v6279_v37, %v10184_v4  ;;  %v5320_v5 = vmul.f32 %v6343_v39, %v10135_v41  ;;  %v11133_v41 = vld [vmem:[#allocation124_spill] sm:$0xff] }
 0xb82   :  { %v6281_v16 = vpop.f32.mrf.mxu0  ;;  %v6345_v50 = vpop.f32.mrf.mxu1 }
 0xb83   :  { %v5127_v33 = vadd.f32 %v5111_v9, %v10227_v24  ;;  %v6282_v32 = vadd.f32 %v6281_v16, %v6280_v60  ;;  %v6346_v0 = vadd.f32 %v6345_v50, %v6344_v13  ;;  %v11135_v60 = vld [vmem:[#allocation55_spill] sm:$0xff] }
 0xb84   :  { %v6283_v57 = vpop.f32.mrf.mxu0  ;;  %v6347_v34 = vpop.f32.mrf.mxu1 }
 0xb85   :  { %v10303_v51 = vadd.f32 %v5320_v5, %v5127_v33  ;;  %v5112_v12 = vmul.f32 %v6282_v32, %v11130_v43  ;;  %v5321_v4 = vmul.f32 %v6346_v0, %v11132_v59  ;;  %v11136_v33 = vld [vmem:[#allocation25_spill] sm:$0xff]  ;;  %v11137_v43 = vld [vmem:[#allocation99_spill] sm:$0xff] }
 0xb86   :  { %v6284_v20 = vpop.f32.mrf.mxu0  ;;  %v6348_v29 = vpop.f32.mrf.mxu1 }
 0xb87   :  { %v5128_v31 = vadd.f32 %v5112_v12, %v11131_v17  ;;  %v6285_v26 = vadd.f32 %v6284_v20, %v6283_v57  ;;  %v6349_v10 = vadd.f32 %v6348_v29, %v6347_v34 }
 0xb88   :  { %v6366_v46 = vpop.f32.mrf.mxu0  ;;  %v6430_v24 = vpop.f32.mrf.mxu1 }
 0xb89   :  { %v10308_v58 = vadd.f32 %v5321_v4, %v5128_v31  ;;  %v5113_v61 = vmul.f32 %v6285_v26, %v11133_v41  ;;  %v5322_v52 = vmul.f32 %v6349_v10, %v11134_v6  ;;  %v11138_v31 = vld [vmem:[#allocation42_spill] sm:$0xff] }
 0xb8a   :  { %v6367_v19 = vpop.f32.mrf.mxu0  ;;  %v6431_v53 = vpop.f32.mrf.mxu1  ;;  %v11139_v41 = vld [vmem:[#allocation66_spill] sm:$0xff] }
 0xb8b   :  { %v5129_v44 = vadd.f32 %v5113_v61, %v10237_v1  ;;  %v6368_v14 = vadd.f32 %v6367_v19, %v6366_v46  ;;  %v10313_v48 = vadd.f32 %v6431_v53, %v6430_v24 }
 0xb8c   :  { %v6369_v18 = vpop.f32.mrf.mxu0  ;;  %v6433_v56 = vpop.f32.mrf.mxu1 }
 0xb8d   :  { %v10315_v3 = vadd.f32 %v5322_v52, %v5129_v44  ;;  %v5516_v2 = vmul.f32 %v6368_v14, %v5454_v7 }
 0xb8e   :  { %v6370_v40 = vpop.f32.mrf.mxu0  ;;  %v6434_v22 = vpop.f32.mrf.mxu1 }
 0xb8f   :  { %v10318_v35 = vadd.f32 %v5516_v2, %v10240_v42  ;;  %v6371_v38 = vadd.f32 %v6370_v40, %v6369_v18  ;;  %v11141_v2 = vld [vmem:[#allocation105_spill] sm:$0xff] }
 0xb90   :  { %v6372_v45 = vpop.f32.mrf.mxu0 }
 0xb91   :  { %v5517_v25 = vmul.f32 %v6371_v38, %v5458_v30  ;;  %v11142_v30 = vld [vmem:[#allocation45_spill] sm:$0xff] }
 0xb92   :  { %v6373_v1 = vpop.f32.mrf.mxu0 }
 0xb93   :  { %v10321_v47 = vadd.f32 %v5517_v25, %v10244_v11  ;;  %v6374_v21 = vadd.f32 %v6373_v1, %v6372_v45 }
 0xb94   :  { %v6375_v37 = vpop.f32.mrf.mxu0 }
 0xb95   :  { %v5548_v39 = vpack.c.bf16 %v10321_v47, %v10318_v35  ;;  %v5518_v13 = vmul.f32 %v6374_v21, %v11135_v60  ;;  %v5661_v35 = vld [vmem:[%s5756_s23 + $0x8] sm:$0xff]  ;;  %v66_v47 = vstv %s5757_s27 }
 0xb96   :  { %v6376_v9 = vpop.f32.mrf.mxu0  ;;  %67 = vst [vmem:[#allocation2] sm:$0x1] %v66_v47 }
 0xb97   :  { %v10327_v16 = vadd.f32 %v5518_v13, %v10248_v23  ;;  %v6377_v42 = vadd.f32 %v6376_v9, %v6375_v37 }
 0xb98   :  { %v6378_v50 = vpop.f32.mrf.mxu0 }
 0xb99   :  { %v5519_v5 = vmul.f32 %v6377_v42, %v11136_v33  ;;  %v11144_v33 = vld [vmem:[#allocation72_spill] sm:$0xff] }
 0xb9a   :  { %v6379_v32 = vpop.f32.mrf.mxu0 }
 0xb9b   :  { %v10331_v0 = vadd.f32 %v5519_v5, %v10253_v54  ;;  %v6380_v11 = vadd.f32 %v6379_v32, %v6378_v50 }
 0xb9c   :  { %v6381_v57 = vpop.f32.mrf.mxu0 }
 0xb9d   :  { %v5549_v34 = vpack.c.bf16 %v10331_v0, %v10327_v16  ;;  %v5520_v12 = vmul.f32 %v6380_v11, %v11137_v43  ;;  %v5660_v16 = vld [vmem:[%s5756_s23] sm:$0xff] }
 0xb9e   :  { %v6382_v20 = vpop.f32.mrf.mxu0 }
 0xb9f   :  { %v10337_v29 = vadd.f32 %v5520_v12, %v10258_v15  ;;  %v6383_v23 = vadd.f32 %v6382_v20, %v6381_v57  ;;  %v11140_v15 = vld [vmem:[#allocation108_spill] sm:$0xff] }
 0xba0   :  { %v6384_v17 = vpop.f32.mrf.mxu0 }
 0xba1   :  { %v5521_v59 = vmul.f32 %v6383_v23, %v11138_v31  ;;  %v11146_v31 = vld [vmem:[#allocation90_spill] sm:$0xff] }
 0xba2   :  { %v6385_v4 = vpop.f32.mrf.mxu0 }
 0xba3   :  { %v10341_v26 = vadd.f32 %v5521_v59, %v10263_v49  ;;  %v6386_v54 = vadd.f32 %v6385_v4, %v6384_v17 }
 0xba4   :  { %v6387_v10 = vpop.f32.mrf.mxu0 }
 0xba5   :  { %v5550_v46 = vpack.c.bf16 %v10341_v26, %v10337_v29  ;;  %v5522_v61 = vmul.f32 %v6386_v54, %v11139_v41 }
 0xba6   :  { %v6388_v24 = vpop.f32.mrf.mxu0 }
 0xba7   :  { %v6389_v19 = vadd.f32 %v6388_v24, %v6387_v10  ;;  %v5538_v6 = vadd.f32 %v5522_v61, %v10268_v63 }
 0xba8   :  { %v6390_v53 = vpop.f32.mrf.mxu0 }
 0xba9   :  { %v5523_v7 = vmul.f32 %v6389_v19, %v11140_v15 }
 0xbaa   :  { %v6391_v44 = vpop.f32.mrf.mxu0 }
 0xbab   :  { %v5539_v52 = vadd.f32 %v5523_v7, %v10273_v36  ;;  %v6392_v14 = vadd.f32 %v6391_v44, %v6390_v53  ;;  %v11143_v36 = vld [vmem:[#allocation119_spill] sm:$0xff]  ;;  %v11148_v53 = vld [vmem:[#allocation113_spill] sm:$0xff] }
 0xbac   :  { %v6393_v49 = vpop.f32.mrf.mxu0 }
 0xbad   :  { %v5551_v18 = vpack.c.bf16 %v5539_v52, %v5538_v6  ;;  %v5524_v40 = vmul.f32 %v6392_v14, %v11141_v2  ;;  %v11149_v52 = vmov 0.0  }
 0xbae   :  { %v6394_v56 = vpop.f32.mrf.mxu0 }
 0xbaf   :  { %v6395_v22 = vadd.f32 %v6394_v56, %v6393_v49  ;;  %v5540_v1 = vadd.f32 %v5524_v40, %v10278_v55 }
 0xbb0   :  { %v6396_v38 = vpop.f32.mrf.mxu0 }
 0xbb1   :  { %v5525_v45 = vmul.f32 %v6395_v22, %v11142_v30 }
 0xbb2   :  { %v6397_v25 = vpop.f32.mrf.mxu0 }
 0xbb3   :  { %v5541_v21 = vadd.f32 %v5525_v45, %v10283_v8  ;;  %v6398_v37 = vadd.f32 %v6397_v25, %v6396_v38  ;;  %v11145_v8 = vld [vmem:[#allocation40_spill] sm:$0xff]  ;;  %v5952_v38 = vld [vmem:[#allocation2] ss:$0 sm:$0xff] }
 0xbb4   :  { %v6399_v60 = vpop.f32.mrf.mxu0 }
 0xbb5   :  { %v5552_v63 = vpack.c.bf16 %v5541_v21, %v5540_v1  ;;  %v5526_v9 = vmul.f32 %v6398_v37, %v11143_v36 }
 0xbb6   :  { %v6400_v13 = vpop.f32.mrf.mxu0 }
 0xbb7   :  { %v6401_v42 = vadd.f32 %v6400_v13, %v6399_v60  ;;  %v5542_v11 = vadd.f32 %v5526_v9, %v10288_v62 }
 0xbb8   :  { %v6402_v50 = vpop.f32.mrf.mxu0 }
 0xbb9   :  { %v5527_v5 = vmul.f32 %v6401_v42, %v11144_v33 }
 0xbba   :  { %v6403_v32 = vpop.f32.mrf.mxu0 }
 0xbbb   :  { %v5543_v57 = vadd.f32 %v5527_v5, %v10293_v28  ;;  %v6404_v43 = vadd.f32 %v6403_v32, %v6402_v50  ;;  %v11147_v28 = vld [vmem:[#allocation130_spill] sm:$0xff] }
 0xbbc   :  { %v6405_v12 = vpop.f32.mrf.mxu0 }
 0xbbd   :  { %v5553_v55 = vpack.c.bf16 %v5543_v57, %v5542_v11  ;;  %v5528_v29 = vmul.f32 %v6404_v43, %v11145_v8 }
 0xbbe   :  { %v6406_v20 = vpop.f32.mrf.mxu0 }
 0xbbf   :  { %v6407_v23 = vadd.f32 %v6406_v20, %v6405_v12  ;;  %v5544_v26 = vadd.f32 %v5528_v29, %v10298_v27  ;;  %v11150_v27 = vmov 1.0|1.0  }
 0xbc0   :  { %v6408_v17 = vpop.f32.mrf.mxu0 }
 0xbc1   :  { %v5529_v59 = vmul.f32 %v6407_v23, %v11146_v31 }
 0xbc2   :  { %v6409_v4 = vpop.f32.mrf.mxu0 }
 0xbc3   :  { %v5545_v54 = vadd.f32 %v5529_v59, %v10303_v51  ;;  %v6410_v10 = vadd.f32 %v6409_v4, %v6408_v17 }
 0xbc4   :  { %v6411_v24 = vpop.f32.mrf.mxu0 }
 0xbc5   :  { %v5554_v62 = vpack.c.bf16 %v5545_v54, %v5544_v26  ;;  %v5530_v61 = vmul.f32 %v6410_v10, %v11147_v28 }
 0xbc6   :  { %v6412_v41 = vpop.f32.mrf.mxu0 }
 0xbc7   :  { %v6413_v19 = vadd.f32 %v6412_v41, %v6411_v24  ;;  %v5546_v7 = vadd.f32 %v5530_v61, %v10308_v58  ;;  %v5662_v58 = vld [vmem:[%s5756_s23 + $0x10] sm:$0xff] }
 0xbc9   :  { %v5531_v15 = vmul.f32 %v6413_v19, %v11148_v53 }
 0xbcb   :  { %v5547_v44 = vadd.f32 %v5531_v15, %v10315_v3  ;;  %v5663_v3 = vld [vmem:[%s5756_s23 + $0x18] sm:$0xff] }
 0xbcc   :  { %v5666_v0 = vpack.c.bf16 %v5663_v3, %v5662_v58 }
 0xbcd   :  { %v5555_v6 = vpack.c.bf16 %v5547_v44, %v5546_v7 }
 0xbce   :  { %6755 = vmatpush3.bf16.msra.mxu1 %v5666_v0 }
 0xbcf   :  { %6735 = vmatpush3.bf16.msra.mxu0 %v5555_v6  ;;  %6756 = vmatprep.subr.bf16.mxu1 %v11149_v52 }
 0xbd0   :  { %6736 = vmatprep.subr.bf16.mxu0 %v11149_v52 }
 0xbd3   :  { %6737 = vmatpush3.bf16.msra.mxu0 %v5554_v62 }
 0xbd4   :  { %6738 = vmatprep.subr.bf16.mxu0 %v11149_v52 }
 0xbd7   :  { %6739 = vmatpush3.bf16.msra.mxu0 %v5553_v55 }
 0xbd8   :  { %6740 = vmatprep.subr.bf16.mxu0 %v11149_v52 }
 0xbdb   :  { %6741 = vmatpush3.bf16.msra.mxu0 %v5552_v63 }
 0xbdc   :  { %6742 = vmatprep.subr.bf16.mxu0 %v11149_v52 }
 0xbdf   :  { %6743 = vmatpush3.bf16.msra.mxu0 %v5551_v18 }
 0xbe0   :  { %6744 = vmatprep.subr.bf16.mxu0 %v11149_v52 }
 0xbe3   :  { %6745 = vmatpush3.bf16.msra.mxu0 %v5550_v46 }
 0xbe4   :  { %6746 = vmatprep.subr.bf16.mxu0 %v11149_v52 }
 0xbe7   :  { %6747 = vmatpush3.bf16.msra.mxu0 %v5549_v34  ;;  %v5951_v34 = vld [vmem:[%s5755_s1] ss:$0 sm:$0xff] }
 0xbe8   :  { %6748 = vmatprep.subr.bf16.mxu0 %v11149_v52 }
 0xbeb   :  { %6749 = vmatpush3.bf16.msra.mxu0 %v5548_v39  ;;  %v5665_v39 = vpack.c.bf16 %v5661_v35, %v5660_v16 }
 0xbed   :  { %6757 = vmatpush3.bf16.msra.mxu1 %v5665_v39 }
 0xbee   :  { %6751 = vmatmul.mubr.msk.bf16.vlgmr.msra.gmra.mxu0 %vm8444_vm8, %v11150_v27 }
 0xcae   :  { %v5646_v46 = vpop.f32.mrf.mxu0 }
 0xcaf   :  { %v5647_v14 = vadd.f32 %v10313_v48, %v5646_v46 }
 0xcb0   :  { %v6752_v49 = vpop.f32.mrf.mxu0 }
 0xcb1   :  { %v5658_v18 = vadd.f32 %v5951_v34, %v5647_v14 }
 0xcb2   :  { %v5649_v56 = vpop.f32.mrf.mxu0 }
 0xcb3   :  { %v5659_v2 = vmax.f32 %v5658_v18, 0.0 }
 0xcb4   :  { %v6753_v40 = vpop.f32.mrf.mxu0 }
 0xcb5   :  { %v5664_v22 = vpack.c.bf16 %v5659_v2, %v5659_v2 }
 0xcb7   :  { %6759 = vmatmul.mubr.msk.bf16.vlgmr.msra.gmra.mxu1 %vm2990_vm10, %v5664_v22 }
 0xd77   :  { %v5711_v30 = vpop.f32.mrf.mxu1 }
 0xd78   :  { %v5712_v45 = vadd.f32 %v5952_v38, %v5711_v30 }
 0xd79   :  { %v6760_v25 = vpop.f32.mrf.mxu1 }
 0xd7a   :  { %v5954_v1 = vmul.f32 -1.442695, %v5712_v45 }
 0xd7b   :  { %v5714_v21 = vpop.f32.mrf.mxu1 }
 0xd7c   :  { %6964 = vpow2.f32 %v5954_v1 }
 0xd7d   :  { %v6761_v37 = vpop.f32.mrf.mxu1 }
 0xd89   :  { %v6965_v60 = vpop.eup %6964 }
 0xd8a   :  { %v5720_v63 = vadd.f32 1.0, %v6965_v60 }
 0xd8c   :  { %6966 = vrcp.f32 %v5720_v63 }
 0xd99   :  { %v6967_v48 = vpop.eup %6966 }
 0xd9a   :  { %5724 = vst.msk [vmem:[%s5758_s5] sm:$0xff] %vm5723_vm0, %v6967_v48 }

</bundles_post_ra>
